<compile_context>
chip_gen: v6e
topology: v6e:2x2x1
jax: 0.10.0
libtpu: 0.0.40
codegen_flags: <defaults>
</compile_context>

<pallas_src>
import functools
import math

import jax
import jax.numpy as jnp
from jax.experimental import pallas as pl
from jax.experimental.pallas import tpu as pltpu

# ---------------- module "config" (globals / args of the PyTorch module) -----
TEXT_DIM = 32
VISUAL_DIM = 16
ACOUSTIC_DIM = 16
HIDDEN_SIZE = TEXT_DIM        # LayerNorm(hidden_size) applied to TEXT_DIM tensors
BETA_SHIFT = 1.0
NUM_HEADS = 4                 # args.num_heads
NLEVELS = 2                   # args.nlevels
GRU_LAYERS = 6
GRU_HIDDEN = 16               # == VISUAL_DIM == ACOUSTIC_DIM (required for fusion)
NUM_STREAMS = 4
LN_EPS = 1e-5
MAG_EPS = 1e-6

VMEM_SPEC = pl.BlockSpec(memory_space=pltpu.MemorySpace.VMEM)


# ============================= Pallas kernels =================================
def _gru4_kernel(x0_ref, wih0_ref, wihr_ref, whh_ref, gxb_ref, bhn_ref, o_ref,
                 *, num_layers, hidden_total, batch):
    """Four 6-layer GRU stacks fused via block-diagonal (stream-packed) weights.

    x0_ref:   (T*B, Din_total)   layer-0 inputs, time-major rows, streams concat'd
    wih0_ref: (Din_total, 3*HT)  layer-0 block-diag input weights (gate-major cols)
    wihr_ref: (L-1, HT, 3*HT)    layers 1..5 block-diag input weights
    whh_ref:  (L,   HT, 3*HT)    block-diag hidden weights
    gxb_ref:  (L, 1, 3*HT)       b_ih(all gates) + b_hh(r,z) folded (loop-invariant)
    bhn_ref:  (L, 1, HT)         b_hh(n) -- must stay inside r*(...)
    o_ref:    (B, T*HT)          last layer hidden states, single lane-dense store
    """
    TB = x0_ref.shape[0]
    B = batch
    T = TB // B
    HT = hidden_total

    cur = x0_ref[...]                                        # (T*B, Din)
    hs = []
    for l in range(num_layers):
        w_ih = wih0_ref[...] if l == 0 else wihr_ref[l - 1]
        # Hoisted input projection: one matmul per layer, biases pre-folded.
        gx = jnp.dot(cur, w_ih, preferred_element_type=jnp.float32) + gxb_ref[l]
        w_hh = whh_ref[l]                                    # (HT, 3HT)
        b_hn = jnp.broadcast_to(bhn_ref[l], (B, HT))         # broadcast once per layer

        h = jnp.zeros((B, HT), jnp.float32)
        hs = []
        for t in range(T):                                   # static unroll (T small)
            gxt = gx[t * B:(t + 1) * B, :]                   # (B, 3HT)
            gh = jnp.dot(h, w_hh, preferred_element_type=jnp.float32)
            r = jax.nn.sigmoid(gxt[:, :HT] + gh[:, :HT])
            z = jax.nn.sigmoid(gxt[:, HT:2 * HT] + gh[:, HT:2 * HT])
            n = jnp.tanh(gxt[:, 2 * HT:] + r * (gh[:, 2 * HT:] + b_hn))
            h = (1.0 - z) * n + z * h
            hs.append(h)
        if l + 1 < num_layers:
            cur = jnp.concatenate(hs, axis=0)                # (T*B, HT) next-layer input
    # Single dense store: (B, T*HT) == (2, 512) lanes.
    o_ref[...] = jnp.concatenate(hs, axis=-1).astype(o_ref.dtype)


def _encoder_kernel(xq_ref, xkv_ref, pe_ref,
                    ln0g_ref, ln0b_ref, wq_ref, bq_ref, wk_ref, bk_ref,
                    wv_ref, bv_ref, wo_ref, bo_ref, ln1g_ref, ln1b_ref,
                    w1_ref, b1_ref, w2_ref, b2_ref, lnfg_ref, lnfb_ref,
                    o_ref, *, num_heads, num_layers, embed_scale):
    """One cross-modal TransformerEncoder stream (grid axis = 4 streams, parallel).

    All per-stream refs carry a leading block dim of 1.
    wq/wk/wv/wo are merged full (D, D) projections (per-head slabs concatenated).
    """
    _, B, T, D = xq_ref.shape
    M = B * T
    hd = D // num_heads
    qk_scale = hd ** -0.5

    def ln(v, g, b):
        mu = jnp.mean(v, axis=-1, keepdims=True)
        var = jnp.mean((v - mu) ** 2, axis=-1, keepdims=True)
        return (v - mu) * jax.lax.rsqrt(var + LN_EPS) * g + b

    pe = pe_ref[...]                                         # (T, D)
    x = (embed_scale * xq_ref[0].astype(jnp.float32) + pe).reshape(M, D)
    xkv = (embed_scale * xkv_ref[0].astype(jnp.float32) + pe).reshape(M, D)

    for l in range(num_layers):
        g0, b0 = ln0g_ref[0, l], ln0b_ref[0, l]
        yq = ln(x, g0, b0)
        ykv = ln(xkv, g0, b0)                                # key == value stream

        # Merged Q/K/V projections: one (M,D)x(D,D) matmul each.
        q = (jnp.dot(yq, wq_ref[0, l], preferred_element_type=jnp.float32)
             + bq_ref[0, l]) * qk_scale
        k = jnp.dot(ykv, wk_ref[0, l], preferred_element_type=jnp.float32) + bk_ref[0, l]
        v = jnp.dot(ykv, wv_ref[0, l], preferred_element_type=jnp.float32) + bv_ref[0, l]
        q3 = q.reshape(B, T, D)
        k3 = k.reshape(B, T, D)
        v3 = v.reshape(B, T, D)

        heads = []
        for h in range(num_heads):                           # scores are per-head by nature
            sl = slice(h * hd, (h + 1) * hd)
            s = jnp.einsum('bqd,bkd->bqk', q3[:, :, sl], k3[:, :, sl],
                           preferred_element_type=jnp.float32)
            s = s - jnp.max(s, axis=-1, keepdims=True)
            p = jnp.exp(s)
            p = p / jnp.sum(p, axis=-1, keepdims=True)       # exact softmax (parity)
            heads.append(jnp.einsum('bqk,bkd->bqd', p, v3[:, :, sl],
                                    preferred_element_type=jnp.float32))
        oh = jnp.concatenate(heads, axis=-1).reshape(M, D)
        # Merged output projection: one (M,D)x(D,D) matmul (no serial per-head adds).
        attn = jnp.dot(oh, wo_ref[0, l], preferred_element_type=jnp.float32) + bo_ref[0, l]
        x = x + attn                                         # residual, dropout = identity

        y = ln(x, ln1g_ref[0, l], ln1b_ref[0, l])
        y = jnp.maximum(jnp.dot(y, w1_ref[0, l], preferred_element_type=jnp.float32)
                        + b1_ref[0, l], 0.0)
        y = jnp.dot(y, w2_ref[0, l], preferred_element_type=jnp.float32) + b2_ref[0, l]
        x = x + y

    xo = ln(x, lnfg_ref[0], lnfb_ref[0])
    o_ref[...] = xo.reshape(1, B, T, D).astype(o_ref.dtype)


def _mag_tail_kernel(enc_ref, txt_ref, vis_ref, ac_ref,
                     whv_v_ref, whv_t_ref, bhv_ref, wha_a_ref, wha_t_ref, bha_ref,
                     wv_ref, bv_ref, wa_ref, ba_ref, g_ref, b_ref, o_ref,
                     *, beta_shift):
    """Fused MAG tail: stream averaging, W_hv/W_ha (concat -> split-weight matmuls),
    W_v/W_a, gating, shift, LayerNorm (dropout = identity, eval)."""
    _, B, T, D = enc_ref.shape
    M = B * T
    e = enc_ref[...].astype(jnp.float32)                     # (4, B, T, D)
    new_v = (0.5 * (e[0] + e[1])).reshape(M, D)              # v_with_l, v_with_a
    new_a = (0.5 * (e[2] + e[3])).reshape(M, D)              # a_with_v, a_with_l
    txt = txt_ref[...]

    weight_v = jnp.maximum(
        jnp.dot(new_v, whv_v_ref[...], preferred_element_type=jnp.float32)
        + jnp.dot(txt, whv_t_ref[...], preferred_element_type=jnp.float32)
        + bhv_ref[...], 0.0)
    weight_a = jnp.maximum(
        jnp.dot(new_a, wha_a_ref[...], preferred_element_type=jnp.float32)
        + jnp.dot(txt, wha_t_ref[...], preferred_element_type=jnp.float32)
        + bha_ref[...], 0.0)

    wv_vis = jnp.dot(vis_ref[...], wv_ref[...], preferred_element_type=jnp.float32) + bv_ref[...]
    wa_ac = jnp.dot(ac_ref[...], wa_ref[...], preferred_element_type=jnp.float32) + ba_ref[...]

    h_m = weight_v * wv_vis + weight_a * wa_ac
    em_norm = jnp.sqrt(jnp.sum(txt * txt, axis=-1, keepdims=True))
    hm_norm = jnp.sqrt(jnp.sum(h_m * h_m, axis=-1, keepdims=True))
    hm_norm = jnp.where(hm_norm == 0.0, jnp.ones_like(hm_norm), hm_norm)
    thresh = em_norm / (hm_norm + MAG_EPS) * beta_shift
    alpha = jnp.minimum(thresh, 1.0)
    y = alpha * h_m + txt

    mu = jnp.mean(y, axis=-1, keepdims=True)
    var = jnp.mean((y - mu) ** 2, axis=-1, keepdims=True)
    yn = (y - mu) * jax.lax.rsqrt(var + LN_EPS)
    o_ref[...] = (yn * g_ref[...] + b_ref[...]).astype(o_ref.dtype)


# ============================== wrappers ======================================
def gru4(x0_tb, gp, batch, seqlen):
    HT = NUM_STREAMS * GRU_HIDDEN
    return pl.pallas_call(
        functools.partial(_gru4_kernel, num_layers=GRU_LAYERS,
                          hidden_total=HT, batch=batch),
        out_shape=jax.ShapeDtypeStruct((batch, seqlen * HT), jnp.float32),
        in_specs=[VMEM_SPEC] * 6,
        out_specs=VMEM_SPEC,
    )(x0_tb, gp['w_ih0'], gp['w_ih_rest'], gp['w_hh'], gp['gx_b'], gp['b_hn'])


def sinusoidal_pos_emb(length, dim):
    half = dim // 2
    freq = jnp.exp(jnp.arange(half, dtype=jnp.float32) * (-math.log(10000.0) / (half - 1)))
    pos = jnp.arange(1, length + 1, dtype=jnp.float32)[:, None]   # positions start at 1 (non-pad)
    args = pos * freq[None, :]
    return jnp.concatenate([jnp.sin(args), jnp.cos(args)], axis=-1)   # (length, dim)


def encoder4(xq, xkv, p):
    """All four cross-modal encoders in one pallas_call, grid=(4,) over streams."""
    S, B, T, D = xq.shape
    L = p['w1'].shape[1]
    pe = sinusoidal_pos_emb(T, D)                           # shared by all 4 streams

    def sspec(arr):
        rest = arr.shape[1:]
        n = len(rest)
        return pl.BlockSpec((1,) + rest, lambda s, _n=n: (s,) + (0,) * _n)

    ordered = [p['ln0_g'], p['ln0_b'], p['wq'], p['bq'], p['wk'], p['bk'],
               p['wv'], p['bv'], p['wo'], p['bo'], p['ln1_g'], p['ln1_b'],
               p['w1'], p['b1'], p['w2'], p['b2'], p['lnf_g'], p['lnf_b']]
    in_specs = ([sspec(xq), sspec(xkv), pl.BlockSpec((T, D), lambda s: (0, 0))]
                + [sspec(a) for a in ordered])

    return pl.pallas_call(
        functools.partial(_encoder_kernel, num_heads=NUM_HEADS, num_layers=L,
                          embed_scale=math.sqrt(D)),
        grid=(S,),
        out_shape=jax.ShapeDtypeStruct((S, B, T, D), jnp.float32),
        in_specs=in_specs,
        out_specs=pl.BlockSpec((1, B, T, D), lambda s: (s, 0, 0, 0)),
        compiler_params=pltpu.CompilerParams(
            dimension_semantics=("parallel",)),             # v7x: split streams over 2 TCs
    )(xq, xkv, pe, *ordered)


def mag_tail(enc, txt, vis, ac, tp):
    S, B, T, D = enc.shape
    Dt = txt.shape[-1]
    M = B * T
    out = pl.pallas_call(
        functools.partial(_mag_tail_kernel, beta_shift=float(BETA_SHIFT)),
        out_shape=jax.ShapeDtypeStruct((M, Dt), jnp.float32),
        in_specs=[VMEM_SPEC] * 16,
        out_specs=VMEM_SPEC,
    )(enc, txt.reshape(M, Dt), vis.reshape(M, -1), ac.reshape(M, -1),
      tp['W_hv_v'], tp['W_hv_t'], tp['b_hv'],
      tp['W_ha_a'], tp['W_ha_t'], tp['b_ha'],
      tp['W_v'], tp['b_v'], tp['W_a'], tp['b_a'],
      tp['LN_g'], tp['LN_b'])
    return out.reshape(B, T, Dt)


# ============================ parameter init ==================================
def gru_params(key, input_dim, hidden, num_layers):
    lim = 1.0 / math.sqrt(hidden)
    k = jax.random.split(key, 5)
    u = lambda kk, shape: jax.random.uniform(kk, shape, jnp.float32, -lim, lim)
    return {
        'w_ih0': u(k[0], (input_dim, 3 * hidden)),           # cols = [r | z | n]
        'w_ih_rest': u(k[1], (num_layers - 1, hidden, 3 * hidden)),
        'w_hh': u(k[2], (num_layers, hidden, 3 * hidden)),
        'b_ih': u(k[3], (num_layers, 1, 3 * hidden)),
        'b_hh': u(k[4], (num_layers, 1, 3 * hidden)),
    }


def transformer_params(key, embed_dim, nlayers):
    D, L = embed_dim, nlayers
    lim = 1.0 / math.sqrt(D)
    limf = 1.0 / math.sqrt(4 * D)
    ks = jax.random.split(key, 12)
    u = lambda kk, shape, l: jax.random.uniform(kk, shape, jnp.float32, -l, l)
    return {
        # merged multi-head projections (per-head slabs concatenated along last dim)
        'wq': u(ks[0], (L, D, D), lim), 'bq': u(ks[1], (L, 1, D), lim),
        'wk': u(ks[2], (L, D, D), lim), 'bk': u(ks[3], (L, 1, D), lim),
        'wv': u(ks[4], (L, D, D), lim), 'bv': u(ks[5], (L, 1, D), lim),
        'wo': u(ks[6], (L, D, D), lim), 'bo': u(ks[7], (L, 1, D), lim),
        'w1': u(ks[8], (L, D, 4 * D), lim), 'b1': u(ks[9], (L, 1, 4 * D), lim),
        'w2': u(ks[10], (L, 4 * D, D), limf), 'b2': u(ks[11], (L, 1, D), limf),
        'ln0_g': jnp.ones((L, 1, D)), 'ln0_b': jnp.zeros((L, 1, D)),
        'ln1_g': jnp.ones((L, 1, D)), 'ln1_b': jnp.zeros((L, 1, D)),
        'lnf_g': jnp.ones((1, D)), 'lnf_b': jnp.zeros((1, D)),
    }


def init_mag_params(key):
    ks = jax.random.split(key, 20)
    lim_hv = 1.0 / math.sqrt(VISUAL_DIM + TEXT_DIM)
    lim_ha = 1.0 / math.sqrt(ACOUSTIC_DIM + TEXT_DIM)
    lim_v = 1.0 / math.sqrt(VISUAL_DIM)
    lim_a = 1.0 / math.sqrt(ACOUSTIC_DIM)
    u = lambda kk, shape, l: jax.random.uniform(kk, shape, jnp.float32, -l, l)
    return {
        # W_hv / W_ha stored pre-split at the concat boundary (modality rows, text rows)
        'W_hv_v': u(ks[0], (VISUAL_DIM, TEXT_DIM), lim_hv),
        'W_hv_t': u(ks[1], (TEXT_DIM, TEXT_DIM), lim_hv),
        'b_hv': u(ks[2], (1, TEXT_DIM), lim_hv),
        'W_ha_a': u(ks[3], (ACOUSTIC_DIM, TEXT_DIM), lim_ha),
        'W_ha_t': u(ks[4], (TEXT_DIM, TEXT_DIM), lim_ha),
        'b_ha': u(ks[5], (1, TEXT_DIM), lim_ha),
        'W_v': u(ks[6], (VISUAL_DIM, TEXT_DIM), lim_v),
        'b_v': u(ks[7], (1, TEXT_DIM), lim_v),
        'W_a': u(ks[8], (ACOUSTIC_DIM, TEXT_DIM), lim_a),
        'b_a': u(ks[9], (1, TEXT_DIM), lim_a),
        'LN_g': jnp.ones((1, HIDDEN_SIZE)), 'LN_b': jnp.zeros((1, HIDDEN_SIZE)),
        'l_v': gru_params(ks[10], TEXT_DIM, VISUAL_DIM, GRU_LAYERS),
        'a_v': gru_params(ks[11], ACOUSTIC_DIM, VISUAL_DIM, GRU_LAYERS),
        'v_a': gru_params(ks[12], VISUAL_DIM, ACOUSTIC_DIM, GRU_LAYERS),
        'l_a': gru_params(ks[13], TEXT_DIM, ACOUSTIC_DIM, GRU_LAYERS),
        'trans_v_with_l': transformer_params(ks[14], VISUAL_DIM, NLEVELS),
        'trans_v_with_a': transformer_params(ks[15], VISUAL_DIM, NLEVELS),
        'trans_a_with_v': transformer_params(ks[16], ACOUSTIC_DIM, NLEVELS),
        'trans_a_with_l': transformer_params(ks[17], ACOUSTIC_DIM, NLEVELS),
    }


# ------------- one-time packing of weights into fused-kernel layouts ---------
def _block_diag(mats):
    rows = sum(m.shape[0] for m in mats)
    cols = sum(m.shape[1] for m in mats)
    out = jnp.zeros((rows, cols), jnp.float32)
    r = c = 0
    for m in mats:
        out = out.at[r:r + m.shape[0], c:c + m.shape[1]].set(m)
        r += m.shape[0]
        c += m.shape[1]
    return out


def _pack_gru4(sp):
    """sp: list of 4 per-stream GRU param dicts (stream order l_v, a_v, v_a, l_a)."""
    H = GRU_HIDDEN
    L = GRU_LAYERS

    def gate_bd(ws):    # list over streams of (din_s, 3H) -> (sum_din, 3*S*H), gate-major
        return jnp.concatenate(
            [_block_diag([w[:, g * H:(g + 1) * H] for w in ws]) for g in range(3)], axis=1)

    def gate_cat(bs, gates):   # list over streams of (1, 3H) -> (1, len(gates)*S*H)
        return jnp.concatenate(
            [jnp.concatenate([b[:, g * H:(g + 1) * H] for b in bs], axis=1) for g in gates],
            axis=1)

    w_ih0 = gate_bd([p['w_ih0'] for p in sp])                                  # (96, 192)
    w_ih_rest = jnp.stack([gate_bd([p['w_ih_rest'][l] for p in sp])
                           for l in range(L - 1)])                             # (5, 64, 192)
    w_hh = jnp.stack([gate_bd([p['w_hh'][l] for p in sp]) for l in range(L)])  # (6, 64, 192)

    gx_b, b_hn = [], []
    for l in range(L):
        bih = [p['b_ih'][l] for p in sp]
        bhh = [p['b_hh'][l] for p in sp]
        rz = jnp.concatenate([gate_cat(bhh, (0, 1)),
                              jnp.zeros((1, NUM_STREAMS * H), jnp.float32)], axis=1)
        gx_b.append(gate_cat(bih, (0, 1, 2)) + rz)          # (1, 192): b_ih + b_hh(r,z)
        b_hn.append(gate_cat(bhh, (2,)))                    # (1, 64):  b_hh(n)
    return {'w_ih0': w_ih0, 'w_ih_rest': w_ih_rest, 'w_hh': w_hh,
            'gx_b': jnp.stack(gx_b), 'b_hn': jnp.stack(b_hn)}


def prepare_params(raw):
    """One-time repack (call once, outside the jitted forward)."""
    gru_streams = ('l_v', 'a_v', 'v_a', 'l_a')
    enc_streams = ('trans_v_with_l', 'trans_v_with_a', 'trans_a_with_v', 'trans_a_with_l')
    gru = _pack_gru4([raw[s] for s in gru_streams])
    enc = {k: jnp.stack([raw[s][k] for s in enc_streams]) for k in raw[enc_streams[0]]}
    tail = {k: raw[k] for k in ('W_hv_v', 'W_hv_t', 'b_hv', 'W_ha_a', 'W_ha_t', 'b_ha',
                                'W_v', 'b_v', 'W_a', 'b_a', 'LN_g', 'LN_b')}
    return {'gru': gru, 'enc': enc, 'tail': tail}


# ============================== MAG forward ===================================
def mag_forward(params, text_embedding, visual, acoustic):
    B, T, _ = text_embedding.shape

    # --- all four 6-layer GRU stacks: ONE fused, stream-interleaved kernel ----
    # stream order: l_v(text), a_v(acoustic), v_a(visual), l_a(text)
    x0 = jnp.concatenate([text_embedding, acoustic, visual, text_embedding], axis=-1)
    x0_tb = jnp.swapaxes(x0, 0, 1).reshape(T * B, -1)        # time-major rows
    gru_out = gru4(x0_tb, params['gru'], B, T)               # (B, T*64) lane-dense
    kv = gru_out.reshape(B, T, NUM_STREAMS, GRU_HIDDEN).transpose(2, 0, 1, 3)  # (4,B,T,16)

    # --- all four cross-modal encoders: ONE kernel, grid=(4,) parallel --------
    xq = jnp.stack([visual, visual, acoustic, acoustic])     # (4,B,T,16) query streams
    enc = encoder4(xq, kv, params['enc'])                    # (4,B,T,16): vl, va, av, al

    # --- fused MAG tail (averaging + gating + shift + LayerNorm) --------------
    return mag_tail(enc, text_embedding, visual, acoustic, params['tail'])


# ================================== main ======================================
if __name__ == "__main__":
    B, T = 2, 8
    key = jax.random.PRNGKey(0)
    kp, kt, kv, ka = jax.random.split(key, 4)
    raw_params = init_mag_params(kp)
    params = prepare_params(raw_params)                      # one-time weight repack
    text = jax.random.normal(kt, (B, T, TEXT_DIM), jnp.float32)
    visual = jax.random.normal(kv, (B, T, VISUAL_DIM), jnp.float32)
    acoustic = jax.random.normal(ka, (B, T, ACOUSTIC_DIM), jnp.float32)

    out = jax.jit(mag_forward)(params, text, visual, acoustic)
    out = jax.block_until_ready(out)
    assert out.shape == (B, T, TEXT_DIM), out.shape
    assert bool(jnp.all(jnp.isfinite(out)))
    print("KERNEL_OK")
</pallas_src>

<mosaic_0001>
module attributes {stable_mosaic.version = 11 : i64} {
  func.func @_gru4_kernel(%arg0: memref<16x96xf32, #tpu.memory_space<vmem>>, %arg1: memref<96x192xf32, #tpu.memory_space<vmem>>, %arg2: memref<5x64x192xf32, #tpu.memory_space<vmem>>, %arg3: memref<6x64x192xf32, #tpu.memory_space<vmem>>, %arg4: memref<6x1x192xf32, #tpu.memory_space<vmem>>, %arg5: memref<6x1x64xf32, #tpu.memory_space<vmem>>, %arg6: memref<2x512xf32, #tpu.memory_space<vmem>>) attributes {dimension_semantics = [], scalar_prefetch = 0 : i64, scratch_operands = 0 : i64, tpu.core_type = #tpu.core_type<tc>} {
    %c0 = arith.constant 0 : index
    %c0_0 = arith.constant 0 : index
    %0 = vector.load %arg0[%c0, %c0_0] : memref<16x96xf32, #tpu.memory_space<vmem>>, vector<16x96xf32>
    %c0_1 = arith.constant 0 : index
    %c0_2 = arith.constant 0 : index
    %1 = vector.load %arg1[%c0_1, %c0_2] : memref<96x192xf32, #tpu.memory_space<vmem>>, vector<96x192xf32>
    %cst = arith.constant dense<0.000000e+00> : vector<16x192xf32>
    %2 = tpu.matmul %0, %1, %cst {dimension_numbers = #tpu.dot_dimension_numbers<[1], [0], [0], [1], [0, 0, 1, 1], [], []>} : vector<16x96xf32>, vector<96x192xf32>, vector<16x192xf32> -> vector<16x192xf32>
    %c0_3 = arith.constant 0 : index
    %c0_4 = arith.constant 0 : index
    %c0_5 = arith.constant 0 : index
    %3 = vector.load %arg4[%c0_3, %c0_4, %c0_5] : memref<6x1x192xf32, #tpu.memory_space<vmem>>, vector<1x1x192xf32>
    %4 = vector.shape_cast %3 : vector<1x1x192xf32> to vector<1x192xf32>
    %5 = vector.broadcast %4 : vector<1x192xf32> to vector<16x192xf32>
    %6 = arith.addf %2, %5 : vector<16x192xf32>
    %c0_6 = arith.constant 0 : index
    %c0_7 = arith.constant 0 : index
    %c0_8 = arith.constant 0 : index
    %7 = vector.load %arg3[%c0_6, %c0_7, %c0_8] : memref<6x64x192xf32, #tpu.memory_space<vmem>>, vector<1x64x192xf32>
    %8 = vector.shape_cast %7 : vector<1x64x192xf32> to vector<64x192xf32>
    %c0_9 = arith.constant 0 : index
    %c0_10 = arith.constant 0 : index
    %c0_11 = arith.constant 0 : index
    %9 = vector.load %arg5[%c0_9, %c0_10, %c0_11] : memref<6x1x64xf32, #tpu.memory_space<vmem>>, vector<1x1x64xf32>
    %10 = vector.shape_cast %9 : vector<1x1x64xf32> to vector<1x64xf32>
    %11 = vector.shape_cast %10 : vector<1x64xf32> to vector<1x64xf32>
    %12 = vector.broadcast %11 : vector<1x64xf32> to vector<2x64xf32>
    %cst_12 = arith.constant 0.000000e+00 : f32
    %13 = vector.broadcast %cst_12 : f32 to vector<2x64xf32>
    %14 = vector.extract_strided_slice %6 {offsets = [0, 0], sizes = [2, 192], strides = [1, 1]} : vector<16x192xf32> to vector<2x192xf32>
    %cst_13 = arith.constant dense<0.000000e+00> : vector<2x192xf32>
    %15 = tpu.matmul %13, %8, %cst_13 {dimension_numbers = #tpu.dot_dimension_numbers<[1], [0], [0], [1], [0, 0, 1, 1], [], []>} : vector<2x64xf32>, vector<64x192xf32>, vector<2x192xf32> -> vector<2x192xf32>
    %16 = vector.extract_strided_slice %14 {offsets = [0, 0], sizes = [2, 64], strides = [1, 1]} : vector<2x192xf32> to vector<2x64xf32>
    %17 = vector.extract_strided_slice %15 {offsets = [0, 0], sizes = [2, 64], strides = [1, 1]} : vector<2x192xf32> to vector<2x64xf32>
    %18 = arith.addf %16, %17 : vector<2x64xf32>
    %19 = arith.negf %18 : vector<2x64xf32>
    %20 = math.exp %19 : vector<2x64xf32>
    %cst_14 = arith.constant 1.000000e+00 : f32
    %21 = vector.broadcast %cst_14 : f32 to vector<2x64xf32>
    %22 = arith.addf %21, %20 : vector<2x64xf32>
    %23 = arith.divf %21, %22 : vector<2x64xf32>
    %24 = vector.extract_strided_slice %14 {offsets = [0, 64], sizes = [2, 64], strides = [1, 1]} : vector<2x192xf32> to vector<2x64xf32>
    %25 = vector.extract_strided_slice %15 {offsets = [0, 64], sizes = [2, 64], strides = [1, 1]} : vector<2x192xf32> to vector<2x64xf32>
    %26 = arith.addf %24, %25 : vector<2x64xf32>
    %27 = arith.negf %26 : vector<2x64xf32>
    %28 = math.exp %27 : vector<2x64xf32>
    %cst_15 = arith.constant 1.000000e+00 : f32
    %29 = vector.broadcast %cst_15 : f32 to vector<2x64xf32>
    %30 = arith.addf %29, %28 : vector<2x64xf32>
    %31 = arith.divf %29, %30 : vector<2x64xf32>
    %32 = vector.extract_strided_slice %14 {offsets = [0, 128], sizes = [2, 64], strides = [1, 1]} : vector<2x192xf32> to vector<2x64xf32>
    %33 = vector.extract_strided_slice %15 {offsets = [0, 128], sizes = [2, 64], strides = [1, 1]} : vector<2x192xf32> to vector<2x64xf32>
    %34 = arith.addf %33, %12 : vector<2x64xf32>
    %35 = arith.mulf %23, %34 : vector<2x64xf32>
    %36 = arith.addf %32, %35 : vector<2x64xf32>
    %37 = math.tanh %36 : vector<2x64xf32>
    %cst_16 = arith.constant 1.000000e+00 : f32
    %38 = vector.broadcast %cst_16 : f32 to vector<2x64xf32>
    %39 = arith.subf %38, %31 : vector<2x64xf32>
    %40 = arith.mulf %39, %37 : vector<2x64xf32>
    %41 = arith.mulf %31, %13 : vector<2x64xf32>
    %42 = arith.addf %40, %41 : vector<2x64xf32>
    %43 = vector.extract_strided_slice %6 {offsets = [2, 0], sizes = [2, 192], strides = [1, 1]} : vector<16x192xf32> to vector<2x192xf32>
    %cst_17 = arith.constant dense<0.000000e+00> : vector<2x192xf32>
    %44 = tpu.matmul %42, %8, %cst_17 {dimension_numbers = #tpu.dot_dimension_numbers<[1], [0], [0], [1], [0, 0, 1, 1], [], []>} : vector<2x64xf32>, vector<64x192xf32>, vector<2x192xf32> -> vector<2x192xf32>
    %45 = vector.extract_strided_slice %43 {offsets = [0, 0], sizes = [2, 64], strides = [1, 1]} : vector<2x192xf32> to vector<2x64xf32>
    %46 = vector.extract_strided_slice %44 {offsets = [0, 0], sizes = [2, 64], strides = [1, 1]} : vector<2x192xf32> to vector<2x64xf32>
    %47 = arith.addf %45, %46 : vector<2x64xf32>
    %48 = arith.negf %47 : vector<2x64xf32>
    %49 = math.exp %48 : vector<2x64xf32>
    %cst_18 = arith.constant 1.000000e+00 : f32
    %50 = vector.broadcast %cst_18 : f32 to vector<2x64xf32>
    %51 = arith.addf %50, %49 : vector<2x64xf32>
    %52 = arith.divf %50, %51 : vector<2x64xf32>
    %53 = vector.extract_strided_slice %43 {offsets = [0, 64], sizes = [2, 64], strides = [1, 1]} : vector<2x192xf32> to vector<2x64xf32>
    %54 = vector.extract_strided_slice %44 {offsets = [0, 64], sizes = [2, 64], strides = [1, 1]} : vector<2x192xf32> to vector<2x64xf32>
    %55 = arith.addf %53, %54 : vector<2x64xf32>
    %56 = arith.negf %55 : vector<2x64xf32>
    %57 = math.exp %56 : vector<2x64xf32>
    %cst_19 = arith.constant 1.000000e+00 : f32
    %58 = vector.broadcast %cst_19 : f32 to vector<2x64xf32>
    %59 = arith.addf %58, %57 : vector<2x64xf32>
    %60 = arith.divf %58, %59 : vector<2x64xf32>
    %61 = vector.extract_strided_slice %43 {offsets = [0, 128], sizes = [2, 64], strides = [1, 1]} : vector<2x192xf32> to vector<2x64xf32>
    %62 = vector.extract_strided_slice %44 {offsets = [0, 128], sizes = [2, 64], strides = [1, 1]} : vector<2x192xf32> to vector<2x64xf32>
    %63 = arith.addf %62, %12 : vector<2x64xf32>
    %64 = arith.mulf %52, %63 : vector<2x64xf32>
    %65 = arith.addf %61, %64 : vector<2x64xf32>
    %66 = math.tanh %65 : vector<2x64xf32>
    %cst_20 = arith.constant 1.000000e+00 : f32
    %67 = vector.broadcast %cst_20 : f32 to vector<2x64xf32>
    %68 = arith.subf %67, %60 : vector<2x64xf32>
    %69 = arith.mulf %68, %66 : vector<2x64xf32>
    %70 = arith.mulf %60, %42 : vector<2x64xf32>
    %71 = arith.addf %69, %70 : vector<2x64xf32>
    %72 = vector.extract_strided_slice %6 {offsets = [4, 0], sizes = [2, 192], strides = [1, 1]} : vector<16x192xf32> to vector<2x192xf32>
    %cst_21 = arith.constant dense<0.000000e+00> : vector<2x192xf32>
    %73 = tpu.matmul %71, %8, %cst_21 {dimension_numbers = #tpu.dot_dimension_numbers<[1], [0], [0], [1], [0, 0, 1, 1], [], []>} : vector<2x64xf32>, vector<64x192xf32>, vector<2x192xf32> -> vector<2x192xf32>
    %74 = vector.extract_strided_slice %72 {offsets = [0, 0], sizes = [2, 64], strides = [1, 1]} : vector<2x192xf32> to vector<2x64xf32>
    %75 = vector.extract_strided_slice %73 {offsets = [0, 0], sizes = [2, 64], strides = [1, 1]} : vector<2x192xf32> to vector<2x64xf32>
    %76 = arith.addf %74, %75 : vector<2x64xf32>
    %77 = arith.negf %76 : vector<2x64xf32>
    %78 = math.exp %77 : vector<2x64xf32>
    %cst_22 = arith.constant 1.000000e+00 : f32
    %79 = vector.broadcast %cst_22 : f32 to vector<2x64xf32>
    %80 = arith.addf %79, %78 : vector<2x64xf32>
    %81 = arith.divf %79, %80 : vector<2x64xf32>
    %82 = vector.extract_strided_slice %72 {offsets = [0, 64], sizes = [2, 64], strides = [1, 1]} : vector<2x192xf32> to vector<2x64xf32>
    %83 = vector.extract_strided_slice %73 {offsets = [0, 64], sizes = [2, 64], strides = [1, 1]} : vector<2x192xf32> to vector<2x64xf32>
    %84 = arith.addf %82, %83 : vector<2x64xf32>
    %85 = arith.negf %84 : vector<2x64xf32>
    %86 = math.exp %85 : vector<2x64xf32>
    %cst_23 = arith.constant 1.000000e+00 : f32
    %87 = vector.broadcast %cst_23 : f32 to vector<2x64xf32>
    %88 = arith.addf %87, %86 : vector<2x64xf32>
    %89 = arith.divf %87, %88 : vector<2x64xf32>
    %90 = vector.extract_strided_slice %72 {offsets = [0, 128], sizes = [2, 64], strides = [1, 1]} : vector<2x192xf32> to vector<2x64xf32>
    %91 = vector.extract_strided_slice %73 {offsets = [0, 128], sizes = [2, 64], strides = [1, 1]} : vector<2x192xf32> to vector<2x64xf32>
    %92 = arith.addf %91, %12 : vector<2x64xf32>
    %93 = arith.mulf %81, %92 : vector<2x64xf32>
    %94 = arith.addf %90, %93 : vector<2x64xf32>
    %95 = math.tanh %94 : vector<2x64xf32>
    %cst_24 = arith.constant 1.000000e+00 : f32
    %96 = vector.broadcast %cst_24 : f32 to vector<2x64xf32>
    %97 = arith.subf %96, %89 : vector<2x64xf32>
    %98 = arith.mulf %97, %95 : vector<2x64xf32>
    %99 = arith.mulf %89, %71 : vector<2x64xf32>
    %100 = arith.addf %98, %99 : vector<2x64xf32>
    %101 = vector.extract_strided_slice %6 {offsets = [6, 0], sizes = [2, 192], strides = [1, 1]} : vector<16x192xf32> to vector<2x192xf32>
    %cst_25 = arith.constant dense<0.000000e+00> : vector<2x192xf32>
    %102 = tpu.matmul %100, %8, %cst_25 {dimension_numbers = #tpu.dot_dimension_numbers<[1], [0], [0], [1], [0, 0, 1, 1], [], []>} : vector<2x64xf32>, vector<64x192xf32>, vector<2x192xf32> -> vector<2x192xf32>
    %103 = vector.extract_strided_slice %101 {offsets = [0, 0], sizes = [2, 64], strides = [1, 1]} : vector<2x192xf32> to vector<2x64xf32>
    %104 = vector.extract_strided_slice %102 {offsets = [0, 0], sizes = [2, 64], strides = [1, 1]} : vector<2x192xf32> to vector<2x64xf32>
    %105 = arith.addf %103, %104 : vector<2x64xf32>
    %106 = arith.negf %105 : vector<2x64xf32>
    %107 = math.exp %106 : vector<2x64xf32>
    %cst_26 = arith.constant 1.000000e+00 : f32
    %108 = vector.broadcast %cst_26 : f32 to vector<2x64xf32>
    %109 = arith.addf %108, %107 : vector<2x64xf32>
    %110 = arith.divf %108, %109 : vector<2x64xf32>
    %111 = vector.extract_strided_slice %101 {offsets = [0, 64], sizes = [2, 64], strides = [1, 1]} : vector<2x192xf32> to vector<2x64xf32>
    %112 = vector.extract_strided_slice %102 {offsets = [0, 64], sizes = [2, 64], strides = [1, 1]} : vector<2x192xf32> to vector<2x64xf32>
    %113 = arith.addf %111, %112 : vector<2x64xf32>
    %114 = arith.negf %113 : vector<2x64xf32>
    %115 = math.exp %114 : vector<2x64xf32>
    %cst_27 = arith.constant 1.000000e+00 : f32
    %116 = vector.broadcast %cst_27 : f32 to vector<2x64xf32>
    %117 = arith.addf %116, %115 : vector<2x64xf32>
    %118 = arith.divf %116, %117 : vector<2x64xf32>
    %119 = vector.extract_strided_slice %101 {offsets = [0, 128], sizes = [2, 64], strides = [1, 1]} : vector<2x192xf32> to vector<2x64xf32>
    %120 = vector.extract_strided_slice %102 {offsets = [0, 128], sizes = [2, 64], strides = [1, 1]} : vector<2x192xf32> to vector<2x64xf32>
    %121 = arith.addf %120, %12 : vector<2x64xf32>
    %122 = arith.mulf %110, %121 : vector<2x64xf32>
    %123 = arith.addf %119, %122 : vector<2x64xf32>
    %124 = math.tanh %123 : vector<2x64xf32>
    %cst_28 = arith.constant 1.000000e+00 : f32
    %125 = vector.broadcast %cst_28 : f32 to vector<2x64xf32>
    %126 = arith.subf %125, %118 : vector<2x64xf32>
    %127 = arith.mulf %126, %124 : vector<2x64xf32>
    %128 = arith.mulf %118, %100 : vector<2x64xf32>
    %129 = arith.addf %127, %128 : vector<2x64xf32>
    %130 = vector.extract_strided_slice %6 {offsets = [8, 0], sizes = [2, 192], strides = [1, 1]} : vector<16x192xf32> to vector<2x192xf32>
    %cst_29 = arith.constant dense<0.000000e+00> : vector<2x192xf32>
    %131 = tpu.matmul %129, %8, %cst_29 {dimension_numbers = #tpu.dot_dimension_numbers<[1], [0], [0], [1], [0, 0, 1, 1], [], []>} : vector<2x64xf32>, vector<64x192xf32>, vector<2x192xf32> -> vector<2x192xf32>
    %132 = vector.extract_strided_slice %130 {offsets = [0, 0], sizes = [2, 64], strides = [1, 1]} : vector<2x192xf32> to vector<2x64xf32>
    %133 = vector.extract_strided_slice %131 {offsets = [0, 0], sizes = [2, 64], strides = [1, 1]} : vector<2x192xf32> to vector<2x64xf32>
    %134 = arith.addf %132, %133 : vector<2x64xf32>
    %135 = arith.negf %134 : vector<2x64xf32>
    %136 = math.exp %135 : vector<2x64xf32>
    %cst_30 = arith.constant 1.000000e+00 : f32
    %137 = vector.broadcast %cst_30 : f32 to vector<2x64xf32>
    %138 = arith.addf %137, %136 : vector<2x64xf32>
    %139 = arith.divf %137, %138 : vector<2x64xf32>
    %140 = vector.extract_strided_slice %130 {offsets = [0, 64], sizes = [2, 64], strides = [1, 1]} : vector<2x192xf32> to vector<2x64xf32>
    %141 = vector.extract_strided_slice %131 {offsets = [0, 64], sizes = [2, 64], strides = [1, 1]} : vector<2x192xf32> to vector<2x64xf32>
    %142 = arith.addf %140, %141 : vector<2x64xf32>
    %143 = arith.negf %142 : vector<2x64xf32>
    %144 = math.exp %143 : vector<2x64xf32>
    %cst_31 = arith.constant 1.000000e+00 : f32
    %145 = vector.broadcast %cst_31 : f32 to vector<2x64xf32>
    %146 = arith.addf %145, %144 : vector<2x64xf32>
    %147 = arith.divf %145, %146 : vector<2x64xf32>
    %148 = vector.extract_strided_slice %130 {offsets = [0, 128], sizes = [2, 64], strides = [1, 1]} : vector<2x192xf32> to vector<2x64xf32>
    %149 = vector.extract_strided_slice %131 {offsets = [0, 128], sizes = [2, 64], strides = [1, 1]} : vector<2x192xf32> to vector<2x64xf32>
    %150 = arith.addf %149, %12 : vector<2x64xf32>
    %151 = arith.mulf %139, %150 : vector<2x64xf32>
    %152 = arith.addf %148, %151 : vector<2x64xf32>
    %153 = math.tanh %152 : vector<2x64xf32>
    %cst_32 = arith.constant 1.000000e+00 : f32
    %154 = vector.broadcast %cst_32 : f32 to vector<2x64xf32>
    %155 = arith.subf %154, %147 : vector<2x64xf32>
    %156 = arith.mulf %155, %153 : vector<2x64xf32>
    %157 = arith.mulf %147, %129 : vector<2x64xf32>
    %158 = arith.addf %156, %157 : vector<2x64xf32>
    %159 = vector.extract_strided_slice %6 {offsets = [10, 0], sizes = [2, 192], strides = [1, 1]} : vector<16x192xf32> to vector<2x192xf32>
    %cst_33 = arith.constant dense<0.000000e+00> : vector<2x192xf32>
    %160 = tpu.matmul %158, %8, %cst_33 {dimension_numbers = #tpu.dot_dimension_numbers<[1], [0], [0], [1], [0, 0, 1, 1], [], []>} : vector<2x64xf32>, vector<64x192xf32>, vector<2x192xf32> -> vector<2x192xf32>
    %161 = vector.extract_strided_slice %159 {offsets = [0, 0], sizes = [2, 64], strides = [1, 1]} : vector<2x192xf32> to vector<2x64xf32>
    %162 = vector.extract_strided_slice %160 {offsets = [0, 0], sizes = [2, 64], strides = [1, 1]} : vector<2x192xf32> to vector<2x64xf32>
    %163 = arith.addf %161, %162 : vector<2x64xf32>
    %164 = arith.negf %163 : vector<2x64xf32>
    %165 = math.exp %164 : vector<2x64xf32>
    %cst_34 = arith.constant 1.000000e+00 : f32
    %166 = vector.broadcast %cst_34 : f32 to vector<2x64xf32>
    %167 = arith.addf %166, %165 : vector<2x64xf32>
    %168 = arith.divf %166, %167 : vector<2x64xf32>
    %169 = vector.extract_strided_slice %159 {offsets = [0, 64], sizes = [2, 64], strides = [1, 1]} : vector<2x192xf32> to vector<2x64xf32>
    %170 = vector.extract_strided_slice %160 {offsets = [0, 64], sizes = [2, 64], strides = [1, 1]} : vector<2x192xf32> to vector<2x64xf32>
    %171 = arith.addf %169, %170 : vector<2x64xf32>
    %172 = arith.negf %171 : vector<2x64xf32>
    %173 = math.exp %172 : vector<2x64xf32>
    %cst_35 = arith.constant 1.000000e+00 : f32
    %174 = vector.broadcast %cst_35 : f32 to vector<2x64xf32>
    %175 = arith.addf %174, %173 : vector<2x64xf32>
    %176 = arith.divf %174, %175 : vector<2x64xf32>
    %177 = vector.extract_strided_slice %159 {offsets = [0, 128], sizes = [2, 64], strides = [1, 1]} : vector<2x192xf32> to vector<2x64xf32>
    %178 = vector.extract_strided_slice %160 {offsets = [0, 128], sizes = [2, 64], strides = [1, 1]} : vector<2x192xf32> to vector<2x64xf32>
    %179 = arith.addf %178, %12 : vector<2x64xf32>
    %180 = arith.mulf %168, %179 : vector<2x64xf32>
    %181 = arith.addf %177, %180 : vector<2x64xf32>
    %182 = math.tanh %181 : vector<2x64xf32>
    %cst_36 = arith.constant 1.000000e+00 : f32
    %183 = vector.broadcast %cst_36 : f32 to vector<2x64xf32>
    %184 = arith.subf %183, %176 : vector<2x64xf32>
    %185 = arith.mulf %184, %182 : vector<2x64xf32>
    %186 = arith.mulf %176, %158 : vector<2x64xf32>
    %187 = arith.addf %185, %186 : vector<2x64xf32>
    %188 = vector.extract_strided_slice %6 {offsets = [12, 0], sizes = [2, 192], strides = [1, 1]} : vector<16x192xf32> to vector<2x192xf32>
    %cst_37 = arith.constant dense<0.000000e+00> : vector<2x192xf32>
    %189 = tpu.matmul %187, %8, %cst_37 {dimension_numbers = #tpu.dot_dimension_numbers<[1], [0], [0], [1], [0, 0, 1, 1], [], []>} : vector<2x64xf32>, vector<64x192xf32>, vector<2x192xf32> -> vector<2x192xf32>
    %190 = vector.extract_strided_slice %188 {offsets = [0, 0], sizes = [2, 64], strides = [1, 1]} : vector<2x192xf32> to vector<2x64xf32>
    %191 = vector.extract_strided_slice %189 {offsets = [0, 0], sizes = [2, 64], strides = [1, 1]} : vector<2x192xf32> to vector<2x64xf32>
    %192 = arith.addf %190, %191 : vector<2x64xf32>
    %193 = arith.negf %192 : vector<2x64xf32>
    %194 = math.exp %193 : vector<2x64xf32>
    %cst_38 = arith.constant 1.000000e+00 : f32
    %195 = vector.broadcast %cst_38 : f32 to vector<2x64xf32>
    %196 = arith.addf %195, %194 : vector<2x64xf32>
    %197 = arith.divf %195, %196 : vector<2x64xf32>
    %198 = vector.extract_strided_slice %188 {offsets = [0, 64], sizes = [2, 64], strides = [1, 1]} : vector<2x192xf32> to vector<2x64xf32>
    %199 = vector.extract_strided_slice %189 {offsets = [0, 64], sizes = [2, 64], strides = [1, 1]} : vector<2x192xf32> to vector<2x64xf32>
    %200 = arith.addf %198, %199 : vector<2x64xf32>
    %201 = arith.negf %200 : vector<2x64xf32>
    %202 = math.exp %201 : vector<2x64xf32>
    %cst_39 = arith.constant 1.000000e+00 : f32
    %203 = vector.broadcast %cst_39 : f32 to vector<2x64xf32>
    %204 = arith.addf %203, %202 : vector<2x64xf32>
    %205 = arith.divf %203, %204 : vector<2x64xf32>
    %206 = vector.extract_strided_slice %188 {offsets = [0, 128], sizes = [2, 64], strides = [1, 1]} : vector<2x192xf32> to vector<2x64xf32>
    %207 = vector.extract_strided_slice %189 {offsets = [0, 128], sizes = [2, 64], strides = [1, 1]} : vector<2x192xf32> to vector<2x64xf32>
    %208 = arith.addf %207, %12 : vector<2x64xf32>
    %209 = arith.mulf %197, %208 : vector<2x64xf32>
    %210 = arith.addf %206, %209 : vector<2x64xf32>
    %211 = math.tanh %210 : vector<2x64xf32>
    %cst_40 = arith.constant 1.000000e+00 : f32
    %212 = vector.broadcast %cst_40 : f32 to vector<2x64xf32>
    %213 = arith.subf %212, %205 : vector<2x64xf32>
    %214 = arith.mulf %213, %211 : vector<2x64xf32>
    %215 = arith.mulf %205, %187 : vector<2x64xf32>
    %216 = arith.addf %214, %215 : vector<2x64xf32>
    %217 = vector.extract_strided_slice %6 {offsets = [14, 0], sizes = [2, 192], strides = [1, 1]} : vector<16x192xf32> to vector<2x192xf32>
    %cst_41 = arith.constant dense<0.000000e+00> : vector<2x192xf32>
    %218 = tpu.matmul %216, %8, %cst_41 {dimension_numbers = #tpu.dot_dimension_numbers<[1], [0], [0], [1], [0, 0, 1, 1], [], []>} : vector<2x64xf32>, vector<64x192xf32>, vector<2x192xf32> -> vector<2x192xf32>
    %219 = vector.extract_strided_slice %217 {offsets = [0, 0], sizes = [2, 64], strides = [1, 1]} : vector<2x192xf32> to vector<2x64xf32>
    %220 = vector.extract_strided_slice %218 {offsets = [0, 0], sizes = [2, 64], strides = [1, 1]} : vector<2x192xf32> to vector<2x64xf32>
    %221 = arith.addf %219, %220 : vector<2x64xf32>
    %222 = arith.negf %221 : vector<2x64xf32>
    %223 = math.exp %222 : vector<2x64xf32>
    %cst_42 = arith.constant 1.000000e+00 : f32
    %224 = vector.broadcast %cst_42 : f32 to vector<2x64xf32>
    %225 = arith.addf %224, %223 : vector<2x64xf32>
    %226 = arith.divf %224, %225 : vector<2x64xf32>
    %227 = vector.extract_strided_slice %217 {offsets = [0, 64], sizes = [2, 64], strides = [1, 1]} : vector<2x192xf32> to vector<2x64xf32>
    %228 = vector.extract_strided_slice %218 {offsets = [0, 64], sizes = [2, 64], strides = [1, 1]} : vector<2x192xf32> to vector<2x64xf32>
    %229 = arith.addf %227, %228 : vector<2x64xf32>
    %230 = arith.negf %229 : vector<2x64xf32>
    %231 = math.exp %230 : vector<2x64xf32>
    %cst_43 = arith.constant 1.000000e+00 : f32
    %232 = vector.broadcast %cst_43 : f32 to vector<2x64xf32>
    %233 = arith.addf %232, %231 : vector<2x64xf32>
    %234 = arith.divf %232, %233 : vector<2x64xf32>
    %235 = vector.extract_strided_slice %217 {offsets = [0, 128], sizes = [2, 64], strides = [1, 1]} : vector<2x192xf32> to vector<2x64xf32>
    %236 = vector.extract_strided_slice %218 {offsets = [0, 128], sizes = [2, 64], strides = [1, 1]} : vector<2x192xf32> to vector<2x64xf32>
    %237 = arith.addf %236, %12 : vector<2x64xf32>
    %238 = arith.mulf %226, %237 : vector<2x64xf32>
    %239 = arith.addf %235, %238 : vector<2x64xf32>
    %240 = math.tanh %239 : vector<2x64xf32>
    %cst_44 = arith.constant 1.000000e+00 : f32
    %241 = vector.broadcast %cst_44 : f32 to vector<2x64xf32>
    %242 = arith.subf %241, %234 : vector<2x64xf32>
    %243 = arith.mulf %242, %240 : vector<2x64xf32>
    %244 = arith.mulf %234, %216 : vector<2x64xf32>
    %245 = arith.addf %243, %244 : vector<2x64xf32>
    %246 = tpu.concatenate %42, %71, %100, %129, %158, %187, %216, %245 in 0 : vector<2x64xf32>, vector<2x64xf32>, vector<2x64xf32>, vector<2x64xf32>, vector<2x64xf32>, vector<2x64xf32>, vector<2x64xf32>, vector<2x64xf32> -> vector<16x64xf32>
    %c0_45 = arith.constant 0 : index
    %c0_46 = arith.constant 0 : index
    %c0_47 = arith.constant 0 : index
    %247 = vector.load %arg2[%c0_45, %c0_46, %c0_47] : memref<5x64x192xf32, #tpu.memory_space<vmem>>, vector<1x64x192xf32>
    %248 = vector.shape_cast %247 : vector<1x64x192xf32> to vector<64x192xf32>
    %cst_48 = arith.constant dense<0.000000e+00> : vector<16x192xf32>
    %249 = tpu.matmul %246, %248, %cst_48 {dimension_numbers = #tpu.dot_dimension_numbers<[1], [0], [0], [1], [0, 0, 1, 1], [], []>} : vector<16x64xf32>, vector<64x192xf32>, vector<16x192xf32> -> vector<16x192xf32>
    %c1 = arith.constant 1 : index
    %c0_49 = arith.constant 0 : index
    %c0_50 = arith.constant 0 : index
    %250 = vector.load %arg4[%c1, %c0_49, %c0_50] : memref<6x1x192xf32, #tpu.memory_space<vmem>>, vector<1x1x192xf32>
    %251 = vector.shape_cast %250 : vector<1x1x192xf32> to vector<1x192xf32>
    %252 = vector.broadcast %251 : vector<1x192xf32> to vector<16x192xf32>
    %253 = arith.addf %249, %252 : vector<16x192xf32>
    %c1_51 = arith.constant 1 : index
    %c0_52 = arith.constant 0 : index
    %c0_53 = arith.constant 0 : index
    %254 = vector.load %arg3[%c1_51, %c0_52, %c0_53] : memref<6x64x192xf32, #tpu.memory_space<vmem>>, vector<1x64x192xf32>
    %255 = vector.shape_cast %254 : vector<1x64x192xf32> to vector<64x192xf32>
    %c1_54 = arith.constant 1 : index
    %c0_55 = arith.constant 0 : index
    %c0_56 = arith.constant 0 : index
    %256 = vector.load %arg5[%c1_54, %c0_55, %c0_56] : memref<6x1x64xf32, #tpu.memory_space<vmem>>, vector<1x1x64xf32>
    %257 = vector.shape_cast %256 : vector<1x1x64xf32> to vector<1x64xf32>
    %258 = vector.shape_cast %257 : vector<1x64xf32> to vector<1x64xf32>
    %259 = vector.broadcast %258 : vector<1x64xf32> to vector<2x64xf32>
    %cst_57 = arith.constant 0.000000e+00 : f32
    %260 = vector.broadcast %cst_57 : f32 to vector<2x64xf32>
    %261 = vector.extract_strided_slice %253 {offsets = [0, 0], sizes = [2, 192], strides = [1, 1]} : vector<16x192xf32> to vector<2x192xf32>
    %cst_58 = arith.constant dense<0.000000e+00> : vector<2x192xf32>
    %262 = tpu.matmul %260, %255, %cst_58 {dimension_numbers = #tpu.dot_dimension_numbers<[1], [0], [0], [1], [0, 0, 1, 1], [], []>} : vector<2x64xf32>, vector<64x192xf32>, vector<2x192xf32> -> vector<2x192xf32>
    %263 = vector.extract_strided_slice %261 {offsets = [0, 0], sizes = [2, 64], strides = [1, 1]} : vector<2x192xf32> to vector<2x64xf32>
    %264 = vector.extract_strided_slice %262 {offsets = [0, 0], sizes = [2, 64], strides = [1, 1]} : vector<2x192xf32> to vector<2x64xf32>
    %265 = arith.addf %263, %264 : vector<2x64xf32>
    %266 = arith.negf %265 : vector<2x64xf32>
    %267 = math.exp %266 : vector<2x64xf32>
    %cst_59 = arith.constant 1.000000e+00 : f32
    %268 = vector.broadcast %cst_59 : f32 to vector<2x64xf32>
    %269 = arith.addf %268, %267 : vector<2x64xf32>
    %270 = arith.divf %268, %269 : vector<2x64xf32>
    %271 = vector.extract_strided_slice %261 {offsets = [0, 64], sizes = [2, 64], strides = [1, 1]} : vector<2x192xf32> to vector<2x64xf32>
    %272 = vector.extract_strided_slice %262 {offsets = [0, 64], sizes = [2, 64], strides = [1, 1]} : vector<2x192xf32> to vector<2x64xf32>
    %273 = arith.addf %271, %272 : vector<2x64xf32>
    %274 = arith.negf %273 : vector<2x64xf32>
    %275 = math.exp %274 : vector<2x64xf32>
    %cst_60 = arith.constant 1.000000e+00 : f32
    %276 = vector.broadcast %cst_60 : f32 to vector<2x64xf32>
    %277 = arith.addf %276, %275 : vector<2x64xf32>
    %278 = arith.divf %276, %277 : vector<2x64xf32>
    %279 = vector.extract_strided_slice %261 {offsets = [0, 128], sizes = [2, 64], strides = [1, 1]} : vector<2x192xf32> to vector<2x64xf32>
    %280 = vector.extract_strided_slice %262 {offsets = [0, 128], sizes = [2, 64], strides = [1, 1]} : vector<2x192xf32> to vector<2x64xf32>
    %281 = arith.addf %280, %259 : vector<2x64xf32>
    %282 = arith.mulf %270, %281 : vector<2x64xf32>
    %283 = arith.addf %279, %282 : vector<2x64xf32>
    %284 = math.tanh %283 : vector<2x64xf32>
    %cst_61 = arith.constant 1.000000e+00 : f32
    %285 = vector.broadcast %cst_61 : f32 to vector<2x64xf32>
    %286 = arith.subf %285, %278 : vector<2x64xf32>
    %287 = arith.mulf %286, %284 : vector<2x64xf32>
    %288 = arith.mulf %278, %260 : vector<2x64xf32>
    %289 = arith.addf %287, %288 : vector<2x64xf32>
    %290 = vector.extract_strided_slice %253 {offsets = [2, 0], sizes = [2, 192], strides = [1, 1]} : vector<16x192xf32> to vector<2x192xf32>
    %cst_62 = arith.constant dense<0.000000e+00> : vector<2x192xf32>
    %291 = tpu.matmul %289, %255, %cst_62 {dimension_numbers = #tpu.dot_dimension_numbers<[1], [0], [0], [1], [0, 0, 1, 1], [], []>} : vector<2x64xf32>, vector<64x192xf32>, vector<2x192xf32> -> vector<2x192xf32>
    %292 = vector.extract_strided_slice %290 {offsets = [0, 0], sizes = [2, 64], strides = [1, 1]} : vector<2x192xf32> to vector<2x64xf32>
    %293 = vector.extract_strided_slice %291 {offsets = [0, 0], sizes = [2, 64], strides = [1, 1]} : vector<2x192xf32> to vector<2x64xf32>
    %294 = arith.addf %292, %293 : vector<2x64xf32>
    %295 = arith.negf %294 : vector<2x64xf32>
    %296 = math.exp %295 : vector<2x64xf32>
    %cst_63 = arith.constant 1.000000e+00 : f32
    %297 = vector.broadcast %cst_63 : f32 to vector<2x64xf32>
    %298 = arith.addf %297, %296 : vector<2x64xf32>
    %299 = arith.divf %297, %298 : vector<2x64xf32>
    %300 = vector.extract_strided_slice %290 {offsets = [0, 64], sizes = [2, 64], strides = [1, 1]} : vector<2x192xf32> to vector<2x64xf32>
    %301 = vector.extract_strided_slice %291 {offsets = [0, 64], sizes = [2, 64], strides = [1, 1]} : vector<2x192xf32> to vector<2x64xf32>
    %302 = arith.addf %300, %301 : vector<2x64xf32>
    %303 = arith.negf %302 : vector<2x64xf32>
    %304 = math.exp %303 : vector<2x64xf32>
    %cst_64 = arith.constant 1.000000e+00 : f32
    %305 = vector.broadcast %cst_64 : f32 to vector<2x64xf32>
    %306 = arith.addf %305, %304 : vector<2x64xf32>
    %307 = arith.divf %305, %306 : vector<2x64xf32>
    %308 = vector.extract_strided_slice %290 {offsets = [0, 128], sizes = [2, 64], strides = [1, 1]} : vector<2x192xf32> to vector<2x64xf32>
    %309 = vector.extract_strided_slice %291 {offsets = [0, 128], sizes = [2, 64], strides = [1, 1]} : vector<2x192xf32> to vector<2x64xf32>
    %310 = arith.addf %309, %259 : vector<2x64xf32>
    %311 = arith.mulf %299, %310 : vector<2x64xf32>
    %312 = arith.addf %308, %311 : vector<2x64xf32>
    %313 = math.tanh %312 : vector<2x64xf32>
    %cst_65 = arith.constant 1.000000e+00 : f32
    %314 = vector.broadcast %cst_65 : f32 to vector<2x64xf32>
    %315 = arith.subf %314, %307 : vector<2x64xf32>
    %316 = arith.mulf %315, %313 : vector<2x64xf32>
    %317 = arith.mulf %307, %289 : vector<2x64xf32>
    %318 = arith.addf %316, %317 : vector<2x64xf32>
    %319 = vector.extract_strided_slice %253 {offsets = [4, 0], sizes = [2, 192], strides = [1, 1]} : vector<16x192xf32> to vector<2x192xf32>
    %cst_66 = arith.constant dense<0.000000e+00> : vector<2x192xf32>
    %320 = tpu.matmul %318, %255, %cst_66 {dimension_numbers = #tpu.dot_dimension_numbers<[1], [0], [0], [1], [0, 0, 1, 1], [], []>} : vector<2x64xf32>, vector<64x192xf32>, vector<2x192xf32> -> vector<2x192xf32>
    %321 = vector.extract_strided_slice %319 {offsets = [0, 0], sizes = [2, 64], strides = [1, 1]} : vector<2x192xf32> to vector<2x64xf32>
    %322 = vector.extract_strided_slice %320 {offsets = [0, 0], sizes = [2, 64], strides = [1, 1]} : vector<2x192xf32> to vector<2x64xf32>
    %323 = arith.addf %321, %322 : vector<2x64xf32>
    %324 = arith.negf %323 : vector<2x64xf32>
    %325 = math.exp %324 : vector<2x64xf32>
    %cst_67 = arith.constant 1.000000e+00 : f32
    %326 = vector.broadcast %cst_67 : f32 to vector<2x64xf32>
    %327 = arith.addf %326, %325 : vector<2x64xf32>
    %328 = arith.divf %326, %327 : vector<2x64xf32>
    %329 = vector.extract_strided_slice %319 {offsets = [0, 64], sizes = [2, 64], strides = [1, 1]} : vector<2x192xf32> to vector<2x64xf32>
    %330 = vector.extract_strided_slice %320 {offsets = [0, 64], sizes = [2, 64], strides = [1, 1]} : vector<2x192xf32> to vector<2x64xf32>
    %331 = arith.addf %329, %330 : vector<2x64xf32>
    %332 = arith.negf %331 : vector<2x64xf32>
    %333 = math.exp %332 : vector<2x64xf32>
    %cst_68 = arith.constant 1.000000e+00 : f32
    %334 = vector.broadcast %cst_68 : f32 to vector<2x64xf32>
    %335 = arith.addf %334, %333 : vector<2x64xf32>
    %336 = arith.divf %334, %335 : vector<2x64xf32>
    %337 = vector.extract_strided_slice %319 {offsets = [0, 128], sizes = [2, 64], strides = [1, 1]} : vector<2x192xf32> to vector<2x64xf32>
    %338 = vector.extract_strided_slice %320 {offsets = [0, 128], sizes = [2, 64], strides = [1, 1]} : vector<2x192xf32> to vector<2x64xf32>
    %339 = arith.addf %338, %259 : vector<2x64xf32>
    %340 = arith.mulf %328, %339 : vector<2x64xf32>
    %341 = arith.addf %337, %340 : vector<2x64xf32>
    %342 = math.tanh %341 : vector<2x64xf32>
    %cst_69 = arith.constant 1.000000e+00 : f32
    %343 = vector.broadcast %cst_69 : f32 to vector<2x64xf32>
    %344 = arith.subf %343, %336 : vector<2x64xf32>
    %345 = arith.mulf %344, %342 : vector<2x64xf32>
    %346 = arith.mulf %336, %318 : vector<2x64xf32>
    %347 = arith.addf %345, %346 : vector<2x64xf32>
    %348 = vector.extract_strided_slice %253 {offsets = [6, 0], sizes = [2, 192], strides = [1, 1]} : vector<16x192xf32> to vector<2x192xf32>
    %cst_70 = arith.constant dense<0.000000e+00> : vector<2x192xf32>
    %349 = tpu.matmul %347, %255, %cst_70 {dimension_numbers = #tpu.dot_dimension_numbers<[1], [0], [0], [1], [0, 0, 1, 1], [], []>} : vector<2x64xf32>, vector<64x192xf32>, vector<2x192xf32> -> vector<2x192xf32>
    %350 = vector.extract_strided_slice %348 {offsets = [0, 0], sizes = [2, 64], strides = [1, 1]} : vector<2x192xf32> to vector<2x64xf32>
    %351 = vector.extract_strided_slice %349 {offsets = [0, 0], sizes = [2, 64], strides = [1, 1]} : vector<2x192xf32> to vector<2x64xf32>
    %352 = arith.addf %350, %351 : vector<2x64xf32>
    %353 = arith.negf %352 : vector<2x64xf32>
    %354 = math.exp %353 : vector<2x64xf32>
    %cst_71 = arith.constant 1.000000e+00 : f32
    %355 = vector.broadcast %cst_71 : f32 to vector<2x64xf32>
    %356 = arith.addf %355, %354 : vector<2x64xf32>
    %357 = arith.divf %355, %356 : vector<2x64xf32>
    %358 = vector.extract_strided_slice %348 {offsets = [0, 64], sizes = [2, 64], strides = [1, 1]} : vector<2x192xf32> to vector<2x64xf32>
    %359 = vector.extract_strided_slice %349 {offsets = [0, 64], sizes = [2, 64], strides = [1, 1]} : vector<2x192xf32> to vector<2x64xf32>
    %360 = arith.addf %358, %359 : vector<2x64xf32>
    %361 = arith.negf %360 : vector<2x64xf32>
    %362 = math.exp %361 : vector<2x64xf32>
    %cst_72 = arith.constant 1.000000e+00 : f32
    %363 = vector.broadcast %cst_72 : f32 to vector<2x64xf32>
    %364 = arith.addf %363, %362 : vector<2x64xf32>
    %365 = arith.divf %363, %364 : vector<2x64xf32>
    %366 = vector.extract_strided_slice %348 {offsets = [0, 128], sizes = [2, 64], strides = [1, 1]} : vector<2x192xf32> to vector<2x64xf32>
    %367 = vector.extract_strided_slice %349 {offsets = [0, 128], sizes = [2, 64], strides = [1, 1]} : vector<2x192xf32> to vector<2x64xf32>
    %368 = arith.addf %367, %259 : vector<2x64xf32>
    %369 = arith.mulf %357, %368 : vector<2x64xf32>
    %370 = arith.addf %366, %369 : vector<2x64xf32>
    %371 = math.tanh %370 : vector<2x64xf32>
    %cst_73 = arith.constant 1.000000e+00 : f32
    %372 = vector.broadcast %cst_73 : f32 to vector<2x64xf32>
    %373 = arith.subf %372, %365 : vector<2x64xf32>
    %374 = arith.mulf %373, %371 : vector<2x64xf32>
    %375 = arith.mulf %365, %347 : vector<2x64xf32>
    %376 = arith.addf %374, %375 : vector<2x64xf32>
    %377 = vector.extract_strided_slice %253 {offsets = [8, 0], sizes = [2, 192], strides = [1, 1]} : vector<16x192xf32> to vector<2x192xf32>
    %cst_74 = arith.constant dense<0.000000e+00> : vector<2x192xf32>
    %378 = tpu.matmul %376, %255, %cst_74 {dimension_numbers = #tpu.dot_dimension_numbers<[1], [0], [0], [1], [0, 0, 1, 1], [], []>} : vector<2x64xf32>, vector<64x192xf32>, vector<2x192xf32> -> vector<2x192xf32>
    %379 = vector.extract_strided_slice %377 {offsets = [0, 0], sizes = [2, 64], strides = [1, 1]} : vector<2x192xf32> to vector<2x64xf32>
    %380 = vector.extract_strided_slice %378 {offsets = [0, 0], sizes = [2, 64], strides = [1, 1]} : vector<2x192xf32> to vector<2x64xf32>
    %381 = arith.addf %379, %380 : vector<2x64xf32>
    %382 = arith.negf %381 : vector<2x64xf32>
    %383 = math.exp %382 : vector<2x64xf32>
    %cst_75 = arith.constant 1.000000e+00 : f32
    %384 = vector.broadcast %cst_75 : f32 to vector<2x64xf32>
    %385 = arith.addf %384, %383 : vector<2x64xf32>
    %386 = arith.divf %384, %385 : vector<2x64xf32>
    %387 = vector.extract_strided_slice %377 {offsets = [0, 64], sizes = [2, 64], strides = [1, 1]} : vector<2x192xf32> to vector<2x64xf32>
    %388 = vector.extract_strided_slice %378 {offsets = [0, 64], sizes = [2, 64], strides = [1, 1]} : vector<2x192xf32> to vector<2x64xf32>
    %389 = arith.addf %387, %388 : vector<2x64xf32>
    %390 = arith.negf %389 : vector<2x64xf32>
    %391 = math.exp %390 : vector<2x64xf32>
    %cst_76 = arith.constant 1.000000e+00 : f32
    %392 = vector.broadcast %cst_76 : f32 to vector<2x64xf32>
    %393 = arith.addf %392, %391 : vector<2x64xf32>
    %394 = arith.divf %392, %393 : vector<2x64xf32>
    %395 = vector.extract_strided_slice %377 {offsets = [0, 128], sizes = [2, 64], strides = [1, 1]} : vector<2x192xf32> to vector<2x64xf32>
    %396 = vector.extract_strided_slice %378 {offsets = [0, 128], sizes = [2, 64], strides = [1, 1]} : vector<2x192xf32> to vector<2x64xf32>
    %397 = arith.addf %396, %259 : vector<2x64xf32>
    %398 = arith.mulf %386, %397 : vector<2x64xf32>
    %399 = arith.addf %395, %398 : vector<2x64xf32>
    %400 = math.tanh %399 : vector<2x64xf32>
    %cst_77 = arith.constant 1.000000e+00 : f32
    %401 = vector.broadcast %cst_77 : f32 to vector<2x64xf32>
    %402 = arith.subf %401, %394 : vector<2x64xf32>
    %403 = arith.mulf %402, %400 : vector<2x64xf32>
    %404 = arith.mulf %394, %376 : vector<2x64xf32>
    %405 = arith.addf %403, %404 : vector<2x64xf32>
    %406 = vector.extract_strided_slice %253 {offsets = [10, 0], sizes = [2, 192], strides = [1, 1]} : vector<16x192xf32> to vector<2x192xf32>
    %cst_78 = arith.constant dense<0.000000e+00> : vector<2x192xf32>
    %407 = tpu.matmul %405, %255, %cst_78 {dimension_numbers = #tpu.dot_dimension_numbers<[1], [0], [0], [1], [0, 0, 1, 1], [], []>} : vector<2x64xf32>, vector<64x192xf32>, vector<2x192xf32> -> vector<2x192xf32>
    %408 = vector.extract_strided_slice %406 {offsets = [0, 0], sizes = [2, 64], strides = [1, 1]} : vector<2x192xf32> to vector<2x64xf32>
    %409 = vector.extract_strided_slice %407 {offsets = [0, 0], sizes = [2, 64], strides = [1, 1]} : vector<2x192xf32> to vector<2x64xf32>
    %410 = arith.addf %408, %409 : vector<2x64xf32>
    %411 = arith.negf %410 : vector<2x64xf32>
    %412 = math.exp %411 : vector<2x64xf32>
    %cst_79 = arith.constant 1.000000e+00 : f32
    %413 = vector.broadcast %cst_79 : f32 to vector<2x64xf32>
    %414 = arith.addf %413, %412 : vector<2x64xf32>
    %415 = arith.divf %413, %414 : vector<2x64xf32>
    %416 = vector.extract_strided_slice %406 {offsets = [0, 64], sizes = [2, 64], strides = [1, 1]} : vector<2x192xf32> to vector<2x64xf32>
    %417 = vector.extract_strided_slice %407 {offsets = [0, 64], sizes = [2, 64], strides = [1, 1]} : vector<2x192xf32> to vector<2x64xf32>
    %418 = arith.addf %416, %417 : vector<2x64xf32>
    %419 = arith.negf %418 : vector<2x64xf32>
    %420 = math.exp %419 : vector<2x64xf32>
    %cst_80 = arith.constant 1.000000e+00 : f32
    %421 = vector.broadcast %cst_80 : f32 to vector<2x64xf32>
    %422 = arith.addf %421, %420 : vector<2x64xf32>
    %423 = arith.divf %421, %422 : vector<2x64xf32>
    %424 = vector.extract_strided_slice %406 {offsets = [0, 128], sizes = [2, 64], strides = [1, 1]} : vector<2x192xf32> to vector<2x64xf32>
    %425 = vector.extract_strided_slice %407 {offsets = [0, 128], sizes = [2, 64], strides = [1, 1]} : vector<2x192xf32> to vector<2x64xf32>
    %426 = arith.addf %425, %259 : vector<2x64xf32>
    %427 = arith.mulf %415, %426 : vector<2x64xf32>
    %428 = arith.addf %424, %427 : vector<2x64xf32>
    %429 = math.tanh %428 : vector<2x64xf32>
    %cst_81 = arith.constant 1.000000e+00 : f32
    %430 = vector.broadcast %cst_81 : f32 to vector<2x64xf32>
    %431 = arith.subf %430, %423 : vector<2x64xf32>
    %432 = arith.mulf %431, %429 : vector<2x64xf32>
    %433 = arith.mulf %423, %405 : vector<2x64xf32>
    %434 = arith.addf %432, %433 : vector<2x64xf32>
    %435 = vector.extract_strided_slice %253 {offsets = [12, 0], sizes = [2, 192], strides = [1, 1]} : vector<16x192xf32> to vector<2x192xf32>
    %cst_82 = arith.constant dense<0.000000e+00> : vector<2x192xf32>
    %436 = tpu.matmul %434, %255, %cst_82 {dimension_numbers = #tpu.dot_dimension_numbers<[1], [0], [0], [1], [0, 0, 1, 1], [], []>} : vector<2x64xf32>, vector<64x192xf32>, vector<2x192xf32> -> vector<2x192xf32>
    %437 = vector.extract_strided_slice %435 {offsets = [0, 0], sizes = [2, 64], strides = [1, 1]} : vector<2x192xf32> to vector<2x64xf32>
    %438 = vector.extract_strided_slice %436 {offsets = [0, 0], sizes = [2, 64], strides = [1, 1]} : vector<2x192xf32> to vector<2x64xf32>
    %439 = arith.addf %437, %438 : vector<2x64xf32>
    %440 = arith.negf %439 : vector<2x64xf32>
    %441 = math.exp %440 : vector<2x64xf32>
    %cst_83 = arith.constant 1.000000e+00 : f32
    %442 = vector.broadcast %cst_83 : f32 to vector<2x64xf32>
    %443 = arith.addf %442, %441 : vector<2x64xf32>
    %444 = arith.divf %442, %443 : vector<2x64xf32>
    %445 = vector.extract_strided_slice %435 {offsets = [0, 64], sizes = [2, 64], strides = [1, 1]} : vector<2x192xf32> to vector<2x64xf32>
    %446 = vector.extract_strided_slice %436 {offsets = [0, 64], sizes = [2, 64], strides = [1, 1]} : vector<2x192xf32> to vector<2x64xf32>
    %447 = arith.addf %445, %446 : vector<2x64xf32>
    %448 = arith.negf %447 : vector<2x64xf32>
    %449 = math.exp %448 : vector<2x64xf32>
    %cst_84 = arith.constant 1.000000e+00 : f32
    %450 = vector.broadcast %cst_84 : f32 to vector<2x64xf32>
    %451 = arith.addf %450, %449 : vector<2x64xf32>
    %452 = arith.divf %450, %451 : vector<2x64xf32>
    %453 = vector.extract_strided_slice %435 {offsets = [0, 128], sizes = [2, 64], strides = [1, 1]} : vector<2x192xf32> to vector<2x64xf32>
    %454 = vector.extract_strided_slice %436 {offsets = [0, 128], sizes = [2, 64], strides = [1, 1]} : vector<2x192xf32> to vector<2x64xf32>
    %455 = arith.addf %454, %259 : vector<2x64xf32>
    %456 = arith.mulf %444, %455 : vector<2x64xf32>
    %457 = arith.addf %453, %456 : vector<2x64xf32>
    %458 = math.tanh %457 : vector<2x64xf32>
    %cst_85 = arith.constant 1.000000e+00 : f32
    %459 = vector.broadcast %cst_85 : f32 to vector<2x64xf32>
    %460 = arith.subf %459, %452 : vector<2x64xf32>
    %461 = arith.mulf %460, %458 : vector<2x64xf32>
    %462 = arith.mulf %452, %434 : vector<2x64xf32>
    %463 = arith.addf %461, %462 : vector<2x64xf32>
    %464 = vector.extract_strided_slice %253 {offsets = [14, 0], sizes = [2, 192], strides = [1, 1]} : vector<16x192xf32> to vector<2x192xf32>
    %cst_86 = arith.constant dense<0.000000e+00> : vector<2x192xf32>
    %465 = tpu.matmul %463, %255, %cst_86 {dimension_numbers = #tpu.dot_dimension_numbers<[1], [0], [0], [1], [0, 0, 1, 1], [], []>} : vector<2x64xf32>, vector<64x192xf32>, vector<2x192xf32> -> vector<2x192xf32>
    %466 = vector.extract_strided_slice %464 {offsets = [0, 0], sizes = [2, 64], strides = [1, 1]} : vector<2x192xf32> to vector<2x64xf32>
    %467 = vector.extract_strided_slice %465 {offsets = [0, 0], sizes = [2, 64], strides = [1, 1]} : vector<2x192xf32> to vector<2x64xf32>
    %468 = arith.addf %466, %467 : vector<2x64xf32>
    %469 = arith.negf %468 : vector<2x64xf32>
    %470 = math.exp %469 : vector<2x64xf32>
    %cst_87 = arith.constant 1.000000e+00 : f32
    %471 = vector.broadcast %cst_87 : f32 to vector<2x64xf32>
    %472 = arith.addf %471, %470 : vector<2x64xf32>
    %473 = arith.divf %471, %472 : vector<2x64xf32>
    %474 = vector.extract_strided_slice %464 {offsets = [0, 64], sizes = [2, 64], strides = [1, 1]} : vector<2x192xf32> to vector<2x64xf32>
    %475 = vector.extract_strided_slice %465 {offsets = [0, 64], sizes = [2, 64], strides = [1, 1]} : vector<2x192xf32> to vector<2x64xf32>
    %476 = arith.addf %474, %475 : vector<2x64xf32>
    %477 = arith.negf %476 : vector<2x64xf32>
    %478 = math.exp %477 : vector<2x64xf32>
    %cst_88 = arith.constant 1.000000e+00 : f32
    %479 = vector.broadcast %cst_88 : f32 to vector<2x64xf32>
    %480 = arith.addf %479, %478 : vector<2x64xf32>
    %481 = arith.divf %479, %480 : vector<2x64xf32>
    %482 = vector.extract_strided_slice %464 {offsets = [0, 128], sizes = [2, 64], strides = [1, 1]} : vector<2x192xf32> to vector<2x64xf32>
    %483 = vector.extract_strided_slice %465 {offsets = [0, 128], sizes = [2, 64], strides = [1, 1]} : vector<2x192xf32> to vector<2x64xf32>
    %484 = arith.addf %483, %259 : vector<2x64xf32>
    %485 = arith.mulf %473, %484 : vector<2x64xf32>
    %486 = arith.addf %482, %485 : vector<2x64xf32>
    %487 = math.tanh %486 : vector<2x64xf32>
    %cst_89 = arith.constant 1.000000e+00 : f32
    %488 = vector.broadcast %cst_89 : f32 to vector<2x64xf32>
    %489 = arith.subf %488, %481 : vector<2x64xf32>
    %490 = arith.mulf %489, %487 : vector<2x64xf32>
    %491 = arith.mulf %481, %463 : vector<2x64xf32>
    %492 = arith.addf %490, %491 : vector<2x64xf32>
    %493 = tpu.concatenate %289, %318, %347, %376, %405, %434, %463, %492 in 0 : vector<2x64xf32>, vector<2x64xf32>, vector<2x64xf32>, vector<2x64xf32>, vector<2x64xf32>, vector<2x64xf32>, vector<2x64xf32>, vector<2x64xf32> -> vector<16x64xf32>
    %c1_90 = arith.constant 1 : index
    %c0_91 = arith.constant 0 : index
    %c0_92 = arith.constant 0 : index
    %494 = vector.load %arg2[%c1_90, %c0_91, %c0_92] : memref<5x64x192xf32, #tpu.memory_space<vmem>>, vector<1x64x192xf32>
    %495 = vector.shape_cast %494 : vector<1x64x192xf32> to vector<64x192xf32>
    %cst_93 = arith.constant dense<0.000000e+00> : vector<16x192xf32>
    %496 = tpu.matmul %493, %495, %cst_93 {dimension_numbers = #tpu.dot_dimension_numbers<[1], [0], [0], [1], [0, 0, 1, 1], [], []>} : vector<16x64xf32>, vector<64x192xf32>, vector<16x192xf32> -> vector<16x192xf32>
    %c2 = arith.constant 2 : index
    %c0_94 = arith.constant 0 : index
    %c0_95 = arith.constant 0 : index
    %497 = vector.load %arg4[%c2, %c0_94, %c0_95] : memref<6x1x192xf32, #tpu.memory_space<vmem>>, vector<1x1x192xf32>
    %498 = vector.shape_cast %497 : vector<1x1x192xf32> to vector<1x192xf32>
    %499 = vector.broadcast %498 : vector<1x192xf32> to vector<16x192xf32>
    %500 = arith.addf %496, %499 : vector<16x192xf32>
    %c2_96 = arith.constant 2 : index
    %c0_97 = arith.constant 0 : index
    %c0_98 = arith.constant 0 : index
    %501 = vector.load %arg3[%c2_96, %c0_97, %c0_98] : memref<6x64x192xf32, #tpu.memory_space<vmem>>, vector<1x64x192xf32>
    %502 = vector.shape_cast %501 : vector<1x64x192xf32> to vector<64x192xf32>
    %c2_99 = arith.constant 2 : index
    %c0_100 = arith.constant 0 : index
    %c0_101 = arith.constant 0 : index
    %503 = vector.load %arg5[%c2_99, %c0_100, %c0_101] : memref<6x1x64xf32, #tpu.memory_space<vmem>>, vector<1x1x64xf32>
    %504 = vector.shape_cast %503 : vector<1x1x64xf32> to vector<1x64xf32>
    %505 = vector.shape_cast %504 : vector<1x64xf32> to vector<1x64xf32>
    %506 = vector.broadcast %505 : vector<1x64xf32> to vector<2x64xf32>
    %cst_102 = arith.constant 0.000000e+00 : f32
    %507 = vector.broadcast %cst_102 : f32 to vector<2x64xf32>
    %508 = vector.extract_strided_slice %500 {offsets = [0, 0], sizes = [2, 192], strides = [1, 1]} : vector<16x192xf32> to vector<2x192xf32>
    %cst_103 = arith.constant dense<0.000000e+00> : vector<2x192xf32>
    %509 = tpu.matmul %507, %502, %cst_103 {dimension_numbers = #tpu.dot_dimension_numbers<[1], [0], [0], [1], [0, 0, 1, 1], [], []>} : vector<2x64xf32>, vector<64x192xf32>, vector<2x192xf32> -> vector<2x192xf32>
    %510 = vector.extract_strided_slice %508 {offsets = [0, 0], sizes = [2, 64], strides = [1, 1]} : vector<2x192xf32> to vector<2x64xf32>
    %511 = vector.extract_strided_slice %509 {offsets = [0, 0], sizes = [2, 64], strides = [1, 1]} : vector<2x192xf32> to vector<2x64xf32>
    %512 = arith.addf %510, %511 : vector<2x64xf32>
    %513 = arith.negf %512 : vector<2x64xf32>
    %514 = math.exp %513 : vector<2x64xf32>
    %cst_104 = arith.constant 1.000000e+00 : f32
    %515 = vector.broadcast %cst_104 : f32 to vector<2x64xf32>
    %516 = arith.addf %515, %514 : vector<2x64xf32>
    %517 = arith.divf %515, %516 : vector<2x64xf32>
    %518 = vector.extract_strided_slice %508 {offsets = [0, 64], sizes = [2, 64], strides = [1, 1]} : vector<2x192xf32> to vector<2x64xf32>
    %519 = vector.extract_strided_slice %509 {offsets = [0, 64], sizes = [2, 64], strides = [1, 1]} : vector<2x192xf32> to vector<2x64xf32>
    %520 = arith.addf %518, %519 : vector<2x64xf32>
    %521 = arith.negf %520 : vector<2x64xf32>
    %522 = math.exp %521 : vector<2x64xf32>
    %cst_105 = arith.constant 1.000000e+00 : f32
    %523 = vector.broadcast %cst_105 : f32 to vector<2x64xf32>
    %524 = arith.addf %523, %522 : vector<2x64xf32>
    %525 = arith.divf %523, %524 : vector<2x64xf32>
    %526 = vector.extract_strided_slice %508 {offsets = [0, 128], sizes = [2, 64], strides = [1, 1]} : vector<2x192xf32> to vector<2x64xf32>
    %527 = vector.extract_strided_slice %509 {offsets = [0, 128], sizes = [2, 64], strides = [1, 1]} : vector<2x192xf32> to vector<2x64xf32>
    %528 = arith.addf %527, %506 : vector<2x64xf32>
    %529 = arith.mulf %517, %528 : vector<2x64xf32>
    %530 = arith.addf %526, %529 : vector<2x64xf32>
    %531 = math.tanh %530 : vector<2x64xf32>
    %cst_106 = arith.constant 1.000000e+00 : f32
    %532 = vector.broadcast %cst_106 : f32 to vector<2x64xf32>
    %533 = arith.subf %532, %525 : vector<2x64xf32>
    %534 = arith.mulf %533, %531 : vector<2x64xf32>
    %535 = arith.mulf %525, %507 : vector<2x64xf32>
    %536 = arith.addf %534, %535 : vector<2x64xf32>
    %537 = vector.extract_strided_slice %500 {offsets = [2, 0], sizes = [2, 192], strides = [1, 1]} : vector<16x192xf32> to vector<2x192xf32>
    %cst_107 = arith.constant dense<0.000000e+00> : vector<2x192xf32>
    %538 = tpu.matmul %536, %502, %cst_107 {dimension_numbers = #tpu.dot_dimension_numbers<[1], [0], [0], [1], [0, 0, 1, 1], [], []>} : vector<2x64xf32>, vector<64x192xf32>, vector<2x192xf32> -> vector<2x192xf32>
    %539 = vector.extract_strided_slice %537 {offsets = [0, 0], sizes = [2, 64], strides = [1, 1]} : vector<2x192xf32> to vector<2x64xf32>
    %540 = vector.extract_strided_slice %538 {offsets = [0, 0], sizes = [2, 64], strides = [1, 1]} : vector<2x192xf32> to vector<2x64xf32>
    %541 = arith.addf %539, %540 : vector<2x64xf32>
    %542 = arith.negf %541 : vector<2x64xf32>
    %543 = math.exp %542 : vector<2x64xf32>
    %cst_108 = arith.constant 1.000000e+00 : f32
    %544 = vector.broadcast %cst_108 : f32 to vector<2x64xf32>
    %545 = arith.addf %544, %543 : vector<2x64xf32>
    %546 = arith.divf %544, %545 : vector<2x64xf32>
    %547 = vector.extract_strided_slice %537 {offsets = [0, 64], sizes = [2, 64], strides = [1, 1]} : vector<2x192xf32> to vector<2x64xf32>
    %548 = vector.extract_strided_slice %538 {offsets = [0, 64], sizes = [2, 64], strides = [1, 1]} : vector<2x192xf32> to vector<2x64xf32>
    %549 = arith.addf %547, %548 : vector<2x64xf32>
    %550 = arith.negf %549 : vector<2x64xf32>
    %551 = math.exp %550 : vector<2x64xf32>
    %cst_109 = arith.constant 1.000000e+00 : f32
    %552 = vector.broadcast %cst_109 : f32 to vector<2x64xf32>
    %553 = arith.addf %552, %551 : vector<2x64xf32>
    %554 = arith.divf %552, %553 : vector<2x64xf32>
    %555 = vector.extract_strided_slice %537 {offsets = [0, 128], sizes = [2, 64], strides = [1, 1]} : vector<2x192xf32> to vector<2x64xf32>
    %556 = vector.extract_strided_slice %538 {offsets = [0, 128], sizes = [2, 64], strides = [1, 1]} : vector<2x192xf32> to vector<2x64xf32>
    %557 = arith.addf %556, %506 : vector<2x64xf32>
    %558 = arith.mulf %546, %557 : vector<2x64xf32>
    %559 = arith.addf %555, %558 : vector<2x64xf32>
    %560 = math.tanh %559 : vector<2x64xf32>
    %cst_110 = arith.constant 1.000000e+00 : f32
    %561 = vector.broadcast %cst_110 : f32 to vector<2x64xf32>
    %562 = arith.subf %561, %554 : vector<2x64xf32>
    %563 = arith.mulf %562, %560 : vector<2x64xf32>
    %564 = arith.mulf %554, %536 : vector<2x64xf32>
    %565 = arith.addf %563, %564 : vector<2x64xf32>
    %566 = vector.extract_strided_slice %500 {offsets = [4, 0], sizes = [2, 192], strides = [1, 1]} : vector<16x192xf32> to vector<2x192xf32>
    %cst_111 = arith.constant dense<0.000000e+00> : vector<2x192xf32>
    %567 = tpu.matmul %565, %502, %cst_111 {dimension_numbers = #tpu.dot_dimension_numbers<[1], [0], [0], [1], [0, 0, 1, 1], [], []>} : vector<2x64xf32>, vector<64x192xf32>, vector<2x192xf32> -> vector<2x192xf32>
    %568 = vector.extract_strided_slice %566 {offsets = [0, 0], sizes = [2, 64], strides = [1, 1]} : vector<2x192xf32> to vector<2x64xf32>
    %569 = vector.extract_strided_slice %567 {offsets = [0, 0], sizes = [2, 64], strides = [1, 1]} : vector<2x192xf32> to vector<2x64xf32>
    %570 = arith.addf %568, %569 : vector<2x64xf32>
    %571 = arith.negf %570 : vector<2x64xf32>
    %572 = math.exp %571 : vector<2x64xf32>
    %cst_112 = arith.constant 1.000000e+00 : f32
    %573 = vector.broadcast %cst_112 : f32 to vector<2x64xf32>
    %574 = arith.addf %573, %572 : vector<2x64xf32>
    %575 = arith.divf %573, %574 : vector<2x64xf32>
    %576 = vector.extract_strided_slice %566 {offsets = [0, 64], sizes = [2, 64], strides = [1, 1]} : vector<2x192xf32> to vector<2x64xf32>
    %577 = vector.extract_strided_slice %567 {offsets = [0, 64], sizes = [2, 64], strides = [1, 1]} : vector<2x192xf32> to vector<2x64xf32>
    %578 = arith.addf %576, %577 : vector<2x64xf32>
    %579 = arith.negf %578 : vector<2x64xf32>
    %580 = math.exp %579 : vector<2x64xf32>
    %cst_113 = arith.constant 1.000000e+00 : f32
    %581 = vector.broadcast %cst_113 : f32 to vector<2x64xf32>
    %582 = arith.addf %581, %580 : vector<2x64xf32>
    %583 = arith.divf %581, %582 : vector<2x64xf32>
    %584 = vector.extract_strided_slice %566 {offsets = [0, 128], sizes = [2, 64], strides = [1, 1]} : vector<2x192xf32> to vector<2x64xf32>
    %585 = vector.extract_strided_slice %567 {offsets = [0, 128], sizes = [2, 64], strides = [1, 1]} : vector<2x192xf32> to vector<2x64xf32>
    %586 = arith.addf %585, %506 : vector<2x64xf32>
    %587 = arith.mulf %575, %586 : vector<2x64xf32>
    %588 = arith.addf %584, %587 : vector<2x64xf32>
    %589 = math.tanh %588 : vector<2x64xf32>
    %cst_114 = arith.constant 1.000000e+00 : f32
    %590 = vector.broadcast %cst_114 : f32 to vector<2x64xf32>
    %591 = arith.subf %590, %583 : vector<2x64xf32>
    %592 = arith.mulf %591, %589 : vector<2x64xf32>
    %593 = arith.mulf %583, %565 : vector<2x64xf32>
    %594 = arith.addf %592, %593 : vector<2x64xf32>
    %595 = vector.extract_strided_slice %500 {offsets = [6, 0], sizes = [2, 192], strides = [1, 1]} : vector<16x192xf32> to vector<2x192xf32>
    %cst_115 = arith.constant dense<0.000000e+00> : vector<2x192xf32>
    %596 = tpu.matmul %594, %502, %cst_115 {dimension_numbers = #tpu.dot_dimension_numbers<[1], [0], [0], [1], [0, 0, 1, 1], [], []>} : vector<2x64xf32>, vector<64x192xf32>, vector<2x192xf32> -> vector<2x192xf32>
    %597 = vector.extract_strided_slice %595 {offsets = [0, 0], sizes = [2, 64], strides = [1, 1]} : vector<2x192xf32> to vector<2x64xf32>
    %598 = vector.extract_strided_slice %596 {offsets = [0, 0], sizes = [2, 64], strides = [1, 1]} : vector<2x192xf32> to vector<2x64xf32>
    %599 = arith.addf %597, %598 : vector<2x64xf32>
    %600 = arith.negf %599 : vector<2x64xf32>
    %601 = math.exp %600 : vector<2x64xf32>
    %cst_116 = arith.constant 1.000000e+00 : f32
    %602 = vector.broadcast %cst_116 : f32 to vector<2x64xf32>
    %603 = arith.addf %602, %601 : vector<2x64xf32>
    %604 = arith.divf %602, %603 : vector<2x64xf32>
    %605 = vector.extract_strided_slice %595 {offsets = [0, 64], sizes = [2, 64], strides = [1, 1]} : vector<2x192xf32> to vector<2x64xf32>
    %606 = vector.extract_strided_slice %596 {offsets = [0, 64], sizes = [2, 64], strides = [1, 1]} : vector<2x192xf32> to vector<2x64xf32>
    %607 = arith.addf %605, %606 : vector<2x64xf32>
    %608 = arith.negf %607 : vector<2x64xf32>
    %609 = math.exp %608 : vector<2x64xf32>
    %cst_117 = arith.constant 1.000000e+00 : f32
    %610 = vector.broadcast %cst_117 : f32 to vector<2x64xf32>
    %611 = arith.addf %610, %609 : vector<2x64xf32>
    %612 = arith.divf %610, %611 : vector<2x64xf32>
    %613 = vector.extract_strided_slice %595 {offsets = [0, 128], sizes = [2, 64], strides = [1, 1]} : vector<2x192xf32> to vector<2x64xf32>
    %614 = vector.extract_strided_slice %596 {offsets = [0, 128], sizes = [2, 64], strides = [1, 1]} : vector<2x192xf32> to vector<2x64xf32>
    %615 = arith.addf %614, %506 : vector<2x64xf32>
    %616 = arith.mulf %604, %615 : vector<2x64xf32>
    %617 = arith.addf %613, %616 : vector<2x64xf32>
    %618 = math.tanh %617 : vector<2x64xf32>
    %cst_118 = arith.constant 1.000000e+00 : f32
    %619 = vector.broadcast %cst_118 : f32 to vector<2x64xf32>
    %620 = arith.subf %619, %612 : vector<2x64xf32>
    %621 = arith.mulf %620, %618 : vector<2x64xf32>
    %622 = arith.mulf %612, %594 : vector<2x64xf32>
    %623 = arith.addf %621, %622 : vector<2x64xf32>
    %624 = vector.extract_strided_slice %500 {offsets = [8, 0], sizes = [2, 192], strides = [1, 1]} : vector<16x192xf32> to vector<2x192xf32>
    %cst_119 = arith.constant dense<0.000000e+00> : vector<2x192xf32>
    %625 = tpu.matmul %623, %502, %cst_119 {dimension_numbers = #tpu.dot_dimension_numbers<[1], [0], [0], [1], [0, 0, 1, 1], [], []>} : vector<2x64xf32>, vector<64x192xf32>, vector<2x192xf32> -> vector<2x192xf32>
    %626 = vector.extract_strided_slice %624 {offsets = [0, 0], sizes = [2, 64], strides = [1, 1]} : vector<2x192xf32> to vector<2x64xf32>
    %627 = vector.extract_strided_slice %625 {offsets = [0, 0], sizes = [2, 64], strides = [1, 1]} : vector<2x192xf32> to vector<2x64xf32>
    %628 = arith.addf %626, %627 : vector<2x64xf32>
    %629 = arith.negf %628 : vector<2x64xf32>
    %630 = math.exp %629 : vector<2x64xf32>
    %cst_120 = arith.constant 1.000000e+00 : f32
    %631 = vector.broadcast %cst_120 : f32 to vector<2x64xf32>
    %632 = arith.addf %631, %630 : vector<2x64xf32>
    %633 = arith.divf %631, %632 : vector<2x64xf32>
    %634 = vector.extract_strided_slice %624 {offsets = [0, 64], sizes = [2, 64], strides = [1, 1]} : vector<2x192xf32> to vector<2x64xf32>
    %635 = vector.extract_strided_slice %625 {offsets = [0, 64], sizes = [2, 64], strides = [1, 1]} : vector<2x192xf32> to vector<2x64xf32>
    %636 = arith.addf %634, %635 : vector<2x64xf32>
    %637 = arith.negf %636 : vector<2x64xf32>
    %638 = math.exp %637 : vector<2x64xf32>
    %cst_121 = arith.constant 1.000000e+00 : f32
    %639 = vector.broadcast %cst_121 : f32 to vector<2x64xf32>
    %640 = arith.addf %639, %638 : vector<2x64xf32>
    %641 = arith.divf %639, %640 : vector<2x64xf32>
    %642 = vector.extract_strided_slice %624 {offsets = [0, 128], sizes = [2, 64], strides = [1, 1]} : vector<2x192xf32> to vector<2x64xf32>
    %643 = vector.extract_strided_slice %625 {offsets = [0, 128], sizes = [2, 64], strides = [1, 1]} : vector<2x192xf32> to vector<2x64xf32>
    %644 = arith.addf %643, %506 : vector<2x64xf32>
    %645 = arith.mulf %633, %644 : vector<2x64xf32>
    %646 = arith.addf %642, %645 : vector<2x64xf32>
    %647 = math.tanh %646 : vector<2x64xf32>
    %cst_122 = arith.constant 1.000000e+00 : f32
    %648 = vector.broadcast %cst_122 : f32 to vector<2x64xf32>
    %649 = arith.subf %648, %641 : vector<2x64xf32>
    %650 = arith.mulf %649, %647 : vector<2x64xf32>
    %651 = arith.mulf %641, %623 : vector<2x64xf32>
    %652 = arith.addf %650, %651 : vector<2x64xf32>
    %653 = vector.extract_strided_slice %500 {offsets = [10, 0], sizes = [2, 192], strides = [1, 1]} : vector<16x192xf32> to vector<2x192xf32>
    %cst_123 = arith.constant dense<0.000000e+00> : vector<2x192xf32>
    %654 = tpu.matmul %652, %502, %cst_123 {dimension_numbers = #tpu.dot_dimension_numbers<[1], [0], [0], [1], [0, 0, 1, 1], [], []>} : vector<2x64xf32>, vector<64x192xf32>, vector<2x192xf32> -> vector<2x192xf32>
    %655 = vector.extract_strided_slice %653 {offsets = [0, 0], sizes = [2, 64], strides = [1, 1]} : vector<2x192xf32> to vector<2x64xf32>
    %656 = vector.extract_strided_slice %654 {offsets = [0, 0], sizes = [2, 64], strides = [1, 1]} : vector<2x192xf32> to vector<2x64xf32>
    %657 = arith.addf %655, %656 : vector<2x64xf32>
    %658 = arith.negf %657 : vector<2x64xf32>
    %659 = math.exp %658 : vector<2x64xf32>
    %cst_124 = arith.constant 1.000000e+00 : f32
    %660 = vector.broadcast %cst_124 : f32 to vector<2x64xf32>
    %661 = arith.addf %660, %659 : vector<2x64xf32>
    %662 = arith.divf %660, %661 : vector<2x64xf32>
    %663 = vector.extract_strided_slice %653 {offsets = [0, 64], sizes = [2, 64], strides = [1, 1]} : vector<2x192xf32> to vector<2x64xf32>
    %664 = vector.extract_strided_slice %654 {offsets = [0, 64], sizes = [2, 64], strides = [1, 1]} : vector<2x192xf32> to vector<2x64xf32>
    %665 = arith.addf %663, %664 : vector<2x64xf32>
    %666 = arith.negf %665 : vector<2x64xf32>
    %667 = math.exp %666 : vector<2x64xf32>
    %cst_125 = arith.constant 1.000000e+00 : f32
    %668 = vector.broadcast %cst_125 : f32 to vector<2x64xf32>
    %669 = arith.addf %668, %667 : vector<2x64xf32>
    %670 = arith.divf %668, %669 : vector<2x64xf32>
    %671 = vector.extract_strided_slice %653 {offsets = [0, 128], sizes = [2, 64], strides = [1, 1]} : vector<2x192xf32> to vector<2x64xf32>
    %672 = vector.extract_strided_slice %654 {offsets = [0, 128], sizes = [2, 64], strides = [1, 1]} : vector<2x192xf32> to vector<2x64xf32>
    %673 = arith.addf %672, %506 : vector<2x64xf32>
    %674 = arith.mulf %662, %673 : vector<2x64xf32>
    %675 = arith.addf %671, %674 : vector<2x64xf32>
    %676 = math.tanh %675 : vector<2x64xf32>
    %cst_126 = arith.constant 1.000000e+00 : f32
    %677 = vector.broadcast %cst_126 : f32 to vector<2x64xf32>
    %678 = arith.subf %677, %670 : vector<2x64xf32>
    %679 = arith.mulf %678, %676 : vector<2x64xf32>
    %680 = arith.mulf %670, %652 : vector<2x64xf32>
    %681 = arith.addf %679, %680 : vector<2x64xf32>
    %682 = vector.extract_strided_slice %500 {offsets = [12, 0], sizes = [2, 192], strides = [1, 1]} : vector<16x192xf32> to vector<2x192xf32>
    %cst_127 = arith.constant dense<0.000000e+00> : vector<2x192xf32>
    %683 = tpu.matmul %681, %502, %cst_127 {dimension_numbers = #tpu.dot_dimension_numbers<[1], [0], [0], [1], [0, 0, 1, 1], [], []>} : vector<2x64xf32>, vector<64x192xf32>, vector<2x192xf32> -> vector<2x192xf32>
    %684 = vector.extract_strided_slice %682 {offsets = [0, 0], sizes = [2, 64], strides = [1, 1]} : vector<2x192xf32> to vector<2x64xf32>
    %685 = vector.extract_strided_slice %683 {offsets = [0, 0], sizes = [2, 64], strides = [1, 1]} : vector<2x192xf32> to vector<2x64xf32>
    %686 = arith.addf %684, %685 : vector<2x64xf32>
    %687 = arith.negf %686 : vector<2x64xf32>
    %688 = math.exp %687 : vector<2x64xf32>
    %cst_128 = arith.constant 1.000000e+00 : f32
    %689 = vector.broadcast %cst_128 : f32 to vector<2x64xf32>
    %690 = arith.addf %689, %688 : vector<2x64xf32>
    %691 = arith.divf %689, %690 : vector<2x64xf32>
    %692 = vector.extract_strided_slice %682 {offsets = [0, 64], sizes = [2, 64], strides = [1, 1]} : vector<2x192xf32> to vector<2x64xf32>
    %693 = vector.extract_strided_slice %683 {offsets = [0, 64], sizes = [2, 64], strides = [1, 1]} : vector<2x192xf32> to vector<2x64xf32>
    %694 = arith.addf %692, %693 : vector<2x64xf32>
    %695 = arith.negf %694 : vector<2x64xf32>
    %696 = math.exp %695 : vector<2x64xf32>
    %cst_129 = arith.constant 1.000000e+00 : f32
    %697 = vector.broadcast %cst_129 : f32 to vector<2x64xf32>
    %698 = arith.addf %697, %696 : vector<2x64xf32>
    %699 = arith.divf %697, %698 : vector<2x64xf32>
    %700 = vector.extract_strided_slice %682 {offsets = [0, 128], sizes = [2, 64], strides = [1, 1]} : vector<2x192xf32> to vector<2x64xf32>
    %701 = vector.extract_strided_slice %683 {offsets = [0, 128], sizes = [2, 64], strides = [1, 1]} : vector<2x192xf32> to vector<2x64xf32>
    %702 = arith.addf %701, %506 : vector<2x64xf32>
    %703 = arith.mulf %691, %702 : vector<2x64xf32>
    %704 = arith.addf %700, %703 : vector<2x64xf32>
    %705 = math.tanh %704 : vector<2x64xf32>
    %cst_130 = arith.constant 1.000000e+00 : f32
    %706 = vector.broadcast %cst_130 : f32 to vector<2x64xf32>
    %707 = arith.subf %706, %699 : vector<2x64xf32>
    %708 = arith.mulf %707, %705 : vector<2x64xf32>
    %709 = arith.mulf %699, %681 : vector<2x64xf32>
    %710 = arith.addf %708, %709 : vector<2x64xf32>
    %711 = vector.extract_strided_slice %500 {offsets = [14, 0], sizes = [2, 192], strides = [1, 1]} : vector<16x192xf32> to vector<2x192xf32>
    %cst_131 = arith.constant dense<0.000000e+00> : vector<2x192xf32>
    %712 = tpu.matmul %710, %502, %cst_131 {dimension_numbers = #tpu.dot_dimension_numbers<[1], [0], [0], [1], [0, 0, 1, 1], [], []>} : vector<2x64xf32>, vector<64x192xf32>, vector<2x192xf32> -> vector<2x192xf32>
    %713 = vector.extract_strided_slice %711 {offsets = [0, 0], sizes = [2, 64], strides = [1, 1]} : vector<2x192xf32> to vector<2x64xf32>
    %714 = vector.extract_strided_slice %712 {offsets = [0, 0], sizes = [2, 64], strides = [1, 1]} : vector<2x192xf32> to vector<2x64xf32>
    %715 = arith.addf %713, %714 : vector<2x64xf32>
    %716 = arith.negf %715 : vector<2x64xf32>
    %717 = math.exp %716 : vector<2x64xf32>
    %cst_132 = arith.constant 1.000000e+00 : f32
    %718 = vector.broadcast %cst_132 : f32 to vector<2x64xf32>
    %719 = arith.addf %718, %717 : vector<2x64xf32>
    %720 = arith.divf %718, %719 : vector<2x64xf32>
    %721 = vector.extract_strided_slice %711 {offsets = [0, 64], sizes = [2, 64], strides = [1, 1]} : vector<2x192xf32> to vector<2x64xf32>
    %722 = vector.extract_strided_slice %712 {offsets = [0, 64], sizes = [2, 64], strides = [1, 1]} : vector<2x192xf32> to vector<2x64xf32>
    %723 = arith.addf %721, %722 : vector<2x64xf32>
    %724 = arith.negf %723 : vector<2x64xf32>
    %725 = math.exp %724 : vector<2x64xf32>
    %cst_133 = arith.constant 1.000000e+00 : f32
    %726 = vector.broadcast %cst_133 : f32 to vector<2x64xf32>
    %727 = arith.addf %726, %725 : vector<2x64xf32>
    %728 = arith.divf %726, %727 : vector<2x64xf32>
    %729 = vector.extract_strided_slice %711 {offsets = [0, 128], sizes = [2, 64], strides = [1, 1]} : vector<2x192xf32> to vector<2x64xf32>
    %730 = vector.extract_strided_slice %712 {offsets = [0, 128], sizes = [2, 64], strides = [1, 1]} : vector<2x192xf32> to vector<2x64xf32>
    %731 = arith.addf %730, %506 : vector<2x64xf32>
    %732 = arith.mulf %720, %731 : vector<2x64xf32>
    %733 = arith.addf %729, %732 : vector<2x64xf32>
    %734 = math.tanh %733 : vector<2x64xf32>
    %cst_134 = arith.constant 1.000000e+00 : f32
    %735 = vector.broadcast %cst_134 : f32 to vector<2x64xf32>
    %736 = arith.subf %735, %728 : vector<2x64xf32>
    %737 = arith.mulf %736, %734 : vector<2x64xf32>
    %738 = arith.mulf %728, %710 : vector<2x64xf32>
    %739 = arith.addf %737, %738 : vector<2x64xf32>
    %740 = tpu.concatenate %536, %565, %594, %623, %652, %681, %710, %739 in 0 : vector<2x64xf32>, vector<2x64xf32>, vector<2x64xf32>, vector<2x64xf32>, vector<2x64xf32>, vector<2x64xf32>, vector<2x64xf32>, vector<2x64xf32> -> vector<16x64xf32>
    %c2_135 = arith.constant 2 : index
    %c0_136 = arith.constant 0 : index
    %c0_137 = arith.constant 0 : index
    %741 = vector.load %arg2[%c2_135, %c0_136, %c0_137] : memref<5x64x192xf32, #tpu.memory_space<vmem>>, vector<1x64x192xf32>
    %742 = vector.shape_cast %741 : vector<1x64x192xf32> to vector<64x192xf32>
    %cst_138 = arith.constant dense<0.000000e+00> : vector<16x192xf32>
    %743 = tpu.matmul %740, %742, %cst_138 {dimension_numbers = #tpu.dot_dimension_numbers<[1], [0], [0], [1], [0, 0, 1, 1], [], []>} : vector<16x64xf32>, vector<64x192xf32>, vector<16x192xf32> -> vector<16x192xf32>
    %c3 = arith.constant 3 : index
    %c0_139 = arith.constant 0 : index
    %c0_140 = arith.constant 0 : index
    %744 = vector.load %arg4[%c3, %c0_139, %c0_140] : memref<6x1x192xf32, #tpu.memory_space<vmem>>, vector<1x1x192xf32>
    %745 = vector.shape_cast %744 : vector<1x1x192xf32> to vector<1x192xf32>
    %746 = vector.broadcast %745 : vector<1x192xf32> to vector<16x192xf32>
    %747 = arith.addf %743, %746 : vector<16x192xf32>
    %c3_141 = arith.constant 3 : index
    %c0_142 = arith.constant 0 : index
    %c0_143 = arith.constant 0 : index
    %748 = vector.load %arg3[%c3_141, %c0_142, %c0_143] : memref<6x64x192xf32, #tpu.memory_space<vmem>>, vector<1x64x192xf32>
    %749 = vector.shape_cast %748 : vector<1x64x192xf32> to vector<64x192xf32>
    %c3_144 = arith.constant 3 : index
    %c0_145 = arith.constant 0 : index
    %c0_146 = arith.constant 0 : index
    %750 = vector.load %arg5[%c3_144, %c0_145, %c0_146] : memref<6x1x64xf32, #tpu.memory_space<vmem>>, vector<1x1x64xf32>
    %751 = vector.shape_cast %750 : vector<1x1x64xf32> to vector<1x64xf32>
    %752 = vector.shape_cast %751 : vector<1x64xf32> to vector<1x64xf32>
    %753 = vector.broadcast %752 : vector<1x64xf32> to vector<2x64xf32>
    %cst_147 = arith.constant 0.000000e+00 : f32
    %754 = vector.broadcast %cst_147 : f32 to vector<2x64xf32>
    %755 = vector.extract_strided_slice %747 {offsets = [0, 0], sizes = [2, 192], strides = [1, 1]} : vector<16x192xf32> to vector<2x192xf32>
    %cst_148 = arith.constant dense<0.000000e+00> : vector<2x192xf32>
    %756 = tpu.matmul %754, %749, %cst_148 {dimension_numbers = #tpu.dot_dimension_numbers<[1], [0], [0], [1], [0, 0, 1, 1], [], []>} : vector<2x64xf32>, vector<64x192xf32>, vector<2x192xf32> -> vector<2x192xf32>
    %757 = vector.extract_strided_slice %755 {offsets = [0, 0], sizes = [2, 64], strides = [1, 1]} : vector<2x192xf32> to vector<2x64xf32>
    %758 = vector.extract_strided_slice %756 {offsets = [0, 0], sizes = [2, 64], strides = [1, 1]} : vector<2x192xf32> to vector<2x64xf32>
    %759 = arith.addf %757, %758 : vector<2x64xf32>
    %760 = arith.negf %759 : vector<2x64xf32>
    %761 = math.exp %760 : vector<2x64xf32>
    %cst_149 = arith.constant 1.000000e+00 : f32
    %762 = vector.broadcast %cst_149 : f32 to vector<2x64xf32>
    %763 = arith.addf %762, %761 : vector<2x64xf32>
    %764 = arith.divf %762, %763 : vector<2x64xf32>
    %765 = vector.extract_strided_slice %755 {offsets = [0, 64], sizes = [2, 64], strides = [1, 1]} : vector<2x192xf32> to vector<2x64xf32>
    %766 = vector.extract_strided_slice %756 {offsets = [0, 64], sizes = [2, 64], strides = [1, 1]} : vector<2x192xf32> to vector<2x64xf32>
    %767 = arith.addf %765, %766 : vector<2x64xf32>
    %768 = arith.negf %767 : vector<2x64xf32>
    %769 = math.exp %768 : vector<2x64xf32>
    %cst_150 = arith.constant 1.000000e+00 : f32
    %770 = vector.broadcast %cst_150 : f32 to vector<2x64xf32>
    %771 = arith.addf %770, %769 : vector<2x64xf32>
    %772 = arith.divf %770, %771 : vector<2x64xf32>
    %773 = vector.extract_strided_slice %755 {offsets = [0, 128], sizes = [2, 64], strides = [1, 1]} : vector<2x192xf32> to vector<2x64xf32>
    %774 = vector.extract_strided_slice %756 {offsets = [0, 128], sizes = [2, 64], strides = [1, 1]} : vector<2x192xf32> to vector<2x64xf32>
    %775 = arith.addf %774, %753 : vector<2x64xf32>
    %776 = arith.mulf %764, %775 : vector<2x64xf32>
    %777 = arith.addf %773, %776 : vector<2x64xf32>
    %778 = math.tanh %777 : vector<2x64xf32>
    %cst_151 = arith.constant 1.000000e+00 : f32
    %779 = vector.broadcast %cst_151 : f32 to vector<2x64xf32>
    %780 = arith.subf %779, %772 : vector<2x64xf32>
    %781 = arith.mulf %780, %778 : vector<2x64xf32>
    %782 = arith.mulf %772, %754 : vector<2x64xf32>
    %783 = arith.addf %781, %782 : vector<2x64xf32>
    %784 = vector.extract_strided_slice %747 {offsets = [2, 0], sizes = [2, 192], strides = [1, 1]} : vector<16x192xf32> to vector<2x192xf32>
    %cst_152 = arith.constant dense<0.000000e+00> : vector<2x192xf32>
    %785 = tpu.matmul %783, %749, %cst_152 {dimension_numbers = #tpu.dot_dimension_numbers<[1], [0], [0], [1], [0, 0, 1, 1], [], []>} : vector<2x64xf32>, vector<64x192xf32>, vector<2x192xf32> -> vector<2x192xf32>
    %786 = vector.extract_strided_slice %784 {offsets = [0, 0], sizes = [2, 64], strides = [1, 1]} : vector<2x192xf32> to vector<2x64xf32>
    %787 = vector.extract_strided_slice %785 {offsets = [0, 0], sizes = [2, 64], strides = [1, 1]} : vector<2x192xf32> to vector<2x64xf32>
    %788 = arith.addf %786, %787 : vector<2x64xf32>
    %789 = arith.negf %788 : vector<2x64xf32>
    %790 = math.exp %789 : vector<2x64xf32>
    %cst_153 = arith.constant 1.000000e+00 : f32
    %791 = vector.broadcast %cst_153 : f32 to vector<2x64xf32>
    %792 = arith.addf %791, %790 : vector<2x64xf32>
    %793 = arith.divf %791, %792 : vector<2x64xf32>
    %794 = vector.extract_strided_slice %784 {offsets = [0, 64], sizes = [2, 64], strides = [1, 1]} : vector<2x192xf32> to vector<2x64xf32>
    %795 = vector.extract_strided_slice %785 {offsets = [0, 64], sizes = [2, 64], strides = [1, 1]} : vector<2x192xf32> to vector<2x64xf32>
    %796 = arith.addf %794, %795 : vector<2x64xf32>
    %797 = arith.negf %796 : vector<2x64xf32>
    %798 = math.exp %797 : vector<2x64xf32>
    %cst_154 = arith.constant 1.000000e+00 : f32
    %799 = vector.broadcast %cst_154 : f32 to vector<2x64xf32>
    %800 = arith.addf %799, %798 : vector<2x64xf32>
    %801 = arith.divf %799, %800 : vector<2x64xf32>
    %802 = vector.extract_strided_slice %784 {offsets = [0, 128], sizes = [2, 64], strides = [1, 1]} : vector<2x192xf32> to vector<2x64xf32>
    %803 = vector.extract_strided_slice %785 {offsets = [0, 128], sizes = [2, 64], strides = [1, 1]} : vector<2x192xf32> to vector<2x64xf32>
    %804 = arith.addf %803, %753 : vector<2x64xf32>
    %805 = arith.mulf %793, %804 : vector<2x64xf32>
    %806 = arith.addf %802, %805 : vector<2x64xf32>
    %807 = math.tanh %806 : vector<2x64xf32>
    %cst_155 = arith.constant 1.000000e+00 : f32
    %808 = vector.broadcast %cst_155 : f32 to vector<2x64xf32>
    %809 = arith.subf %808, %801 : vector<2x64xf32>
    %810 = arith.mulf %809, %807 : vector<2x64xf32>
    %811 = arith.mulf %801, %783 : vector<2x64xf32>
    %812 = arith.addf %810, %811 : vector<2x64xf32>
    %813 = vector.extract_strided_slice %747 {offsets = [4, 0], sizes = [2, 192], strides = [1, 1]} : vector<16x192xf32> to vector<2x192xf32>
    %cst_156 = arith.constant dense<0.000000e+00> : vector<2x192xf32>
    %814 = tpu.matmul %812, %749, %cst_156 {dimension_numbers = #tpu.dot_dimension_numbers<[1], [0], [0], [1], [0, 0, 1, 1], [], []>} : vector<2x64xf32>, vector<64x192xf32>, vector<2x192xf32> -> vector<2x192xf32>
    %815 = vector.extract_strided_slice %813 {offsets = [0, 0], sizes = [2, 64], strides = [1, 1]} : vector<2x192xf32> to vector<2x64xf32>
    %816 = vector.extract_strided_slice %814 {offsets = [0, 0], sizes = [2, 64], strides = [1, 1]} : vector<2x192xf32> to vector<2x64xf32>
    %817 = arith.addf %815, %816 : vector<2x64xf32>
    %818 = arith.negf %817 : vector<2x64xf32>
    %819 = math.exp %818 : vector<2x64xf32>
    %cst_157 = arith.constant 1.000000e+00 : f32
    %820 = vector.broadcast %cst_157 : f32 to vector<2x64xf32>
    %821 = arith.addf %820, %819 : vector<2x64xf32>
    %822 = arith.divf %820, %821 : vector<2x64xf32>
    %823 = vector.extract_strided_slice %813 {offsets = [0, 64], sizes = [2, 64], strides = [1, 1]} : vector<2x192xf32> to vector<2x64xf32>
    %824 = vector.extract_strided_slice %814 {offsets = [0, 64], sizes = [2, 64], strides = [1, 1]} : vector<2x192xf32> to vector<2x64xf32>
    %825 = arith.addf %823, %824 : vector<2x64xf32>
    %826 = arith.negf %825 : vector<2x64xf32>
    %827 = math.exp %826 : vector<2x64xf32>
    %cst_158 = arith.constant 1.000000e+00 : f32
    %828 = vector.broadcast %cst_158 : f32 to vector<2x64xf32>
    %829 = arith.addf %828, %827 : vector<2x64xf32>
    %830 = arith.divf %828, %829 : vector<2x64xf32>
    %831 = vector.extract_strided_slice %813 {offsets = [0, 128], sizes = [2, 64], strides = [1, 1]} : vector<2x192xf32> to vector<2x64xf32>
    %832 = vector.extract_strided_slice %814 {offsets = [0, 128], sizes = [2, 64], strides = [1, 1]} : vector<2x192xf32> to vector<2x64xf32>
    %833 = arith.addf %832, %753 : vector<2x64xf32>
    %834 = arith.mulf %822, %833 : vector<2x64xf32>
    %835 = arith.addf %831, %834 : vector<2x64xf32>
    %836 = math.tanh %835 : vector<2x64xf32>
    %cst_159 = arith.constant 1.000000e+00 : f32
    %837 = vector.broadcast %cst_159 : f32 to vector<2x64xf32>
    %838 = arith.subf %837, %830 : vector<2x64xf32>
    %839 = arith.mulf %838, %836 : vector<2x64xf32>
    %840 = arith.mulf %830, %812 : vector<2x64xf32>
    %841 = arith.addf %839, %840 : vector<2x64xf32>
    %842 = vector.extract_strided_slice %747 {offsets = [6, 0], sizes = [2, 192], strides = [1, 1]} : vector<16x192xf32> to vector<2x192xf32>
    %cst_160 = arith.constant dense<0.000000e+00> : vector<2x192xf32>
    %843 = tpu.matmul %841, %749, %cst_160 {dimension_numbers = #tpu.dot_dimension_numbers<[1], [0], [0], [1], [0, 0, 1, 1], [], []>} : vector<2x64xf32>, vector<64x192xf32>, vector<2x192xf32> -> vector<2x192xf32>
    %844 = vector.extract_strided_slice %842 {offsets = [0, 0], sizes = [2, 64], strides = [1, 1]} : vector<2x192xf32> to vector<2x64xf32>
    %845 = vector.extract_strided_slice %843 {offsets = [0, 0], sizes = [2, 64], strides = [1, 1]} : vector<2x192xf32> to vector<2x64xf32>
    %846 = arith.addf %844, %845 : vector<2x64xf32>
    %847 = arith.negf %846 : vector<2x64xf32>
    %848 = math.exp %847 : vector<2x64xf32>
    %cst_161 = arith.constant 1.000000e+00 : f32
    %849 = vector.broadcast %cst_161 : f32 to vector<2x64xf32>
    %850 = arith.addf %849, %848 : vector<2x64xf32>
    %851 = arith.divf %849, %850 : vector<2x64xf32>
    %852 = vector.extract_strided_slice %842 {offsets = [0, 64], sizes = [2, 64], strides = [1, 1]} : vector<2x192xf32> to vector<2x64xf32>
    %853 = vector.extract_strided_slice %843 {offsets = [0, 64], sizes = [2, 64], strides = [1, 1]} : vector<2x192xf32> to vector<2x64xf32>
    %854 = arith.addf %852, %853 : vector<2x64xf32>
    %855 = arith.negf %854 : vector<2x64xf32>
    %856 = math.exp %855 : vector<2x64xf32>
    %cst_162 = arith.constant 1.000000e+00 : f32
    %857 = vector.broadcast %cst_162 : f32 to vector<2x64xf32>
    %858 = arith.addf %857, %856 : vector<2x64xf32>
    %859 = arith.divf %857, %858 : vector<2x64xf32>
    %860 = vector.extract_strided_slice %842 {offsets = [0, 128], sizes = [2, 64], strides = [1, 1]} : vector<2x192xf32> to vector<2x64xf32>
    %861 = vector.extract_strided_slice %843 {offsets = [0, 128], sizes = [2, 64], strides = [1, 1]} : vector<2x192xf32> to vector<2x64xf32>
    %862 = arith.addf %861, %753 : vector<2x64xf32>
    %863 = arith.mulf %851, %862 : vector<2x64xf32>
    %864 = arith.addf %860, %863 : vector<2x64xf32>
    %865 = math.tanh %864 : vector<2x64xf32>
    %cst_163 = arith.constant 1.000000e+00 : f32
    %866 = vector.broadcast %cst_163 : f32 to vector<2x64xf32>
    %867 = arith.subf %866, %859 : vector<2x64xf32>
    %868 = arith.mulf %867, %865 : vector<2x64xf32>
    %869 = arith.mulf %859, %841 : vector<2x64xf32>
    %870 = arith.addf %868, %869 : vector<2x64xf32>
    %871 = vector.extract_strided_slice %747 {offsets = [8, 0], sizes = [2, 192], strides = [1, 1]} : vector<16x192xf32> to vector<2x192xf32>
    %cst_164 = arith.constant dense<0.000000e+00> : vector<2x192xf32>
    %872 = tpu.matmul %870, %749, %cst_164 {dimension_numbers = #tpu.dot_dimension_numbers<[1], [0], [0], [1], [0, 0, 1, 1], [], []>} : vector<2x64xf32>, vector<64x192xf32>, vector<2x192xf32> -> vector<2x192xf32>
    %873 = vector.extract_strided_slice %871 {offsets = [0, 0], sizes = [2, 64], strides = [1, 1]} : vector<2x192xf32> to vector<2x64xf32>
    %874 = vector.extract_strided_slice %872 {offsets = [0, 0], sizes = [2, 64], strides = [1, 1]} : vector<2x192xf32> to vector<2x64xf32>
    %875 = arith.addf %873, %874 : vector<2x64xf32>
    %876 = arith.negf %875 : vector<2x64xf32>
    %877 = math.exp %876 : vector<2x64xf32>
    %cst_165 = arith.constant 1.000000e+00 : f32
    %878 = vector.broadcast %cst_165 : f32 to vector<2x64xf32>
    %879 = arith.addf %878, %877 : vector<2x64xf32>
    %880 = arith.divf %878, %879 : vector<2x64xf32>
    %881 = vector.extract_strided_slice %871 {offsets = [0, 64], sizes = [2, 64], strides = [1, 1]} : vector<2x192xf32> to vector<2x64xf32>
    %882 = vector.extract_strided_slice %872 {offsets = [0, 64], sizes = [2, 64], strides = [1, 1]} : vector<2x192xf32> to vector<2x64xf32>
    %883 = arith.addf %881, %882 : vector<2x64xf32>
    %884 = arith.negf %883 : vector<2x64xf32>
    %885 = math.exp %884 : vector<2x64xf32>
    %cst_166 = arith.constant 1.000000e+00 : f32
    %886 = vector.broadcast %cst_166 : f32 to vector<2x64xf32>
    %887 = arith.addf %886, %885 : vector<2x64xf32>
    %888 = arith.divf %886, %887 : vector<2x64xf32>
    %889 = vector.extract_strided_slice %871 {offsets = [0, 128], sizes = [2, 64], strides = [1, 1]} : vector<2x192xf32> to vector<2x64xf32>
    %890 = vector.extract_strided_slice %872 {offsets = [0, 128], sizes = [2, 64], strides = [1, 1]} : vector<2x192xf32> to vector<2x64xf32>
    %891 = arith.addf %890, %753 : vector<2x64xf32>
    %892 = arith.mulf %880, %891 : vector<2x64xf32>
    %893 = arith.addf %889, %892 : vector<2x64xf32>
    %894 = math.tanh %893 : vector<2x64xf32>
    %cst_167 = arith.constant 1.000000e+00 : f32
    %895 = vector.broadcast %cst_167 : f32 to vector<2x64xf32>
    %896 = arith.subf %895, %888 : vector<2x64xf32>
    %897 = arith.mulf %896, %894 : vector<2x64xf32>
    %898 = arith.mulf %888, %870 : vector<2x64xf32>
    %899 = arith.addf %897, %898 : vector<2x64xf32>
    %900 = vector.extract_strided_slice %747 {offsets = [10, 0], sizes = [2, 192], strides = [1, 1]} : vector<16x192xf32> to vector<2x192xf32>
    %cst_168 = arith.constant dense<0.000000e+00> : vector<2x192xf32>
    %901 = tpu.matmul %899, %749, %cst_168 {dimension_numbers = #tpu.dot_dimension_numbers<[1], [0], [0], [1], [0, 0, 1, 1], [], []>} : vector<2x64xf32>, vector<64x192xf32>, vector<2x192xf32> -> vector<2x192xf32>
    %902 = vector.extract_strided_slice %900 {offsets = [0, 0], sizes = [2, 64], strides = [1, 1]} : vector<2x192xf32> to vector<2x64xf32>
    %903 = vector.extract_strided_slice %901 {offsets = [0, 0], sizes = [2, 64], strides = [1, 1]} : vector<2x192xf32> to vector<2x64xf32>
    %904 = arith.addf %902, %903 : vector<2x64xf32>
    %905 = arith.negf %904 : vector<2x64xf32>
    %906 = math.exp %905 : vector<2x64xf32>
    %cst_169 = arith.constant 1.000000e+00 : f32
    %907 = vector.broadcast %cst_169 : f32 to vector<2x64xf32>
    %908 = arith.addf %907, %906 : vector<2x64xf32>
    %909 = arith.divf %907, %908 : vector<2x64xf32>
    %910 = vector.extract_strided_slice %900 {offsets = [0, 64], sizes = [2, 64], strides = [1, 1]} : vector<2x192xf32> to vector<2x64xf32>
    %911 = vector.extract_strided_slice %901 {offsets = [0, 64], sizes = [2, 64], strides = [1, 1]} : vector<2x192xf32> to vector<2x64xf32>
    %912 = arith.addf %910, %911 : vector<2x64xf32>
    %913 = arith.negf %912 : vector<2x64xf32>
    %914 = math.exp %913 : vector<2x64xf32>
    %cst_170 = arith.constant 1.000000e+00 : f32
    %915 = vector.broadcast %cst_170 : f32 to vector<2x64xf32>
    %916 = arith.addf %915, %914 : vector<2x64xf32>
    %917 = arith.divf %915, %916 : vector<2x64xf32>
    %918 = vector.extract_strided_slice %900 {offsets = [0, 128], sizes = [2, 64], strides = [1, 1]} : vector<2x192xf32> to vector<2x64xf32>
    %919 = vector.extract_strided_slice %901 {offsets = [0, 128], sizes = [2, 64], strides = [1, 1]} : vector<2x192xf32> to vector<2x64xf32>
    %920 = arith.addf %919, %753 : vector<2x64xf32>
    %921 = arith.mulf %909, %920 : vector<2x64xf32>
    %922 = arith.addf %918, %921 : vector<2x64xf32>
    %923 = math.tanh %922 : vector<2x64xf32>
    %cst_171 = arith.constant 1.000000e+00 : f32
    %924 = vector.broadcast %cst_171 : f32 to vector<2x64xf32>
    %925 = arith.subf %924, %917 : vector<2x64xf32>
    %926 = arith.mulf %925, %923 : vector<2x64xf32>
    %927 = arith.mulf %917, %899 : vector<2x64xf32>
    %928 = arith.addf %926, %927 : vector<2x64xf32>
    %929 = vector.extract_strided_slice %747 {offsets = [12, 0], sizes = [2, 192], strides = [1, 1]} : vector<16x192xf32> to vector<2x192xf32>
    %cst_172 = arith.constant dense<0.000000e+00> : vector<2x192xf32>
    %930 = tpu.matmul %928, %749, %cst_172 {dimension_numbers = #tpu.dot_dimension_numbers<[1], [0], [0], [1], [0, 0, 1, 1], [], []>} : vector<2x64xf32>, vector<64x192xf32>, vector<2x192xf32> -> vector<2x192xf32>
    %931 = vector.extract_strided_slice %929 {offsets = [0, 0], sizes = [2, 64], strides = [1, 1]} : vector<2x192xf32> to vector<2x64xf32>
    %932 = vector.extract_strided_slice %930 {offsets = [0, 0], sizes = [2, 64], strides = [1, 1]} : vector<2x192xf32> to vector<2x64xf32>
    %933 = arith.addf %931, %932 : vector<2x64xf32>
    %934 = arith.negf %933 : vector<2x64xf32>
    %935 = math.exp %934 : vector<2x64xf32>
    %cst_173 = arith.constant 1.000000e+00 : f32
    %936 = vector.broadcast %cst_173 : f32 to vector<2x64xf32>
    %937 = arith.addf %936, %935 : vector<2x64xf32>
    %938 = arith.divf %936, %937 : vector<2x64xf32>
    %939 = vector.extract_strided_slice %929 {offsets = [0, 64], sizes = [2, 64], strides = [1, 1]} : vector<2x192xf32> to vector<2x64xf32>
    %940 = vector.extract_strided_slice %930 {offsets = [0, 64], sizes = [2, 64], strides = [1, 1]} : vector<2x192xf32> to vector<2x64xf32>
    %941 = arith.addf %939, %940 : vector<2x64xf32>
    %942 = arith.negf %941 : vector<2x64xf32>
    %943 = math.exp %942 : vector<2x64xf32>
    %cst_174 = arith.constant 1.000000e+00 : f32
    %944 = vector.broadcast %cst_174 : f32 to vector<2x64xf32>
    %945 = arith.addf %944, %943 : vector<2x64xf32>
    %946 = arith.divf %944, %945 : vector<2x64xf32>
    %947 = vector.extract_strided_slice %929 {offsets = [0, 128], sizes = [2, 64], strides = [1, 1]} : vector<2x192xf32> to vector<2x64xf32>
    %948 = vector.extract_strided_slice %930 {offsets = [0, 128], sizes = [2, 64], strides = [1, 1]} : vector<2x192xf32> to vector<2x64xf32>
    %949 = arith.addf %948, %753 : vector<2x64xf32>
    %950 = arith.mulf %938, %949 : vector<2x64xf32>
    %951 = arith.addf %947, %950 : vector<2x64xf32>
    %952 = math.tanh %951 : vector<2x64xf32>
    %cst_175 = arith.constant 1.000000e+00 : f32
    %953 = vector.broadcast %cst_175 : f32 to vector<2x64xf32>
    %954 = arith.subf %953, %946 : vector<2x64xf32>
    %955 = arith.mulf %954, %952 : vector<2x64xf32>
    %956 = arith.mulf %946, %928 : vector<2x64xf32>
    %957 = arith.addf %955, %956 : vector<2x64xf32>
    %958 = vector.extract_strided_slice %747 {offsets = [14, 0], sizes = [2, 192], strides = [1, 1]} : vector<16x192xf32> to vector<2x192xf32>
    %cst_176 = arith.constant dense<0.000000e+00> : vector<2x192xf32>
    %959 = tpu.matmul %957, %749, %cst_176 {dimension_numbers = #tpu.dot_dimension_numbers<[1], [0], [0], [1], [0, 0, 1, 1], [], []>} : vector<2x64xf32>, vector<64x192xf32>, vector<2x192xf32> -> vector<2x192xf32>
    %960 = vector.extract_strided_slice %958 {offsets = [0, 0], sizes = [2, 64], strides = [1, 1]} : vector<2x192xf32> to vector<2x64xf32>
    %961 = vector.extract_strided_slice %959 {offsets = [0, 0], sizes = [2, 64], strides = [1, 1]} : vector<2x192xf32> to vector<2x64xf32>
    %962 = arith.addf %960, %961 : vector<2x64xf32>
    %963 = arith.negf %962 : vector<2x64xf32>
    %964 = math.exp %963 : vector<2x64xf32>
    %cst_177 = arith.constant 1.000000e+00 : f32
    %965 = vector.broadcast %cst_177 : f32 to vector<2x64xf32>
    %966 = arith.addf %965, %964 : vector<2x64xf32>
    %967 = arith.divf %965, %966 : vector<2x64xf32>
    %968 = vector.extract_strided_slice %958 {offsets = [0, 64], sizes = [2, 64], strides = [1, 1]} : vector<2x192xf32> to vector<2x64xf32>
    %969 = vector.extract_strided_slice %959 {offsets = [0, 64], sizes = [2, 64], strides = [1, 1]} : vector<2x192xf32> to vector<2x64xf32>
    %970 = arith.addf %968, %969 : vector<2x64xf32>
    %971 = arith.negf %970 : vector<2x64xf32>
    %972 = math.exp %971 : vector<2x64xf32>
    %cst_178 = arith.constant 1.000000e+00 : f32
    %973 = vector.broadcast %cst_178 : f32 to vector<2x64xf32>
    %974 = arith.addf %973, %972 : vector<2x64xf32>
    %975 = arith.divf %973, %974 : vector<2x64xf32>
    %976 = vector.extract_strided_slice %958 {offsets = [0, 128], sizes = [2, 64], strides = [1, 1]} : vector<2x192xf32> to vector<2x64xf32>
    %977 = vector.extract_strided_slice %959 {offsets = [0, 128], sizes = [2, 64], strides = [1, 1]} : vector<2x192xf32> to vector<2x64xf32>
    %978 = arith.addf %977, %753 : vector<2x64xf32>
    %979 = arith.mulf %967, %978 : vector<2x64xf32>
    %980 = arith.addf %976, %979 : vector<2x64xf32>
    %981 = math.tanh %980 : vector<2x64xf32>
    %cst_179 = arith.constant 1.000000e+00 : f32
    %982 = vector.broadcast %cst_179 : f32 to vector<2x64xf32>
    %983 = arith.subf %982, %975 : vector<2x64xf32>
    %984 = arith.mulf %983, %981 : vector<2x64xf32>
    %985 = arith.mulf %975, %957 : vector<2x64xf32>
    %986 = arith.addf %984, %985 : vector<2x64xf32>
    %987 = tpu.concatenate %783, %812, %841, %870, %899, %928, %957, %986 in 0 : vector<2x64xf32>, vector<2x64xf32>, vector<2x64xf32>, vector<2x64xf32>, vector<2x64xf32>, vector<2x64xf32>, vector<2x64xf32>, vector<2x64xf32> -> vector<16x64xf32>
    %c3_180 = arith.constant 3 : index
    %c0_181 = arith.constant 0 : index
    %c0_182 = arith.constant 0 : index
    %988 = vector.load %arg2[%c3_180, %c0_181, %c0_182] : memref<5x64x192xf32, #tpu.memory_space<vmem>>, vector<1x64x192xf32>
    %989 = vector.shape_cast %988 : vector<1x64x192xf32> to vector<64x192xf32>
    %cst_183 = arith.constant dense<0.000000e+00> : vector<16x192xf32>
    %990 = tpu.matmul %987, %989, %cst_183 {dimension_numbers = #tpu.dot_dimension_numbers<[1], [0], [0], [1], [0, 0, 1, 1], [], []>} : vector<16x64xf32>, vector<64x192xf32>, vector<16x192xf32> -> vector<16x192xf32>
    %c4 = arith.constant 4 : index
    %c0_184 = arith.constant 0 : index
    %c0_185 = arith.constant 0 : index
    %991 = vector.load %arg4[%c4, %c0_184, %c0_185] : memref<6x1x192xf32, #tpu.memory_space<vmem>>, vector<1x1x192xf32>
    %992 = vector.shape_cast %991 : vector<1x1x192xf32> to vector<1x192xf32>
    %993 = vector.broadcast %992 : vector<1x192xf32> to vector<16x192xf32>
    %994 = arith.addf %990, %993 : vector<16x192xf32>
    %c4_186 = arith.constant 4 : index
    %c0_187 = arith.constant 0 : index
    %c0_188 = arith.constant 0 : index
    %995 = vector.load %arg3[%c4_186, %c0_187, %c0_188] : memref<6x64x192xf32, #tpu.memory_space<vmem>>, vector<1x64x192xf32>
    %996 = vector.shape_cast %995 : vector<1x64x192xf32> to vector<64x192xf32>
    %c4_189 = arith.constant 4 : index
    %c0_190 = arith.constant 0 : index
    %c0_191 = arith.constant 0 : index
    %997 = vector.load %arg5[%c4_189, %c0_190, %c0_191] : memref<6x1x64xf32, #tpu.memory_space<vmem>>, vector<1x1x64xf32>
    %998 = vector.shape_cast %997 : vector<1x1x64xf32> to vector<1x64xf32>
    %999 = vector.shape_cast %998 : vector<1x64xf32> to vector<1x64xf32>
    %1000 = vector.broadcast %999 : vector<1x64xf32> to vector<2x64xf32>
    %cst_192 = arith.constant 0.000000e+00 : f32
    %1001 = vector.broadcast %cst_192 : f32 to vector<2x64xf32>
    %1002 = vector.extract_strided_slice %994 {offsets = [0, 0], sizes = [2, 192], strides = [1, 1]} : vector<16x192xf32> to vector<2x192xf32>
    %cst_193 = arith.constant dense<0.000000e+00> : vector<2x192xf32>
    %1003 = tpu.matmul %1001, %996, %cst_193 {dimension_numbers = #tpu.dot_dimension_numbers<[1], [0], [0], [1], [0, 0, 1, 1], [], []>} : vector<2x64xf32>, vector<64x192xf32>, vector<2x192xf32> -> vector<2x192xf32>
    %1004 = vector.extract_strided_slice %1002 {offsets = [0, 0], sizes = [2, 64], strides = [1, 1]} : vector<2x192xf32> to vector<2x64xf32>
    %1005 = vector.extract_strided_slice %1003 {offsets = [0, 0], sizes = [2, 64], strides = [1, 1]} : vector<2x192xf32> to vector<2x64xf32>
    %1006 = arith.addf %1004, %1005 : vector<2x64xf32>
    %1007 = arith.negf %1006 : vector<2x64xf32>
    %1008 = math.exp %1007 : vector<2x64xf32>
    %cst_194 = arith.constant 1.000000e+00 : f32
    %1009 = vector.broadcast %cst_194 : f32 to vector<2x64xf32>
    %1010 = arith.addf %1009, %1008 : vector<2x64xf32>
    %1011 = arith.divf %1009, %1010 : vector<2x64xf32>
    %1012 = vector.extract_strided_slice %1002 {offsets = [0, 64], sizes = [2, 64], strides = [1, 1]} : vector<2x192xf32> to vector<2x64xf32>
    %1013 = vector.extract_strided_slice %1003 {offsets = [0, 64], sizes = [2, 64], strides = [1, 1]} : vector<2x192xf32> to vector<2x64xf32>
    %1014 = arith.addf %1012, %1013 : vector<2x64xf32>
    %1015 = arith.negf %1014 : vector<2x64xf32>
    %1016 = math.exp %1015 : vector<2x64xf32>
    %cst_195 = arith.constant 1.000000e+00 : f32
    %1017 = vector.broadcast %cst_195 : f32 to vector<2x64xf32>
    %1018 = arith.addf %1017, %1016 : vector<2x64xf32>
    %1019 = arith.divf %1017, %1018 : vector<2x64xf32>
    %1020 = vector.extract_strided_slice %1002 {offsets = [0, 128], sizes = [2, 64], strides = [1, 1]} : vector<2x192xf32> to vector<2x64xf32>
    %1021 = vector.extract_strided_slice %1003 {offsets = [0, 128], sizes = [2, 64], strides = [1, 1]} : vector<2x192xf32> to vector<2x64xf32>
    %1022 = arith.addf %1021, %1000 : vector<2x64xf32>
    %1023 = arith.mulf %1011, %1022 : vector<2x64xf32>
    %1024 = arith.addf %1020, %1023 : vector<2x64xf32>
    %1025 = math.tanh %1024 : vector<2x64xf32>
    %cst_196 = arith.constant 1.000000e+00 : f32
    %1026 = vector.broadcast %cst_196 : f32 to vector<2x64xf32>
    %1027 = arith.subf %1026, %1019 : vector<2x64xf32>
    %1028 = arith.mulf %1027, %1025 : vector<2x64xf32>
    %1029 = arith.mulf %1019, %1001 : vector<2x64xf32>
    %1030 = arith.addf %1028, %1029 : vector<2x64xf32>
    %1031 = vector.extract_strided_slice %994 {offsets = [2, 0], sizes = [2, 192], strides = [1, 1]} : vector<16x192xf32> to vector<2x192xf32>
    %cst_197 = arith.constant dense<0.000000e+00> : vector<2x192xf32>
    %1032 = tpu.matmul %1030, %996, %cst_197 {dimension_numbers = #tpu.dot_dimension_numbers<[1], [0], [0], [1], [0, 0, 1, 1], [], []>} : vector<2x64xf32>, vector<64x192xf32>, vector<2x192xf32> -> vector<2x192xf32>
    %1033 = vector.extract_strided_slice %1031 {offsets = [0, 0], sizes = [2, 64], strides = [1, 1]} : vector<2x192xf32> to vector<2x64xf32>
    %1034 = vector.extract_strided_slice %1032 {offsets = [0, 0], sizes = [2, 64], strides = [1, 1]} : vector<2x192xf32> to vector<2x64xf32>
    %1035 = arith.addf %1033, %1034 : vector<2x64xf32>
    %1036 = arith.negf %1035 : vector<2x64xf32>
    %1037 = math.exp %1036 : vector<2x64xf32>
    %cst_198 = arith.constant 1.000000e+00 : f32
    %1038 = vector.broadcast %cst_198 : f32 to vector<2x64xf32>
    %1039 = arith.addf %1038, %1037 : vector<2x64xf32>
    %1040 = arith.divf %1038, %1039 : vector<2x64xf32>
    %1041 = vector.extract_strided_slice %1031 {offsets = [0, 64], sizes = [2, 64], strides = [1, 1]} : vector<2x192xf32> to vector<2x64xf32>
    %1042 = vector.extract_strided_slice %1032 {offsets = [0, 64], sizes = [2, 64], strides = [1, 1]} : vector<2x192xf32> to vector<2x64xf32>
    %1043 = arith.addf %1041, %1042 : vector<2x64xf32>
    %1044 = arith.negf %1043 : vector<2x64xf32>
    %1045 = math.exp %1044 : vector<2x64xf32>
    %cst_199 = arith.constant 1.000000e+00 : f32
    %1046 = vector.broadcast %cst_199 : f32 to vector<2x64xf32>
    %1047 = arith.addf %1046, %1045 : vector<2x64xf32>
    %1048 = arith.divf %1046, %1047 : vector<2x64xf32>
    %1049 = vector.extract_strided_slice %1031 {offsets = [0, 128], sizes = [2, 64], strides = [1, 1]} : vector<2x192xf32> to vector<2x64xf32>
    %1050 = vector.extract_strided_slice %1032 {offsets = [0, 128], sizes = [2, 64], strides = [1, 1]} : vector<2x192xf32> to vector<2x64xf32>
    %1051 = arith.addf %1050, %1000 : vector<2x64xf32>
    %1052 = arith.mulf %1040, %1051 : vector<2x64xf32>
    %1053 = arith.addf %1049, %1052 : vector<2x64xf32>
    %1054 = math.tanh %1053 : vector<2x64xf32>
    %cst_200 = arith.constant 1.000000e+00 : f32
    %1055 = vector.broadcast %cst_200 : f32 to vector<2x64xf32>
    %1056 = arith.subf %1055, %1048 : vector<2x64xf32>
    %1057 = arith.mulf %1056, %1054 : vector<2x64xf32>
    %1058 = arith.mulf %1048, %1030 : vector<2x64xf32>
    %1059 = arith.addf %1057, %1058 : vector<2x64xf32>
    %1060 = vector.extract_strided_slice %994 {offsets = [4, 0], sizes = [2, 192], strides = [1, 1]} : vector<16x192xf32> to vector<2x192xf32>
    %cst_201 = arith.constant dense<0.000000e+00> : vector<2x192xf32>
    %1061 = tpu.matmul %1059, %996, %cst_201 {dimension_numbers = #tpu.dot_dimension_numbers<[1], [0], [0], [1], [0, 0, 1, 1], [], []>} : vector<2x64xf32>, vector<64x192xf32>, vector<2x192xf32> -> vector<2x192xf32>
    %1062 = vector.extract_strided_slice %1060 {offsets = [0, 0], sizes = [2, 64], strides = [1, 1]} : vector<2x192xf32> to vector<2x64xf32>
    %1063 = vector.extract_strided_slice %1061 {offsets = [0, 0], sizes = [2, 64], strides = [1, 1]} : vector<2x192xf32> to vector<2x64xf32>
    %1064 = arith.addf %1062, %1063 : vector<2x64xf32>
    %1065 = arith.negf %1064 : vector<2x64xf32>
    %1066 = math.exp %1065 : vector<2x64xf32>
    %cst_202 = arith.constant 1.000000e+00 : f32
    %1067 = vector.broadcast %cst_202 : f32 to vector<2x64xf32>
    %1068 = arith.addf %1067, %1066 : vector<2x64xf32>
    %1069 = arith.divf %1067, %1068 : vector<2x64xf32>
    %1070 = vector.extract_strided_slice %1060 {offsets = [0, 64], sizes = [2, 64], strides = [1, 1]} : vector<2x192xf32> to vector<2x64xf32>
    %1071 = vector.extract_strided_slice %1061 {offsets = [0, 64], sizes = [2, 64], strides = [1, 1]} : vector<2x192xf32> to vector<2x64xf32>
    %1072 = arith.addf %1070, %1071 : vector<2x64xf32>
    %1073 = arith.negf %1072 : vector<2x64xf32>
    %1074 = math.exp %1073 : vector<2x64xf32>
    %cst_203 = arith.constant 1.000000e+00 : f32
    %1075 = vector.broadcast %cst_203 : f32 to vector<2x64xf32>
    %1076 = arith.addf %1075, %1074 : vector<2x64xf32>
    %1077 = arith.divf %1075, %1076 : vector<2x64xf32>
    %1078 = vector.extract_strided_slice %1060 {offsets = [0, 128], sizes = [2, 64], strides = [1, 1]} : vector<2x192xf32> to vector<2x64xf32>
    %1079 = vector.extract_strided_slice %1061 {offsets = [0, 128], sizes = [2, 64], strides = [1, 1]} : vector<2x192xf32> to vector<2x64xf32>
    %1080 = arith.addf %1079, %1000 : vector<2x64xf32>
    %1081 = arith.mulf %1069, %1080 : vector<2x64xf32>
    %1082 = arith.addf %1078, %1081 : vector<2x64xf32>
    %1083 = math.tanh %1082 : vector<2x64xf32>
    %cst_204 = arith.constant 1.000000e+00 : f32
    %1084 = vector.broadcast %cst_204 : f32 to vector<2x64xf32>
    %1085 = arith.subf %1084, %1077 : vector<2x64xf32>
    %1086 = arith.mulf %1085, %1083 : vector<2x64xf32>
    %1087 = arith.mulf %1077, %1059 : vector<2x64xf32>
    %1088 = arith.addf %1086, %1087 : vector<2x64xf32>
    %1089 = vector.extract_strided_slice %994 {offsets = [6, 0], sizes = [2, 192], strides = [1, 1]} : vector<16x192xf32> to vector<2x192xf32>
    %cst_205 = arith.constant dense<0.000000e+00> : vector<2x192xf32>
    %1090 = tpu.matmul %1088, %996, %cst_205 {dimension_numbers = #tpu.dot_dimension_numbers<[1], [0], [0], [1], [0, 0, 1, 1], [], []>} : vector<2x64xf32>, vector<64x192xf32>, vector<2x192xf32> -> vector<2x192xf32>
    %1091 = vector.extract_strided_slice %1089 {offsets = [0, 0], sizes = [2, 64], strides = [1, 1]} : vector<2x192xf32> to vector<2x64xf32>
    %1092 = vector.extract_strided_slice %1090 {offsets = [0, 0], sizes = [2, 64], strides = [1, 1]} : vector<2x192xf32> to vector<2x64xf32>
    %1093 = arith.addf %1091, %1092 : vector<2x64xf32>
    %1094 = arith.negf %1093 : vector<2x64xf32>
    %1095 = math.exp %1094 : vector<2x64xf32>
    %cst_206 = arith.constant 1.000000e+00 : f32
    %1096 = vector.broadcast %cst_206 : f32 to vector<2x64xf32>
    %1097 = arith.addf %1096, %1095 : vector<2x64xf32>
    %1098 = arith.divf %1096, %1097 : vector<2x64xf32>
    %1099 = vector.extract_strided_slice %1089 {offsets = [0, 64], sizes = [2, 64], strides = [1, 1]} : vector<2x192xf32> to vector<2x64xf32>
    %1100 = vector.extract_strided_slice %1090 {offsets = [0, 64], sizes = [2, 64], strides = [1, 1]} : vector<2x192xf32> to vector<2x64xf32>
    %1101 = arith.addf %1099, %1100 : vector<2x64xf32>
    %1102 = arith.negf %1101 : vector<2x64xf32>
    %1103 = math.exp %1102 : vector<2x64xf32>
    %cst_207 = arith.constant 1.000000e+00 : f32
    %1104 = vector.broadcast %cst_207 : f32 to vector<2x64xf32>
    %1105 = arith.addf %1104, %1103 : vector<2x64xf32>
    %1106 = arith.divf %1104, %1105 : vector<2x64xf32>
    %1107 = vector.extract_strided_slice %1089 {offsets = [0, 128], sizes = [2, 64], strides = [1, 1]} : vector<2x192xf32> to vector<2x64xf32>
    %1108 = vector.extract_strided_slice %1090 {offsets = [0, 128], sizes = [2, 64], strides = [1, 1]} : vector<2x192xf32> to vector<2x64xf32>
    %1109 = arith.addf %1108, %1000 : vector<2x64xf32>
    %1110 = arith.mulf %1098, %1109 : vector<2x64xf32>
    %1111 = arith.addf %1107, %1110 : vector<2x64xf32>
    %1112 = math.tanh %1111 : vector<2x64xf32>
    %cst_208 = arith.constant 1.000000e+00 : f32
    %1113 = vector.broadcast %cst_208 : f32 to vector<2x64xf32>
    %1114 = arith.subf %1113, %1106 : vector<2x64xf32>
    %1115 = arith.mulf %1114, %1112 : vector<2x64xf32>
    %1116 = arith.mulf %1106, %1088 : vector<2x64xf32>
    %1117 = arith.addf %1115, %1116 : vector<2x64xf32>
    %1118 = vector.extract_strided_slice %994 {offsets = [8, 0], sizes = [2, 192], strides = [1, 1]} : vector<16x192xf32> to vector<2x192xf32>
    %cst_209 = arith.constant dense<0.000000e+00> : vector<2x192xf32>
    %1119 = tpu.matmul %1117, %996, %cst_209 {dimension_numbers = #tpu.dot_dimension_numbers<[1], [0], [0], [1], [0, 0, 1, 1], [], []>} : vector<2x64xf32>, vector<64x192xf32>, vector<2x192xf32> -> vector<2x192xf32>
    %1120 = vector.extract_strided_slice %1118 {offsets = [0, 0], sizes = [2, 64], strides = [1, 1]} : vector<2x192xf32> to vector<2x64xf32>
    %1121 = vector.extract_strided_slice %1119 {offsets = [0, 0], sizes = [2, 64], strides = [1, 1]} : vector<2x192xf32> to vector<2x64xf32>
    %1122 = arith.addf %1120, %1121 : vector<2x64xf32>
    %1123 = arith.negf %1122 : vector<2x64xf32>
    %1124 = math.exp %1123 : vector<2x64xf32>
    %cst_210 = arith.constant 1.000000e+00 : f32
    %1125 = vector.broadcast %cst_210 : f32 to vector<2x64xf32>
    %1126 = arith.addf %1125, %1124 : vector<2x64xf32>
    %1127 = arith.divf %1125, %1126 : vector<2x64xf32>
    %1128 = vector.extract_strided_slice %1118 {offsets = [0, 64], sizes = [2, 64], strides = [1, 1]} : vector<2x192xf32> to vector<2x64xf32>
    %1129 = vector.extract_strided_slice %1119 {offsets = [0, 64], sizes = [2, 64], strides = [1, 1]} : vector<2x192xf32> to vector<2x64xf32>
    %1130 = arith.addf %1128, %1129 : vector<2x64xf32>
    %1131 = arith.negf %1130 : vector<2x64xf32>
    %1132 = math.exp %1131 : vector<2x64xf32>
    %cst_211 = arith.constant 1.000000e+00 : f32
    %1133 = vector.broadcast %cst_211 : f32 to vector<2x64xf32>
    %1134 = arith.addf %1133, %1132 : vector<2x64xf32>
    %1135 = arith.divf %1133, %1134 : vector<2x64xf32>
    %1136 = vector.extract_strided_slice %1118 {offsets = [0, 128], sizes = [2, 64], strides = [1, 1]} : vector<2x192xf32> to vector<2x64xf32>
    %1137 = vector.extract_strided_slice %1119 {offsets = [0, 128], sizes = [2, 64], strides = [1, 1]} : vector<2x192xf32> to vector<2x64xf32>
    %1138 = arith.addf %1137, %1000 : vector<2x64xf32>
    %1139 = arith.mulf %1127, %1138 : vector<2x64xf32>
    %1140 = arith.addf %1136, %1139 : vector<2x64xf32>
    %1141 = math.tanh %1140 : vector<2x64xf32>
    %cst_212 = arith.constant 1.000000e+00 : f32
    %1142 = vector.broadcast %cst_212 : f32 to vector<2x64xf32>
    %1143 = arith.subf %1142, %1135 : vector<2x64xf32>
    %1144 = arith.mulf %1143, %1141 : vector<2x64xf32>
    %1145 = arith.mulf %1135, %1117 : vector<2x64xf32>
    %1146 = arith.addf %1144, %1145 : vector<2x64xf32>
    %1147 = vector.extract_strided_slice %994 {offsets = [10, 0], sizes = [2, 192], strides = [1, 1]} : vector<16x192xf32> to vector<2x192xf32>
    %cst_213 = arith.constant dense<0.000000e+00> : vector<2x192xf32>
    %1148 = tpu.matmul %1146, %996, %cst_213 {dimension_numbers = #tpu.dot_dimension_numbers<[1], [0], [0], [1], [0, 0, 1, 1], [], []>} : vector<2x64xf32>, vector<64x192xf32>, vector<2x192xf32> -> vector<2x192xf32>
    %1149 = vector.extract_strided_slice %1147 {offsets = [0, 0], sizes = [2, 64], strides = [1, 1]} : vector<2x192xf32> to vector<2x64xf32>
    %1150 = vector.extract_strided_slice %1148 {offsets = [0, 0], sizes = [2, 64], strides = [1, 1]} : vector<2x192xf32> to vector<2x64xf32>
    %1151 = arith.addf %1149, %1150 : vector<2x64xf32>
    %1152 = arith.negf %1151 : vector<2x64xf32>
    %1153 = math.exp %1152 : vector<2x64xf32>
    %cst_214 = arith.constant 1.000000e+00 : f32
    %1154 = vector.broadcast %cst_214 : f32 to vector<2x64xf32>
    %1155 = arith.addf %1154, %1153 : vector<2x64xf32>
    %1156 = arith.divf %1154, %1155 : vector<2x64xf32>
    %1157 = vector.extract_strided_slice %1147 {offsets = [0, 64], sizes = [2, 64], strides = [1, 1]} : vector<2x192xf32> to vector<2x64xf32>
    %1158 = vector.extract_strided_slice %1148 {offsets = [0, 64], sizes = [2, 64], strides = [1, 1]} : vector<2x192xf32> to vector<2x64xf32>
    %1159 = arith.addf %1157, %1158 : vector<2x64xf32>
    %1160 = arith.negf %1159 : vector<2x64xf32>
    %1161 = math.exp %1160 : vector<2x64xf32>
    %cst_215 = arith.constant 1.000000e+00 : f32
    %1162 = vector.broadcast %cst_215 : f32 to vector<2x64xf32>
    %1163 = arith.addf %1162, %1161 : vector<2x64xf32>
    %1164 = arith.divf %1162, %1163 : vector<2x64xf32>
    %1165 = vector.extract_strided_slice %1147 {offsets = [0, 128], sizes = [2, 64], strides = [1, 1]} : vector<2x192xf32> to vector<2x64xf32>
    %1166 = vector.extract_strided_slice %1148 {offsets = [0, 128], sizes = [2, 64], strides = [1, 1]} : vector<2x192xf32> to vector<2x64xf32>
    %1167 = arith.addf %1166, %1000 : vector<2x64xf32>
    %1168 = arith.mulf %1156, %1167 : vector<2x64xf32>
    %1169 = arith.addf %1165, %1168 : vector<2x64xf32>
    %1170 = math.tanh %1169 : vector<2x64xf32>
    %cst_216 = arith.constant 1.000000e+00 : f32
    %1171 = vector.broadcast %cst_216 : f32 to vector<2x64xf32>
    %1172 = arith.subf %1171, %1164 : vector<2x64xf32>
    %1173 = arith.mulf %1172, %1170 : vector<2x64xf32>
    %1174 = arith.mulf %1164, %1146 : vector<2x64xf32>
    %1175 = arith.addf %1173, %1174 : vector<2x64xf32>
    %1176 = vector.extract_strided_slice %994 {offsets = [12, 0], sizes = [2, 192], strides = [1, 1]} : vector<16x192xf32> to vector<2x192xf32>
    %cst_217 = arith.constant dense<0.000000e+00> : vector<2x192xf32>
    %1177 = tpu.matmul %1175, %996, %cst_217 {dimension_numbers = #tpu.dot_dimension_numbers<[1], [0], [0], [1], [0, 0, 1, 1], [], []>} : vector<2x64xf32>, vector<64x192xf32>, vector<2x192xf32> -> vector<2x192xf32>
    %1178 = vector.extract_strided_slice %1176 {offsets = [0, 0], sizes = [2, 64], strides = [1, 1]} : vector<2x192xf32> to vector<2x64xf32>
    %1179 = vector.extract_strided_slice %1177 {offsets = [0, 0], sizes = [2, 64], strides = [1, 1]} : vector<2x192xf32> to vector<2x64xf32>
    %1180 = arith.addf %1178, %1179 : vector<2x64xf32>
    %1181 = arith.negf %1180 : vector<2x64xf32>
    %1182 = math.exp %1181 : vector<2x64xf32>
    %cst_218 = arith.constant 1.000000e+00 : f32
    %1183 = vector.broadcast %cst_218 : f32 to vector<2x64xf32>
    %1184 = arith.addf %1183, %1182 : vector<2x64xf32>
    %1185 = arith.divf %1183, %1184 : vector<2x64xf32>
    %1186 = vector.extract_strided_slice %1176 {offsets = [0, 64], sizes = [2, 64], strides = [1, 1]} : vector<2x192xf32> to vector<2x64xf32>
    %1187 = vector.extract_strided_slice %1177 {offsets = [0, 64], sizes = [2, 64], strides = [1, 1]} : vector<2x192xf32> to vector<2x64xf32>
    %1188 = arith.addf %1186, %1187 : vector<2x64xf32>
    %1189 = arith.negf %1188 : vector<2x64xf32>
    %1190 = math.exp %1189 : vector<2x64xf32>
    %cst_219 = arith.constant 1.000000e+00 : f32
    %1191 = vector.broadcast %cst_219 : f32 to vector<2x64xf32>
    %1192 = arith.addf %1191, %1190 : vector<2x64xf32>
    %1193 = arith.divf %1191, %1192 : vector<2x64xf32>
    %1194 = vector.extract_strided_slice %1176 {offsets = [0, 128], sizes = [2, 64], strides = [1, 1]} : vector<2x192xf32> to vector<2x64xf32>
    %1195 = vector.extract_strided_slice %1177 {offsets = [0, 128], sizes = [2, 64], strides = [1, 1]} : vector<2x192xf32> to vector<2x64xf32>
    %1196 = arith.addf %1195, %1000 : vector<2x64xf32>
    %1197 = arith.mulf %1185, %1196 : vector<2x64xf32>
    %1198 = arith.addf %1194, %1197 : vector<2x64xf32>
    %1199 = math.tanh %1198 : vector<2x64xf32>
    %cst_220 = arith.constant 1.000000e+00 : f32
    %1200 = vector.broadcast %cst_220 : f32 to vector<2x64xf32>
    %1201 = arith.subf %1200, %1193 : vector<2x64xf32>
    %1202 = arith.mulf %1201, %1199 : vector<2x64xf32>
    %1203 = arith.mulf %1193, %1175 : vector<2x64xf32>
    %1204 = arith.addf %1202, %1203 : vector<2x64xf32>
    %1205 = vector.extract_strided_slice %994 {offsets = [14, 0], sizes = [2, 192], strides = [1, 1]} : vector<16x192xf32> to vector<2x192xf32>
    %cst_221 = arith.constant dense<0.000000e+00> : vector<2x192xf32>
    %1206 = tpu.matmul %1204, %996, %cst_221 {dimension_numbers = #tpu.dot_dimension_numbers<[1], [0], [0], [1], [0, 0, 1, 1], [], []>} : vector<2x64xf32>, vector<64x192xf32>, vector<2x192xf32> -> vector<2x192xf32>
    %1207 = vector.extract_strided_slice %1205 {offsets = [0, 0], sizes = [2, 64], strides = [1, 1]} : vector<2x192xf32> to vector<2x64xf32>
    %1208 = vector.extract_strided_slice %1206 {offsets = [0, 0], sizes = [2, 64], strides = [1, 1]} : vector<2x192xf32> to vector<2x64xf32>
    %1209 = arith.addf %1207, %1208 : vector<2x64xf32>
    %1210 = arith.negf %1209 : vector<2x64xf32>
    %1211 = math.exp %1210 : vector<2x64xf32>
    %cst_222 = arith.constant 1.000000e+00 : f32
    %1212 = vector.broadcast %cst_222 : f32 to vector<2x64xf32>
    %1213 = arith.addf %1212, %1211 : vector<2x64xf32>
    %1214 = arith.divf %1212, %1213 : vector<2x64xf32>
    %1215 = vector.extract_strided_slice %1205 {offsets = [0, 64], sizes = [2, 64], strides = [1, 1]} : vector<2x192xf32> to vector<2x64xf32>
    %1216 = vector.extract_strided_slice %1206 {offsets = [0, 64], sizes = [2, 64], strides = [1, 1]} : vector<2x192xf32> to vector<2x64xf32>
    %1217 = arith.addf %1215, %1216 : vector<2x64xf32>
    %1218 = arith.negf %1217 : vector<2x64xf32>
    %1219 = math.exp %1218 : vector<2x64xf32>
    %cst_223 = arith.constant 1.000000e+00 : f32
    %1220 = vector.broadcast %cst_223 : f32 to vector<2x64xf32>
    %1221 = arith.addf %1220, %1219 : vector<2x64xf32>
    %1222 = arith.divf %1220, %1221 : vector<2x64xf32>
    %1223 = vector.extract_strided_slice %1205 {offsets = [0, 128], sizes = [2, 64], strides = [1, 1]} : vector<2x192xf32> to vector<2x64xf32>
    %1224 = vector.extract_strided_slice %1206 {offsets = [0, 128], sizes = [2, 64], strides = [1, 1]} : vector<2x192xf32> to vector<2x64xf32>
    %1225 = arith.addf %1224, %1000 : vector<2x64xf32>
    %1226 = arith.mulf %1214, %1225 : vector<2x64xf32>
    %1227 = arith.addf %1223, %1226 : vector<2x64xf32>
    %1228 = math.tanh %1227 : vector<2x64xf32>
    %cst_224 = arith.constant 1.000000e+00 : f32
    %1229 = vector.broadcast %cst_224 : f32 to vector<2x64xf32>
    %1230 = arith.subf %1229, %1222 : vector<2x64xf32>
    %1231 = arith.mulf %1230, %1228 : vector<2x64xf32>
    %1232 = arith.mulf %1222, %1204 : vector<2x64xf32>
    %1233 = arith.addf %1231, %1232 : vector<2x64xf32>
    %1234 = tpu.concatenate %1030, %1059, %1088, %1117, %1146, %1175, %1204, %1233 in 0 : vector<2x64xf32>, vector<2x64xf32>, vector<2x64xf32>, vector<2x64xf32>, vector<2x64xf32>, vector<2x64xf32>, vector<2x64xf32>, vector<2x64xf32> -> vector<16x64xf32>
    %c4_225 = arith.constant 4 : index
    %c0_226 = arith.constant 0 : index
    %c0_227 = arith.constant 0 : index
    %1235 = vector.load %arg2[%c4_225, %c0_226, %c0_227] : memref<5x64x192xf32, #tpu.memory_space<vmem>>, vector<1x64x192xf32>
    %1236 = vector.shape_cast %1235 : vector<1x64x192xf32> to vector<64x192xf32>
    %cst_228 = arith.constant dense<0.000000e+00> : vector<16x192xf32>
    %1237 = tpu.matmul %1234, %1236, %cst_228 {dimension_numbers = #tpu.dot_dimension_numbers<[1], [0], [0], [1], [0, 0, 1, 1], [], []>} : vector<16x64xf32>, vector<64x192xf32>, vector<16x192xf32> -> vector<16x192xf32>
    %c5 = arith.constant 5 : index
    %c0_229 = arith.constant 0 : index
    %c0_230 = arith.constant 0 : index
    %1238 = vector.load %arg4[%c5, %c0_229, %c0_230] : memref<6x1x192xf32, #tpu.memory_space<vmem>>, vector<1x1x192xf32>
    %1239 = vector.shape_cast %1238 : vector<1x1x192xf32> to vector<1x192xf32>
    %1240 = vector.broadcast %1239 : vector<1x192xf32> to vector<16x192xf32>
    %1241 = arith.addf %1237, %1240 : vector<16x192xf32>
    %c5_231 = arith.constant 5 : index
    %c0_232 = arith.constant 0 : index
    %c0_233 = arith.constant 0 : index
    %1242 = vector.load %arg3[%c5_231, %c0_232, %c0_233] : memref<6x64x192xf32, #tpu.memory_space<vmem>>, vector<1x64x192xf32>
    %1243 = vector.shape_cast %1242 : vector<1x64x192xf32> to vector<64x192xf32>
    %c5_234 = arith.constant 5 : index
    %c0_235 = arith.constant 0 : index
    %c0_236 = arith.constant 0 : index
    %1244 = vector.load %arg5[%c5_234, %c0_235, %c0_236] : memref<6x1x64xf32, #tpu.memory_space<vmem>>, vector<1x1x64xf32>
    %1245 = vector.shape_cast %1244 : vector<1x1x64xf32> to vector<1x64xf32>
    %1246 = vector.shape_cast %1245 : vector<1x64xf32> to vector<1x64xf32>
    %1247 = vector.broadcast %1246 : vector<1x64xf32> to vector<2x64xf32>
    %cst_237 = arith.constant 0.000000e+00 : f32
    %1248 = vector.broadcast %cst_237 : f32 to vector<2x64xf32>
    %1249 = vector.extract_strided_slice %1241 {offsets = [0, 0], sizes = [2, 192], strides = [1, 1]} : vector<16x192xf32> to vector<2x192xf32>
    %cst_238 = arith.constant dense<0.000000e+00> : vector<2x192xf32>
    %1250 = tpu.matmul %1248, %1243, %cst_238 {dimension_numbers = #tpu.dot_dimension_numbers<[1], [0], [0], [1], [0, 0, 1, 1], [], []>} : vector<2x64xf32>, vector<64x192xf32>, vector<2x192xf32> -> vector<2x192xf32>
    %1251 = vector.extract_strided_slice %1249 {offsets = [0, 0], sizes = [2, 64], strides = [1, 1]} : vector<2x192xf32> to vector<2x64xf32>
    %1252 = vector.extract_strided_slice %1250 {offsets = [0, 0], sizes = [2, 64], strides = [1, 1]} : vector<2x192xf32> to vector<2x64xf32>
    %1253 = arith.addf %1251, %1252 : vector<2x64xf32>
    %1254 = arith.negf %1253 : vector<2x64xf32>
    %1255 = math.exp %1254 : vector<2x64xf32>
    %cst_239 = arith.constant 1.000000e+00 : f32
    %1256 = vector.broadcast %cst_239 : f32 to vector<2x64xf32>
    %1257 = arith.addf %1256, %1255 : vector<2x64xf32>
    %1258 = arith.divf %1256, %1257 : vector<2x64xf32>
    %1259 = vector.extract_strided_slice %1249 {offsets = [0, 64], sizes = [2, 64], strides = [1, 1]} : vector<2x192xf32> to vector<2x64xf32>
    %1260 = vector.extract_strided_slice %1250 {offsets = [0, 64], sizes = [2, 64], strides = [1, 1]} : vector<2x192xf32> to vector<2x64xf32>
    %1261 = arith.addf %1259, %1260 : vector<2x64xf32>
    %1262 = arith.negf %1261 : vector<2x64xf32>
    %1263 = math.exp %1262 : vector<2x64xf32>
    %cst_240 = arith.constant 1.000000e+00 : f32
    %1264 = vector.broadcast %cst_240 : f32 to vector<2x64xf32>
    %1265 = arith.addf %1264, %1263 : vector<2x64xf32>
    %1266 = arith.divf %1264, %1265 : vector<2x64xf32>
    %1267 = vector.extract_strided_slice %1249 {offsets = [0, 128], sizes = [2, 64], strides = [1, 1]} : vector<2x192xf32> to vector<2x64xf32>
    %1268 = vector.extract_strided_slice %1250 {offsets = [0, 128], sizes = [2, 64], strides = [1, 1]} : vector<2x192xf32> to vector<2x64xf32>
    %1269 = arith.addf %1268, %1247 : vector<2x64xf32>
    %1270 = arith.mulf %1258, %1269 : vector<2x64xf32>
    %1271 = arith.addf %1267, %1270 : vector<2x64xf32>
    %1272 = math.tanh %1271 : vector<2x64xf32>
    %cst_241 = arith.constant 1.000000e+00 : f32
    %1273 = vector.broadcast %cst_241 : f32 to vector<2x64xf32>
    %1274 = arith.subf %1273, %1266 : vector<2x64xf32>
    %1275 = arith.mulf %1274, %1272 : vector<2x64xf32>
    %1276 = arith.mulf %1266, %1248 : vector<2x64xf32>
    %1277 = arith.addf %1275, %1276 : vector<2x64xf32>
    %1278 = vector.extract_strided_slice %1241 {offsets = [2, 0], sizes = [2, 192], strides = [1, 1]} : vector<16x192xf32> to vector<2x192xf32>
    %cst_242 = arith.constant dense<0.000000e+00> : vector<2x192xf32>
    %1279 = tpu.matmul %1277, %1243, %cst_242 {dimension_numbers = #tpu.dot_dimension_numbers<[1], [0], [0], [1], [0, 0, 1, 1], [], []>} : vector<2x64xf32>, vector<64x192xf32>, vector<2x192xf32> -> vector<2x192xf32>
    %1280 = vector.extract_strided_slice %1278 {offsets = [0, 0], sizes = [2, 64], strides = [1, 1]} : vector<2x192xf32> to vector<2x64xf32>
    %1281 = vector.extract_strided_slice %1279 {offsets = [0, 0], sizes = [2, 64], strides = [1, 1]} : vector<2x192xf32> to vector<2x64xf32>
    %1282 = arith.addf %1280, %1281 : vector<2x64xf32>
    %1283 = arith.negf %1282 : vector<2x64xf32>
    %1284 = math.exp %1283 : vector<2x64xf32>
    %cst_243 = arith.constant 1.000000e+00 : f32
    %1285 = vector.broadcast %cst_243 : f32 to vector<2x64xf32>
    %1286 = arith.addf %1285, %1284 : vector<2x64xf32>
    %1287 = arith.divf %1285, %1286 : vector<2x64xf32>
    %1288 = vector.extract_strided_slice %1278 {offsets = [0, 64], sizes = [2, 64], strides = [1, 1]} : vector<2x192xf32> to vector<2x64xf32>
    %1289 = vector.extract_strided_slice %1279 {offsets = [0, 64], sizes = [2, 64], strides = [1, 1]} : vector<2x192xf32> to vector<2x64xf32>
    %1290 = arith.addf %1288, %1289 : vector<2x64xf32>
    %1291 = arith.negf %1290 : vector<2x64xf32>
    %1292 = math.exp %1291 : vector<2x64xf32>
    %cst_244 = arith.constant 1.000000e+00 : f32
    %1293 = vector.broadcast %cst_244 : f32 to vector<2x64xf32>
    %1294 = arith.addf %1293, %1292 : vector<2x64xf32>
    %1295 = arith.divf %1293, %1294 : vector<2x64xf32>
    %1296 = vector.extract_strided_slice %1278 {offsets = [0, 128], sizes = [2, 64], strides = [1, 1]} : vector<2x192xf32> to vector<2x64xf32>
    %1297 = vector.extract_strided_slice %1279 {offsets = [0, 128], sizes = [2, 64], strides = [1, 1]} : vector<2x192xf32> to vector<2x64xf32>
    %1298 = arith.addf %1297, %1247 : vector<2x64xf32>
    %1299 = arith.mulf %1287, %1298 : vector<2x64xf32>
    %1300 = arith.addf %1296, %1299 : vector<2x64xf32>
    %1301 = math.tanh %1300 : vector<2x64xf32>
    %cst_245 = arith.constant 1.000000e+00 : f32
    %1302 = vector.broadcast %cst_245 : f32 to vector<2x64xf32>
    %1303 = arith.subf %1302, %1295 : vector<2x64xf32>
    %1304 = arith.mulf %1303, %1301 : vector<2x64xf32>
    %1305 = arith.mulf %1295, %1277 : vector<2x64xf32>
    %1306 = arith.addf %1304, %1305 : vector<2x64xf32>
    %1307 = vector.extract_strided_slice %1241 {offsets = [4, 0], sizes = [2, 192], strides = [1, 1]} : vector<16x192xf32> to vector<2x192xf32>
    %cst_246 = arith.constant dense<0.000000e+00> : vector<2x192xf32>
    %1308 = tpu.matmul %1306, %1243, %cst_246 {dimension_numbers = #tpu.dot_dimension_numbers<[1], [0], [0], [1], [0, 0, 1, 1], [], []>} : vector<2x64xf32>, vector<64x192xf32>, vector<2x192xf32> -> vector<2x192xf32>
    %1309 = vector.extract_strided_slice %1307 {offsets = [0, 0], sizes = [2, 64], strides = [1, 1]} : vector<2x192xf32> to vector<2x64xf32>
    %1310 = vector.extract_strided_slice %1308 {offsets = [0, 0], sizes = [2, 64], strides = [1, 1]} : vector<2x192xf32> to vector<2x64xf32>
    %1311 = arith.addf %1309, %1310 : vector<2x64xf32>
    %1312 = arith.negf %1311 : vector<2x64xf32>
    %1313 = math.exp %1312 : vector<2x64xf32>
    %cst_247 = arith.constant 1.000000e+00 : f32
    %1314 = vector.broadcast %cst_247 : f32 to vector<2x64xf32>
    %1315 = arith.addf %1314, %1313 : vector<2x64xf32>
    %1316 = arith.divf %1314, %1315 : vector<2x64xf32>
    %1317 = vector.extract_strided_slice %1307 {offsets = [0, 64], sizes = [2, 64], strides = [1, 1]} : vector<2x192xf32> to vector<2x64xf32>
    %1318 = vector.extract_strided_slice %1308 {offsets = [0, 64], sizes = [2, 64], strides = [1, 1]} : vector<2x192xf32> to vector<2x64xf32>
    %1319 = arith.addf %1317, %1318 : vector<2x64xf32>
    %1320 = arith.negf %1319 : vector<2x64xf32>
    %1321 = math.exp %1320 : vector<2x64xf32>
    %cst_248 = arith.constant 1.000000e+00 : f32
    %1322 = vector.broadcast %cst_248 : f32 to vector<2x64xf32>
    %1323 = arith.addf %1322, %1321 : vector<2x64xf32>
    %1324 = arith.divf %1322, %1323 : vector<2x64xf32>
    %1325 = vector.extract_strided_slice %1307 {offsets = [0, 128], sizes = [2, 64], strides = [1, 1]} : vector<2x192xf32> to vector<2x64xf32>
    %1326 = vector.extract_strided_slice %1308 {offsets = [0, 128], sizes = [2, 64], strides = [1, 1]} : vector<2x192xf32> to vector<2x64xf32>
    %1327 = arith.addf %1326, %1247 : vector<2x64xf32>
    %1328 = arith.mulf %1316, %1327 : vector<2x64xf32>
    %1329 = arith.addf %1325, %1328 : vector<2x64xf32>
    %1330 = math.tanh %1329 : vector<2x64xf32>
    %cst_249 = arith.constant 1.000000e+00 : f32
    %1331 = vector.broadcast %cst_249 : f32 to vector<2x64xf32>
    %1332 = arith.subf %1331, %1324 : vector<2x64xf32>
    %1333 = arith.mulf %1332, %1330 : vector<2x64xf32>
    %1334 = arith.mulf %1324, %1306 : vector<2x64xf32>
    %1335 = arith.addf %1333, %1334 : vector<2x64xf32>
    %1336 = vector.extract_strided_slice %1241 {offsets = [6, 0], sizes = [2, 192], strides = [1, 1]} : vector<16x192xf32> to vector<2x192xf32>
    %cst_250 = arith.constant dense<0.000000e+00> : vector<2x192xf32>
    %1337 = tpu.matmul %1335, %1243, %cst_250 {dimension_numbers = #tpu.dot_dimension_numbers<[1], [0], [0], [1], [0, 0, 1, 1], [], []>} : vector<2x64xf32>, vector<64x192xf32>, vector<2x192xf32> -> vector<2x192xf32>
    %1338 = vector.extract_strided_slice %1336 {offsets = [0, 0], sizes = [2, 64], strides = [1, 1]} : vector<2x192xf32> to vector<2x64xf32>
    %1339 = vector.extract_strided_slice %1337 {offsets = [0, 0], sizes = [2, 64], strides = [1, 1]} : vector<2x192xf32> to vector<2x64xf32>
    %1340 = arith.addf %1338, %1339 : vector<2x64xf32>
    %1341 = arith.negf %1340 : vector<2x64xf32>
    %1342 = math.exp %1341 : vector<2x64xf32>
    %cst_251 = arith.constant 1.000000e+00 : f32
    %1343 = vector.broadcast %cst_251 : f32 to vector<2x64xf32>
    %1344 = arith.addf %1343, %1342 : vector<2x64xf32>
    %1345 = arith.divf %1343, %1344 : vector<2x64xf32>
    %1346 = vector.extract_strided_slice %1336 {offsets = [0, 64], sizes = [2, 64], strides = [1, 1]} : vector<2x192xf32> to vector<2x64xf32>
    %1347 = vector.extract_strided_slice %1337 {offsets = [0, 64], sizes = [2, 64], strides = [1, 1]} : vector<2x192xf32> to vector<2x64xf32>
    %1348 = arith.addf %1346, %1347 : vector<2x64xf32>
    %1349 = arith.negf %1348 : vector<2x64xf32>
    %1350 = math.exp %1349 : vector<2x64xf32>
    %cst_252 = arith.constant 1.000000e+00 : f32
    %1351 = vector.broadcast %cst_252 : f32 to vector<2x64xf32>
    %1352 = arith.addf %1351, %1350 : vector<2x64xf32>
    %1353 = arith.divf %1351, %1352 : vector<2x64xf32>
    %1354 = vector.extract_strided_slice %1336 {offsets = [0, 128], sizes = [2, 64], strides = [1, 1]} : vector<2x192xf32> to vector<2x64xf32>
    %1355 = vector.extract_strided_slice %1337 {offsets = [0, 128], sizes = [2, 64], strides = [1, 1]} : vector<2x192xf32> to vector<2x64xf32>
    %1356 = arith.addf %1355, %1247 : vector<2x64xf32>
    %1357 = arith.mulf %1345, %1356 : vector<2x64xf32>
    %1358 = arith.addf %1354, %1357 : vector<2x64xf32>
    %1359 = math.tanh %1358 : vector<2x64xf32>
    %cst_253 = arith.constant 1.000000e+00 : f32
    %1360 = vector.broadcast %cst_253 : f32 to vector<2x64xf32>
    %1361 = arith.subf %1360, %1353 : vector<2x64xf32>
    %1362 = arith.mulf %1361, %1359 : vector<2x64xf32>
    %1363 = arith.mulf %1353, %1335 : vector<2x64xf32>
    %1364 = arith.addf %1362, %1363 : vector<2x64xf32>
    %1365 = vector.extract_strided_slice %1241 {offsets = [8, 0], sizes = [2, 192], strides = [1, 1]} : vector<16x192xf32> to vector<2x192xf32>
    %cst_254 = arith.constant dense<0.000000e+00> : vector<2x192xf32>
    %1366 = tpu.matmul %1364, %1243, %cst_254 {dimension_numbers = #tpu.dot_dimension_numbers<[1], [0], [0], [1], [0, 0, 1, 1], [], []>} : vector<2x64xf32>, vector<64x192xf32>, vector<2x192xf32> -> vector<2x192xf32>
    %1367 = vector.extract_strided_slice %1365 {offsets = [0, 0], sizes = [2, 64], strides = [1, 1]} : vector<2x192xf32> to vector<2x64xf32>
    %1368 = vector.extract_strided_slice %1366 {offsets = [0, 0], sizes = [2, 64], strides = [1, 1]} : vector<2x192xf32> to vector<2x64xf32>
    %1369 = arith.addf %1367, %1368 : vector<2x64xf32>
    %1370 = arith.negf %1369 : vector<2x64xf32>
    %1371 = math.exp %1370 : vector<2x64xf32>
    %cst_255 = arith.constant 1.000000e+00 : f32
    %1372 = vector.broadcast %cst_255 : f32 to vector<2x64xf32>
    %1373 = arith.addf %1372, %1371 : vector<2x64xf32>
    %1374 = arith.divf %1372, %1373 : vector<2x64xf32>
    %1375 = vector.extract_strided_slice %1365 {offsets = [0, 64], sizes = [2, 64], strides = [1, 1]} : vector<2x192xf32> to vector<2x64xf32>
    %1376 = vector.extract_strided_slice %1366 {offsets = [0, 64], sizes = [2, 64], strides = [1, 1]} : vector<2x192xf32> to vector<2x64xf32>
    %1377 = arith.addf %1375, %1376 : vector<2x64xf32>
    %1378 = arith.negf %1377 : vector<2x64xf32>
    %1379 = math.exp %1378 : vector<2x64xf32>
    %cst_256 = arith.constant 1.000000e+00 : f32
    %1380 = vector.broadcast %cst_256 : f32 to vector<2x64xf32>
    %1381 = arith.addf %1380, %1379 : vector<2x64xf32>
    %1382 = arith.divf %1380, %1381 : vector<2x64xf32>
    %1383 = vector.extract_strided_slice %1365 {offsets = [0, 128], sizes = [2, 64], strides = [1, 1]} : vector<2x192xf32> to vector<2x64xf32>
    %1384 = vector.extract_strided_slice %1366 {offsets = [0, 128], sizes = [2, 64], strides = [1, 1]} : vector<2x192xf32> to vector<2x64xf32>
    %1385 = arith.addf %1384, %1247 : vector<2x64xf32>
    %1386 = arith.mulf %1374, %1385 : vector<2x64xf32>
    %1387 = arith.addf %1383, %1386 : vector<2x64xf32>
    %1388 = math.tanh %1387 : vector<2x64xf32>
    %cst_257 = arith.constant 1.000000e+00 : f32
    %1389 = vector.broadcast %cst_257 : f32 to vector<2x64xf32>
    %1390 = arith.subf %1389, %1382 : vector<2x64xf32>
    %1391 = arith.mulf %1390, %1388 : vector<2x64xf32>
    %1392 = arith.mulf %1382, %1364 : vector<2x64xf32>
    %1393 = arith.addf %1391, %1392 : vector<2x64xf32>
    %1394 = vector.extract_strided_slice %1241 {offsets = [10, 0], sizes = [2, 192], strides = [1, 1]} : vector<16x192xf32> to vector<2x192xf32>
    %cst_258 = arith.constant dense<0.000000e+00> : vector<2x192xf32>
    %1395 = tpu.matmul %1393, %1243, %cst_258 {dimension_numbers = #tpu.dot_dimension_numbers<[1], [0], [0], [1], [0, 0, 1, 1], [], []>} : vector<2x64xf32>, vector<64x192xf32>, vector<2x192xf32> -> vector<2x192xf32>
    %1396 = vector.extract_strided_slice %1394 {offsets = [0, 0], sizes = [2, 64], strides = [1, 1]} : vector<2x192xf32> to vector<2x64xf32>
    %1397 = vector.extract_strided_slice %1395 {offsets = [0, 0], sizes = [2, 64], strides = [1, 1]} : vector<2x192xf32> to vector<2x64xf32>
    %1398 = arith.addf %1396, %1397 : vector<2x64xf32>
    %1399 = arith.negf %1398 : vector<2x64xf32>
    %1400 = math.exp %1399 : vector<2x64xf32>
    %cst_259 = arith.constant 1.000000e+00 : f32
    %1401 = vector.broadcast %cst_259 : f32 to vector<2x64xf32>
    %1402 = arith.addf %1401, %1400 : vector<2x64xf32>
    %1403 = arith.divf %1401, %1402 : vector<2x64xf32>
    %1404 = vector.extract_strided_slice %1394 {offsets = [0, 64], sizes = [2, 64], strides = [1, 1]} : vector<2x192xf32> to vector<2x64xf32>
    %1405 = vector.extract_strided_slice %1395 {offsets = [0, 64], sizes = [2, 64], strides = [1, 1]} : vector<2x192xf32> to vector<2x64xf32>
    %1406 = arith.addf %1404, %1405 : vector<2x64xf32>
    %1407 = arith.negf %1406 : vector<2x64xf32>
    %1408 = math.exp %1407 : vector<2x64xf32>
    %cst_260 = arith.constant 1.000000e+00 : f32
    %1409 = vector.broadcast %cst_260 : f32 to vector<2x64xf32>
    %1410 = arith.addf %1409, %1408 : vector<2x64xf32>
    %1411 = arith.divf %1409, %1410 : vector<2x64xf32>
    %1412 = vector.extract_strided_slice %1394 {offsets = [0, 128], sizes = [2, 64], strides = [1, 1]} : vector<2x192xf32> to vector<2x64xf32>
    %1413 = vector.extract_strided_slice %1395 {offsets = [0, 128], sizes = [2, 64], strides = [1, 1]} : vector<2x192xf32> to vector<2x64xf32>
    %1414 = arith.addf %1413, %1247 : vector<2x64xf32>
    %1415 = arith.mulf %1403, %1414 : vector<2x64xf32>
    %1416 = arith.addf %1412, %1415 : vector<2x64xf32>
    %1417 = math.tanh %1416 : vector<2x64xf32>
    %cst_261 = arith.constant 1.000000e+00 : f32
    %1418 = vector.broadcast %cst_261 : f32 to vector<2x64xf32>
    %1419 = arith.subf %1418, %1411 : vector<2x64xf32>
    %1420 = arith.mulf %1419, %1417 : vector<2x64xf32>
    %1421 = arith.mulf %1411, %1393 : vector<2x64xf32>
    %1422 = arith.addf %1420, %1421 : vector<2x64xf32>
    %1423 = vector.extract_strided_slice %1241 {offsets = [12, 0], sizes = [2, 192], strides = [1, 1]} : vector<16x192xf32> to vector<2x192xf32>
    %cst_262 = arith.constant dense<0.000000e+00> : vector<2x192xf32>
    %1424 = tpu.matmul %1422, %1243, %cst_262 {dimension_numbers = #tpu.dot_dimension_numbers<[1], [0], [0], [1], [0, 0, 1, 1], [], []>} : vector<2x64xf32>, vector<64x192xf32>, vector<2x192xf32> -> vector<2x192xf32>
    %1425 = vector.extract_strided_slice %1423 {offsets = [0, 0], sizes = [2, 64], strides = [1, 1]} : vector<2x192xf32> to vector<2x64xf32>
    %1426 = vector.extract_strided_slice %1424 {offsets = [0, 0], sizes = [2, 64], strides = [1, 1]} : vector<2x192xf32> to vector<2x64xf32>
    %1427 = arith.addf %1425, %1426 : vector<2x64xf32>
    %1428 = arith.negf %1427 : vector<2x64xf32>
    %1429 = math.exp %1428 : vector<2x64xf32>
    %cst_263 = arith.constant 1.000000e+00 : f32
    %1430 = vector.broadcast %cst_263 : f32 to vector<2x64xf32>
    %1431 = arith.addf %1430, %1429 : vector<2x64xf32>
    %1432 = arith.divf %1430, %1431 : vector<2x64xf32>
    %1433 = vector.extract_strided_slice %1423 {offsets = [0, 64], sizes = [2, 64], strides = [1, 1]} : vector<2x192xf32> to vector<2x64xf32>
    %1434 = vector.extract_strided_slice %1424 {offsets = [0, 64], sizes = [2, 64], strides = [1, 1]} : vector<2x192xf32> to vector<2x64xf32>
    %1435 = arith.addf %1433, %1434 : vector<2x64xf32>
    %1436 = arith.negf %1435 : vector<2x64xf32>
    %1437 = math.exp %1436 : vector<2x64xf32>
    %cst_264 = arith.constant 1.000000e+00 : f32
    %1438 = vector.broadcast %cst_264 : f32 to vector<2x64xf32>
    %1439 = arith.addf %1438, %1437 : vector<2x64xf32>
    %1440 = arith.divf %1438, %1439 : vector<2x64xf32>
    %1441 = vector.extract_strided_slice %1423 {offsets = [0, 128], sizes = [2, 64], strides = [1, 1]} : vector<2x192xf32> to vector<2x64xf32>
    %1442 = vector.extract_strided_slice %1424 {offsets = [0, 128], sizes = [2, 64], strides = [1, 1]} : vector<2x192xf32> to vector<2x64xf32>
    %1443 = arith.addf %1442, %1247 : vector<2x64xf32>
    %1444 = arith.mulf %1432, %1443 : vector<2x64xf32>
    %1445 = arith.addf %1441, %1444 : vector<2x64xf32>
    %1446 = math.tanh %1445 : vector<2x64xf32>
    %cst_265 = arith.constant 1.000000e+00 : f32
    %1447 = vector.broadcast %cst_265 : f32 to vector<2x64xf32>
    %1448 = arith.subf %1447, %1440 : vector<2x64xf32>
    %1449 = arith.mulf %1448, %1446 : vector<2x64xf32>
    %1450 = arith.mulf %1440, %1422 : vector<2x64xf32>
    %1451 = arith.addf %1449, %1450 : vector<2x64xf32>
    %1452 = vector.extract_strided_slice %1241 {offsets = [14, 0], sizes = [2, 192], strides = [1, 1]} : vector<16x192xf32> to vector<2x192xf32>
    %cst_266 = arith.constant dense<0.000000e+00> : vector<2x192xf32>
    %1453 = tpu.matmul %1451, %1243, %cst_266 {dimension_numbers = #tpu.dot_dimension_numbers<[1], [0], [0], [1], [0, 0, 1, 1], [], []>} : vector<2x64xf32>, vector<64x192xf32>, vector<2x192xf32> -> vector<2x192xf32>
    %1454 = vector.extract_strided_slice %1452 {offsets = [0, 0], sizes = [2, 64], strides = [1, 1]} : vector<2x192xf32> to vector<2x64xf32>
    %1455 = vector.extract_strided_slice %1453 {offsets = [0, 0], sizes = [2, 64], strides = [1, 1]} : vector<2x192xf32> to vector<2x64xf32>
    %1456 = arith.addf %1454, %1455 : vector<2x64xf32>
    %1457 = arith.negf %1456 : vector<2x64xf32>
    %1458 = math.exp %1457 : vector<2x64xf32>
    %cst_267 = arith.constant 1.000000e+00 : f32
    %1459 = vector.broadcast %cst_267 : f32 to vector<2x64xf32>
    %1460 = arith.addf %1459, %1458 : vector<2x64xf32>
    %1461 = arith.divf %1459, %1460 : vector<2x64xf32>
    %1462 = vector.extract_strided_slice %1452 {offsets = [0, 64], sizes = [2, 64], strides = [1, 1]} : vector<2x192xf32> to vector<2x64xf32>
    %1463 = vector.extract_strided_slice %1453 {offsets = [0, 64], sizes = [2, 64], strides = [1, 1]} : vector<2x192xf32> to vector<2x64xf32>
    %1464 = arith.addf %1462, %1463 : vector<2x64xf32>
    %1465 = arith.negf %1464 : vector<2x64xf32>
    %1466 = math.exp %1465 : vector<2x64xf32>
    %cst_268 = arith.constant 1.000000e+00 : f32
    %1467 = vector.broadcast %cst_268 : f32 to vector<2x64xf32>
    %1468 = arith.addf %1467, %1466 : vector<2x64xf32>
    %1469 = arith.divf %1467, %1468 : vector<2x64xf32>
    %1470 = vector.extract_strided_slice %1452 {offsets = [0, 128], sizes = [2, 64], strides = [1, 1]} : vector<2x192xf32> to vector<2x64xf32>
    %1471 = vector.extract_strided_slice %1453 {offsets = [0, 128], sizes = [2, 64], strides = [1, 1]} : vector<2x192xf32> to vector<2x64xf32>
    %1472 = arith.addf %1471, %1247 : vector<2x64xf32>
    %1473 = arith.mulf %1461, %1472 : vector<2x64xf32>
    %1474 = arith.addf %1470, %1473 : vector<2x64xf32>
    %1475 = math.tanh %1474 : vector<2x64xf32>
    %cst_269 = arith.constant 1.000000e+00 : f32
    %1476 = vector.broadcast %cst_269 : f32 to vector<2x64xf32>
    %1477 = arith.subf %1476, %1469 : vector<2x64xf32>
    %1478 = arith.mulf %1477, %1475 : vector<2x64xf32>
    %1479 = arith.mulf %1469, %1451 : vector<2x64xf32>
    %1480 = arith.addf %1478, %1479 : vector<2x64xf32>
    %1481 = tpu.concatenate %1277, %1306, %1335, %1364, %1393, %1422, %1451, %1480 in 1 : vector<2x64xf32>, vector<2x64xf32>, vector<2x64xf32>, vector<2x64xf32>, vector<2x64xf32>, vector<2x64xf32>, vector<2x64xf32>, vector<2x64xf32> -> vector<2x512xf32>
    %c0_270 = arith.constant 0 : index
    %c0_271 = arith.constant 0 : index
    %1482 = vector.load %arg6[%c0_270, %c0_271] : memref<2x512xf32, #tpu.memory_space<vmem>>, vector<2x512xf32>
    tpu.vector_store %arg6[%c0_270, %c0_271], %1481 {strides = array<i32>} : memref<2x512xf32, #tpu.memory_space<vmem>>, vector<2x512xf32>,
    return
  }
}

module attributes {stable_mosaic.version = 11 : i64} {
  func.func @_mag_tail_kernel(%arg0: memref<4x2x8x16xf32, #tpu.memory_space<vmem>>, %arg1: memref<16x32xf32, #tpu.memory_space<vmem>>, %arg2: memref<16x16xf32, #tpu.memory_space<vmem>>, %arg3: memref<16x16xf32, #tpu.memory_space<vmem>>, %arg4: memref<16x32xf32, #tpu.memory_space<vmem>>, %arg5: memref<32x32xf32, #tpu.memory_space<vmem>>, %arg6: memref<1x32xf32, #tpu.memory_space<vmem>>, %arg7: memref<16x32xf32, #tpu.memory_space<vmem>>, %arg8: memref<32x32xf32, #tpu.memory_space<vmem>>, %arg9: memref<1x32xf32, #tpu.memory_space<vmem>>, %arg10: memref<16x32xf32, #tpu.memory_space<vmem>>, %arg11: memref<1x32xf32, #tpu.memory_space<vmem>>, %arg12: memref<16x32xf32, #tpu.memory_space<vmem>>, %arg13: memref<1x32xf32, #tpu.memory_space<vmem>>, %arg14: memref<1x32xf32, #tpu.memory_space<vmem>>, %arg15: memref<1x32xf32, #tpu.memory_space<vmem>>, %arg16: memref<16x32xf32, #tpu.memory_space<vmem>>) attributes {dimension_semantics = [], scalar_prefetch = 0 : i64, scratch_operands = 0 : i64, tpu.core_type = #tpu.core_type<tc>} {
    %c0 = arith.constant 0 : index
    %c0_0 = arith.constant 0 : index
    %c0_1 = arith.constant 0 : index
    %c0_2 = arith.constant 0 : index
    %0 = vector.load %arg0[%c0, %c0_0, %c0_1, %c0_2] : memref<4x2x8x16xf32, #tpu.memory_space<vmem>>, vector<4x2x8x16xf32>
    %1 = vector.extract_strided_slice %0 {offsets = [0, 0, 0, 0], sizes = [1, 2, 8, 16], strides = [1, 1, 1, 1]} : vector<4x2x8x16xf32> to vector<1x2x8x16xf32>
    %2 = vector.shape_cast %1 : vector<1x2x8x16xf32> to vector<2x8x16xf32>
    %3 = vector.extract_strided_slice %0 {offsets = [1, 0, 0, 0], sizes = [1, 2, 8, 16], strides = [1, 1, 1, 1]} : vector<4x2x8x16xf32> to vector<1x2x8x16xf32>
    %4 = vector.shape_cast %3 : vector<1x2x8x16xf32> to vector<2x8x16xf32>
    %5 = arith.addf %2, %4 : vector<2x8x16xf32>
    %cst = arith.constant 5.000000e-01 : f32
    %6 = vector.broadcast %cst : f32 to vector<2x8x16xf32>
    %7 = arith.mulf %6, %5 : vector<2x8x16xf32>
    %8 = vector.shape_cast %7 : vector<2x8x16xf32> to vector<16x16xf32>
    %9 = vector.extract_strided_slice %0 {offsets = [2, 0, 0, 0], sizes = [1, 2, 8, 16], strides = [1, 1, 1, 1]} : vector<4x2x8x16xf32> to vector<1x2x8x16xf32>
    %10 = vector.shape_cast %9 : vector<1x2x8x16xf32> to vector<2x8x16xf32>
    %11 = vector.extract_strided_slice %0 {offsets = [3, 0, 0, 0], sizes = [1, 2, 8, 16], strides = [1, 1, 1, 1]} : vector<4x2x8x16xf32> to vector<1x2x8x16xf32>
    %12 = vector.shape_cast %11 : vector<1x2x8x16xf32> to vector<2x8x16xf32>
    %13 = arith.addf %10, %12 : vector<2x8x16xf32>
    %cst_3 = arith.constant 5.000000e-01 : f32
    %14 = vector.broadcast %cst_3 : f32 to vector<2x8x16xf32>
    %15 = arith.mulf %14, %13 : vector<2x8x16xf32>
    %16 = vector.shape_cast %15 : vector<2x8x16xf32> to vector<16x16xf32>
    %c0_4 = arith.constant 0 : index
    %c0_5 = arith.constant 0 : index
    %17 = vector.load %arg1[%c0_4, %c0_5] : memref<16x32xf32, #tpu.memory_space<vmem>>, vector<16x32xf32>
    %c0_6 = arith.constant 0 : index
    %c0_7 = arith.constant 0 : index
    %18 = vector.load %arg4[%c0_6, %c0_7] : memref<16x32xf32, #tpu.memory_space<vmem>>, vector<16x32xf32>
    %cst_8 = arith.constant dense<0.000000e+00> : vector<16x32xf32>
    %19 = tpu.matmul %8, %18, %cst_8 {dimension_numbers = #tpu.dot_dimension_numbers<[1], [0], [0], [1], [0, 0, 1, 1], [], []>} : vector<16x16xf32>, vector<16x32xf32>, vector<16x32xf32> -> vector<16x32xf32>
    %c0_9 = arith.constant 0 : index
    %c0_10 = arith.constant 0 : index
    %20 = vector.load %arg5[%c0_9, %c0_10] : memref<32x32xf32, #tpu.memory_space<vmem>>, vector<32x32xf32>
    %cst_11 = arith.constant dense<0.000000e+00> : vector<16x32xf32>
    %21 = tpu.matmul %17, %20, %cst_11 {dimension_numbers = #tpu.dot_dimension_numbers<[1], [0], [0], [1], [0, 0, 1, 1], [], []>} : vector<16x32xf32>, vector<32x32xf32>, vector<16x32xf32> -> vector<16x32xf32>
    %22 = arith.addf %19, %21 : vector<16x32xf32>
    %c0_12 = arith.constant 0 : index
    %c0_13 = arith.constant 0 : index
    %23 = vector.load %arg6[%c0_12, %c0_13] : memref<1x32xf32, #tpu.memory_space<vmem>>, vector<1x32xf32>
    %24 = vector.broadcast %23 : vector<1x32xf32> to vector<16x32xf32>
    %25 = arith.addf %22, %24 : vector<16x32xf32>
    %cst_14 = arith.constant 0.000000e+00 : f32
    %26 = vector.broadcast %cst_14 : f32 to vector<16x32xf32>
    %27 = arith.maximumf %25, %26 : vector<16x32xf32>
    %c0_15 = arith.constant 0 : index
    %c0_16 = arith.constant 0 : index
    %28 = vector.load %arg7[%c0_15, %c0_16] : memref<16x32xf32, #tpu.memory_space<vmem>>, vector<16x32xf32>
    %cst_17 = arith.constant dense<0.000000e+00> : vector<16x32xf32>
    %29 = tpu.matmul %16, %28, %cst_17 {dimension_numbers = #tpu.dot_dimension_numbers<[1], [0], [0], [1], [0, 0, 1, 1], [], []>} : vector<16x16xf32>, vector<16x32xf32>, vector<16x32xf32> -> vector<16x32xf32>
    %c0_18 = arith.constant 0 : index
    %c0_19 = arith.constant 0 : index
    %30 = vector.load %arg8[%c0_18, %c0_19] : memref<32x32xf32, #tpu.memory_space<vmem>>, vector<32x32xf32>
    %cst_20 = arith.constant dense<0.000000e+00> : vector<16x32xf32>
    %31 = tpu.matmul %17, %30, %cst_20 {dimension_numbers = #tpu.dot_dimension_numbers<[1], [0], [0], [1], [0, 0, 1, 1], [], []>} : vector<16x32xf32>, vector<32x32xf32>, vector<16x32xf32> -> vector<16x32xf32>
    %32 = arith.addf %29, %31 : vector<16x32xf32>
    %c0_21 = arith.constant 0 : index
    %c0_22 = arith.constant 0 : index
    %33 = vector.load %arg9[%c0_21, %c0_22] : memref<1x32xf32, #tpu.memory_space<vmem>>, vector<1x32xf32>
    %34 = vector.broadcast %33 : vector<1x32xf32> to vector<16x32xf32>
    %35 = arith.addf %32, %34 : vector<16x32xf32>
    %cst_23 = arith.constant 0.000000e+00 : f32
    %36 = vector.broadcast %cst_23 : f32 to vector<16x32xf32>
    %37 = arith.maximumf %35, %36 : vector<16x32xf32>
    %c0_24 = arith.constant 0 : index
    %c0_25 = arith.constant 0 : index
    %38 = vector.load %arg2[%c0_24, %c0_25] : memref<16x16xf32, #tpu.memory_space<vmem>>, vector<16x16xf32>
    %c0_26 = arith.constant 0 : index
    %c0_27 = arith.constant 0 : index
    %39 = vector.load %arg10[%c0_26, %c0_27] : memref<16x32xf32, #tpu.memory_space<vmem>>, vector<16x32xf32>
    %cst_28 = arith.constant dense<0.000000e+00> : vector<16x32xf32>
    %40 = tpu.matmul %38, %39, %cst_28 {dimension_numbers = #tpu.dot_dimension_numbers<[1], [0], [0], [1], [0, 0, 1, 1], [], []>} : vector<16x16xf32>, vector<16x32xf32>, vector<16x32xf32> -> vector<16x32xf32>
    %c0_29 = arith.constant 0 : index
    %c0_30 = arith.constant 0 : index
    %41 = vector.load %arg11[%c0_29, %c0_30] : memref<1x32xf32, #tpu.memory_space<vmem>>, vector<1x32xf32>
    %42 = vector.broadcast %41 : vector<1x32xf32> to vector<16x32xf32>
    %43 = arith.addf %40, %42 : vector<16x32xf32>
    %c0_31 = arith.constant 0 : index
    %c0_32 = arith.constant 0 : index
    %44 = vector.load %arg3[%c0_31, %c0_32] : memref<16x16xf32, #tpu.memory_space<vmem>>, vector<16x16xf32>
    %c0_33 = arith.constant 0 : index
    %c0_34 = arith.constant 0 : index
    %45 = vector.load %arg12[%c0_33, %c0_34] : memref<16x32xf32, #tpu.memory_space<vmem>>, vector<16x32xf32>
    %cst_35 = arith.constant dense<0.000000e+00> : vector<16x32xf32>
    %46 = tpu.matmul %44, %45, %cst_35 {dimension_numbers = #tpu.dot_dimension_numbers<[1], [0], [0], [1], [0, 0, 1, 1], [], []>} : vector<16x16xf32>, vector<16x32xf32>, vector<16x32xf32> -> vector<16x32xf32>
    %c0_36 = arith.constant 0 : index
    %c0_37 = arith.constant 0 : index
    %47 = vector.load %arg13[%c0_36, %c0_37] : memref<1x32xf32, #tpu.memory_space<vmem>>, vector<1x32xf32>
    %48 = vector.broadcast %47 : vector<1x32xf32> to vector<16x32xf32>
    %49 = arith.addf %46, %48 : vector<16x32xf32>
    %50 = arith.mulf %27, %43 : vector<16x32xf32>
    %51 = arith.mulf %37, %49 : vector<16x32xf32>
    %52 = arith.addf %50, %51 : vector<16x32xf32>
    %53 = arith.mulf %17, %17 : vector<16x32xf32>
    %cst_38 = arith.constant dense<0.000000e+00> : vector<16xf32>
    %54 = vector.multi_reduction <add>, %53, %cst_38 [1] : vector<16x32xf32> to vector<16xf32>
    %55 = vector.shape_cast %54 : vector<16xf32> to vector<16x1xf32>
    %56 = math.sqrt %55 : vector<16x1xf32>
    %57 = arith.mulf %52, %52 : vector<16x32xf32>
    %cst_39 = arith.constant dense<0.000000e+00> : vector<16xf32>
    %58 = vector.multi_reduction <add>, %57, %cst_39 [1] : vector<16x32xf32> to vector<16xf32>
    %59 = vector.shape_cast %58 : vector<16xf32> to vector<16x1xf32>
    %60 = math.sqrt %59 : vector<16x1xf32>
    %cst_40 = arith.constant 0.000000e+00 : f32
    %61 = vector.broadcast %cst_40 : f32 to vector<16x1xf32>
    %62 = arith.cmpf oeq, %60, %61 : vector<16x1xf32>
    %cst_41 = arith.constant 1.000000e+00 : f32
    %63 = vector.broadcast %cst_41 : f32 to vector<16x1xf32>
    %64 = arith.select %62, %63, %60 : vector<16x1xi1>, vector<16x1xf32>
    %cst_42 = arith.constant 9.99999997E-7 : f32
    %65 = vector.broadcast %cst_42 : f32 to vector<16x1xf32>
    %66 = arith.addf %64, %65 : vector<16x1xf32>
    %67 = arith.divf %56, %66 : vector<16x1xf32>
    %cst_43 = arith.constant 1.000000e+00 : f32
    %68 = vector.broadcast %cst_43 : f32 to vector<16x1xf32>
    %69 = arith.mulf %67, %68 : vector<16x1xf32>
    %cst_44 = arith.constant 1.000000e+00 : f32
    %70 = vector.broadcast %cst_44 : f32 to vector<16x1xf32>
    %71 = arith.minimumf %69, %70 : vector<16x1xf32>
    %72 = vector.broadcast %71 : vector<16x1xf32> to vector<16x32xf32>
    %73 = arith.mulf %72, %52 : vector<16x32xf32>
    %74 = arith.addf %73, %17 : vector<16x32xf32>
    %cst_45 = arith.constant dense<0.000000e+00> : vector<16xf32>
    %75 = vector.multi_reduction <add>, %74, %cst_45 [1] : vector<16x32xf32> to vector<16xf32>
    %76 = vector.shape_cast %75 : vector<16xf32> to vector<16x1xf32>
    %cst_46 = arith.constant 3.200000e+01 : f32
    %77 = vector.broadcast %cst_46 : f32 to vector<16x1xf32>
    %78 = arith.divf %76, %77 : vector<16x1xf32>
    %79 = vector.broadcast %78 : vector<16x1xf32> to vector<16x32xf32>
    %80 = arith.subf %74, %79 : vector<16x32xf32>
    %81 = arith.mulf %80, %80 : vector<16x32xf32>
    %cst_47 = arith.constant dense<0.000000e+00> : vector<16xf32>
    %82 = vector.multi_reduction <add>, %81, %cst_47 [1] : vector<16x32xf32> to vector<16xf32>
    %83 = vector.shape_cast %82 : vector<16xf32> to vector<16x1xf32>
    %cst_48 = arith.constant 3.200000e+01 : f32
    %84 = vector.broadcast %cst_48 : f32 to vector<16x1xf32>
    %85 = arith.divf %83, %84 : vector<16x1xf32>
    %86 = vector.broadcast %78 : vector<16x1xf32> to vector<16x32xf32>
    %87 = arith.subf %74, %86 : vector<16x32xf32>
    %cst_49 = arith.constant 9.99999974E-6 : f32
    %88 = vector.broadcast %cst_49 : f32 to vector<16x1xf32>
    %89 = arith.addf %85, %88 : vector<16x1xf32>
    %90 = math.rsqrt %89 : vector<16x1xf32>
    %91 = vector.broadcast %90 : vector<16x1xf32> to vector<16x32xf32>
    %92 = arith.mulf %87, %91 : vector<16x32xf32>
    %c0_50 = arith.constant 0 : index
    %c0_51 = arith.constant 0 : index
    %93 = vector.load %arg14[%c0_50, %c0_51] : memref<1x32xf32, #tpu.memory_space<vmem>>, vector<1x32xf32>
    %94 = vector.broadcast %93 : vector<1x32xf32> to vector<16x32xf32>
    %95 = arith.mulf %92, %94 : vector<16x32xf32>
    %c0_52 = arith.constant 0 : index
    %c0_53 = arith.constant 0 : index
    %96 = vector.load %arg15[%c0_52, %c0_53] : memref<1x32xf32, #tpu.memory_space<vmem>>, vector<1x32xf32>
    %97 = vector.broadcast %96 : vector<1x32xf32> to vector<16x32xf32>
    %98 = arith.addf %95, %97 : vector<16x32xf32>
    %c0_54 = arith.constant 0 : index
    %c0_55 = arith.constant 0 : index
    %99 = vector.load %arg16[%c0_54, %c0_55] : memref<16x32xf32, #tpu.memory_space<vmem>>, vector<16x32xf32>
    tpu.vector_store %arg16[%c0_54, %c0_55], %98 {strides = array<i32>} : memref<16x32xf32, #tpu.memory_space<vmem>>, vector<16x32xf32>,
    return
  }
}

module attributes {stable_mosaic.version = 11 : i64} {
  func.func @_encoder_kernel(%arg0: i32, %arg1: memref<1x2x8x16xf32, #tpu.memory_space<vmem>>, %arg2: memref<1x2x8x16xf32, #tpu.memory_space<vmem>>, %arg3: memref<8x16xf32, #tpu.memory_space<vmem>>, %arg4: memref<1x2x1x16xf32, #tpu.memory_space<vmem>>, %arg5: memref<1x2x1x16xf32, #tpu.memory_space<vmem>>, %arg6: memref<1x2x16x16xf32, #tpu.memory_space<vmem>>, %arg7: memref<1x2x1x16xf32, #tpu.memory_space<vmem>>, %arg8: memref<1x2x16x16xf32, #tpu.memory_space<vmem>>, %arg9: memref<1x2x1x16xf32, #tpu.memory_space<vmem>>, %arg10: memref<1x2x16x16xf32, #tpu.memory_space<vmem>>, %arg11: memref<1x2x1x16xf32, #tpu.memory_space<vmem>>, %arg12: memref<1x2x16x16xf32, #tpu.memory_space<vmem>>, %arg13: memref<1x2x1x16xf32, #tpu.memory_space<vmem>>, %arg14: memref<1x2x1x16xf32, #tpu.memory_space<vmem>>, %arg15: memref<1x2x1x16xf32, #tpu.memory_space<vmem>>, %arg16: memref<1x2x16x64xf32, #tpu.memory_space<vmem>>, %arg17: memref<1x2x1x64xf32, #tpu.memory_space<vmem>>, %arg18: memref<1x2x64x16xf32, #tpu.memory_space<vmem>>, %arg19: memref<1x2x1x16xf32, #tpu.memory_space<vmem>>, %arg20: memref<1x1x16xf32, #tpu.memory_space<vmem>>, %arg21: memref<1x1x16xf32, #tpu.memory_space<vmem>>, %arg22: memref<1x2x8x16xf32, #tpu.memory_space<vmem>>) attributes {dimension_semantics = [#tpu.dimension_semantics<parallel>], iteration_bounds = array<i64: 4>, scalar_prefetch = 0 : i64, scratch_operands = 0 : i64, tpu.core_type = #tpu.core_type<tc>, window_params = [{transform_indices = @transform_0, window_bounds = array<i64: 1, 2, 8, 16>}, {transform_indices = @transform_1, window_bounds = array<i64: 1, 2, 8, 16>}, {pipeline_mode = #tpu.pipeline_mode<synchronous>, transform_indices = @transform_2, window_bounds = array<i64: 8, 16>}, {transform_indices = @transform_3, window_bounds = array<i64: 1, 2, 1, 16>}, {transform_indices = @transform_4, window_bounds = array<i64: 1, 2, 1, 16>}, {transform_indices = @transform_5, window_bounds = array<i64: 1, 2, 16, 16>}, {transform_indices = @transform_6, window_bounds = array<i64: 1, 2, 1, 16>}, {transform_indices = @transform_7, window_bounds = array<i64: 1, 2, 16, 16>}, {transform_indices = @transform_8, window_bounds = array<i64: 1, 2, 1, 16>}, {transform_indices = @transform_9, window_bounds = array<i64: 1, 2, 16, 16>}, {transform_indices = @transform_10, window_bounds = array<i64: 1, 2, 1, 16>}, {transform_indices = @transform_11, window_bounds = array<i64: 1, 2, 16, 16>}, {transform_indices = @transform_12, window_bounds = array<i64: 1, 2, 1, 16>}, {transform_indices = @transform_13, window_bounds = array<i64: 1, 2, 1, 16>}, {transform_indices = @transform_14, window_bounds = array<i64: 1, 2, 1, 16>}, {transform_indices = @transform_15, window_bounds = array<i64: 1, 2, 16, 64>}, {transform_indices = @transform_16, window_bounds = array<i64: 1, 2, 1, 64>}, {transform_indices = @transform_17, window_bounds = array<i64: 1, 2, 64, 16>}, {transform_indices = @transform_18, window_bounds = array<i64: 1, 2, 1, 16>}, {transform_indices = @transform_19, window_bounds = array<i64: 1, 1, 16>}, {transform_indices = @transform_20, window_bounds = array<i64: 1, 1, 16>}, {transform_indices = @transform_21, window_bounds = array<i64: 1, 2, 8, 16>}]} {
    %c0 = arith.constant 0 : index
    %c0_0 = arith.constant 0 : index
    %0 = vector.load %arg3[%c0, %c0_0] : memref<8x16xf32, #tpu.memory_space<vmem>>, vector<8x16xf32>
    %c0_1 = arith.constant 0 : index
    %c0_2 = arith.constant 0 : index
    %c0_3 = arith.constant 0 : index
    %c0_4 = arith.constant 0 : index
    %1 = vector.load %arg1[%c0_1, %c0_2, %c0_3, %c0_4] : memref<1x2x8x16xf32, #tpu.memory_space<vmem>>, vector<1x2x8x16xf32>
    %2 = vector.shape_cast %1 : vector<1x2x8x16xf32> to vector<2x8x16xf32>
    %cst = arith.constant 4.000000e+00 : f32
    %3 = vector.broadcast %cst : f32 to vector<2x8x16xf32>
    %4 = arith.mulf %3, %2 : vector<2x8x16xf32>
    %5 = vector.shape_cast %0 : vector<8x16xf32> to vector<1x8x16xf32>
    %6 = vector.broadcast %5 : vector<1x8x16xf32> to vector<2x8x16xf32>
    %7 = arith.addf %4, %6 : vector<2x8x16xf32>
    %8 = vector.shape_cast %7 : vector<2x8x16xf32> to vector<16x16xf32>
    %c0_5 = arith.constant 0 : index
    %c0_6 = arith.constant 0 : index
    %c0_7 = arith.constant 0 : index
    %c0_8 = arith.constant 0 : index
    %9 = vector.load %arg2[%c0_5, %c0_6, %c0_7, %c0_8] : memref<1x2x8x16xf32, #tpu.memory_space<vmem>>, vector<1x2x8x16xf32>
    %10 = vector.shape_cast %9 : vector<1x2x8x16xf32> to vector<2x8x16xf32>
    %cst_9 = arith.constant 4.000000e+00 : f32
    %11 = vector.broadcast %cst_9 : f32 to vector<2x8x16xf32>
    %12 = arith.mulf %11, %10 : vector<2x8x16xf32>
    %13 = vector.shape_cast %0 : vector<8x16xf32> to vector<1x8x16xf32>
    %14 = vector.broadcast %13 : vector<1x8x16xf32> to vector<2x8x16xf32>
    %15 = arith.addf %12, %14 : vector<2x8x16xf32>
    %16 = vector.shape_cast %15 : vector<2x8x16xf32> to vector<16x16xf32>
    %c0_10 = arith.constant 0 : index
    %c0_11 = arith.constant 0 : index
    %c0_12 = arith.constant 0 : index
    %c0_13 = arith.constant 0 : index
    %17 = vector.load %arg4[%c0_10, %c0_11, %c0_12, %c0_13] : memref<1x2x1x16xf32, #tpu.memory_space<vmem>>, vector<1x1x1x16xf32>
    %18 = vector.shape_cast %17 : vector<1x1x1x16xf32> to vector<1x16xf32>
    %c0_14 = arith.constant 0 : index
    %c0_15 = arith.constant 0 : index
    %c0_16 = arith.constant 0 : index
    %c0_17 = arith.constant 0 : index
    %19 = vector.load %arg5[%c0_14, %c0_15, %c0_16, %c0_17] : memref<1x2x1x16xf32, #tpu.memory_space<vmem>>, vector<1x1x1x16xf32>
    %20 = vector.shape_cast %19 : vector<1x1x1x16xf32> to vector<1x16xf32>
    %cst_18 = arith.constant dense<0.000000e+00> : vector<16xf32>
    %21 = vector.multi_reduction <add>, %8, %cst_18 [1] : vector<16x16xf32> to vector<16xf32>
    %22 = vector.shape_cast %21 : vector<16xf32> to vector<16x1xf32>
    %cst_19 = arith.constant 1.600000e+01 : f32
    %23 = vector.broadcast %cst_19 : f32 to vector<16x1xf32>
    %24 = arith.divf %22, %23 : vector<16x1xf32>
    %25 = vector.broadcast %24 : vector<16x1xf32> to vector<16x16xf32>
    %26 = arith.subf %8, %25 : vector<16x16xf32>
    %27 = arith.mulf %26, %26 : vector<16x16xf32>
    %cst_20 = arith.constant dense<0.000000e+00> : vector<16xf32>
    %28 = vector.multi_reduction <add>, %27, %cst_20 [1] : vector<16x16xf32> to vector<16xf32>
    %29 = vector.shape_cast %28 : vector<16xf32> to vector<16x1xf32>
    %cst_21 = arith.constant 1.600000e+01 : f32
    %30 = vector.broadcast %cst_21 : f32 to vector<16x1xf32>
    %31 = arith.divf %29, %30 : vector<16x1xf32>
    %32 = vector.broadcast %24 : vector<16x1xf32> to vector<16x16xf32>
    %33 = arith.subf %8, %32 : vector<16x16xf32>
    %cst_22 = arith.constant 9.99999974E-6 : f32
    %34 = vector.broadcast %cst_22 : f32 to vector<16x1xf32>
    %35 = arith.addf %31, %34 : vector<16x1xf32>
    %36 = math.rsqrt %35 : vector<16x1xf32>
    %37 = vector.broadcast %36 : vector<16x1xf32> to vector<16x16xf32>
    %38 = arith.mulf %33, %37 : vector<16x16xf32>
    %39 = vector.broadcast %18 : vector<1x16xf32> to vector<16x16xf32>
    %40 = arith.mulf %38, %39 : vector<16x16xf32>
    %41 = vector.broadcast %20 : vector<1x16xf32> to vector<16x16xf32>
    %42 = arith.addf %40, %41 : vector<16x16xf32>
    %cst_23 = arith.constant dense<0.000000e+00> : vector<16xf32>
    %43 = vector.multi_reduction <add>, %16, %cst_23 [1] : vector<16x16xf32> to vector<16xf32>
    %44 = vector.shape_cast %43 : vector<16xf32> to vector<16x1xf32>
    %cst_24 = arith.constant 1.600000e+01 : f32
    %45 = vector.broadcast %cst_24 : f32 to vector<16x1xf32>
    %46 = arith.divf %44, %45 : vector<16x1xf32>
    %47 = vector.broadcast %46 : vector<16x1xf32> to vector<16x16xf32>
    %48 = arith.subf %16, %47 : vector<16x16xf32>
    %49 = arith.mulf %48, %48 : vector<16x16xf32>
    %cst_25 = arith.constant dense<0.000000e+00> : vector<16xf32>
    %50 = vector.multi_reduction <add>, %49, %cst_25 [1] : vector<16x16xf32> to vector<16xf32>
    %51 = vector.shape_cast %50 : vector<16xf32> to vector<16x1xf32>
    %cst_26 = arith.constant 1.600000e+01 : f32
    %52 = vector.broadcast %cst_26 : f32 to vector<16x1xf32>
    %53 = arith.divf %51, %52 : vector<16x1xf32>
    %54 = vector.broadcast %46 : vector<16x1xf32> to vector<16x16xf32>
    %55 = arith.subf %16, %54 : vector<16x16xf32>
    %cst_27 = arith.constant 9.99999974E-6 : f32
    %56 = vector.broadcast %cst_27 : f32 to vector<16x1xf32>
    %57 = arith.addf %53, %56 : vector<16x1xf32>
    %58 = math.rsqrt %57 : vector<16x1xf32>
    %59 = vector.broadcast %58 : vector<16x1xf32> to vector<16x16xf32>
    %60 = arith.mulf %55, %59 : vector<16x16xf32>
    %61 = vector.broadcast %18 : vector<1x16xf32> to vector<16x16xf32>
    %62 = arith.mulf %60, %61 : vector<16x16xf32>
    %63 = vector.broadcast %20 : vector<1x16xf32> to vector<16x16xf32>
    %64 = arith.addf %62, %63 : vector<16x16xf32>
    %c0_28 = arith.constant 0 : index
    %c0_29 = arith.constant 0 : index
    %c0_30 = arith.constant 0 : index
    %c0_31 = arith.constant 0 : index
    %65 = vector.load %arg6[%c0_28, %c0_29, %c0_30, %c0_31] : memref<1x2x16x16xf32, #tpu.memory_space<vmem>>, vector<1x1x16x16xf32>
    %66 = vector.shape_cast %65 : vector<1x1x16x16xf32> to vector<16x16xf32>
    %cst_32 = arith.constant dense<0.000000e+00> : vector<16x16xf32>
    %67 = tpu.matmul %42, %66, %cst_32 {dimension_numbers = #tpu.dot_dimension_numbers<[1], [0], [0], [1], [0, 0, 1, 1], [], []>} : vector<16x16xf32>, vector<16x16xf32>, vector<16x16xf32> -> vector<16x16xf32>
    %c0_33 = arith.constant 0 : index
    %c0_34 = arith.constant 0 : index
    %c0_35 = arith.constant 0 : index
    %c0_36 = arith.constant 0 : index
    %68 = vector.load %arg7[%c0_33, %c0_34, %c0_35, %c0_36] : memref<1x2x1x16xf32, #tpu.memory_space<vmem>>, vector<1x1x1x16xf32>
    %69 = vector.shape_cast %68 : vector<1x1x1x16xf32> to vector<1x16xf32>
    %70 = vector.broadcast %69 : vector<1x16xf32> to vector<16x16xf32>
    %71 = arith.addf %67, %70 : vector<16x16xf32>
    %cst_37 = arith.constant 5.000000e-01 : f32
    %72 = vector.broadcast %cst_37 : f32 to vector<16x16xf32>
    %73 = arith.mulf %71, %72 : vector<16x16xf32>
    %c0_38 = arith.constant 0 : index
    %c0_39 = arith.constant 0 : index
    %c0_40 = arith.constant 0 : index
    %c0_41 = arith.constant 0 : index
    %74 = vector.load %arg8[%c0_38, %c0_39, %c0_40, %c0_41] : memref<1x2x16x16xf32, #tpu.memory_space<vmem>>, vector<1x1x16x16xf32>
    %75 = vector.shape_cast %74 : vector<1x1x16x16xf32> to vector<16x16xf32>
    %cst_42 = arith.constant dense<0.000000e+00> : vector<16x16xf32>
    %76 = tpu.matmul %64, %75, %cst_42 {dimension_numbers = #tpu.dot_dimension_numbers<[1], [0], [0], [1], [0, 0, 1, 1], [], []>} : vector<16x16xf32>, vector<16x16xf32>, vector<16x16xf32> -> vector<16x16xf32>
    %c0_43 = arith.constant 0 : index
    %c0_44 = arith.constant 0 : index
    %c0_45 = arith.constant 0 : index
    %c0_46 = arith.constant 0 : index
    %77 = vector.load %arg9[%c0_43, %c0_44, %c0_45, %c0_46] : memref<1x2x1x16xf32, #tpu.memory_space<vmem>>, vector<1x1x1x16xf32>
    %78 = vector.shape_cast %77 : vector<1x1x1x16xf32> to vector<1x16xf32>
    %79 = vector.broadcast %78 : vector<1x16xf32> to vector<16x16xf32>
    %80 = arith.addf %76, %79 : vector<16x16xf32>
    %c0_47 = arith.constant 0 : index
    %c0_48 = arith.constant 0 : index
    %c0_49 = arith.constant 0 : index
    %c0_50 = arith.constant 0 : index
    %81 = vector.load %arg10[%c0_47, %c0_48, %c0_49, %c0_50] : memref<1x2x16x16xf32, #tpu.memory_space<vmem>>, vector<1x1x16x16xf32>
    %82 = vector.shape_cast %81 : vector<1x1x16x16xf32> to vector<16x16xf32>
    %cst_51 = arith.constant dense<0.000000e+00> : vector<16x16xf32>
    %83 = tpu.matmul %64, %82, %cst_51 {dimension_numbers = #tpu.dot_dimension_numbers<[1], [0], [0], [1], [0, 0, 1, 1], [], []>} : vector<16x16xf32>, vector<16x16xf32>, vector<16x16xf32> -> vector<16x16xf32>
    %c0_52 = arith.constant 0 : index
    %c0_53 = arith.constant 0 : index
    %c0_54 = arith.constant 0 : index
    %c0_55 = arith.constant 0 : index
    %84 = vector.load %arg11[%c0_52, %c0_53, %c0_54, %c0_55] : memref<1x2x1x16xf32, #tpu.memory_space<vmem>>, vector<1x1x1x16xf32>
    %85 = vector.shape_cast %84 : vector<1x1x1x16xf32> to vector<1x16xf32>
    %86 = vector.broadcast %85 : vector<1x16xf32> to vector<16x16xf32>
    %87 = arith.addf %83, %86 : vector<16x16xf32>
    %88 = vector.shape_cast %73 : vector<16x16xf32> to vector<2x8x16xf32>
    %89 = vector.shape_cast %80 : vector<16x16xf32> to vector<2x8x16xf32>
    %90 = vector.shape_cast %87 : vector<16x16xf32> to vector<2x8x16xf32>
    %91 = vector.extract_strided_slice %88 {offsets = [0, 0, 0], sizes = [2, 8, 4], strides = [1, 1, 1]} : vector<2x8x16xf32> to vector<2x8x4xf32>
    %92 = vector.extract_strided_slice %89 {offsets = [0, 0, 0], sizes = [2, 8, 4], strides = [1, 1, 1]} : vector<2x8x16xf32> to vector<2x8x4xf32>
    "tpu.trace_start"() <{level = 10 : i32, message = "bqd,bkd->bqk"}> : () -> ()
    %cst_56 = arith.constant dense<0.000000e+00> : vector<2x8x8xf32>
    %93 = tpu.matmul %91, %92, %cst_56 {dimension_numbers = #tpu.dot_dimension_numbers<[2], [2], [1], [1], [0, 0, 0, 1, 1, 1], [0], [0]>} : vector<2x8x4xf32>, vector<2x8x4xf32>, vector<2x8x8xf32> -> vector<2x8x8xf32>
    "tpu.trace_stop"() : () -> ()
    %cst_57 = arith.constant dense<0xFF800000> : vector<2x8xf32>
    %94 = vector.multi_reduction <maximumf>, %93, %cst_57 [2] : vector<2x8x8xf32> to vector<2x8xf32>
    %95 = vector.shape_cast %94 : vector<2x8xf32> to vector<2x8x1xf32>
    %96 = vector.broadcast %95 : vector<2x8x1xf32> to vector<2x8x8xf32>
    %97 = arith.subf %93, %96 : vector<2x8x8xf32>
    %98 = math.exp %97 : vector<2x8x8xf32>
    %cst_58 = arith.constant dense<0.000000e+00> : vector<2x8xf32>
    %99 = vector.multi_reduction <add>, %98, %cst_58 [2] : vector<2x8x8xf32> to vector<2x8xf32>
    %100 = vector.shape_cast %99 : vector<2x8xf32> to vector<2x8x1xf32>
    %101 = vector.broadcast %100 : vector<2x8x1xf32> to vector<2x8x8xf32>
    %102 = arith.divf %98, %101 : vector<2x8x8xf32>
    %103 = vector.extract_strided_slice %90 {offsets = [0, 0, 0], sizes = [2, 8, 4], strides = [1, 1, 1]} : vector<2x8x16xf32> to vector<2x8x4xf32>
    "tpu.trace_start"() <{level = 10 : i32, message = "bqk,bkd->bqd"}> : () -> ()
    %cst_59 = arith.constant dense<0.000000e+00> : vector<2x8x4xf32>
    %104 = tpu.matmul %102, %103, %cst_59 {dimension_numbers = #tpu.dot_dimension_numbers<[2], [1], [1], [2], [0, 0, 0, 1, 1, 2], [0], [0]>} : vector<2x8x8xf32>, vector<2x8x4xf32>, vector<2x8x4xf32> -> vector<2x8x4xf32>
    "tpu.trace_stop"() : () -> ()
    %105 = vector.extract_strided_slice %88 {offsets = [0, 0, 4], sizes = [2, 8, 4], strides = [1, 1, 1]} : vector<2x8x16xf32> to vector<2x8x4xf32>
    %106 = vector.extract_strided_slice %89 {offsets = [0, 0, 4], sizes = [2, 8, 4], strides = [1, 1, 1]} : vector<2x8x16xf32> to vector<2x8x4xf32>
    "tpu.trace_start"() <{level = 10 : i32, message = "bqd,bkd->bqk"}> : () -> ()
    %cst_60 = arith.constant dense<0.000000e+00> : vector<2x8x8xf32>
    %107 = tpu.matmul %105, %106, %cst_60 {dimension_numbers = #tpu.dot_dimension_numbers<[2], [2], [1], [1], [0, 0, 0, 1, 1, 1], [0], [0]>} : vector<2x8x4xf32>, vector<2x8x4xf32>, vector<2x8x8xf32> -> vector<2x8x8xf32>
    "tpu.trace_stop"() : () -> ()
    %cst_61 = arith.constant dense<0xFF800000> : vector<2x8xf32>
    %108 = vector.multi_reduction <maximumf>, %107, %cst_61 [2] : vector<2x8x8xf32> to vector<2x8xf32>
    %109 = vector.shape_cast %108 : vector<2x8xf32> to vector<2x8x1xf32>
    %110 = vector.broadcast %109 : vector<2x8x1xf32> to vector<2x8x8xf32>
    %111 = arith.subf %107, %110 : vector<2x8x8xf32>
    %112 = math.exp %111 : vector<2x8x8xf32>
    %cst_62 = arith.constant dense<0.000000e+00> : vector<2x8xf32>
    %113 = vector.multi_reduction <add>, %112, %cst_62 [2] : vector<2x8x8xf32> to vector<2x8xf32>
    %114 = vector.shape_cast %113 : vector<2x8xf32> to vector<2x8x1xf32>
    %115 = vector.broadcast %114 : vector<2x8x1xf32> to vector<2x8x8xf32>
    %116 = arith.divf %112, %115 : vector<2x8x8xf32>
    %117 = vector.extract_strided_slice %90 {offsets = [0, 0, 4], sizes = [2, 8, 4], strides = [1, 1, 1]} : vector<2x8x16xf32> to vector<2x8x4xf32>
    "tpu.trace_start"() <{level = 10 : i32, message = "bqk,bkd->bqd"}> : () -> ()
    %cst_63 = arith.constant dense<0.000000e+00> : vector<2x8x4xf32>
    %118 = tpu.matmul %116, %117, %cst_63 {dimension_numbers = #tpu.dot_dimension_numbers<[2], [1], [1], [2], [0, 0, 0, 1, 1, 2], [0], [0]>} : vector<2x8x8xf32>, vector<2x8x4xf32>, vector<2x8x4xf32> -> vector<2x8x4xf32>
    "tpu.trace_stop"() : () -> ()
    %119 = vector.extract_strided_slice %88 {offsets = [0, 0, 8], sizes = [2, 8, 4], strides = [1, 1, 1]} : vector<2x8x16xf32> to vector<2x8x4xf32>
    %120 = vector.extract_strided_slice %89 {offsets = [0, 0, 8], sizes = [2, 8, 4], strides = [1, 1, 1]} : vector<2x8x16xf32> to vector<2x8x4xf32>
    "tpu.trace_start"() <{level = 10 : i32, message = "bqd,bkd->bqk"}> : () -> ()
    %cst_64 = arith.constant dense<0.000000e+00> : vector<2x8x8xf32>
    %121 = tpu.matmul %119, %120, %cst_64 {dimension_numbers = #tpu.dot_dimension_numbers<[2], [2], [1], [1], [0, 0, 0, 1, 1, 1], [0], [0]>} : vector<2x8x4xf32>, vector<2x8x4xf32>, vector<2x8x8xf32> -> vector<2x8x8xf32>
    "tpu.trace_stop"() : () -> ()
    %cst_65 = arith.constant dense<0xFF800000> : vector<2x8xf32>
    %122 = vector.multi_reduction <maximumf>, %121, %cst_65 [2] : vector<2x8x8xf32> to vector<2x8xf32>
    %123 = vector.shape_cast %122 : vector<2x8xf32> to vector<2x8x1xf32>
    %124 = vector.broadcast %123 : vector<2x8x1xf32> to vector<2x8x8xf32>
    %125 = arith.subf %121, %124 : vector<2x8x8xf32>
    %126 = math.exp %125 : vector<2x8x8xf32>
    %cst_66 = arith.constant dense<0.000000e+00> : vector<2x8xf32>
    %127 = vector.multi_reduction <add>, %126, %cst_66 [2] : vector<2x8x8xf32> to vector<2x8xf32>
    %128 = vector.shape_cast %127 : vector<2x8xf32> to vector<2x8x1xf32>
    %129 = vector.broadcast %128 : vector<2x8x1xf32> to vector<2x8x8xf32>
    %130 = arith.divf %126, %129 : vector<2x8x8xf32>
    %131 = vector.extract_strided_slice %90 {offsets = [0, 0, 8], sizes = [2, 8, 4], strides = [1, 1, 1]} : vector<2x8x16xf32> to vector<2x8x4xf32>
    "tpu.trace_start"() <{level = 10 : i32, message = "bqk,bkd->bqd"}> : () -> ()
    %cst_67 = arith.constant dense<0.000000e+00> : vector<2x8x4xf32>
    %132 = tpu.matmul %130, %131, %cst_67 {dimension_numbers = #tpu.dot_dimension_numbers<[2], [1], [1], [2], [0, 0, 0, 1, 1, 2], [0], [0]>} : vector<2x8x8xf32>, vector<2x8x4xf32>, vector<2x8x4xf32> -> vector<2x8x4xf32>
    "tpu.trace_stop"() : () -> ()
    %133 = vector.extract_strided_slice %88 {offsets = [0, 0, 12], sizes = [2, 8, 4], strides = [1, 1, 1]} : vector<2x8x16xf32> to vector<2x8x4xf32>
    %134 = vector.extract_strided_slice %89 {offsets = [0, 0, 12], sizes = [2, 8, 4], strides = [1, 1, 1]} : vector<2x8x16xf32> to vector<2x8x4xf32>
    "tpu.trace_start"() <{level = 10 : i32, message = "bqd,bkd->bqk"}> : () -> ()
    %cst_68 = arith.constant dense<0.000000e+00> : vector<2x8x8xf32>
    %135 = tpu.matmul %133, %134, %cst_68 {dimension_numbers = #tpu.dot_dimension_numbers<[2], [2], [1], [1], [0, 0, 0, 1, 1, 1], [0], [0]>} : vector<2x8x4xf32>, vector<2x8x4xf32>, vector<2x8x8xf32> -> vector<2x8x8xf32>
    "tpu.trace_stop"() : () -> ()
    %cst_69 = arith.constant dense<0xFF800000> : vector<2x8xf32>
    %136 = vector.multi_reduction <maximumf>, %135, %cst_69 [2] : vector<2x8x8xf32> to vector<2x8xf32>
    %137 = vector.shape_cast %136 : vector<2x8xf32> to vector<2x8x1xf32>
    %138 = vector.broadcast %137 : vector<2x8x1xf32> to vector<2x8x8xf32>
    %139 = arith.subf %135, %138 : vector<2x8x8xf32>
    %140 = math.exp %139 : vector<2x8x8xf32>
    %cst_70 = arith.constant dense<0.000000e+00> : vector<2x8xf32>
    %141 = vector.multi_reduction <add>, %140, %cst_70 [2] : vector<2x8x8xf32> to vector<2x8xf32>
    %142 = vector.shape_cast %141 : vector<2x8xf32> to vector<2x8x1xf32>
    %143 = vector.broadcast %142 : vector<2x8x1xf32> to vector<2x8x8xf32>
    %144 = arith.divf %140, %143 : vector<2x8x8xf32>
    %145 = vector.extract_strided_slice %90 {offsets = [0, 0, 12], sizes = [2, 8, 4], strides = [1, 1, 1]} : vector<2x8x16xf32> to vector<2x8x4xf32>
    "tpu.trace_start"() <{level = 10 : i32, message = "bqk,bkd->bqd"}> : () -> ()
    %cst_71 = arith.constant dense<0.000000e+00> : vector<2x8x4xf32>
    %146 = tpu.matmul %144, %145, %cst_71 {dimension_numbers = #tpu.dot_dimension_numbers<[2], [1], [1], [2], [0, 0, 0, 1, 1, 2], [0], [0]>} : vector<2x8x8xf32>, vector<2x8x4xf32>, vector<2x8x4xf32> -> vector<2x8x4xf32>
    "tpu.trace_stop"() : () -> ()
    %147 = tpu.concatenate %104, %118, %132, %146 in 2 : vector<2x8x4xf32>, vector<2x8x4xf32>, vector<2x8x4xf32>, vector<2x8x4xf32> -> vector<2x8x16xf32>
    %148 = vector.shape_cast %147 : vector<2x8x16xf32> to vector<16x16xf32>
    %c0_72 = arith.constant 0 : index
    %c0_73 = arith.constant 0 : index
    %c0_74 = arith.constant 0 : index
    %c0_75 = arith.constant 0 : index
    %149 = vector.load %arg12[%c0_72, %c0_73, %c0_74, %c0_75] : memref<1x2x16x16xf32, #tpu.memory_space<vmem>>, vector<1x1x16x16xf32>
    %150 = vector.shape_cast %149 : vector<1x1x16x16xf32> to vector<16x16xf32>
    %cst_76 = arith.constant dense<0.000000e+00> : vector<16x16xf32>
    %151 = tpu.matmul %148, %150, %cst_76 {dimension_numbers = #tpu.dot_dimension_numbers<[1], [0], [0], [1], [0, 0, 1, 1], [], []>} : vector<16x16xf32>, vector<16x16xf32>, vector<16x16xf32> -> vector<16x16xf32>
    %c0_77 = arith.constant 0 : index
    %c0_78 = arith.constant 0 : index
    %c0_79 = arith.constant 0 : index
    %c0_80 = arith.constant 0 : index
    %152 = vector.load %arg13[%c0_77, %c0_78, %c0_79, %c0_80] : memref<1x2x1x16xf32, #tpu.memory_space<vmem>>, vector<1x1x1x16xf32>
    %153 = vector.shape_cast %152 : vector<1x1x1x16xf32> to vector<1x16xf32>
    %154 = vector.broadcast %153 : vector<1x16xf32> to vector<16x16xf32>
    %155 = arith.addf %151, %154 : vector<16x16xf32>
    %156 = arith.addf %8, %155 : vector<16x16xf32>
    %c0_81 = arith.constant 0 : index
    %c0_82 = arith.constant 0 : index
    %c0_83 = arith.constant 0 : index
    %c0_84 = arith.constant 0 : index
    %157 = vector.load %arg14[%c0_81, %c0_82, %c0_83, %c0_84] : memref<1x2x1x16xf32, #tpu.memory_space<vmem>>, vector<1x1x1x16xf32>
    %158 = vector.shape_cast %157 : vector<1x1x1x16xf32> to vector<1x16xf32>
    %c0_85 = arith.constant 0 : index
    %c0_86 = arith.constant 0 : index
    %c0_87 = arith.constant 0 : index
    %c0_88 = arith.constant 0 : index
    %159 = vector.load %arg15[%c0_85, %c0_86, %c0_87, %c0_88] : memref<1x2x1x16xf32, #tpu.memory_space<vmem>>, vector<1x1x1x16xf32>
    %160 = vector.shape_cast %159 : vector<1x1x1x16xf32> to vector<1x16xf32>
    %cst_89 = arith.constant dense<0.000000e+00> : vector<16xf32>
    %161 = vector.multi_reduction <add>, %156, %cst_89 [1] : vector<16x16xf32> to vector<16xf32>
    %162 = vector.shape_cast %161 : vector<16xf32> to vector<16x1xf32>
    %cst_90 = arith.constant 1.600000e+01 : f32
    %163 = vector.broadcast %cst_90 : f32 to vector<16x1xf32>
    %164 = arith.divf %162, %163 : vector<16x1xf32>
    %165 = vector.broadcast %164 : vector<16x1xf32> to vector<16x16xf32>
    %166 = arith.subf %156, %165 : vector<16x16xf32>
    %167 = arith.mulf %166, %166 : vector<16x16xf32>
    %cst_91 = arith.constant dense<0.000000e+00> : vector<16xf32>
    %168 = vector.multi_reduction <add>, %167, %cst_91 [1] : vector<16x16xf32> to vector<16xf32>
    %169 = vector.shape_cast %168 : vector<16xf32> to vector<16x1xf32>
    %cst_92 = arith.constant 1.600000e+01 : f32
    %170 = vector.broadcast %cst_92 : f32 to vector<16x1xf32>
    %171 = arith.divf %169, %170 : vector<16x1xf32>
    %172 = vector.broadcast %164 : vector<16x1xf32> to vector<16x16xf32>
    %173 = arith.subf %156, %172 : vector<16x16xf32>
    %cst_93 = arith.constant 9.99999974E-6 : f32
    %174 = vector.broadcast %cst_93 : f32 to vector<16x1xf32>
    %175 = arith.addf %171, %174 : vector<16x1xf32>
    %176 = math.rsqrt %175 : vector<16x1xf32>
    %177 = vector.broadcast %176 : vector<16x1xf32> to vector<16x16xf32>
    %178 = arith.mulf %173, %177 : vector<16x16xf32>
    %179 = vector.broadcast %158 : vector<1x16xf32> to vector<16x16xf32>
    %180 = arith.mulf %178, %179 : vector<16x16xf32>
    %181 = vector.broadcast %160 : vector<1x16xf32> to vector<16x16xf32>
    %182 = arith.addf %180, %181 : vector<16x16xf32>
    %c0_94 = arith.constant 0 : index
    %c0_95 = arith.constant 0 : index
    %c0_96 = arith.constant 0 : index
    %c0_97 = arith.constant 0 : index
    %183 = vector.load %arg16[%c0_94, %c0_95, %c0_96, %c0_97] : memref<1x2x16x64xf32, #tpu.memory_space<vmem>>, vector<1x1x16x64xf32>
    %184 = vector.shape_cast %183 : vector<1x1x16x64xf32> to vector<16x64xf32>
    %cst_98 = arith.constant dense<0.000000e+00> : vector<16x64xf32>
    %185 = tpu.matmul %182, %184, %cst_98 {dimension_numbers = #tpu.dot_dimension_numbers<[1], [0], [0], [1], [0, 0, 1, 1], [], []>} : vector<16x16xf32>, vector<16x64xf32>, vector<16x64xf32> -> vector<16x64xf32>
    %c0_99 = arith.constant 0 : index
    %c0_100 = arith.constant 0 : index
    %c0_101 = arith.constant 0 : index
    %c0_102 = arith.constant 0 : index
    %186 = vector.load %arg17[%c0_99, %c0_100, %c0_101, %c0_102] : memref<1x2x1x64xf32, #tpu.memory_space<vmem>>, vector<1x1x1x64xf32>
    %187 = vector.shape_cast %186 : vector<1x1x1x64xf32> to vector<1x64xf32>
    %188 = vector.broadcast %187 : vector<1x64xf32> to vector<16x64xf32>
    %189 = arith.addf %185, %188 : vector<16x64xf32>
    %cst_103 = arith.constant 0.000000e+00 : f32
    %190 = vector.broadcast %cst_103 : f32 to vector<16x64xf32>
    %191 = arith.maximumf %189, %190 : vector<16x64xf32>
    %c0_104 = arith.constant 0 : index
    %c0_105 = arith.constant 0 : index
    %c0_106 = arith.constant 0 : index
    %c0_107 = arith.constant 0 : index
    %192 = vector.load %arg18[%c0_104, %c0_105, %c0_106, %c0_107] : memref<1x2x64x16xf32, #tpu.memory_space<vmem>>, vector<1x1x64x16xf32>
    %193 = vector.shape_cast %192 : vector<1x1x64x16xf32> to vector<64x16xf32>
    %cst_108 = arith.constant dense<0.000000e+00> : vector<16x16xf32>
    %194 = tpu.matmul %191, %193, %cst_108 {dimension_numbers = #tpu.dot_dimension_numbers<[1], [0], [0], [1], [0, 0, 1, 1], [], []>} : vector<16x64xf32>, vector<64x16xf32>, vector<16x16xf32> -> vector<16x16xf32>
    %c0_109 = arith.constant 0 : index
    %c0_110 = arith.constant 0 : index
    %c0_111 = arith.constant 0 : index
    %c0_112 = arith.constant 0 : index
    %195 = vector.load %arg19[%c0_109, %c0_110, %c0_111, %c0_112] : memref<1x2x1x16xf32, #tpu.memory_space<vmem>>, vector<1x1x1x16xf32>
    %196 = vector.shape_cast %195 : vector<1x1x1x16xf32> to vector<1x16xf32>
    %197 = vector.broadcast %196 : vector<1x16xf32> to vector<16x16xf32>
    %198 = arith.addf %194, %197 : vector<16x16xf32>
    %199 = arith.addf %156, %198 : vector<16x16xf32>
    %c0_113 = arith.constant 0 : index
    %c1 = arith.constant 1 : index
    %c0_114 = arith.constant 0 : index
    %c0_115 = arith.constant 0 : index
    %200 = vector.load %arg4[%c0_113, %c1, %c0_114, %c0_115] : memref<1x2x1x16xf32, #tpu.memory_space<vmem>>, vector<1x1x1x16xf32>
    %201 = vector.shape_cast %200 : vector<1x1x1x16xf32> to vector<1x16xf32>
    %c0_116 = arith.constant 0 : index
    %c1_117 = arith.constant 1 : index
    %c0_118 = arith.constant 0 : index
    %c0_119 = arith.constant 0 : index
    %202 = vector.load %arg5[%c0_116, %c1_117, %c0_118, %c0_119] : memref<1x2x1x16xf32, #tpu.memory_space<vmem>>, vector<1x1x1x16xf32>
    %203 = vector.shape_cast %202 : vector<1x1x1x16xf32> to vector<1x16xf32>
    %cst_120 = arith.constant dense<0.000000e+00> : vector<16xf32>
    %204 = vector.multi_reduction <add>, %199, %cst_120 [1] : vector<16x16xf32> to vector<16xf32>
    %205 = vector.shape_cast %204 : vector<16xf32> to vector<16x1xf32>
    %cst_121 = arith.constant 1.600000e+01 : f32
    %206 = vector.broadcast %cst_121 : f32 to vector<16x1xf32>
    %207 = arith.divf %205, %206 : vector<16x1xf32>
    %208 = vector.broadcast %207 : vector<16x1xf32> to vector<16x16xf32>
    %209 = arith.subf %199, %208 : vector<16x16xf32>
    %210 = arith.mulf %209, %209 : vector<16x16xf32>
    %cst_122 = arith.constant dense<0.000000e+00> : vector<16xf32>
    %211 = vector.multi_reduction <add>, %210, %cst_122 [1] : vector<16x16xf32> to vector<16xf32>
    %212 = vector.shape_cast %211 : vector<16xf32> to vector<16x1xf32>
    %cst_123 = arith.constant 1.600000e+01 : f32
    %213 = vector.broadcast %cst_123 : f32 to vector<16x1xf32>
    %214 = arith.divf %212, %213 : vector<16x1xf32>
    %215 = vector.broadcast %207 : vector<16x1xf32> to vector<16x16xf32>
    %216 = arith.subf %199, %215 : vector<16x16xf32>
    %cst_124 = arith.constant 9.99999974E-6 : f32
    %217 = vector.broadcast %cst_124 : f32 to vector<16x1xf32>
    %218 = arith.addf %214, %217 : vector<16x1xf32>
    %219 = math.rsqrt %218 : vector<16x1xf32>
    %220 = vector.broadcast %219 : vector<16x1xf32> to vector<16x16xf32>
    %221 = arith.mulf %216, %220 : vector<16x16xf32>
    %222 = vector.broadcast %201 : vector<1x16xf32> to vector<16x16xf32>
    %223 = arith.mulf %221, %222 : vector<16x16xf32>
    %224 = vector.broadcast %203 : vector<1x16xf32> to vector<16x16xf32>
    %225 = arith.addf %223, %224 : vector<16x16xf32>
    %cst_125 = arith.constant dense<0.000000e+00> : vector<16xf32>
    %226 = vector.multi_reduction <add>, %16, %cst_125 [1] : vector<16x16xf32> to vector<16xf32>
    %227 = vector.shape_cast %226 : vector<16xf32> to vector<16x1xf32>
    %cst_126 = arith.constant 1.600000e+01 : f32
    %228 = vector.broadcast %cst_126 : f32 to vector<16x1xf32>
    %229 = arith.divf %227, %228 : vector<16x1xf32>
    %230 = vector.broadcast %229 : vector<16x1xf32> to vector<16x16xf32>
    %231 = arith.subf %16, %230 : vector<16x16xf32>
    %232 = arith.mulf %231, %231 : vector<16x16xf32>
    %cst_127 = arith.constant dense<0.000000e+00> : vector<16xf32>
    %233 = vector.multi_reduction <add>, %232, %cst_127 [1] : vector<16x16xf32> to vector<16xf32>
    %234 = vector.shape_cast %233 : vector<16xf32> to vector<16x1xf32>
    %cst_128 = arith.constant 1.600000e+01 : f32
    %235 = vector.broadcast %cst_128 : f32 to vector<16x1xf32>
    %236 = arith.divf %234, %235 : vector<16x1xf32>
    %237 = vector.broadcast %229 : vector<16x1xf32> to vector<16x16xf32>
    %238 = arith.subf %16, %237 : vector<16x16xf32>
    %cst_129 = arith.constant 9.99999974E-6 : f32
    %239 = vector.broadcast %cst_129 : f32 to vector<16x1xf32>
    %240 = arith.addf %236, %239 : vector<16x1xf32>
    %241 = math.rsqrt %240 : vector<16x1xf32>
    %242 = vector.broadcast %241 : vector<16x1xf32> to vector<16x16xf32>
    %243 = arith.mulf %238, %242 : vector<16x16xf32>
    %244 = vector.broadcast %201 : vector<1x16xf32> to vector<16x16xf32>
    %245 = arith.mulf %243, %244 : vector<16x16xf32>
    %246 = vector.broadcast %203 : vector<1x16xf32> to vector<16x16xf32>
    %247 = arith.addf %245, %246 : vector<16x16xf32>
    %c0_130 = arith.constant 0 : index
    %c1_131 = arith.constant 1 : index
    %c0_132 = arith.constant 0 : index
    %c0_133 = arith.constant 0 : index
    %248 = vector.load %arg6[%c0_130, %c1_131, %c0_132, %c0_133] : memref<1x2x16x16xf32, #tpu.memory_space<vmem>>, vector<1x1x16x16xf32>
    %249 = vector.shape_cast %248 : vector<1x1x16x16xf32> to vector<16x16xf32>
    %cst_134 = arith.constant dense<0.000000e+00> : vector<16x16xf32>
    %250 = tpu.matmul %225, %249, %cst_134 {dimension_numbers = #tpu.dot_dimension_numbers<[1], [0], [0], [1], [0, 0, 1, 1], [], []>} : vector<16x16xf32>, vector<16x16xf32>, vector<16x16xf32> -> vector<16x16xf32>
    %c0_135 = arith.constant 0 : index
    %c1_136 = arith.constant 1 : index
    %c0_137 = arith.constant 0 : index
    %c0_138 = arith.constant 0 : index
    %251 = vector.load %arg7[%c0_135, %c1_136, %c0_137, %c0_138] : memref<1x2x1x16xf32, #tpu.memory_space<vmem>>, vector<1x1x1x16xf32>
    %252 = vector.shape_cast %251 : vector<1x1x1x16xf32> to vector<1x16xf32>
    %253 = vector.broadcast %252 : vector<1x16xf32> to vector<16x16xf32>
    %254 = arith.addf %250, %253 : vector<16x16xf32>
    %cst_139 = arith.constant 5.000000e-01 : f32
    %255 = vector.broadcast %cst_139 : f32 to vector<16x16xf32>
    %256 = arith.mulf %254, %255 : vector<16x16xf32>
    %c0_140 = arith.constant 0 : index
    %c1_141 = arith.constant 1 : index
    %c0_142 = arith.constant 0 : index
    %c0_143 = arith.constant 0 : index
    %257 = vector.load %arg8[%c0_140, %c1_141, %c0_142, %c0_143] : memref<1x2x16x16xf32, #tpu.memory_space<vmem>>, vector<1x1x16x16xf32>
    %258 = vector.shape_cast %257 : vector<1x1x16x16xf32> to vector<16x16xf32>
    %cst_144 = arith.constant dense<0.000000e+00> : vector<16x16xf32>
    %259 = tpu.matmul %247, %258, %cst_144 {dimension_numbers = #tpu.dot_dimension_numbers<[1], [0], [0], [1], [0, 0, 1, 1], [], []>} : vector<16x16xf32>, vector<16x16xf32>, vector<16x16xf32> -> vector<16x16xf32>
    %c0_145 = arith.constant 0 : index
    %c1_146 = arith.constant 1 : index
    %c0_147 = arith.constant 0 : index
    %c0_148 = arith.constant 0 : index
    %260 = vector.load %arg9[%c0_145, %c1_146, %c0_147, %c0_148] : memref<1x2x1x16xf32, #tpu.memory_space<vmem>>, vector<1x1x1x16xf32>
    %261 = vector.shape_cast %260 : vector<1x1x1x16xf32> to vector<1x16xf32>
    %262 = vector.broadcast %261 : vector<1x16xf32> to vector<16x16xf32>
    %263 = arith.addf %259, %262 : vector<16x16xf32>
    %c0_149 = arith.constant 0 : index
    %c1_150 = arith.constant 1 : index
    %c0_151 = arith.constant 0 : index
    %c0_152 = arith.constant 0 : index
    %264 = vector.load %arg10[%c0_149, %c1_150, %c0_151, %c0_152] : memref<1x2x16x16xf32, #tpu.memory_space<vmem>>, vector<1x1x16x16xf32>
    %265 = vector.shape_cast %264 : vector<1x1x16x16xf32> to vector<16x16xf32>
    %cst_153 = arith.constant dense<0.000000e+00> : vector<16x16xf32>
    %266 = tpu.matmul %247, %265, %cst_153 {dimension_numbers = #tpu.dot_dimension_numbers<[1], [0], [0], [1], [0, 0, 1, 1], [], []>} : vector<16x16xf32>, vector<16x16xf32>, vector<16x16xf32> -> vector<16x16xf32>
    %c0_154 = arith.constant 0 : index
    %c1_155 = arith.constant 1 : index
    %c0_156 = arith.constant 0 : index
    %c0_157 = arith.constant 0 : index
    %267 = vector.load %arg11[%c0_154, %c1_155, %c0_156, %c0_157] : memref<1x2x1x16xf32, #tpu.memory_space<vmem>>, vector<1x1x1x16xf32>
    %268 = vector.shape_cast %267 : vector<1x1x1x16xf32> to vector<1x16xf32>
    %269 = vector.broadcast %268 : vector<1x16xf32> to vector<16x16xf32>
    %270 = arith.addf %266, %269 : vector<16x16xf32>
    %271 = vector.shape_cast %256 : vector<16x16xf32> to vector<2x8x16xf32>
    %272 = vector.shape_cast %263 : vector<16x16xf32> to vector<2x8x16xf32>
    %273 = vector.shape_cast %270 : vector<16x16xf32> to vector<2x8x16xf32>
    %274 = vector.extract_strided_slice %271 {offsets = [0, 0, 0], sizes = [2, 8, 4], strides = [1, 1, 1]} : vector<2x8x16xf32> to vector<2x8x4xf32>
    %275 = vector.extract_strided_slice %272 {offsets = [0, 0, 0], sizes = [2, 8, 4], strides = [1, 1, 1]} : vector<2x8x16xf32> to vector<2x8x4xf32>
    "tpu.trace_start"() <{level = 10 : i32, message = "bqd,bkd->bqk"}> : () -> ()
    %cst_158 = arith.constant dense<0.000000e+00> : vector<2x8x8xf32>
    %276 = tpu.matmul %274, %275, %cst_158 {dimension_numbers = #tpu.dot_dimension_numbers<[2], [2], [1], [1], [0, 0, 0, 1, 1, 1], [0], [0]>} : vector<2x8x4xf32>, vector<2x8x4xf32>, vector<2x8x8xf32> -> vector<2x8x8xf32>
    "tpu.trace_stop"() : () -> ()
    %cst_159 = arith.constant dense<0xFF800000> : vector<2x8xf32>
    %277 = vector.multi_reduction <maximumf>, %276, %cst_159 [2] : vector<2x8x8xf32> to vector<2x8xf32>
    %278 = vector.shape_cast %277 : vector<2x8xf32> to vector<2x8x1xf32>
    %279 = vector.broadcast %278 : vector<2x8x1xf32> to vector<2x8x8xf32>
    %280 = arith.subf %276, %279 : vector<2x8x8xf32>
    %281 = math.exp %280 : vector<2x8x8xf32>
    %cst_160 = arith.constant dense<0.000000e+00> : vector<2x8xf32>
    %282 = vector.multi_reduction <add>, %281, %cst_160 [2] : vector<2x8x8xf32> to vector<2x8xf32>
    %283 = vector.shape_cast %282 : vector<2x8xf32> to vector<2x8x1xf32>
    %284 = vector.broadcast %283 : vector<2x8x1xf32> to vector<2x8x8xf32>
    %285 = arith.divf %281, %284 : vector<2x8x8xf32>
    %286 = vector.extract_strided_slice %273 {offsets = [0, 0, 0], sizes = [2, 8, 4], strides = [1, 1, 1]} : vector<2x8x16xf32> to vector<2x8x4xf32>
    "tpu.trace_start"() <{level = 10 : i32, message = "bqk,bkd->bqd"}> : () -> ()
    %cst_161 = arith.constant dense<0.000000e+00> : vector<2x8x4xf32>
    %287 = tpu.matmul %285, %286, %cst_161 {dimension_numbers = #tpu.dot_dimension_numbers<[2], [1], [1], [2], [0, 0, 0, 1, 1, 2], [0], [0]>} : vector<2x8x8xf32>, vector<2x8x4xf32>, vector<2x8x4xf32> -> vector<2x8x4xf32>
    "tpu.trace_stop"() : () -> ()
    %288 = vector.extract_strided_slice %271 {offsets = [0, 0, 4], sizes = [2, 8, 4], strides = [1, 1, 1]} : vector<2x8x16xf32> to vector<2x8x4xf32>
    %289 = vector.extract_strided_slice %272 {offsets = [0, 0, 4], sizes = [2, 8, 4], strides = [1, 1, 1]} : vector<2x8x16xf32> to vector<2x8x4xf32>
    "tpu.trace_start"() <{level = 10 : i32, message = "bqd,bkd->bqk"}> : () -> ()
    %cst_162 = arith.constant dense<0.000000e+00> : vector<2x8x8xf32>
    %290 = tpu.matmul %288, %289, %cst_162 {dimension_numbers = #tpu.dot_dimension_numbers<[2], [2], [1], [1], [0, 0, 0, 1, 1, 1], [0], [0]>} : vector<2x8x4xf32>, vector<2x8x4xf32>, vector<2x8x8xf32> -> vector<2x8x8xf32>
    "tpu.trace_stop"() : () -> ()
    %cst_163 = arith.constant dense<0xFF800000> : vector<2x8xf32>
    %291 = vector.multi_reduction <maximumf>, %290, %cst_163 [2] : vector<2x8x8xf32> to vector<2x8xf32>
    %292 = vector.shape_cast %291 : vector<2x8xf32> to vector<2x8x1xf32>
    %293 = vector.broadcast %292 : vector<2x8x1xf32> to vector<2x8x8xf32>
    %294 = arith.subf %290, %293 : vector<2x8x8xf32>
    %295 = math.exp %294 : vector<2x8x8xf32>
    %cst_164 = arith.constant dense<0.000000e+00> : vector<2x8xf32>
    %296 = vector.multi_reduction <add>, %295, %cst_164 [2] : vector<2x8x8xf32> to vector<2x8xf32>
    %297 = vector.shape_cast %296 : vector<2x8xf32> to vector<2x8x1xf32>
    %298 = vector.broadcast %297 : vector<2x8x1xf32> to vector<2x8x8xf32>
    %299 = arith.divf %295, %298 : vector<2x8x8xf32>
    %300 = vector.extract_strided_slice %273 {offsets = [0, 0, 4], sizes = [2, 8, 4], strides = [1, 1, 1]} : vector<2x8x16xf32> to vector<2x8x4xf32>
    "tpu.trace_start"() <{level = 10 : i32, message = "bqk,bkd->bqd"}> : () -> ()
    %cst_165 = arith.constant dense<0.000000e+00> : vector<2x8x4xf32>
    %301 = tpu.matmul %299, %300, %cst_165 {dimension_numbers = #tpu.dot_dimension_numbers<[2], [1], [1], [2], [0, 0, 0, 1, 1, 2], [0], [0]>} : vector<2x8x8xf32>, vector<2x8x4xf32>, vector<2x8x4xf32> -> vector<2x8x4xf32>
    "tpu.trace_stop"() : () -> ()
    %302 = vector.extract_strided_slice %271 {offsets = [0, 0, 8], sizes = [2, 8, 4], strides = [1, 1, 1]} : vector<2x8x16xf32> to vector<2x8x4xf32>
    %303 = vector.extract_strided_slice %272 {offsets = [0, 0, 8], sizes = [2, 8, 4], strides = [1, 1, 1]} : vector<2x8x16xf32> to vector<2x8x4xf32>
    "tpu.trace_start"() <{level = 10 : i32, message = "bqd,bkd->bqk"}> : () -> ()
    %cst_166 = arith.constant dense<0.000000e+00> : vector<2x8x8xf32>
    %304 = tpu.matmul %302, %303, %cst_166 {dimension_numbers = #tpu.dot_dimension_numbers<[2], [2], [1], [1], [0, 0, 0, 1, 1, 1], [0], [0]>} : vector<2x8x4xf32>, vector<2x8x4xf32>, vector<2x8x8xf32> -> vector<2x8x8xf32>
    "tpu.trace_stop"() : () -> ()
    %cst_167 = arith.constant dense<0xFF800000> : vector<2x8xf32>
    %305 = vector.multi_reduction <maximumf>, %304, %cst_167 [2] : vector<2x8x8xf32> to vector<2x8xf32>
    %306 = vector.shape_cast %305 : vector<2x8xf32> to vector<2x8x1xf32>
    %307 = vector.broadcast %306 : vector<2x8x1xf32> to vector<2x8x8xf32>
    %308 = arith.subf %304, %307 : vector<2x8x8xf32>
    %309 = math.exp %308 : vector<2x8x8xf32>
    %cst_168 = arith.constant dense<0.000000e+00> : vector<2x8xf32>
    %310 = vector.multi_reduction <add>, %309, %cst_168 [2] : vector<2x8x8xf32> to vector<2x8xf32>
    %311 = vector.shape_cast %310 : vector<2x8xf32> to vector<2x8x1xf32>
    %312 = vector.broadcast %311 : vector<2x8x1xf32> to vector<2x8x8xf32>
    %313 = arith.divf %309, %312 : vector<2x8x8xf32>
    %314 = vector.extract_strided_slice %273 {offsets = [0, 0, 8], sizes = [2, 8, 4], strides = [1, 1, 1]} : vector<2x8x16xf32> to vector<2x8x4xf32>
    "tpu.trace_start"() <{level = 10 : i32, message = "bqk,bkd->bqd"}> : () -> ()
    %cst_169 = arith.constant dense<0.000000e+00> : vector<2x8x4xf32>
    %315 = tpu.matmul %313, %314, %cst_169 {dimension_numbers = #tpu.dot_dimension_numbers<[2], [1], [1], [2], [0, 0, 0, 1, 1, 2], [0], [0]>} : vector<2x8x8xf32>, vector<2x8x4xf32>, vector<2x8x4xf32> -> vector<2x8x4xf32>
    "tpu.trace_stop"() : () -> ()
    %316 = vector.extract_strided_slice %271 {offsets = [0, 0, 12], sizes = [2, 8, 4], strides = [1, 1, 1]} : vector<2x8x16xf32> to vector<2x8x4xf32>
    %317 = vector.extract_strided_slice %272 {offsets = [0, 0, 12], sizes = [2, 8, 4], strides = [1, 1, 1]} : vector<2x8x16xf32> to vector<2x8x4xf32>
    "tpu.trace_start"() <{level = 10 : i32, message = "bqd,bkd->bqk"}> : () -> ()
    %cst_170 = arith.constant dense<0.000000e+00> : vector<2x8x8xf32>
    %318 = tpu.matmul %316, %317, %cst_170 {dimension_numbers = #tpu.dot_dimension_numbers<[2], [2], [1], [1], [0, 0, 0, 1, 1, 1], [0], [0]>} : vector<2x8x4xf32>, vector<2x8x4xf32>, vector<2x8x8xf32> -> vector<2x8x8xf32>
    "tpu.trace_stop"() : () -> ()
    %cst_171 = arith.constant dense<0xFF800000> : vector<2x8xf32>
    %319 = vector.multi_reduction <maximumf>, %318, %cst_171 [2] : vector<2x8x8xf32> to vector<2x8xf32>
    %320 = vector.shape_cast %319 : vector<2x8xf32> to vector<2x8x1xf32>
    %321 = vector.broadcast %320 : vector<2x8x1xf32> to vector<2x8x8xf32>
    %322 = arith.subf %318, %321 : vector<2x8x8xf32>
    %323 = math.exp %322 : vector<2x8x8xf32>
    %cst_172 = arith.constant dense<0.000000e+00> : vector<2x8xf32>
    %324 = vector.multi_reduction <add>, %323, %cst_172 [2] : vector<2x8x8xf32> to vector<2x8xf32>
    %325 = vector.shape_cast %324 : vector<2x8xf32> to vector<2x8x1xf32>
    %326 = vector.broadcast %325 : vector<2x8x1xf32> to vector<2x8x8xf32>
    %327 = arith.divf %323, %326 : vector<2x8x8xf32>
    %328 = vector.extract_strided_slice %273 {offsets = [0, 0, 12], sizes = [2, 8, 4], strides = [1, 1, 1]} : vector<2x8x16xf32> to vector<2x8x4xf32>
    "tpu.trace_start"() <{level = 10 : i32, message = "bqk,bkd->bqd"}> : () -> ()
    %cst_173 = arith.constant dense<0.000000e+00> : vector<2x8x4xf32>
    %329 = tpu.matmul %327, %328, %cst_173 {dimension_numbers = #tpu.dot_dimension_numbers<[2], [1], [1], [2], [0, 0, 0, 1, 1, 2], [0], [0]>} : vector<2x8x8xf32>, vector<2x8x4xf32>, vector<2x8x4xf32> -> vector<2x8x4xf32>
    "tpu.trace_stop"() : () -> ()
    %330 = tpu.concatenate %287, %301, %315, %329 in 2 : vector<2x8x4xf32>, vector<2x8x4xf32>, vector<2x8x4xf32>, vector<2x8x4xf32> -> vector<2x8x16xf32>
    %331 = vector.shape_cast %330 : vector<2x8x16xf32> to vector<16x16xf32>
    %c0_174 = arith.constant 0 : index
    %c1_175 = arith.constant 1 : index
    %c0_176 = arith.constant 0 : index
    %c0_177 = arith.constant 0 : index
    %332 = vector.load %arg12[%c0_174, %c1_175, %c0_176, %c0_177] : memref<1x2x16x16xf32, #tpu.memory_space<vmem>>, vector<1x1x16x16xf32>
    %333 = vector.shape_cast %332 : vector<1x1x16x16xf32> to vector<16x16xf32>
    %cst_178 = arith.constant dense<0.000000e+00> : vector<16x16xf32>
    %334 = tpu.matmul %331, %333, %cst_178 {dimension_numbers = #tpu.dot_dimension_numbers<[1], [0], [0], [1], [0, 0, 1, 1], [], []>} : vector<16x16xf32>, vector<16x16xf32>, vector<16x16xf32> -> vector<16x16xf32>
    %c0_179 = arith.constant 0 : index
    %c1_180 = arith.constant 1 : index
    %c0_181 = arith.constant 0 : index
    %c0_182 = arith.constant 0 : index
    %335 = vector.load %arg13[%c0_179, %c1_180, %c0_181, %c0_182] : memref<1x2x1x16xf32, #tpu.memory_space<vmem>>, vector<1x1x1x16xf32>
    %336 = vector.shape_cast %335 : vector<1x1x1x16xf32> to vector<1x16xf32>
    %337 = vector.broadcast %336 : vector<1x16xf32> to vector<16x16xf32>
    %338 = arith.addf %334, %337 : vector<16x16xf32>
    %339 = arith.addf %199, %338 : vector<16x16xf32>
    %c0_183 = arith.constant 0 : index
    %c1_184 = arith.constant 1 : index
    %c0_185 = arith.constant 0 : index
    %c0_186 = arith.constant 0 : index
    %340 = vector.load %arg14[%c0_183, %c1_184, %c0_185, %c0_186] : memref<1x2x1x16xf32, #tpu.memory_space<vmem>>, vector<1x1x1x16xf32>
    %341 = vector.shape_cast %340 : vector<1x1x1x16xf32> to vector<1x16xf32>
    %c0_187 = arith.constant 0 : index
    %c1_188 = arith.constant 1 : index
    %c0_189 = arith.constant 0 : index
    %c0_190 = arith.constant 0 : index
    %342 = vector.load %arg15[%c0_187, %c1_188, %c0_189, %c0_190] : memref<1x2x1x16xf32, #tpu.memory_space<vmem>>, vector<1x1x1x16xf32>
    %343 = vector.shape_cast %342 : vector<1x1x1x16xf32> to vector<1x16xf32>
    %cst_191 = arith.constant dense<0.000000e+00> : vector<16xf32>
    %344 = vector.multi_reduction <add>, %339, %cst_191 [1] : vector<16x16xf32> to vector<16xf32>
    %345 = vector.shape_cast %344 : vector<16xf32> to vector<16x1xf32>
    %cst_192 = arith.constant 1.600000e+01 : f32
    %346 = vector.broadcast %cst_192 : f32 to vector<16x1xf32>
    %347 = arith.divf %345, %346 : vector<16x1xf32>
    %348 = vector.broadcast %347 : vector<16x1xf32> to vector<16x16xf32>
    %349 = arith.subf %339, %348 : vector<16x16xf32>
    %350 = arith.mulf %349, %349 : vector<16x16xf32>
    %cst_193 = arith.constant dense<0.000000e+00> : vector<16xf32>
    %351 = vector.multi_reduction <add>, %350, %cst_193 [1] : vector<16x16xf32> to vector<16xf32>
    %352 = vector.shape_cast %351 : vector<16xf32> to vector<16x1xf32>
    %cst_194 = arith.constant 1.600000e+01 : f32
    %353 = vector.broadcast %cst_194 : f32 to vector<16x1xf32>
    %354 = arith.divf %352, %353 : vector<16x1xf32>
    %355 = vector.broadcast %347 : vector<16x1xf32> to vector<16x16xf32>
    %356 = arith.subf %339, %355 : vector<16x16xf32>
    %cst_195 = arith.constant 9.99999974E-6 : f32
    %357 = vector.broadcast %cst_195 : f32 to vector<16x1xf32>
    %358 = arith.addf %354, %357 : vector<16x1xf32>
    %359 = math.rsqrt %358 : vector<16x1xf32>
    %360 = vector.broadcast %359 : vector<16x1xf32> to vector<16x16xf32>
    %361 = arith.mulf %356, %360 : vector<16x16xf32>
    %362 = vector.broadcast %341 : vector<1x16xf32> to vector<16x16xf32>
    %363 = arith.mulf %361, %362 : vector<16x16xf32>
    %364 = vector.broadcast %343 : vector<1x16xf32> to vector<16x16xf32>
    %365 = arith.addf %363, %364 : vector<16x16xf32>
    %c0_196 = arith.constant 0 : index
    %c1_197 = arith.constant 1 : index
    %c0_198 = arith.constant 0 : index
    %c0_199 = arith.constant 0 : index
    %366 = vector.load %arg16[%c0_196, %c1_197, %c0_198, %c0_199] : memref<1x2x16x64xf32, #tpu.memory_space<vmem>>, vector<1x1x16x64xf32>
    %367 = vector.shape_cast %366 : vector<1x1x16x64xf32> to vector<16x64xf32>
    %cst_200 = arith.constant dense<0.000000e+00> : vector<16x64xf32>
    %368 = tpu.matmul %365, %367, %cst_200 {dimension_numbers = #tpu.dot_dimension_numbers<[1], [0], [0], [1], [0, 0, 1, 1], [], []>} : vector<16x16xf32>, vector<16x64xf32>, vector<16x64xf32> -> vector<16x64xf32>
    %c0_201 = arith.constant 0 : index
    %c1_202 = arith.constant 1 : index
    %c0_203 = arith.constant 0 : index
    %c0_204 = arith.constant 0 : index
    %369 = vector.load %arg17[%c0_201, %c1_202, %c0_203, %c0_204] : memref<1x2x1x64xf32, #tpu.memory_space<vmem>>, vector<1x1x1x64xf32>
    %370 = vector.shape_cast %369 : vector<1x1x1x64xf32> to vector<1x64xf32>
    %371 = vector.broadcast %370 : vector<1x64xf32> to vector<16x64xf32>
    %372 = arith.addf %368, %371 : vector<16x64xf32>
    %cst_205 = arith.constant 0.000000e+00 : f32
    %373 = vector.broadcast %cst_205 : f32 to vector<16x64xf32>
    %374 = arith.maximumf %372, %373 : vector<16x64xf32>
    %c0_206 = arith.constant 0 : index
    %c1_207 = arith.constant 1 : index
    %c0_208 = arith.constant 0 : index
    %c0_209 = arith.constant 0 : index
    %375 = vector.load %arg18[%c0_206, %c1_207, %c0_208, %c0_209] : memref<1x2x64x16xf32, #tpu.memory_space<vmem>>, vector<1x1x64x16xf32>
    %376 = vector.shape_cast %375 : vector<1x1x64x16xf32> to vector<64x16xf32>
    %cst_210 = arith.constant dense<0.000000e+00> : vector<16x16xf32>
    %377 = tpu.matmul %374, %376, %cst_210 {dimension_numbers = #tpu.dot_dimension_numbers<[1], [0], [0], [1], [0, 0, 1, 1], [], []>} : vector<16x64xf32>, vector<64x16xf32>, vector<16x16xf32> -> vector<16x16xf32>
    %c0_211 = arith.constant 0 : index
    %c1_212 = arith.constant 1 : index
    %c0_213 = arith.constant 0 : index
    %c0_214 = arith.constant 0 : index
    %378 = vector.load %arg19[%c0_211, %c1_212, %c0_213, %c0_214] : memref<1x2x1x16xf32, #tpu.memory_space<vmem>>, vector<1x1x1x16xf32>
    %379 = vector.shape_cast %378 : vector<1x1x1x16xf32> to vector<1x16xf32>
    %380 = vector.broadcast %379 : vector<1x16xf32> to vector<16x16xf32>
    %381 = arith.addf %377, %380 : vector<16x16xf32>
    %382 = arith.addf %339, %381 : vector<16x16xf32>
    %c0_215 = arith.constant 0 : index
    %c0_216 = arith.constant 0 : index
    %c0_217 = arith.constant 0 : index
    %383 = vector.load %arg20[%c0_215, %c0_216, %c0_217] : memref<1x1x16xf32, #tpu.memory_space<vmem>>, vector<1x1x16xf32>
    %384 = vector.shape_cast %383 : vector<1x1x16xf32> to vector<1x16xf32>
    %c0_218 = arith.constant 0 : index
    %c0_219 = arith.constant 0 : index
    %c0_220 = arith.constant 0 : index
    %385 = vector.load %arg21[%c0_218, %c0_219, %c0_220] : memref<1x1x16xf32, #tpu.memory_space<vmem>>, vector<1x1x16xf32>
    %386 = vector.shape_cast %385 : vector<1x1x16xf32> to vector<1x16xf32>
    %cst_221 = arith.constant dense<0.000000e+00> : vector<16xf32>
    %387 = vector.multi_reduction <add>, %382, %cst_221 [1] : vector<16x16xf32> to vector<16xf32>
    %388 = vector.shape_cast %387 : vector<16xf32> to vector<16x1xf32>
    %cst_222 = arith.constant 1.600000e+01 : f32
    %389 = vector.broadcast %cst_222 : f32 to vector<16x1xf32>
    %390 = arith.divf %388, %389 : vector<16x1xf32>
    %391 = vector.broadcast %390 : vector<16x1xf32> to vector<16x16xf32>
    %392 = arith.subf %382, %391 : vector<16x16xf32>
    %393 = arith.mulf %392, %392 : vector<16x16xf32>
    %cst_223 = arith.constant dense<0.000000e+00> : vector<16xf32>
    %394 = vector.multi_reduction <add>, %393, %cst_223 [1] : vector<16x16xf32> to vector<16xf32>
    %395 = vector.shape_cast %394 : vector<16xf32> to vector<16x1xf32>
    %cst_224 = arith.constant 1.600000e+01 : f32
    %396 = vector.broadcast %cst_224 : f32 to vector<16x1xf32>
    %397 = arith.divf %395, %396 : vector<16x1xf32>
    %398 = vector.broadcast %390 : vector<16x1xf32> to vector<16x16xf32>
    %399 = arith.subf %382, %398 : vector<16x16xf32>
    %cst_225 = arith.constant 9.99999974E-6 : f32
    %400 = vector.broadcast %cst_225 : f32 to vector<16x1xf32>
    %401 = arith.addf %397, %400 : vector<16x1xf32>
    %402 = math.rsqrt %401 : vector<16x1xf32>
    %403 = vector.broadcast %402 : vector<16x1xf32> to vector<16x16xf32>
    %404 = arith.mulf %399, %403 : vector<16x16xf32>
    %405 = vector.broadcast %384 : vector<1x16xf32> to vector<16x16xf32>
    %406 = arith.mulf %404, %405 : vector<16x16xf32>
    %407 = vector.broadcast %386 : vector<1x16xf32> to vector<16x16xf32>
    %408 = arith.addf %406, %407 : vector<16x16xf32>
    %409 = vector.shape_cast %408 : vector<16x16xf32> to vector<1x2x8x16xf32>
    %c0_226 = arith.constant 0 : index
    %c0_227 = arith.constant 0 : index
    %c0_228 = arith.constant 0 : index
    %c0_229 = arith.constant 0 : index
    %410 = vector.load %arg22[%c0_226, %c0_227, %c0_228, %c0_229] : memref<1x2x8x16xf32, #tpu.memory_space<vmem>>, vector<1x2x8x16xf32>
    tpu.vector_store %arg22[%c0_226, %c0_227, %c0_228, %c0_229], %409 {strides = array<i32>} : memref<1x2x8x16xf32, #tpu.memory_space<vmem>>, vector<1x2x8x16xf32>,
    return
  }
  func.func @transform_0(%arg0: i32) -> (i32, i32, i32, i32) {
    %c0_i32 = arith.constant 0 : i32
    %c0_i32_0 = arith.constant 0 : i32
    %c0_i32_1 = arith.constant 0 : i32
    %c0_i32_2 = arith.constant 0 : i32
    return %arg0, %c0_i32, %c0_i32_0, %c0_i32_1 : i32, i32, i32, i32
  }
  func.func @transform_1(%arg0: i32) -> (i32, i32, i32, i32) {
    %c0_i32 = arith.constant 0 : i32
    %c0_i32_0 = arith.constant 0 : i32
    %c0_i32_1 = arith.constant 0 : i32
    %c0_i32_2 = arith.constant 0 : i32
    return %arg0, %c0_i32, %c0_i32_0, %c0_i32_1 : i32, i32, i32, i32
  }
  func.func @transform_2(%arg0: i32) -> (i32, i32) {
    %c0_i32 = arith.constant 0 : i32
    %c0_i32_0 = arith.constant 0 : i32
    %c0_i32_1 = arith.constant 0 : i32
    return %c0_i32, %c0_i32_0 : i32, i32
  }
  func.func @transform_3(%arg0: i32) -> (i32, i32, i32, i32) {
    %c0_i32 = arith.constant 0 : i32
    %c0_i32_0 = arith.constant 0 : i32
    %c0_i32_1 = arith.constant 0 : i32
    %c0_i32_2 = arith.constant 0 : i32
    return %arg0, %c0_i32, %c0_i32_0, %c0_i32_1 : i32, i32, i32, i32
  }
  func.func @transform_4(%arg0: i32) -> (i32, i32, i32, i32) {
    %c0_i32 = arith.constant 0 : i32
    %c0_i32_0 = arith.constant 0 : i32
    %c0_i32_1 = arith.constant 0 : i32
    %c0_i32_2 = arith.constant 0 : i32
    return %arg0, %c0_i32, %c0_i32_0, %c0_i32_1 : i32, i32, i32, i32
  }
  func.func @transform_5(%arg0: i32) -> (i32, i32, i32, i32) {
    %c0_i32 = arith.constant 0 : i32
    %c0_i32_0 = arith.constant 0 : i32
    %c0_i32_1 = arith.constant 0 : i32
    %c0_i32_2 = arith.constant 0 : i32
    return %arg0, %c0_i32, %c0_i32_0, %c0_i32_1 : i32, i32, i32, i32
  }
  func.func @transform_6(%arg0: i32) -> (i32, i32, i32, i32) {
    %c0_i32 = arith.constant 0 : i32
    %c0_i32_0 = arith.constant 0 : i32
    %c0_i32_1 = arith.constant 0 : i32
    %c0_i32_2 = arith.constant 0 : i32
    return %arg0, %c0_i32, %c0_i32_0, %c0_i32_1 : i32, i32, i32, i32
  }
  func.func @transform_7(%arg0: i32) -> (i32, i32, i32, i32) {
    %c0_i32 = arith.constant 0 : i32
    %c0_i32_0 = arith.constant 0 : i32
    %c0_i32_1 = arith.constant 0 : i32
    %c0_i32_2 = arith.constant 0 : i32
    return %arg0, %c0_i32, %c0_i32_0, %c0_i32_1 : i32, i32, i32, i32
  }
  func.func @transform_8(%arg0: i32) -> (i32, i32, i32, i32) {
    %c0_i32 = arith.constant 0 : i32
    %c0_i32_0 = arith.constant 0 : i32
    %c0_i32_1 = arith.constant 0 : i32
    %c0_i32_2 = arith.constant 0 : i32
    return %arg0, %c0_i32, %c0_i32_0, %c0_i32_1 : i32, i32, i32, i32
  }
  func.func @transform_9(%arg0: i32) -> (i32, i32, i32, i32) {
    %c0_i32 = arith.constant 0 : i32
    %c0_i32_0 = arith.constant 0 : i32
    %c0_i32_1 = arith.constant 0 : i32
    %c0_i32_2 = arith.constant 0 : i32
    return %arg0, %c0_i32, %c0_i32_0, %c0_i32_1 : i32, i32, i32, i32
  }
  func.func @transform_10(%arg0: i32) -> (i32, i32, i32, i32) {
    %c0_i32 = arith.constant 0 : i32
    %c0_i32_0 = arith.constant 0 : i32
    %c0_i32_1 = arith.constant 0 : i32
    %c0_i32_2 = arith.constant 0 : i32
    return %arg0, %c0_i32, %c0_i32_0, %c0_i32_1 : i32, i32, i32, i32
  }
  func.func @transform_11(%arg0: i32) -> (i32, i32, i32, i32) {
    %c0_i32 = arith.constant 0 : i32
    %c0_i32_0 = arith.constant 0 : i32
    %c0_i32_1 = arith.constant 0 : i32
    %c0_i32_2 = arith.constant 0 : i32
    return %arg0, %c0_i32, %c0_i32_0, %c0_i32_1 : i32, i32, i32, i32
  }
  func.func @transform_12(%arg0: i32) -> (i32, i32, i32, i32) {
    %c0_i32 = arith.constant 0 : i32
    %c0_i32_0 = arith.constant 0 : i32
    %c0_i32_1 = arith.constant 0 : i32
    %c0_i32_2 = arith.constant 0 : i32
    return %arg0, %c0_i32, %c0_i32_0, %c0_i32_1 : i32, i32, i32, i32
  }
  func.func @transform_13(%arg0: i32) -> (i32, i32, i32, i32) {
    %c0_i32 = arith.constant 0 : i32
    %c0_i32_0 = arith.constant 0 : i32
    %c0_i32_1 = arith.constant 0 : i32
    %c0_i32_2 = arith.constant 0 : i32
    return %arg0, %c0_i32, %c0_i32_0, %c0_i32_1 : i32, i32, i32, i32
  }
  func.func @transform_14(%arg0: i32) -> (i32, i32, i32, i32) {
    %c0_i32 = arith.constant 0 : i32
    %c0_i32_0 = arith.constant 0 : i32
    %c0_i32_1 = arith.constant 0 : i32
    %c0_i32_2 = arith.constant 0 : i32
    return %arg0, %c0_i32, %c0_i32_0, %c0_i32_1 : i32, i32, i32, i32
  }
  func.func @transform_15(%arg0: i32) -> (i32, i32, i32, i32) {
    %c0_i32 = arith.constant 0 : i32
    %c0_i32_0 = arith.constant 0 : i32
    %c0_i32_1 = arith.constant 0 : i32
    %c0_i32_2 = arith.constant 0 : i32
    return %arg0, %c0_i32, %c0_i32_0, %c0_i32_1 : i32, i32, i32, i32
  }
  func.func @transform_16(%arg0: i32) -> (i32, i32, i32, i32) {
    %c0_i32 = arith.constant 0 : i32
    %c0_i32_0 = arith.constant 0 : i32
    %c0_i32_1 = arith.constant 0 : i32
    %c0_i32_2 = arith.constant 0 : i32
    return %arg0, %c0_i32, %c0_i32_0, %c0_i32_1 : i32, i32, i32, i32
  }
  func.func @transform_17(%arg0: i32) -> (i32, i32, i32, i32) {
    %c0_i32 = arith.constant 0 : i32
    %c0_i32_0 = arith.constant 0 : i32
    %c0_i32_1 = arith.constant 0 : i32
    %c0_i32_2 = arith.constant 0 : i32
    return %arg0, %c0_i32, %c0_i32_0, %c0_i32_1 : i32, i32, i32, i32
  }
  func.func @transform_18(%arg0: i32) -> (i32, i32, i32, i32) {
    %c0_i32 = arith.constant 0 : i32
    %c0_i32_0 = arith.constant 0 : i32
    %c0_i32_1 = arith.constant 0 : i32
    %c0_i32_2 = arith.constant 0 : i32
    return %arg0, %c0_i32, %c0_i32_0, %c0_i32_1 : i32, i32, i32, i32
  }
  func.func @transform_19(%arg0: i32) -> (i32, i32, i32) {
    %c0_i32 = arith.constant 0 : i32
    %c0_i32_0 = arith.constant 0 : i32
    %c0_i32_1 = arith.constant 0 : i32
    return %arg0, %c0_i32, %c0_i32_0 : i32, i32, i32
  }
  func.func @transform_20(%arg0: i32) -> (i32, i32, i32) {
    %c0_i32 = arith.constant 0 : i32
    %c0_i32_0 = arith.constant 0 : i32
    %c0_i32_1 = arith.constant 0 : i32
    return %arg0, %c0_i32, %c0_i32_0 : i32, i32, i32
  }
  func.func @transform_21(%arg0: i32) -> (i32, i32, i32, i32) {
    %c0_i32 = arith.constant 0 : i32
    %c0_i32_0 = arith.constant 0 : i32
    %c0_i32_1 = arith.constant 0 : i32
    %c0_i32_2 = arith.constant 0 : i32
    return %arg0, %c0_i32, %c0_i32_0, %c0_i32_1 : i32, i32, i32, i32
  }
}

</mosaic_0001>

<bundles_post_ra>
// kernel: mag_forward.5
= control target key start
LH: loop header
LB: loop body
LE: loop exit
PB: predicated region body
PF: predicated region fallthrough
CT: control target
= control target key end

     0   :  { %s1111_s0 = inlined_call_operand.vmem [shape: f32[4,2,8,16], index: 0, kind: input, shape index: {}]   ;;  %s1112_s1 = inlined_call_operand.vmem [shape: f32[16,32], index: 1, kind: input, shape index: {}]   ;;  %s1113_s2 = inlined_call_operand.vmem [shape: f32[16,16], index: 2, kind: input, shape index: {}]   ;;  %s1114_s3 = inlined_call_operand.vmem [shape: f32[16,16], index: 3, kind: input, shape index: {}]   ;;  %s1115_s4 = inlined_call_operand.vmem [shape: f32[16,32], index: 4, kind: input, shape index: {}]   ;;  %s1116_s5 = inlined_call_operand.vmem [shape: f32[32,32], index: 5, kind: input, shape index: {}]   ;;  %s1117_s6 = inlined_call_operand.vmem [shape: f32[1,32], index: 6, kind: input, shape index: {}]   ;;  %s1118_s7 = inlined_call_operand.vmem [shape: f32[16,32], index: 7, kind: input, shape index: {}]   ;;  %s1119_s8 = inlined_call_operand.vmem [shape: f32[32,32], index: 8, kind: input, shape index: {}]   ;;  %s1120_s9 = inlined_call_operand.vmem [shape: f32[1,32], index: 9, kind: input, shape index: {}]   ;;  %s1121_s10 = inlined_call_operand.vmem [shape: f32[16,32], index: 10, kind: input, shape index: {}]   ;;  %s1122_s11 = inlined_call_operand.vmem [shape: f32[1,32], index: 11, kind: input, shape index: {}]   ;;  %s1123_s12 = inlined_call_operand.vmem [shape: f32[16,32], index: 12, kind: input, shape index: {}]   ;;  %s1124_s13 = inlined_call_operand.vmem [shape: f32[1,32], index: 13, kind: input, shape index: {}]   ;;  %s1125_s14 = inlined_call_operand.vmem [shape: f32[1,32], index: 14, kind: input, shape index: {}]   ;;  %s1126_s15 = inlined_call_operand.vmem [shape: f32[1,32], index: 15, kind: input, shape index: {}]   ;;  %s1127_s16 = inlined_call_operand.hbm [shape: f32[16,32], index: 16, kind: output, shape index: {}]  }
   0x1   :  { %1129 = sst [smem:[#allocation5_spill]] %s1111_s0 }
   0x2   :  { %v77_v0 = vld [vmem:[%s1116_s5 + $0x18] sm:$0xff]  ;;  %v73_v1 = vld [vmem:[%s1115_s4 + $0x8] sm:$0xff]  ;;  %v76_v2 = vld [vmem:[%s1116_s5 + $0x10] sm:$0xff]  ;;  %s1130_s18 = sld [smem:[#allocation5_spill]]  ;;  %vm78_vm0 = vcmask 261120   ;;  %vm160_vm1 = vcmask 130048  }
   0x3   :  { %785 = vmatprep.subr.mxu0 %v77_v0  ;;  %796 = vmatprep.subr.mxu1 %v73_v1  ;;  %v72_v3 = vld [vmem:[%s1115_s4] sm:$0xff]  ;;  %v75_v4 = vld [vmem:[%s1116_s5 + $0x8] sm:$0xff]  ;;  %v258_v7 = vld [vmem:[%s1119_s8 + $0x18] sm:$0xff] }
   0x4   :  { %786 = vmatpush3.msra.mxu0 %v77_v0  ;;  %797 = vmatpush3.msra.mxu1 %v73_v1  ;;  %v74_v12 = vld [vmem:[%s1116_s5] sm:$0xff]  ;;  %v1005_v15 = vld [vmem:[%s1112_s1 + $0x8] sm:$0xff]  ;;  %v257_v20 = vld [vmem:[%s1119_s8 + $0x10] sm:$0xff] }
   0x5   :  { %787 = vmatprep.subr.mxu0 %v76_v2  ;;  %798 = vmatprep.subr.mxu1 %v72_v3  ;;  %v1000_v13 = vld [vmem:[%s1112_s1] sm:$0xff]  ;;  %v254_v21 = vld [vmem:[%s1118_s7 + $0x8] sm:$0xff] }
   0x6   :  { %788 = vmatpush3.msra.mxu0 %v76_v2  ;;  %799 = vmatpush3.msra.mxu1 %v72_v3  ;;  %v256_v25 = vld [vmem:[%s1119_s8 + $0x8] sm:$0xff]  ;;  %v253_v26 = vld [vmem:[%s1118_s7] sm:$0xff] }
   0x7   :  { %789 = vmatprep.subr.mxu0 %v75_v4  ;;  %803 = vmatprep.subr.mxu1 %v258_v7 }
   0x8   :  { %v54_v5 = vld [vmem:[%s1130_s18] sm:$0xff]  ;;  %v56_v6 = vld [vmem:[%s1130_s18 + $0x10] sm:$0xff]  ;;  %v55_v8 = vld [vmem:[%s1130_s18 + $0x8] sm:$0xff]  ;;  %790 = vmatpush3.msra.mxu0 %v75_v4  ;;  %793 = vmatprep.mubr.msk.f32.mxu0 %vm78_vm0, %v1000_v13 }
   0x9   :  { %v62_v9 = vadd.f32 %v56_v6, %v54_v5  ;;  %v57_v10 = vld [vmem:[%s1130_s18 + $0x18] sm:$0xff]  ;;  %v58_v17 = vld [vmem:[%s1130_s18 + $0x20] sm:$0xff]  ;;  %v60_v18 = vld [vmem:[%s1130_s18 + $0x30] sm:$0xff]  ;;  %791 = vmatprep.subr.mxu0 %v74_v12 }
   0xa   :  { %v63_v11 = vadd.f32 %v57_v10, %v55_v8  ;;  %v59_v19 = vld [vmem:[%s1130_s18 + $0x28] sm:$0xff]  ;;  %v66_v22 = vadd.f32 %v60_v18, %v58_v17  ;;  %v61_v23 = vld [vmem:[%s1130_s18 + $0x38] sm:$0xff]  ;;  %792 = vmatpush3.msra.mxu0 %v74_v12 }
   0xb   :  { %v64_v14 = vmul.f32 0.5, %v62_v9  ;;  %v67_v24 = vadd.f32 %v61_v23, %v59_v19  ;;  %794 = vmatmul.mubr.msk.f32.vlgmr.msra.gmra.mxu0 %vm78_vm0, %v1005_v15  ;;  %814 = vmatprep.subr.mxu0 %v254_v21 }
   0xc   :  { %v65_v16 = vmul.f32 0.5, %v63_v11 }
   0xd   :  { %800 = vmatprep.mubr.msk.f32.mxu1 %vm160_vm1, %v64_v14 }
   0xe   :  { %801 = vmatmul.mubr.msk.f32.vlgmr.msra.gmra.mxu1 %vm160_vm1, %v65_v16 }
   0xf   :  { %804 = vmatpush3.msra.mxu1 %v258_v7 }
  0x10   :  { %805 = vmatprep.subr.mxu1 %v257_v20 }
  0x11   :  { %21 = vsyncpa [#allocation3], 0  ;;  %806 = vmatpush3.msra.mxu1 %v257_v20  ;;  %815 = vmatpush3.msra.mxu0 %v254_v21  ;;  %v255_v27 = vld [vmem:[%s1119_s8] sm:$0xff]  ;;  %v68_v28 = vmul.f32 0.5, %v66_v22  ;;  %v69_v29 = vmul.f32 0.5, %v67_v24  ;;  %v429_v30 = vld [vmem:[%s1121_s10 + $0x8] sm:$0xff]  ;;  %v616_v38 = vmul.f32 %v1000_v13, %v1000_v13  ;;  %v617_v40 = vmul.f32 %v1005_v15, %v1005_v15 }
  0x12   :  { %807 = vmatprep.subr.mxu1 %v256_v25  ;;  %816 = vmatprep.subr.mxu0 %v253_v26  ;;  %v521_v31 = vld [vmem:[%s1123_s12 + $0x8] sm:$0xff]  ;;  %v428_v32 = vld [vmem:[%s1121_s10] sm:$0xff]  ;;  %s876_s7 = smov [#allocation2]  }
  0x13   :  { %808 = vmatpush3.msra.mxu1 %v256_v25  ;;  %811 = vmatprep.mubr.msk.f32.mxu1 %vm78_vm0, %v1000_v13  ;;  %v520_v33 = vld [vmem:[%s1123_s12] sm:$0xff]  ;;  %v427_v36 = vld [vmem:[%s1113_s2 + $0x8] sm:$0xff]  ;;  %v618_v39 = vsel %vm78_vm0, %v616_v38, 0.0  ;;  %v621_v41 = vsel %vm78_vm0, %v617_v40, 0.0  ;;  %s728_s17 = sshll.u32 %s876_s7, 4  ;;  %s729_s17 = int_to_ptr.vmem [resolvable:$true] %s728_s17 }
  0x14   :  { %809 = vmatprep.subr.mxu1 %v255_v27  ;;  %817 = vmatpush3.msra.mxu0 %v253_v26  ;;  %v426_v34 = vld [vmem:[%s1113_s2] sm:$0xff]  ;;  %v519_v37 = vld [vmem:[%s1114_s3 + $0x8] sm:$0xff]  ;;  %s854_s5 = scalar_lea.vmem %s729_s17, 256  ;;  %p859_p1 = scmp.lt.s32.totalorder %s729_s17, %s729_s17 }
  0x15   :  { %810 = vmatpush3.msra.mxu1 %v255_v27  ;;  %818 = vmatprep.mubr.msk.f32.mxu0 %vm160_vm1, %v68_v28  ;;  %v518_v35 = vld [vmem:[%s1114_s3] sm:$0xff]  ;;  %p855_p0 = scmp.ne.s32.totalorder %s729_s17, %s854_s5  ;;  %p860_p2 = scmp.lt.s32.totalorder %s854_s5, %s854_s5 }
  0x16   :  { %812 = vmatmul.mubr.msk.f32.vlgmr.msra.gmra.mxu1 %vm78_vm0, %v1005_v15  ;;  %819 = vmatmul.mubr.msk.f32.vlgmr.msra.gmra.mxu0 %vm160_vm1, %v69_v29  ;;  %v743_v47 = vld [vmem:[%s1117_s6] ss:$0 sm:$0xff] }
  0x17   :  { %821 = vmatprep.subr.mxu0 %v429_v30  ;;  %828 = vmatprep.subr.mxu1 %v521_v31  ;;  %v748_v51 = vld [vmem:[%s1120_s9] ss:$0 sm:$0xff]  ;;  %p861_p3 = por %p860_p2, %p859_p1 }
  0x18   :  { %822 = vmatpush3.msra.mxu0 %v429_v30  ;;  %829 = vmatpush3.msra.mxu1 %v521_v31  ;;  %v749_v59 = vld [vmem:[%s1122_s11] ss:$0 sm:$0xff] }
  0x19   :  { %823 = vmatprep.subr.mxu0 %v428_v32  ;;  %830 = vmatprep.subr.mxu1 %v520_v33  ;;  %v752_v60 = vld [vmem:[%s1124_s13] ss:$0 sm:$0xff]  ;;  %p862_p4 = pnand %p861_p3, %p855_p0 }
  0x1a   :  { %824 = vmatpush3.msra.mxu0 %v428_v32  ;;  %825 = vmatprep.mubr.msk.f32.mxu0 %vm160_vm1, %v426_v34 }
  0x1b   :  { %831 = vmatpush3.msra.mxu1 %v520_v33  ;;  %832 = vmatprep.mubr.msk.f32.mxu1 %vm160_vm1, %v518_v35 }
  0x1c   :  { %826 = vmatmul.mubr.msk.f32.vlgmr.msra.gmra.mxu0 %vm160_vm1, %v427_v36  ;;  %833 = vmatmul.mubr.msk.f32.vlgmr.msra.gmra.mxu1 %vm160_vm1, %v519_v37 }
  0x1d   :  { %619 = vadd.xlane.f32.xlu1 %v618_v39 }
  0x21   :  { %622 = vadd.xlane.f32.xlu1 %v621_v41 }
  0xa6   :  { %v620_v24 = vpop.xlane.xlu1 %619 }
  0xa7   :  { %vm626_vm8 = vcmp.eq.f32.partialorder %v620_v24, inf  ;;  %vm628_vm9 = vcmp.eq.f32.partialorder %v620_v24, 0.0 }
  0xaa   :  { %v623_v26 = vpop.xlane.xlu1 %622 }
  0xab   :  { %vm633_vm10 = vcmp.eq.f32.partialorder %v623_v26, inf  ;;  %vm635_vm11 = vcmp.eq.f32.partialorder %v623_v26, 0.0 }
  0xcb   :  { %v795_v42 = vpop.f32.mrf.mxu0 }
  0xcd   :  { %v151_v44 = vpop.f32.mrf.mxu0 }
  0xce   :  { %v802_v43 = vpop.f32.mrf.mxu1 }
  0xcf   :  { %v239_v46 = vadd.f32 %v802_v43, %v795_v42  ;;  %v629_v43 = vand.u32 2147483648, %v620_v24 }
  0xd0   :  { %v233_v45 = vpop.f32.mrf.mxu1 }
  0xd1   :  { %v234_v48 = vadd.f32 %v233_v45, %v151_v44  ;;  %v250_v55 = vadd.f32 %v743_v47, %v239_v46 }
  0xd3   :  { %v249_v58 = vadd.f32 %v743_v47, %v234_v48  ;;  %v252_v1 = vmax.f32 %v250_v55, 0.0  ;;  %v636_v47 = vand.u32 2147483648, %v623_v26 }
  0xd5   :  { %v251_v5 = vmax.f32 %v249_v58, 0.0 }
  0xd6   :  { %v813_v49 = vpop.f32.mrf.mxu1  ;;  %v820_v50 = vpop.f32.mrf.mxu0 }
  0xd7   :  { %v412_v52 = vadd.f32 %v820_v50, %v813_v49 }
  0xd8   :  { %v325_v53 = vpop.f32.mrf.mxu1  ;;  %v406_v54 = vpop.f32.mrf.mxu0 }
  0xd9   :  { %v423_v56 = vadd.f32 %v748_v51, %v412_v52  ;;  %v407_v57 = vadd.f32 %v406_v54, %v325_v53 }
  0xdb   :  { %v425_v61 = vmax.f32 %v423_v56, 0.0  ;;  %v422_v62 = vadd.f32 %v748_v51, %v407_v57 }
  0xdc   :  { %v827_v63 = vpop.f32.mrf.mxu0  ;;  %v834_v0 = vpop.f32.mrf.mxu1 }
  0xdd   :  { %v424_v2 = vmax.f32 %v422_v62, 0.0  ;;  %v515_v3 = vadd.f32 %v827_v63, %v749_v59  ;;  %v607_v4 = vadd.f32 %v834_v0, %v752_v60 }
  0xde   :  { %v509_v6 = vpop.f32.mrf.mxu0  ;;  %v601_v7 = vpop.f32.mrf.mxu1 }
  0xdf   :  { %v611_v8 = vmul.f32 %v515_v3, %v252_v1  ;;  %v613_v9 = vmul.f32 %v607_v4, %v425_v61  ;;  %v510_v10 = vadd.f32 %v749_v59, %v509_v6  ;;  %v602_v11 = vadd.f32 %v752_v60, %v601_v7 }
  0xe1   :  { %v610_v12 = vmul.f32 %v510_v10, %v251_v5  ;;  %v612_v14 = vmul.f32 %v602_v11, %v424_v2  ;;  %v615_v17 = vadd.f32 %v613_v9, %v611_v8 }
  0xe3   :  { %v614_v16 = vadd.f32 %v612_v14, %v610_v12  ;;  %v639_v20 = vmul.f32 %v615_v17, %v615_v17  ;;  %v755_v14 = vld [vmem:[%s1125_s14] ss:$0 sm:$0xff] }
  0xe5   :  { %v638_v18 = vmul.f32 %v614_v16, %v614_v16  ;;  %v643_v21 = vsel %vm78_vm0, %v639_v20, 0.0 }
  0xe7   :  { %v640_v19 = vsel %vm78_vm0, %v638_v18, 0.0 }
  0xe8   :  { %641 = vadd.xlane.f32.xlu0 %v640_v19 }
  0xec   :  { %644 = vadd.xlane.f32.xlu0 %v643_v21 }
 0x171   :  { %v642_v22 = vpop.xlane.xlu0 %641 }
 0x172   :  { %838 = vrsqrt.f32 %v642_v22  ;;  %vm648_vm2 = vcmp.eq.f32.partialorder %v642_v22, inf  ;;  %v651_v28 = vand.u32 2147483648, %v642_v22  ;;  %vm650_vm3 = vcmp.eq.f32.partialorder %v642_v22, 0.0 }
 0x175   :  { %v645_v23 = vpop.xlane.xlu0 %644 }
 0x176   :  { %840 = vrsqrt.f32 %v645_v23  ;;  %vm655_vm5 = vcmp.eq.f32.partialorder %v645_v23, inf  ;;  %v658_v34 = vand.u32 2147483648, %v645_v23  ;;  %vm657_vm6 = vcmp.eq.f32.partialorder %v645_v23, 0.0 }
 0x177   :  { %842 = vrsqrt.f32 %v620_v24 }
 0x178   :  { %844 = vrsqrt.f32 %v623_v26 }
 0x17f   :  { %v839_v25 = vpop.eup %838 }
 0x180   :  { %v647_v27 = vmul.f32 %v839_v25, %v642_v22 }
 0x182   :  { %v649_v29 = vsel %vm648_vm2, %v642_v22, %v647_v27 }
 0x183   :  { %v841_v30 = vpop.eup %840  ;;  %v652_v31 = vsel %vm650_vm3, %v651_v28, %v649_v29 }
 0x184   :  { %vm660_vm4 = vcmp.eq.f32.partialorder %v652_v31, 0.0  ;;  %v654_v32 = vmul.f32 %v841_v30, %v645_v23  ;;  %v843_v40 = vpop.eup %842 }
 0x185   :  { %v662_v33 = vsel %vm660_vm4, 1.0, %v652_v31  ;;  %v625_v41 = vmul.f32 %v843_v40, %v620_v24  ;;  %v845_v42 = vpop.eup %844 }
 0x186   :  { %v664_v35 = vadd.f32 1e-06, %v662_v33  ;;  %v656_v36 = vsel %vm655_vm5, %v645_v23, %v654_v32  ;;  %v632_v44 = vmul.f32 %v845_v42, %v623_v26 }
 0x187   :  { %v659_v37 = vsel %vm657_vm6, %v658_v34, %v656_v36  ;;  %v627_v45 = vsel %vm626_vm8, %v620_v24, %v625_v41 }
 0x188   :  { %846 = vrcp.f32 %v664_v35  ;;  %vm661_vm7 = vcmp.eq.f32.partialorder %v659_v37, 0.0  ;;  %v630_v48 = vsel %vm628_vm9, %v629_v43, %v627_v45  ;;  %v634_v50 = vsel %vm633_vm10, %v623_v26, %v632_v44 }
 0x189   :  { %v663_v38 = vsel %vm661_vm7, 1.0, %v659_v37  ;;  %v637_v53 = vsel %vm635_vm11, %v636_v47, %v634_v50 }
 0x18a   :  { %v665_v39 = vadd.f32 1e-06, %v663_v38 }
 0x18c   :  { %848 = vrcp.f32 %v665_v39 }
 0x195   :  { %v847_v46 = vpop.eup %846 }
 0x196   :  { %v667_v49 = vmul.f32 %v847_v46, %v630_v48 }
 0x198   :  { %v670_v51 = vmin.f32 %v667_v49, 1.0 }
 0x199   :  { %v849_v52 = vpop.eup %848 }
 0x19a   :  { %v672_v54 = vmul.f32 %v670_v51, %v614_v16  ;;  %v669_v55 = vmul.f32 %v849_v52, %v637_v53 }
 0x19c   :  { %v674_v56 = vadd.f32 %v672_v54, %v1000_v13  ;;  %v671_v57 = vmin.f32 %v669_v55, 1.0 }
 0x19e   :  { %v676_v58 = vsel %vm78_vm0, %v674_v56, 0.0  ;;  %v673_v59 = vmul.f32 %v671_v57, %v615_v17  ;;  %v756_v17 = vld [vmem:[%s1126_s15] ss:$0 sm:$0xff] }
 0x19f   :  { %677 = vadd.xlane.f32.xlu0 %v676_v58 }
 0x1a0   :  { %v675_v60 = vadd.f32 %v673_v59, %v1005_v15 }
 0x1a2   :  { %v679_v61 = vsel %vm78_vm0, %v675_v60, 0.0 }
 0x1a3   :  { %680 = vadd.xlane.f32.xlu1 %v679_v61 }
 0x228   :  { %v678_v62 = vpop.xlane.xlu0 %677 }
 0x229   :  { %v683_v63 = vmul.f32 0.03125, %v678_v62 }
 0x22b   :  { %v685_v0 = vsub.f32 %v674_v56, %v683_v63 }
 0x22c   :  { %v681_v1 = vpop.xlane.xlu1 %680 }
 0x22d   :  { %v684_v2 = vmul.f32 0.03125, %v681_v1  ;;  %v687_v3 = vmul.f32 %v685_v0, %v685_v0 }
 0x22f   :  { %v686_v4 = vsub.f32 %v675_v60, %v684_v2  ;;  %v689_v5 = vsel %vm78_vm0, %v687_v3, 0.0 }
 0x230   :  { %690 = vadd.xlane.f32.xlu0 %v689_v5 }
 0x231   :  { %v688_v13 = vmul.f32 %v686_v4, %v686_v4 }
 0x233   :  { %v692_v6 = vsel %vm78_vm0, %v688_v13, 0.0 }
 0x234   :  { %693 = vadd.xlane.f32.xlu1 %v692_v6 }
 0x2b9   :  { %v691_v7 = vpop.xlane.xlu0 %690 }
 0x2ba   :  { %v695_v8 = vmul.f32 0.03125, %v691_v7 }
 0x2bc   :  { %v697_v15 = vadd.f32 1e-05, %v695_v8 }
 0x2bd   :  { %v694_v9 = vpop.xlane.xlu1 %693 }
 0x2be   :  { %850 = vrsqrt.f32 %v697_v15  ;;  %v696_v10 = vmul.f32 0.03125, %v694_v9 }
 0x2c0   :  { %v698_v11 = vadd.f32 1e-05, %v696_v10 }
 0x2c2   :  { %852 = vrsqrt.f32 %v698_v11 }
 0x2cb   :  { %v851_v12 = vpop.eup %850 }
 0x2cc   :  { %v701_v16 = vmul.f32 %v851_v12, %v685_v0 }
 0x2ce   :  { %v710_v18 = vmul.f32 %v755_v14, %v701_v16 }
 0x2cf   :  { %v853_v19 = vpop.eup %852 }
 0x2d0   :  { %v702_v20 = vmul.f32 %v853_v19, %v686_v4  ;;  %v719_v21 = vadd.f32 %v756_v17, %v710_v18 }
 0x2d2   :  { %v711_v22 = vmul.f32 %v755_v14, %v702_v20  ;;  %721 = vst.msk [vmem:[#allocation2] sm:$0xff] %vm78_vm0, %v719_v21 }
 0x2d4   :  { %v720_v23 = vadd.f32 %v756_v17, %v711_v22 }
 0x2d6   :  { %722 = vst.msk [vmem:[#allocation2 + $0x8] sm:$0xff] %vm78_vm0, %v720_v23 }
 0x2d7   :  { %865 = shalt.err (!%p862_p4)
}
 0x2d8   :  { %s877_s14 = smov 128   ;;  %s878_s15 = smov 8  }
 0x2d9   :  { %734 = dma.vmem_to_hbm [thread:$0]  %s729_s17, 256, %s1127_s16, [#allocation3], %s877_s14, %s877_s14, %s878_s15  }
 0x2da   :  { %874 = dma.done.wait [#allocation3], 256  }
 0x2db   :  { %875 = vsyncadd [#allocation3], 4294967040 }
 0x2dc   :  { %738 = vsyncpa [#allocation3], 1 }

// kernel: mag_forward.4
= control target key start
LH: loop header
LB: loop body
LE: loop exit
PB: predicated region body
PF: predicated region fallthrough
CT: control target
= control target key end

     0   :  { %s6762_s0 = inlined_call_operand.vmem [shape: f32[4,2,8,16], index: 0, kind: input, shape index: {}]   ;;  %s6763_s1 = inlined_call_operand.vmem [shape: f32[4,2,8,16], index: 1, kind: input, shape index: {}]   ;;  %s6764_s2 = inlined_call_operand.vmem [shape: f32[8,16], index: 2, kind: input, shape index: {}]   ;;  %s6765_s3 = inlined_call_operand.vmem [shape: f32[4,2,1,16], index: 3, kind: input, shape index: {}]   ;;  %s6766_s4 = inlined_call_operand.vmem [shape: f32[4,2,1,16], index: 4, kind: input, shape index: {}]   ;;  %s6767_s5 = inlined_call_operand.vmem [shape: f32[4,2,16,16], index: 5, kind: input, shape index: {}]   ;;  %s6768_s6 = inlined_call_operand.vmem [shape: f32[4,2,1,16], index: 6, kind: input, shape index: {}]   ;;  %s6769_s7 = inlined_call_operand.vmem [shape: f32[4,2,16,16], index: 7, kind: input, shape index: {}]   ;;  %s6770_s8 = inlined_call_operand.vmem [shape: f32[4,2,1,16], index: 8, kind: input, shape index: {}]   ;;  %s6771_s9 = inlined_call_operand.vmem [shape: f32[4,2,16,16], index: 9, kind: input, shape index: {}]   ;;  %s6772_s10 = inlined_call_operand.vmem [shape: f32[4,2,1,16], index: 10, kind: input, shape index: {}]   ;;  %s6773_s11 = inlined_call_operand.vmem [shape: f32[4,2,16,16], index: 11, kind: input, shape index: {}]   ;;  %s6774_s12 = inlined_call_operand.vmem [shape: f32[4,2,1,16], index: 12, kind: input, shape index: {}]   ;;  %s6775_s13 = inlined_call_operand.vmem [shape: f32[4,2,1,16], index: 13, kind: input, shape index: {}]   ;;  %s6776_s14 = inlined_call_operand.vmem [shape: f32[4,2,1,16], index: 14, kind: input, shape index: {}]   ;;  %s6777_s15 = inlined_call_operand.vmem [shape: f32[4,2,16,64], index: 15, kind: input, shape index: {}]   ;;  %s6778_s16 = inlined_call_operand.vmem [shape: f32[4,2,1,64], index: 16, kind: input, shape index: {}]   ;;  %s6779_s17 = inlined_call_operand.vmem [shape: f32[4,2,64,16], index: 17, kind: input, shape index: {}]   ;;  %s6780_s18 = inlined_call_operand.vmem [shape: f32[4,2,1,16], index: 18, kind: input, shape index: {}]   ;;  %s6781_s19 = inlined_call_operand.vmem [shape: f32[4,1,16], index: 19, kind: input, shape index: {}]   ;;  %s6782_s20 = inlined_call_operand.vmem [shape: f32[4,1,16], index: 20, kind: input, shape index: {}]   ;;  %s6783_s21 = inlined_call_operand.vmem [shape: f32[4,2,8,16], index: 21, kind: output, shape index: {}]  }
   0x1   :  { %6796 = sst [smem:[#allocation2_spill]] %s6762_s0 }
   0x2   :  { %6797 = sst [smem:[#allocation3_spill]] %s6763_s1 }
   0x3   :  { %6798 = sst [smem:[#allocation4_spill]] %s6764_s2  ;;  %s6131_s2 = smov 0  }
   0x4   :  { %6799 = sst [smem:[#allocation5_spill]] %s6765_s3 }
   0x5   :  { %6800 = sst [smem:[#allocation6_spill]] %s6766_s4 }
   0x6   :  { %6801 = sst [smem:[#allocation7_spill]] %s6767_s5 }
   0x7   :  { %6802 = sst [smem:[#allocation8_spill]] %s6768_s6 }
   0x8   :  { %6803 = sst [smem:[#allocation9_spill]] %s6769_s7 }
   0x9   :  { %6804 = sst [smem:[#allocation10_spill]] %s6770_s8 }
   0xa   :  { %6805 = sst [smem:[#allocation11_spill]] %s6771_s9 }
   0xb   :  { %6806 = sst [smem:[#allocation12_spill]] %s6772_s10 }
   0xc LB: > { %s5343_s25 = sadd.s32 4294967295, %s6011_s2   ;;  %p5347_p0 = scmp.ge.s32.totalorder %s6011_s2, 1  ;;  %s6011_s2 = sphi %s6131_s2, %s31_s2  }
   0xd   : > { %p763_p1 = scmp.lt.s32.totalorder %s6011_s2, 5 }
   0xf   : > { %p764_p2 = pnand %p5347_p0, %p763_p1 }
  0x10   : > { %p904_p3 = scmp.lt.s32.totalorder (!%p764_p2), %s5343_s25, 3  ;;  %s6807_s28 = sld [smem:[#allocation2_spill]] (!%p764_p2) }
  0x11   : > { %767 = sbr.rel (%p764_p2) target bundleno = 7876 (0x1ec4), region = 104  ;;  %s6808_s30 = sld [smem:[#allocation4_spill]] (!%p764_p2) }
  0x12   : > { %s6809_s23 = sld [smem:[#allocation3_spill]] (!%p764_p2)  ;;  %s6786_s3 = smov (!%p764_p2), 116  }
  0x13   : > { %s6811_s7 = sld [smem:[#allocation9_spill]] (!%p764_p2) }
  0x14   : > { %s6813_s0 = sld [smem:[#allocation6_spill]] (!%p764_p2) }
  0x15   : > { %s6814_s9 = sld [smem:[#allocation11_spill]] (!%p764_p2) }
  0x16   : > { %s6825_s25 = smov (!%p904_p3, %s5343_s25), 3  ;;  %vm1010_vm0 = vcmask 130048   ;;  %vm6014_vm1 = vmmov 0   ;;  %s6815_s6 = sld [smem:[#allocation8_spill]]  ;;  %vm1350_vm2 = vcmask 31744   ;;  %vm1503_vm3 = vcmask 64512  }
  0x17   : > { %s6142_s26 = sshll.u32 %s6825_s25, 4  ;;  %v995_v0 = vld [vmem:[%s6808_s30] sm:$0xff]  ;;  %s6172_s24 = sshll.u32 %s6825_s25, 5  ;;  %vm2692_vm4 = vcmask 97280   ;;  %vm2938_vm5 = vcmask 523264  }
  0x18   : > { %s908_s29 = scalar_lea.vmem %s6807_s28, %s6142_s26  ;;  %s913_s1 = scalar_lea.vmem %s6809_s23, %s6142_s26 }
  0x19   : > { %v996_v1 = vld [vmem:[%s908_s29] sm:$0xff]  ;;  %v997_v2 = vld [vmem:[%s908_s29 + $0x8] sm:$0xff]  ;;  %s6810_s28 = sld [smem:[#allocation7_spill]]  ;;  %s6186_s30 = scalar_lea.vmem %s6811_s7, %s6172_s24 }
  0x1a   : > { %v998_v3 = vmul.f32 4.0, %v996_v1  ;;  %v1002_v4 = vld [vmem:[%s913_s1] sm:$0xff]  ;;  %v999_v5 = vmul.f32 4.0, %v997_v2  ;;  %v1003_v6 = vld [vmem:[%s913_s1 + $0x8] sm:$0xff]  ;;  %s6190_s5 = sshll.u32 %s6825_s25, 1  ;;  %s6812_s1 = sld [smem:[#allocation5_spill]] }
  0x1b   : > { %v1004_v7 = vmul.f32 4.0, %v1002_v4  ;;  %v1005_v8 = vmul.f32 4.0, %v1003_v6  ;;  %v1177_v39 = vld [vmem:[%s6186_s30 + $0x8] sm:$0xff]  ;;  %s921_s4 = scalar_lea.vmem %s6813_s0, %s6190_s5  ;;  %s6816_s8 = sld [smem:[#allocation10_spill]] }
  0x1c   : > { %v6155_v9 = vadd.f32 %v998_v3, %v995_v0  ;;  %v6157_v10 = vadd.f32 %v999_v5, %v995_v0  ;;  %v5377_v55 = vld [vmem:[%s921_s4] ss:$0 sm:$0xff]  ;;  %v6203_v63 = vld [vmem:[%s921_s4 + $0x1] ss:$0 sm:$0xff]  ;;  %s6817_s10 = sld [smem:[#allocation12_spill]]  ;;  %s6794_s7 = smov 124  }
  0x1d   : > { %v1006_v11 = vadd.f32 %v1004_v7, %v995_v0  ;;  %v1007_v12 = vadd.f32 %v1005_v8, %v995_v0  ;;  %v1176_v7 = vld [vmem:[%s6186_s30] sm:$0xff]  ;;  %s6784_s0 = smov 4   ;;  %s6788_s4 = smov 8  }
  0x1e   : > { %v1011_v13 = vsel %vm1010_vm0, %v6155_v9, 0.0  ;;  %v1014_v15 = vsel %vm1010_vm0, %v6157_v10, 0.0  ;;  %s6473_s23 = scalar_lea.vmem %s6776_s14, %s6190_s5 }
  0x1f   : > { %1012 = vadd.xlane.f32.xlu0 %v1011_v13  ;;  %v1054_v14 = vsel %vm1010_vm0, %v1006_v11, 0.0  ;;  %v1057_v16 = vsel %vm1010_vm0, %v1007_v12, 0.0  ;;  %s6178_s29 = scalar_lea.vmem %s6810_s28, %s6172_s24  ;;  %s6237_s28 = scalar_lea.vmem %s6815_s6, %s6190_s5 }
  0x20   : > { %1055 = vadd.xlane.f32.xlu1 %v1054_v14  ;;  %v1085_v37 = vld [vmem:[%s6178_s29 + $0x8] sm:$0xff]  ;;  %v1084_v38 = vld [vmem:[%s6178_s29] sm:$0xff]  ;;  %s917_s27 = scalar_lea.vmem %s6812_s1, %s6190_s5  ;;  %s6210_s1 = scalar_lea.vmem %s6814_s9, %s6172_s24 }
  0x21   : > { %5633 = vmatprep.subr.mxu1 %v1085_v37  ;;  %v5376_v53 = vld [vmem:[%s917_s27] ss:$0 sm:$0xff]  ;;  %v6200_v60 = vld [vmem:[%s917_s27 + $0x1] ss:$0 sm:$0xff]  ;;  %v1267_v13 = vld [vmem:[%s6210_s1 + $0x8] sm:$0xff]  ;;  %s6243_s22 = scalar_lea.vmem %s6816_s8, %s6190_s5  ;;  %s6792_s27 = smov 120  }
  0x22   : > { %5634 = vmatpush3.msra.mxu1 %v1085_v37  ;;  %s6251_s9 = scalar_lea.vmem %s6817_s10, %s6190_s5  ;;  %s6499_s8 = scalar_lea.vmem %s6780_s18, %s6190_s5 }
  0x23   : > { %1015 = vadd.xlane.f32.xlu0 %v1014_v15  ;;  %5635 = vmatprep.subr.mxu1 %v1084_v38 }
  0x24   : > { %1058 = vadd.xlane.f32.xlu1 %v1057_v16  ;;  %5636 = vmatpush3.msra.mxu1 %v1084_v38  ;;  %v1266_v16 = vld [vmem:[%s6210_s1] sm:$0xff] }
  0x25   : > { %5640 = vmatprep.subr.mxu1 %v1177_v39 }
  0xa8   : > { %v1013_v17 = vpop.xlane.xlu0 %1012 }
  0xa9   : > { %v1018_v18 = vmul.f32 0.0625, %v1013_v17  ;;  %v1056_v19 = vpop.xlane.xlu1 %1055  ;;  %v6013_v17 = vmov 0.0  }
  0xaa   : > { %v1060_v20 = vmul.f32 0.0625, %v1056_v19  ;;  %5659 = vmatprep.subr.mxu0 %v6013_v17  ;;  %5661 = vmatprep.mubr.msk.f32.mxu0 %vm6014_vm1, %v6013_v17  ;;  %v5378_v19 = vld [vmem:[%s6237_s28] ss:$0 sm:$0xff] }
  0xab   : > { %v1020_v21 = vsub.f32 %v6155_v9, %v1018_v18 }
  0xac   : > { %v1062_v22 = vsub.f32 %v1006_v11, %v1060_v20  ;;  %v1016_v23 = vpop.xlane.xlu0 %1015 }
  0xad   : > { %v1019_v24 = vmul.f32 0.0625, %v1016_v23  ;;  %v1059_v25 = vpop.xlane.xlu1 %1058  ;;  %v1022_v26 = vmul.f32 %v1020_v21, %v1020_v21 }
  0xae   : > { %v1061_v27 = vmul.f32 0.0625, %v1059_v25  ;;  %v1064_v28 = vmul.f32 %v1062_v22, %v1062_v22 }
  0xaf   : > { %v1021_v29 = vsub.f32 %v6157_v10, %v1019_v24  ;;  %v1024_v30 = vsel %vm1010_vm0, %v1022_v26, 0.0 }
  0xb0   : > { %v1063_v31 = vsub.f32 %v1007_v12, %v1061_v27  ;;  %1025 = vadd.xlane.f32.xlu0 %v1024_v30  ;;  %v1066_v32 = vsel %vm1010_vm0, %v1064_v28, 0.0  ;;  %v5384_v27 = vld [vmem:[%s6251_s9] ss:$0 sm:$0xff] }
  0xb1   : > { %v1023_v33 = vmul.f32 %v1021_v29, %v1021_v29 }
  0xb2   : > { %v1065_v34 = vmul.f32 %v1063_v31, %v1063_v31 }
  0xb3   : > { %v1027_v35 = vsel %vm1010_vm0, %v1023_v33, 0.0 }
  0xb4   : > { %1067 = vadd.xlane.f32.xlu0 %v1066_v32  ;;  %1028 = vadd.xlane.f32.xlu1 %v1027_v35  ;;  %v1069_v36 = vsel %vm1010_vm0, %v1065_v34, 0.0 }
  0xb8   : > { %1070 = vadd.xlane.f32.xlu1 %v1069_v36 }
 0x139   : > { %v1026_v40 = vpop.xlane.xlu0 %1025 }
 0x13a   : > { %v1030_v41 = vmul.f32 0.0625, %v1026_v40 }
 0x13c   : > { %v1032_v42 = vadd.f32 1e-05, %v1030_v41 }
 0x13d   : > { %v1029_v43 = vpop.xlane.xlu1 %1028  ;;  %v1068_v44 = vpop.xlane.xlu0 %1067 }
 0x13e   : > { %5917 = vrsqrt.f32 %v1032_v42  ;;  %v1031_v45 = vmul.f32 0.0625, %v1029_v43  ;;  %v1072_v46 = vmul.f32 0.0625, %v1068_v44 }
 0x140   : > { %v1033_v47 = vadd.f32 1e-05, %v1031_v45  ;;  %v1074_v48 = vadd.f32 1e-05, %v1072_v46 }
 0x141   : > { %v1071_v49 = vpop.xlane.xlu1 %1070 }
 0x142   : > { %5919 = vrsqrt.f32 %v1033_v47  ;;  %v1073_v50 = vmul.f32 0.0625, %v1071_v49 }
 0x143   : > { %5921 = vrsqrt.f32 %v1074_v48 }
 0x144   : > { %v1075_v51 = vadd.f32 1e-05, %v1073_v50 }
 0x146   : > { %5923 = vrsqrt.f32 %v1075_v51 }
 0x14b   : > { %v5918_v52 = vpop.eup %5917 }
 0x14c   : > { %v1036_v54 = vmul.f32 %v5918_v52, %v1020_v21  ;;  %v5381_v21 = vld [vmem:[%s6243_s22] ss:$0 sm:$0xff] }
 0x14e   : > { %v1044_v56 = vmul.f32 %v5376_v53, %v1036_v54 }
 0x14f   : > { %v5920_v57 = vpop.eup %5919 }
 0x150   : > { %v5922_v58 = vpop.eup %5921  ;;  %v1052_v59 = vadd.f32 %v5377_v55, %v1044_v56  ;;  %v1037_v61 = vmul.f32 %v5920_v57, %v1021_v29 }
 0x151   : > { %v1078_v62 = vmul.f32 %v5922_v58, %v1062_v22 }
 0x152   : > { %5637 = vmatprep.mubr.msk.f32.mxu1 %vm1010_vm0, %v1052_v59  ;;  %v1045_v0 = vmul.f32 %v5376_v53, %v1037_v61 }
 0x153   : > { %v5924_v1 = vpop.eup %5923  ;;  %v1080_v2 = vmul.f32 %v5376_v53, %v1078_v62  ;;  %v3068_v3 = vmul.f32 %v6200_v60, %v1078_v62 }
 0x154   : > { %v1079_v4 = vmul.f32 %v5924_v1, %v1063_v31  ;;  %v1053_v5 = vadd.f32 %v5377_v55, %v1045_v0 }
 0x155   : > { %v1082_v6 = vadd.f32 %v5377_v55, %v1080_v2  ;;  %v6214_v8 = vadd.f32 %v6203_v63, %v3068_v3 }
 0x156   : > { %v1081_v11 = vmul.f32 %v5376_v53, %v1079_v4  ;;  %v3069_v12 = vmul.f32 %v6200_v60, %v1079_v4  ;;  %5638 = vmatmul.mubr.msk.f32.vlgmr.msra.gmra.mxu1 %vm1010_vm0, %v1053_v5 }
 0x157   : > { %5641 = vmatpush3.msra.mxu1 %v1177_v39  ;;  %5644 = vmatprep.mubr.msk.f32.mxu1 %vm1010_vm0, %v1082_v6 }
 0x158   : > { %v1083_v14 = vadd.f32 %v5377_v55, %v1081_v11  ;;  %v6221_v15 = vadd.f32 %v6203_v63, %v3069_v12  ;;  %5642 = vmatprep.subr.mxu1 %v1176_v7 }
 0x159   : > { %5643 = vmatpush3.msra.mxu1 %v1176_v7 }
 0x15a   : > { %5645 = vmatmul.mubr.msk.f32.vlgmr.msra.gmra.mxu1 %vm1010_vm0, %v1083_v14  ;;  %5647 = vmatprep.subr.mxu1 %v1267_v13 }
 0x15b   : > { %5648 = vmatpush3.msra.mxu1 %v1267_v13  ;;  %5651 = vmatprep.mubr.msk.f32.mxu1 %vm1010_vm0, %v1082_v6 }
 0x15c   : > { %5649 = vmatprep.subr.mxu1 %v1266_v16 }
 0x15d   : > { %5650 = vmatpush3.msra.mxu1 %v1266_v16 }
 0x15e   : > { %5652 = vmatmul.mubr.msk.f32.vlgmr.msra.gmra.mxu1 %vm1010_vm0, %v1083_v14  ;;  %5654 = vmatprep.subr.mxu1 %v6013_v17 }
 0x15f   : > { %5656 = vmatprep.mubr.msk.f32.mxu1 %vm6014_vm1, %v6013_v17 }
 0x216   : > { %v5639_v18 = vpop.f32.mrf.mxu1 }
 0x217   : > { %v1171_v22 = vadd.f32 %v5639_v18, %v5378_v19 }
 0x218   : > { %v1165_v20 = vpop.f32.mrf.mxu1 }
 0x219   : > { %v1166_v25 = vadd.f32 %v5378_v19, %v1165_v20  ;;  %v6260_v29 = vmul.f32 0.5, %v1171_v22 }
 0x21a   : > { %v5646_v23 = vpop.f32.mrf.mxu1 }
 0x21b   : > { %v6253_v24 = vadd.f32 %v5646_v23, %v5381_v21  ;;  %v6267_v32 = vmul.f32 0.5, %v1166_v25 }
 0x21c   : > { %v1257_v26 = vpop.f32.mrf.mxu1 }
 0x21d   : > { %v6256_v28 = vadd.f32 %v5381_v21, %v1257_v26  ;;  %5660 = vmatpush3.xpose.msk.msra.mxu0 %vm1350_vm2, %v6253_v24 }
 0x21e   : > { %v5653_v30 = vpop.f32.mrf.mxu1  ;;  %5669 = vmatprep.subr.mxu0 %v6013_v17 }
 0x21f   : > { %v6263_v31 = vadd.f32 %v5653_v30, %v5384_v27  ;;  %5655 = vmatpush3.xpose.msk.msra.mxu1 %vm1350_vm2, %v6256_v28 }
 0x220   : > { %v1341_v33 = vpop.f32.mrf.mxu1  ;;  %5662 = vmatmul.mubr.msk.f32.vlgmr.msra.gmra.mxu0 %vm1350_vm2, %v6260_v29  ;;  %5664 = vmatprep.subr.mxu1 %v6013_v17 }
 0x221   : > { %v6272_v34 = vadd.f32 %v5384_v27, %v1341_v33  ;;  %5670 = vmatpush3.msra.mxu0 %v6263_v31  ;;  %5671 = vmatprep.mubr.msk.f32.mxu0 %vm6014_vm1, %v6013_v17 }
 0x222   : > { %5657 = vmatmul.mubr.msk.f32.vlgmr.msra.gmra.mxu1 %vm1350_vm2, %v6267_v32  ;;  %5679 = vmatprep.subr.mxu0 %v6013_v17 }
 0x223   : > { %5665 = vmatpush3.msra.mxu1 %v6272_v34  ;;  %5666 = vmatprep.mubr.msk.f32.mxu1 %vm6014_vm1, %v6013_v17 }
 0x224   : > { %5674 = vmatprep.subr.mxu1 %v6013_v17 }
 0x2e0   : > { %v1499_v35 = vpop.f32.mrf.mxu0 }
 0x2e1   : > { %v1507_v36 = vsel %vm1503_vm3, %v1499_v35, -inf }
 0x2e2   : > { %1508 = vmax.xlane.f32.xlu1 %v1507_v36  ;;  %v1423_v37 = vpop.f32.mrf.mxu1  ;;  %v5663_v38 = vpop.f32.mrf.mxu0 }
 0x2e3   : > { %v1504_v39 = vsel %vm1503_vm3, %v1423_v37, -inf }
 0x2e4   : > { %1505 = vmax.xlane.f32.xlu0 %v1504_v39  ;;  %v5658_v40 = vpop.f32.mrf.mxu1 }
 0x36b   : > { %v1509_v41 = vpop.xlane.xlu1 %1508 }
 0x36c   : > { %v1511_v42 = vsub.f32 %v1499_v35, %v1509_v41 }
 0x36d   : > { %v1506_v43 = vpop.xlane.xlu0 %1505 }
 0x36e   : > { %v1514_v44 = vmul.f32 1.442695, %v1511_v42  ;;  %v1510_v45 = vsub.f32 %v1423_v37, %v1506_v43 }
 0x370   : > { %5925 = vpow2.f32 %v1514_v44  ;;  %v1512_v46 = vmul.f32 1.442695, %v1510_v45 }
 0x372   : > { %5927 = vpow2.f32 %v1512_v46 }
 0x37d   : > { %v5926_v47 = vpop.eup %5925 }
 0x37e   : > { %v1519_v48 = vsel %vm1503_vm3, %v5926_v47, 0.0 }
 0x37f   : > { %v5928_v49 = vpop.eup %5927  ;;  %1520 = vadd.xlane.f32.xlu1 %v1519_v48 }
 0x380   : > { %v1516_v50 = vsel %vm1503_vm3, %v5928_v49, 0.0 }
 0x381   : > { %1517 = vadd.xlane.f32.xlu0 %v1516_v50 }
 0x390   : > { %1752 = vrot.lane.b32.xlu1 %v6253_v24, %s6794_s7 }
 0x394   : > { %1672 = vrot.lane.b32.xlu1 %v6267_v32, %s6794_s7 }
 0x397   : > { %1674 = vrot.lane.b32.xlu0 %v6256_v28, %s6794_s7 }
 0x398   : > { %1750 = vrot.lane.b32.xlu1 %v6260_v29, %s6794_s7 }
 0x408   : > { %v1521_v51 = vpop.xlane.xlu1 %1520 }
 0x409   : > { %5929 = vrcp.f32 %v1521_v51 }
 0x40a   : > { %v1518_v52 = vpop.xlane.xlu0 %1517 }
 0x40b   : > { %5931 = vrcp.f32 %v1518_v52 }
 0x40c   : > { %v1753_v53 = vpop.permute.xlu1 %1752 }
 0x40e   : > { %v1675_v59 = vpop.permute.xlu0 %1674 }
 0x410   : > { %v1673_v55 = vpop.permute.xlu1 %1672 }
 0x414   : > { %v1751_v61 = vpop.permute.xlu1 %1750 }
 0x416   : > { %v5930_v54 = vpop.eup %5929 }
 0x417   : > { %v1525_v56 = vmul.f32 %v5930_v54, %v5926_v47 }
 0x418   : > { %v5932_v57 = vpop.eup %5931 }
 0x419   : > { %5672 = vmatmul.mubr.msk.f32.vlgmr.msra.gmra.mxu0 %vm1503_vm3, %v1525_v56  ;;  %v1523_v58 = vmul.f32 %v5932_v57, %v5928_v49 }
 0x41a   : > { %5680 = vmatpush3.xpose.msk.msra.mxu0 %vm1350_vm2, %v1753_v53  ;;  %5681 = vmatprep.mubr.msk.f32.mxu0 %vm6014_vm1, %v6013_v17 }
 0x41b   : > { %5667 = vmatmul.mubr.msk.f32.vlgmr.msra.gmra.mxu1 %vm1503_vm3, %v1523_v58  ;;  %5689 = vmatprep.subr.mxu0 %v6013_v17 }
 0x41c   : > { %5675 = vmatpush3.xpose.msk.msra.mxu1 %vm1350_vm2, %v1675_v59  ;;  %5676 = vmatprep.mubr.msk.f32.mxu1 %vm6014_vm1, %v6013_v17 }
 0x41d   : > { %5682 = vmatmul.mubr.msk.f32.vlgmr.msra.gmra.mxu0 %vm1350_vm2, %v1751_v61  ;;  %5684 = vmatprep.subr.mxu1 %v6013_v17 }
 0x41e   : > { %5691 = vmatprep.mubr.msk.f32.mxu0 %vm6014_vm1, %v6013_v17 }
 0x41f   : > { %5677 = vmatmul.mubr.msk.f32.vlgmr.msra.gmra.mxu1 %vm1350_vm2, %v1673_v55 }
 0x420   : > { %5686 = vmatprep.mubr.msk.f32.mxu1 %vm6014_vm1, %v6013_v17 }
 0x4d9   : > { %v6312_v62 = vpop.f32.mrf.mxu0 }
 0x4db   : > { %v6314_v0 = vpop.f32.mrf.mxu1  ;;  %v5673_v1 = vpop.f32.mrf.mxu0 }
 0x4dd   : > { %v5668_v2 = vpop.f32.mrf.mxu1  ;;  %v1824_v3 = vpop.f32.mrf.mxu0 }
 0x4de   : > { %v1831_v4 = vsel %vm1503_vm3, %v1824_v3, -inf }
 0x4df   : > { %1832 = vmax.xlane.f32.xlu1 %v1831_v4  ;;  %v1746_v5 = vpop.f32.mrf.mxu1  ;;  %v5683_v6 = vpop.f32.mrf.mxu0 }
 0x4e0   : > { %v1828_v7 = vsel %vm1503_vm3, %v1746_v5, -inf }
 0x4e1   : > { %1829 = vmax.xlane.f32.xlu0 %v1828_v7  ;;  %v5678_v11 = vpop.f32.mrf.mxu1 }
 0x4f0   : > { %1928 = vrot.lane.b32.xlu1 %v6263_v31, %s6794_s7 }
 0x4f4   : > { %2006 = vrot.lane.b32.xlu1 %v6256_v28, %s6792_s27 }
 0x4f8   : > { %2084 = vrot.lane.b32.xlu1 %v6253_v24, %s6792_s27 }
 0x4fc   : > { %2082 = vrot.lane.b32.xlu1 %v6260_v29, %s6792_s27 }
 0x568   : > { %v1833_v12 = vpop.xlane.xlu1 %1832 }
 0x569   : > { %v1835_v13 = vsub.f32 %v1824_v3, %v1833_v12 }
 0x56a   : > { %v1830_v14 = vpop.xlane.xlu0 %1829 }
 0x56b   : > { %v1838_v16 = vmul.f32 1.442695, %v1835_v13  ;;  %v1834_v18 = vsub.f32 %v1746_v5, %v1830_v14 }
 0x56c   : > { %v1929_v19 = vpop.permute.xlu1 %1928 }
 0x56d   : > { %5933 = vpow2.f32 %v1838_v16  ;;  %v1836_v20 = vmul.f32 1.442695, %v1834_v18  ;;  %5690 = vmatpush3.msra.mxu0 %v1929_v19 }
 0x56e   : > { %5699 = vmatprep.subr.mxu0 %v6013_v17 }
 0x56f   : > { %5935 = vpow2.f32 %v1836_v20 }
 0x570   : > { %v2007_v30 = vpop.permute.xlu1 %2006 }
 0x574   : > { %v2085_v36 = vpop.permute.xlu1 %2084 }
 0x578   : > { %v2083_v40 = vpop.permute.xlu1 %2082 }
 0x57a   : > { %v5934_v21 = vpop.eup %5933 }
 0x57b   : > { %v1843_v22 = vsel %vm1503_vm3, %v5934_v21, 0.0 }
 0x57c   : > { %v5936_v23 = vpop.eup %5935  ;;  %1844 = vadd.xlane.f32.xlu0 %v1843_v22 }
 0x57d   : > { %v1840_v25 = vsel %vm1503_vm3, %v5936_v23, 0.0 }
 0x580   : > { %1841 = vadd.xlane.f32.xlu0 %v1840_v25 }
 0x596   : > { %1851 = vrot.lane.b32.xlu0 %v6272_v34, %s6794_s7  ;;  %s5507_s7 = sshll.u32 %s6825_s25, 7 }
 0x597   : > { %s6456_s10 = scalar_lea.vmem %s6779_s17, %s5507_s7  ;;  %s6488_s7 = scalar_lea.vmem %s6778_s16, %s6190_s5 }
 0x59a   : > { %2004 = vrot.lane.b32.xlu0 %v6267_v32, %s6792_s27 }
 0x605   : > { %v1845_v26 = vpop.xlane.xlu0 %1844 }
 0x606   : > { %5937 = vrcp.f32 %v1845_v26 }
 0x609   : > { %v1842_v27 = vpop.xlane.xlu0 %1841 }
 0x60a   : > { %5939 = vrcp.f32 %v1842_v27 }
 0x60d   : > { %v1852_v33 = vpop.permute.xlu0 %1851 }
 0x60e   : > { %5685 = vmatpush3.msra.mxu1 %v1852_v33 }
 0x60f   : > { %5694 = vmatprep.subr.mxu1 %v6013_v17 }
 0x611   : > { %v2005_v41 = vpop.permute.xlu0 %2004 }
 0x613   : > { %v5938_v35 = vpop.eup %5937 }
 0x614   : > { %v1849_v37 = vmul.f32 %v5938_v35, %v5934_v21 }
 0x616   : > { %5692 = vmatmul.mubr.msk.f32.vlgmr.msra.gmra.mxu0 %vm1503_vm3, %v1849_v37 }
 0x617   : > { %v5940_v38 = vpop.eup %5939  ;;  %5700 = vmatpush3.xpose.msk.msra.mxu0 %vm1350_vm2, %v2085_v36  ;;  %5701 = vmatprep.mubr.msk.f32.mxu0 %vm6014_vm1, %v6013_v17 }
 0x618   : > { %v1847_v39 = vmul.f32 %v5940_v38, %v5936_v23  ;;  %5709 = vmatprep.subr.mxu0 %v6013_v17 }
 0x61a   : > { %5687 = vmatmul.mubr.msk.f32.vlgmr.msra.gmra.mxu1 %vm1503_vm3, %v1847_v39  ;;  %5702 = vmatmul.mubr.msk.f32.vlgmr.msra.gmra.mxu0 %vm1350_vm2, %v2083_v40 }
 0x61b   : > { %5695 = vmatpush3.xpose.msk.msra.mxu1 %vm1350_vm2, %v2007_v30  ;;  %5696 = vmatprep.mubr.msk.f32.mxu1 %vm6014_vm1, %v6013_v17 }
 0x61c   : > { %5704 = vmatprep.subr.mxu1 %v6013_v17  ;;  %5711 = vmatprep.mubr.msk.f32.mxu0 %vm6014_vm1, %v6013_v17 }
 0x61e   : > { %5697 = vmatmul.mubr.msk.f32.vlgmr.msra.gmra.mxu1 %vm1350_vm2, %v2005_v41 }
 0x61f   : > { %5706 = vmatprep.mubr.msk.f32.mxu1 %vm6014_vm1, %v6013_v17 }
 0x6d6   : > { %v6350_v42 = vpop.f32.mrf.mxu0 }
 0x6d8   : > { %v5693_v43 = vpop.f32.mrf.mxu0 }
 0x6da   : > { %v6352_v44 = vpop.f32.mrf.mxu1  ;;  %v2156_v45 = vpop.f32.mrf.mxu0 }
 0x6db   : > { %v2163_v46 = vsel %vm1503_vm3, %v2156_v45, -inf }
 0x6dc   : > { %2164 = vmax.xlane.f32.xlu1 %v2163_v46  ;;  %v5688_v47 = vpop.f32.mrf.mxu1  ;;  %v5703_v48 = vpop.f32.mrf.mxu0 }
 0x6de   : > { %v2078_v49 = vpop.f32.mrf.mxu1 }
 0x6df   : > { %v2160_v50 = vsel %vm1503_vm3, %v2078_v49, -inf }
 0x6e0   : > { %2161 = vmax.xlane.f32.xlu0 %v2160_v50  ;;  %v5698_v51 = vpop.f32.mrf.mxu1 }
 0x6ed   : > { %2258 = vrot.lane.b32.xlu1 %v6263_v31, %s6792_s27 }
 0x6f1   : > { %2336 = vrot.lane.b32.xlu1 %v6256_v28, %s6786_s3 }
 0x6f5   : > { %2414 = vrot.lane.b32.xlu1 %v6253_v24, %s6786_s3 }
 0x6f9   : > { %2412 = vrot.lane.b32.xlu1 %v6260_v29, %s6786_s3 }
 0x765   : > { %v2165_v52 = vpop.xlane.xlu1 %2164 }
 0x766   : > { %v2167_v53 = vsub.f32 %v2156_v45, %v2165_v52 }
 0x768   : > { %v2170_v54 = vmul.f32 1.442695, %v2167_v53 }
 0x769   : > { %v2259_v55 = vpop.permute.xlu1 %2258  ;;  %v2162_v56 = vpop.xlane.xlu0 %2161 }
 0x76a   : > { %5941 = vpow2.f32 %v2170_v54  ;;  %v2166_v57 = vsub.f32 %v2078_v49, %v2162_v56  ;;  %5710 = vmatpush3.msra.mxu0 %v2259_v55 }
 0x76b   : > { %5719 = vmatprep.subr.mxu0 %v6013_v17 }
 0x76c   : > { %v2168_v58 = vmul.f32 1.442695, %v2166_v57 }
 0x76d   : > { %v2337_v2 = vpop.permute.xlu1 %2336 }
 0x76e   : > { %5943 = vpow2.f32 %v2168_v58 }
 0x771   : > { %v2415_v5 = vpop.permute.xlu1 %2414 }
 0x775   : > { %v2413_v11 = vpop.permute.xlu1 %2412 }
 0x777   : > { %v5942_v59 = vpop.eup %5941 }
 0x778   : > { %v2175_v28 = vsel %vm1503_vm3, %v5942_v59, 0.0 }
 0x779   : > { %2176 = vadd.xlane.f32.xlu0 %v2175_v28 }
 0x77b   : > { %v5944_v24 = vpop.eup %5943 }
 0x77c   : > { %v2172_v61 = vsel %vm1503_vm3, %v5944_v24, 0.0 }
 0x77d   : > { %2173 = vadd.xlane.f32.xlu0 %v2172_v61 }
 0x793   : > { %2182 = vrot.lane.b32.xlu0 %v6272_v34, %s6792_s27  ;;  %s6449_s27 = scalar_lea.vmem %s6777_s15, %s6172_s24 }
 0x797   : > { %2334 = vrot.lane.b32.xlu0 %v6267_v32, %s6786_s3 }
 0x802   : > { %v2177_v29 = vpop.xlane.xlu0 %2176 }
 0x803   : > { %5945 = vrcp.f32 %v2177_v29 }
 0x806   : > { %v2174_v1 = vpop.xlane.xlu0 %2173 }
 0x807   : > { %5947 = vrcp.f32 %v2174_v1 }
 0x80a   : > { %v2183_v3 = vpop.permute.xlu0 %2182 }
 0x80b   : > { %5705 = vmatpush3.msra.mxu1 %v2183_v3 }
 0x80c   : > { %5714 = vmatprep.subr.mxu1 %v6013_v17 }
 0x80e   : > { %v2335_v12 = vpop.permute.xlu0 %2334 }
 0x810   : > { %v5946_v4 = vpop.eup %5945 }
 0x811   : > { %v2181_v6 = vmul.f32 %v5946_v4, %v5942_v59 }
 0x813   : > { %5712 = vmatmul.mubr.msk.f32.vlgmr.msra.gmra.mxu0 %vm1503_vm3, %v2181_v6 }
 0x814   : > { %v5948_v7 = vpop.eup %5947  ;;  %5720 = vmatpush3.xpose.msk.msra.mxu0 %vm1350_vm2, %v2415_v5  ;;  %5721 = vmatprep.mubr.msk.f32.mxu0 %vm6014_vm1, %v6013_v17 }
 0x815   : > { %v2179_v32 = vmul.f32 %v5948_v7, %v5944_v24  ;;  %5729 = vmatprep.subr.mxu0 %v6013_v17 }
 0x817   : > { %5707 = vmatmul.mubr.msk.f32.vlgmr.msra.gmra.mxu1 %vm1503_vm3, %v2179_v32  ;;  %5722 = vmatmul.mubr.msk.f32.vlgmr.msra.gmra.mxu0 %vm1350_vm2, %v2413_v11 }
 0x818   : > { %5715 = vmatpush3.xpose.msk.msra.mxu1 %vm1350_vm2, %v2337_v2  ;;  %5716 = vmatprep.mubr.msk.f32.mxu1 %vm6014_vm1, %v6013_v17 }
 0x819   : > { %5724 = vmatprep.subr.mxu1 %v6013_v17  ;;  %5731 = vmatprep.mubr.msk.f32.mxu0 %vm6014_vm1, %v6013_v17 }
 0x81b   : > { %5717 = vmatmul.mubr.msk.f32.vlgmr.msra.gmra.mxu1 %vm1350_vm2, %v2335_v12 }
 0x81c   : > { %5726 = vmatprep.mubr.msk.f32.mxu1 %vm6014_vm1, %v6013_v17 }
 0x8d3   : > { %v2330_v13 = vpop.f32.mrf.mxu0 }
 0x8d5   : > { %v5713_v14 = vpop.f32.mrf.mxu0 }
 0x8d7   : > { %v2254_v16 = vpop.f32.mrf.mxu1  ;;  %v2486_v18 = vpop.f32.mrf.mxu0 }
 0x8d8   : > { %v2493_v19 = vsel %vm1503_vm3, %v2486_v18, -inf }
 0x8d9   : > { %2494 = vmax.xlane.f32.xlu1 %v2493_v19  ;;  %v5708_v20 = vpop.f32.mrf.mxu1  ;;  %v5723_v21 = vpop.f32.mrf.mxu0 }
 0x8da   : > { %v2832_v21 = vld [vmem:[%s6449_s27 + $0x8] sm:$0xff] }
 0x8db   : > { %v2408_v22 = vpop.f32.mrf.mxu1 }
 0x8dc   : > { %v2490_v23 = vsel %vm1503_vm3, %v2408_v22, -inf }
 0x8dd   : > { %2491 = vmax.xlane.f32.xlu0 %v2490_v23  ;;  %v5718_v25 = vpop.f32.mrf.mxu1  ;;  %v2930_v23 = vld [vmem:[%s6456_s10 + $0x38] sm:$0xff] }
 0x8de   : > { %v2929_v25 = vld [vmem:[%s6456_s10 + $0x30] sm:$0xff] }
 0x8ea   : > { %2588 = vrot.lane.b32.xlu1 %v6263_v31, %s6786_s3 }
 0x8ee   : > { %2666 = vrot.lane.b32.xlu1 %v6352_v44, %s6784_s0 }
 0x8f2   : > { %2668 = vrot.lane.b32.xlu1 %v6350_v42, %s6784_s0  ;;  %s994_s0 = scalar_lea.vmem %s6783_s21, %s6142_s26 }
 0x8f6   : > { %2676 = vrot.lane.b32.xlu1 %v2330_v13, %s6788_s4 }
 0x962   : > { %v2495_v26 = vpop.xlane.xlu1 %2494 }
 0x963   : > { %v2497_v27 = vsub.f32 %v2486_v18, %v2495_v26  ;;  %v2928_v26 = vld [vmem:[%s6456_s10 + $0x28] sm:$0xff] }
 0x965   : > { %v2500_v30 = vmul.f32 1.442695, %v2497_v27  ;;  %v2927_v27 = vld [vmem:[%s6456_s10 + $0x20] sm:$0xff] }
 0x966   : > { %v2589_v33 = vpop.permute.xlu1 %2588  ;;  %v2492_v35 = vpop.xlane.xlu0 %2491 }
 0x967   : > { %5949 = vpow2.f32 %v2500_v30  ;;  %v2496_v36 = vsub.f32 %v2408_v22, %v2492_v35  ;;  %5730 = vmatpush3.msra.mxu0 %v2589_v33  ;;  %v2831_v22 = vld [vmem:[%s6449_s27] sm:$0xff] }
 0x968   : > { %5741 = vmatprep.subr.mxu0 %v2832_v21 }
 0x969   : > { %v2498_v37 = vmul.f32 1.442695, %v2496_v36 }
 0x96a   : > { %v2667_v53 = vpop.permute.xlu1 %2666 }
 0x96b   : > { %5951 = vpow2.f32 %v2498_v37  ;;  %v2688_v57 = vsel %vm1350_vm2, %v6314_v0, %v2667_v53 }
 0x96e   : > { %v2669_v54 = vpop.permute.xlu1 %2668 }
 0x96f   : > { %v2689_v59 = vsel %vm1350_vm2, %v6312_v62, %v2669_v54 }
 0x972   : > { %v2677_v55 = vpop.permute.xlu1 %2676 }
 0x973   : > { %v2691_v61 = vsel %vm1503_vm3, %v2689_v59, %v2677_v55 }
 0x974   : > { %v5950_v31 = vpop.eup %5949 }
 0x975   : > { %v2505_v38 = vsel %vm1503_vm3, %v5950_v31, 0.0 }
 0x976   : > { %2506 = vadd.xlane.f32.xlu0 %v2505_v38 }
 0x978   : > { %v5952_v39 = vpop.eup %5951 }
 0x979   : > { %v2502_v40 = vsel %vm1503_vm3, %v5952_v39, 0.0 }
 0x97a   : > { %2503 = vadd.xlane.f32.xlu0 %v2502_v40 }
 0x990   : > { %2512 = vrot.lane.b32.xlu0 %v6272_v34, %s6786_s3  ;;  %s6408_s3 = scalar_lea.vmem %s6773_s11, %s6172_s24  ;;  %s6467_s24 = scalar_lea.vmem %s6775_s13, %s6190_s5 }
 0x991   : > { %v2696_v34 = vld [vmem:[%s6408_s3 + $0x8] sm:$0xff]  ;;  %v2695_v48 = vld [vmem:[%s6408_s3] sm:$0xff] }
 0x994   : > { %2674 = vrot.lane.b32.xlu0 %v2254_v16, %s6788_s4  ;;  %s6790_s4 = smov 12  }
 0x9ff   : > { %v2507_v41 = vpop.xlane.xlu0 %2506 }
 0xa00   : > { %5953 = vrcp.f32 %v2507_v41  ;;  %v5415_v41 = vld [vmem:[%s6473_s23] ss:$0 sm:$0xff] }
 0xa03   : > { %v2504_v42 = vpop.xlane.xlu0 %2503 }
 0xa04   : > { %5955 = vrcp.f32 %v2504_v42 }
 0xa07   : > { %v2513_v43 = vpop.permute.xlu0 %2512 }
 0xa08   : > { %5725 = vmatpush3.msra.mxu1 %v2513_v43 }
 0xa09   : > { %5734 = vmatprep.subr.mxu1 %v2696_v34 }
 0xa0b   : > { %v2675_v56 = vpop.permute.xlu0 %2674 }
 0xa0c   : > { %v2690_v28 = vsel %vm1503_vm3, %v2688_v57, %v2675_v56 }
 0xa0d   : > { %v5954_v44 = vpop.eup %5953 }
 0xa0e   : > { %v2511_v45 = vmul.f32 %v5954_v44, %v5950_v31 }
 0xa10   : > { %5732 = vmatmul.mubr.msk.f32.vlgmr.msra.gmra.mxu0 %vm1503_vm3, %v2511_v45 }
 0xa11   : > { %v5956_v46 = vpop.eup %5955  ;;  %5742 = vmatpush3.msra.mxu0 %v2832_v21 }
 0xa12   : > { %v2509_v47 = vmul.f32 %v5956_v46, %v5952_v39  ;;  %5743 = vmatprep.subr.mxu0 %v2831_v22  ;;  %v5414_v39 = vld [vmem:[%s6467_s24] ss:$0 sm:$0xff] }
 0xa13   : > { %5744 = vmatpush3.msra.mxu0 %v2831_v22 }
 0xa14   : > { %5727 = vmatmul.mubr.msk.f32.vlgmr.msra.gmra.mxu1 %vm1503_vm3, %v2509_v47 }
 0xa15   : > { %5735 = vmatpush3.msra.mxu1 %v2696_v34  ;;  %v2926_v34 = vld [vmem:[%s6456_s10 + $0x18] sm:$0xff] }
 0xa16   : > { %5736 = vmatprep.subr.mxu1 %v2695_v48 }
 0xa17   : > { %5737 = vmatpush3.msra.mxu1 %v2695_v48  ;;  %v2925_v48 = vld [vmem:[%s6456_s10 + $0x10] sm:$0xff] }
 0xa18   : > { %5748 = vmatprep.subr.mxu1 %v2930_v23 }
 0xad0   : > { %v2660_v49 = vpop.f32.mrf.mxu0 }
 0xad1   : > { %2684 = vrot.lane.b32.xlu1 %v2660_v49, %s6790_s4  ;;  %v2924_v49 = vld [vmem:[%s6456_s10 + $0x8] sm:$0xff] }
 0xad2   : > { %v5733_v50 = vpop.f32.mrf.mxu0 }
 0xad3   : > { %v2923_v50 = vld [vmem:[%s6456_s10] sm:$0xff] }
 0xad4   : > { %v2584_v51 = vpop.f32.mrf.mxu1 }
 0xad5   : > { %2682 = vrot.lane.b32.xlu0 %v2584_v51, %s6790_s4  ;;  %s6428_s4 = scalar_lea.vmem %s6774_s12, %s6190_s5  ;;  %v5416_v51 = vld [vmem:[%s6488_s7] ss:$0 sm:$0xff]  ;;  %s6821_s5 = smov 4  }
 0xad6   : > { %v5728_v52 = vpop.f32.mrf.mxu1  ;;  %v5411_v62 = vld [vmem:[%s6428_s4] ss:$0 sm:$0xff] }
 0xb43   : > { %v2685_v58 = vpop.permute.xlu1 %2684 }
 0xb44   : > { %v2694_v1 = vsel %vm2692_vm4, %v2691_v61, %v2685_v58  ;;  %v5419_v58 = vld [vmem:[%s6499_s8] ss:$0 sm:$0xff] }
 0xb47   : > { %v2683_v24 = vpop.permute.xlu0 %2682 }
 0xb48   : > { %v2693_v29 = vsel %vm2692_vm4, %v2690_v28, %v2683_v24 }
 0xb49   : > { %5738 = vmatprep.mubr.msk.f32.mxu1 %vm1010_vm0, %v2693_v29 }
 0xb4a   : > { %5739 = vmatmul.mubr.msk.f32.vlgmr.msra.gmra.mxu1 %vm1010_vm0, %v2694_v1 }
 0xb4b   : > { %5749 = vmatpush3.msra.mxu1 %v2930_v23 }
 0xb4c   : > { %5750 = vmatprep.subr.mxu1 %v2929_v25 }
 0xb4d   : > { %5751 = vmatpush3.msra.mxu1 %v2929_v25 }
 0xb4e   : > { %5752 = vmatprep.subr.mxu1 %v2928_v26 }
 0xb4f   : > { %5753 = vmatpush3.msra.mxu1 %v2928_v26 }
 0xb50   : > { %5754 = vmatprep.subr.mxu1 %v2927_v27 }
 0xb51   : > { %5755 = vmatpush3.msra.mxu1 %v2927_v27 }
 0xb52   : > { %5756 = vmatprep.subr.mxu1 %v2926_v34 }
 0xb53   : > { %5757 = vmatpush3.msra.mxu1 %v2926_v34 }
 0xb54   : > { %5758 = vmatprep.subr.mxu1 %v2925_v48 }
 0xb55   : > { %5759 = vmatpush3.msra.mxu1 %v2925_v48 }
 0xb56   : > { %5760 = vmatprep.subr.mxu1 %v2924_v49 }
 0xb57   : > { %5761 = vmatpush3.msra.mxu1 %v2924_v49 }
 0xb58   : > { %5762 = vmatprep.subr.mxu1 %v2923_v50 }
 0xb59   : > { %5763 = vmatpush3.msra.mxu1 %v2923_v50 }
 0xb5a   : > { %5793 = vmatprep.subr.mxu1 %v6013_v17 }
 0xc0a   : > { %v5740_v0 = vpop.f32.mrf.mxu1 }
 0xc0b   : > { %v2782_v2 = vadd.f32 %v5740_v0, %v5411_v62 }
 0xc0c   : > { %v2776_v3 = vpop.f32.mrf.mxu1 }
 0xc0d   : > { %v6432_v4 = vadd.f32 %v2782_v2, %v6157_v10  ;;  %v2777_v5 = vadd.f32 %v5411_v62, %v2776_v3 }
 0xc0f   : > { %v6435_v6 = vadd.f32 %v2777_v5, %v6155_v9  ;;  %v2792_v7 = vsel %vm1010_vm0, %v6432_v4, 0.0 }
 0xc10   : > { %2793 = vadd.xlane.f32.xlu1 %v2792_v7 }
 0xc11   : > { %v2789_v32 = vsel %vm1010_vm0, %v6435_v6, 0.0 }
 0xc12   : > { %2790 = vadd.xlane.f32.xlu0 %v2789_v32 }
 0xc99   : > { %v2794_v11 = vpop.xlane.xlu1 %2793 }
 0xc9a   : > { %v2796_v12 = vmul.f32 0.0625, %v2794_v11 }
 0xc9b   : > { %v2791_v13 = vpop.xlane.xlu0 %2790 }
 0xc9c   : > { %v2795_v14 = vmul.f32 0.0625, %v2791_v13  ;;  %v2798_v10 = vsub.f32 %v6432_v4, %v2796_v12 }
 0xc9e   : > { %v2797_v16 = vsub.f32 %v6435_v6, %v2795_v14  ;;  %v2800_v19 = vmul.f32 %v2798_v10, %v2798_v10  ;;  %v5427_v14 = vld [vmem:[%s6178_s29 + $0x18] sm:$0xff] }
 0xc9f   : > { %5767 = vmatprep.subr.mxu0 %v5427_v14 }
 0xca0   : > { %v2799_v9 = vmul.f32 %v2797_v16, %v2797_v16  ;;  %v2804_v20 = vsel %vm1010_vm0, %v2800_v19, 0.0 }
 0xca2   : > { %v2801_v18 = vsel %vm1010_vm0, %v2799_v9, 0.0 }
 0xca3   : > { %2802 = vadd.xlane.f32.xlu0 %v2801_v18 }
 0xca7   : > { %2805 = vadd.xlane.f32.xlu0 %v2804_v20 }
 0xd2c   : > { %v2803_v30 = vpop.xlane.xlu0 %2802 }
 0xd2d   : > { %v2807_v33 = vmul.f32 0.0625, %v2803_v30 }
 0xd2f   : > { %v2809_v35 = vadd.f32 1e-05, %v2807_v33 }
 0xd30   : > { %v2806_v36 = vpop.xlane.xlu0 %2805 }
 0xd31   : > { %5957 = vrsqrt.f32 %v2809_v35  ;;  %v2808_v37 = vmul.f32 0.0625, %v2806_v36 }
 0xd33   : > { %v2810_v31 = vadd.f32 1e-05, %v2808_v37  ;;  %v5432_v37 = vld [vmem:[%s6186_s30 + $0x10] sm:$0xff] }
 0xd35   : > { %5959 = vrsqrt.f32 %v2810_v31  ;;  %v5439_v31 = vld [vmem:[%s6210_s1 + $0x18] sm:$0xff] }
 0xd3e   : > { %v5958_v38 = vpop.eup %5957 }
 0xd3f   : > { %v2813_v40 = vmul.f32 %v5958_v38, %v2797_v16  ;;  %v5433_v16 = vld [vmem:[%s6186_s30 + $0x18] sm:$0xff]  ;;  %v5438_v38 = vld [vmem:[%s6210_s1 + $0x10] sm:$0xff]  ;;  %s6820_s30 = smov 116   ;;  %s6822_s1 = smov 8  }
 0xd41   : > { %v2821_v42 = vmul.f32 %v5414_v39, %v2813_v40  ;;  %v5435_v40 = vld [vmem:[%s6243_s22 + $0x1] ss:$0 sm:$0xff] }
 0xd42   : > { %v5960_v43 = vpop.eup %5959 }
 0xd43   : > { %v2814_v44 = vmul.f32 %v5960_v43, %v2798_v10  ;;  %v2829_v45 = vadd.f32 %v5415_v41, %v2821_v42  ;;  %v5426_v10 = vld [vmem:[%s6178_s29 + $0x10] sm:$0xff]  ;;  %s6819_s29 = smov 120  }
 0xd45   : > { %v2822_v46 = vmul.f32 %v5414_v39, %v2814_v44  ;;  %5745 = vmatprep.mubr.msk.f32.mxu0 %vm1010_vm0, %v2829_v45  ;;  %v5441_v45 = vld [vmem:[%s6251_s9 + $0x1] ss:$0 sm:$0xff]  ;;  %s6818_s9 = smov 124  }
 0xd47   : > { %v2830_v47 = vadd.f32 %v5415_v41, %v2822_v46 }
 0xd49   : > { %5746 = vmatmul.mubr.msk.f32.vlgmr.msra.gmra.mxu0 %vm1010_vm0, %v2830_v47 }
 0xd4a   : > { %5768 = vmatpush3.msra.mxu0 %v5427_v14 }
 0xd4b   : > { %5769 = vmatprep.subr.mxu0 %v5426_v10 }
 0xd4c   : > { %5770 = vmatpush3.msra.mxu0 %v5426_v10 }
 0xd4d   : > { %5774 = vmatprep.subr.mxu0 %v5433_v16 }
 0xe09   : > { %v5747_v52 = vpop.f32.mrf.mxu0 }
 0xe0a   : > { %v2918_v53 = vadd.f32 %v5747_v52, %v5416_v51 }
 0xe0b   : > { %v2912_v54 = vpop.f32.mrf.mxu0 }
 0xe0c   : > { %v2913_v55 = vadd.f32 %v5416_v51, %v2912_v54  ;;  %v2922_v57 = vmax.f32 %v2918_v53, 0.0 }
 0xe0e   : > { %v2921_v56 = vmax.f32 %v2913_v55, 0.0 }
 0xe10   : > { %5764 = vmatprep.mubr.msk.f32.mxu1 %vm2938_vm5, %v2921_v56 }
 0xe11   : > { %5765 = vmatmul.mubr.msk.f32.vlgmr.msra.gmra.mxu1 %vm2938_vm5, %v2922_v57 }
 0xe12   : > { %5795 = vmatprep.mubr.msk.f32.mxu1 %vm6014_vm1, %v6013_v17 }
 0xed1   : > { %v5766_v59 = vpop.f32.mrf.mxu1 }
 0xed2   : > { %v3017_v28 = vadd.f32 %v5766_v59, %v5419_v58 }
 0xed3   : > { %v3011_v24 = vpop.f32.mrf.mxu1 }
 0xed4   : > { %v6503_v61 = vadd.f32 %v3017_v28, %v6432_v4  ;;  %v3012_v29 = vadd.f32 %v5419_v58, %v3011_v24 }
 0xed6   : > { %v6506_v1 = vadd.f32 %v3012_v29, %v6435_v6  ;;  %v3029_v62 = vsel %vm1010_vm0, %v6503_v61, 0.0 }
 0xed7   : > { %3030 = vadd.xlane.f32.xlu1 %v3029_v62 }
 0xed8   : > { %v3026_v0 = vsel %vm1010_vm0, %v6506_v1, 0.0 }
 0xed9   : > { %3027 = vadd.xlane.f32.xlu0 %v3026_v0 }
 0xf60   : > { %v3031_v2 = vpop.xlane.xlu1 %3030 }
 0xf61   : > { %v3033_v3 = vmul.f32 0.0625, %v3031_v2 }
 0xf62   : > { %v3028_v5 = vpop.xlane.xlu0 %3027 }
 0xf63   : > { %v3035_v4 = vsub.f32 %v6503_v61, %v3033_v3  ;;  %v3032_v7 = vmul.f32 0.0625, %v3028_v5 }
 0xf65   : > { %v3034_v6 = vsub.f32 %v6506_v1, %v3032_v7  ;;  %v3037_v32 = vmul.f32 %v3035_v4, %v3035_v4 }
 0xf67   : > { %v3041_v11 = vsel %vm1010_vm0, %v3037_v32, 0.0  ;;  %v3036_v12 = vmul.f32 %v3034_v6, %v3034_v6 }
 0xf68   : > { %3042 = vadd.xlane.f32.xlu1 %v3041_v11 }
 0xf69   : > { %v3038_v13 = vsel %vm1010_vm0, %v3036_v12, 0.0 }
 0xf6a   : > { %3039 = vadd.xlane.f32.xlu0 %v3038_v13 }
 0xff1   : > { %v3043_v9 = vpop.xlane.xlu1 %3042 }
 0xff2   : > { %v3045_v18 = vmul.f32 0.0625, %v3043_v9 }
 0xff3   : > { %v3040_v19 = vpop.xlane.xlu0 %3039 }
 0xff4   : > { %v3047_v20 = vadd.f32 1e-05, %v3045_v18  ;;  %v3044_v21 = vmul.f32 0.0625, %v3040_v19 }
 0xff6   : > { %5961 = vrsqrt.f32 %v3047_v20  ;;  %v3046_v22 = vadd.f32 1e-05, %v3044_v21 }
 0xff8   : > { %5963 = vrsqrt.f32 %v3046_v22 }
0x1003   : > { %v5962_v23 = vpop.eup %5961 }
0x1004   : > { %v3051_v25 = vmul.f32 %v5962_v23, %v3035_v4 }
0x1005   : > { %v5964_v26 = vpop.eup %5963 }
0x1006   : > { %v3050_v27 = vmul.f32 %v5964_v26, %v3034_v6  ;;  %v3059_v30 = vmul.f32 %v6200_v60, %v3051_v25 }
0x1008   : > { %v3058_v33 = vmul.f32 %v6200_v60, %v3050_v27  ;;  %v3067_v35 = vadd.f32 %v6203_v63, %v3059_v30 }
0x100a   : > { %v3066_v36 = vadd.f32 %v6203_v63, %v3058_v33  ;;  %v5429_v63 = vld [vmem:[%s6237_s28 + $0x1] ss:$0 sm:$0xff]  ;;  %s6823_s28 = smov 12  }
0x100c   : > { %5771 = vmatprep.mubr.msk.f32.mxu0 %vm1010_vm0, %v3066_v36 }
0x100d   : > { %5772 = vmatmul.mubr.msk.f32.vlgmr.msra.gmra.mxu0 %vm1010_vm0, %v3067_v35 }
0x100e   : > { %5775 = vmatpush3.msra.mxu0 %v5433_v16  ;;  %5778 = vmatprep.mubr.msk.f32.mxu0 %vm1010_vm0, %v6214_v8 }
0x100f   : > { %5776 = vmatprep.subr.mxu0 %v5432_v37 }
0x1010   : > { %5777 = vmatpush3.msra.mxu0 %v5432_v37 }
0x1011   : > { %5779 = vmatmul.mubr.msk.f32.vlgmr.msra.gmra.mxu0 %vm1010_vm0, %v6221_v15  ;;  %5781 = vmatprep.subr.mxu0 %v5439_v31 }
0x1012   : > { %5782 = vmatpush3.msra.mxu0 %v5439_v31  ;;  %5785 = vmatprep.mubr.msk.f32.mxu0 %vm1010_vm0, %v6214_v8 }
0x1013   : > { %5783 = vmatprep.subr.mxu0 %v5438_v38 }
0x1014   : > { %5784 = vmatpush3.msra.mxu0 %v5438_v38 }
0x1015   : > { %5786 = vmatmul.mubr.msk.f32.vlgmr.msra.gmra.mxu0 %vm1010_vm0, %v6221_v15  ;;  %5788 = vmatprep.subr.mxu0 %v6013_v17 }
0x1016   : > { %5790 = vmatprep.mubr.msk.f32.mxu0 %vm6014_vm1, %v6013_v17 }
0x10cd   : > { %v5773_v60 = vpop.f32.mrf.mxu0 }
0x10ce   : > { %v3161_v41 = vadd.f32 %v5773_v60, %v5429_v63 }
0x10cf   : > { %v3155_v39 = vpop.f32.mrf.mxu0 }
0x10d0   : > { %v3156_v44 = vadd.f32 %v5429_v63, %v3155_v39  ;;  %v6548_v15 = vmul.f32 0.5, %v3161_v41 }
0x10d1   : > { %v5780_v42 = vpop.f32.mrf.mxu0 }
0x10d2   : > { %v6541_v43 = vadd.f32 %v5780_v42, %v5435_v40  ;;  %v6555_v48 = vmul.f32 0.5, %v3156_v44 }
0x10d3   : > { %v3249_v8 = vpop.f32.mrf.mxu0 }
0x10d4   : > { %v6544_v46 = vadd.f32 %v5435_v40, %v3249_v8  ;;  %5794 = vmatpush3.xpose.msk.msra.mxu1 %vm1350_vm2, %v6541_v43 }
0x10d5   : > { %v5787_v47 = vpop.f32.mrf.mxu0  ;;  %5803 = vmatprep.subr.mxu1 %v6013_v17 }
0x10d6   : > { %v6551_v34 = vadd.f32 %v5787_v47, %v5441_v45  ;;  %5789 = vmatpush3.xpose.msk.msra.mxu0 %vm1350_vm2, %v6544_v46 }
0x10d7   : > { %v3335_v49 = vpop.f32.mrf.mxu0  ;;  %5796 = vmatmul.mubr.msk.f32.vlgmr.msra.gmra.mxu1 %vm1350_vm2, %v6548_v15  ;;  %5798 = vmatprep.subr.mxu0 %v6013_v17 }
0x10d8   : > { %v6560_v50 = vadd.f32 %v5441_v45, %v3335_v49  ;;  %5804 = vmatpush3.msra.mxu1 %v6551_v34  ;;  %5805 = vmatprep.mubr.msk.f32.mxu1 %vm6014_vm1, %v6013_v17 }
0x10d9   : > { %5791 = vmatmul.mubr.msk.f32.vlgmr.msra.gmra.mxu0 %vm1350_vm2, %v6555_v48  ;;  %5813 = vmatprep.subr.mxu1 %v6013_v17 }
0x10da   : > { %5799 = vmatpush3.msra.mxu0 %v6560_v50  ;;  %5800 = vmatprep.mubr.msk.f32.mxu0 %vm6014_vm1, %v6013_v17 }
0x10db   : > { %5808 = vmatprep.subr.mxu0 %v6013_v17 }
0x1197   : > { %v3492_v51 = vpop.f32.mrf.mxu1 }
0x1198   : > { %v3499_v52 = vsel %vm1503_vm3, %v3492_v51, -inf }
0x1199   : > { %3500 = vmax.xlane.f32.xlu1 %v3499_v52  ;;  %v3416_v53 = vpop.f32.mrf.mxu0  ;;  %v5797_v54 = vpop.f32.mrf.mxu1 }
0x119a   : > { %v3496_v55 = vsel %vm1503_vm3, %v3416_v53, -inf }
0x119b   : > { %3497 = vmax.xlane.f32.xlu0 %v3496_v55  ;;  %v5792_v56 = vpop.f32.mrf.mxu0 }
0x1222   : > { %v3501_v57 = vpop.xlane.xlu1 %3500 }
0x1223   : > { %v3503_v58 = vsub.f32 %v3492_v51, %v3501_v57 }
0x1224   : > { %v3498_v59 = vpop.xlane.xlu0 %3497 }
0x1225   : > { %v3506_v28 = vmul.f32 1.442695, %v3503_v58  ;;  %v3502_v24 = vsub.f32 %v3416_v53, %v3498_v59 }
0x1227   : > { %5965 = vpow2.f32 %v3506_v28  ;;  %v3504_v29 = vmul.f32 1.442695, %v3502_v24 }
0x1229   : > { %5967 = vpow2.f32 %v3504_v29 }
0x1234   : > { %v5966_v62 = vpop.eup %5965 }
0x1235   : > { %v3511_v0 = vsel %vm1503_vm3, %v5966_v62, 0.0 }
0x1236   : > { %v5968_v2 = vpop.eup %5967  ;;  %3512 = vadd.xlane.f32.xlu1 %v3511_v0 }
0x1237   : > { %v3508_v3 = vsel %vm1503_vm3, %v5968_v2, 0.0 }
0x1238   : > { %3509 = vadd.xlane.f32.xlu0 %v3508_v3 }
0x1247   : > { %3744 = vrot.lane.b32.xlu1 %v6541_v43, %s6818_s9 }
0x124b   : > { %3664 = vrot.lane.b32.xlu1 %v6555_v48, %s6818_s9 }
0x124e   : > { %3666 = vrot.lane.b32.xlu0 %v6544_v46, %s6818_s9 }
0x124f   : > { %3742 = vrot.lane.b32.xlu1 %v6548_v15, %s6818_s9 }
0x12bf   : > { %v3513_v5 = vpop.xlane.xlu1 %3512 }
0x12c0   : > { %5969 = vrcp.f32 %v3513_v5 }
0x12c1   : > { %v3510_v4 = vpop.xlane.xlu0 %3509 }
0x12c2   : > { %5971 = vrcp.f32 %v3510_v4 }
0x12c3   : > { %v3745_v7 = vpop.permute.xlu1 %3744 }
0x12c5   : > { %v3667_v14 = vpop.permute.xlu0 %3666 }
0x12c7   : > { %v3665_v32 = vpop.permute.xlu1 %3664 }
0x12cb   : > { %v3743_v10 = vpop.permute.xlu1 %3742 }
0x12cd   : > { %v5970_v6 = vpop.eup %5969 }
0x12ce   : > { %v3517_v11 = vmul.f32 %v5970_v6, %v5966_v62 }
0x12cf   : > { %v5972_v12 = vpop.eup %5971 }
0x12d0   : > { %5806 = vmatmul.mubr.msk.f32.vlgmr.msra.gmra.mxu1 %vm1503_vm3, %v3517_v11  ;;  %v3515_v13 = vmul.f32 %v5972_v12, %v5968_v2 }
0x12d1   : > { %5814 = vmatpush3.xpose.msk.msra.mxu1 %vm1350_vm2, %v3745_v7  ;;  %5815 = vmatprep.mubr.msk.f32.mxu1 %vm6014_vm1, %v6013_v17 }
0x12d2   : > { %5801 = vmatmul.mubr.msk.f32.vlgmr.msra.gmra.mxu0 %vm1503_vm3, %v3515_v13  ;;  %5823 = vmatprep.subr.mxu1 %v6013_v17 }
0x12d3   : > { %5809 = vmatpush3.xpose.msk.msra.mxu0 %vm1350_vm2, %v3667_v14  ;;  %5810 = vmatprep.mubr.msk.f32.mxu0 %vm6014_vm1, %v6013_v17 }
0x12d4   : > { %5816 = vmatmul.mubr.msk.f32.vlgmr.msra.gmra.mxu1 %vm1350_vm2, %v3743_v10  ;;  %5818 = vmatprep.subr.mxu0 %v6013_v17 }
0x12d5   : > { %5825 = vmatprep.mubr.msk.f32.mxu1 %vm6014_vm1, %v6013_v17 }
0x12d6   : > { %5811 = vmatmul.mubr.msk.f32.vlgmr.msra.gmra.mxu0 %vm1350_vm2, %v3665_v32 }
0x12d7   : > { %5820 = vmatprep.mubr.msk.f32.mxu0 %vm6014_vm1, %v6013_v17 }
0x1390   : > { %v6600_v16 = vpop.f32.mrf.mxu1 }
0x1392   : > { %v6602_v9 = vpop.f32.mrf.mxu0  ;;  %v5807_v18 = vpop.f32.mrf.mxu1 }
0x1394   : > { %v5802_v19 = vpop.f32.mrf.mxu0  ;;  %v3816_v20 = vpop.f32.mrf.mxu1 }
0x1395   : > { %v3823_v21 = vsel %vm1503_vm3, %v3816_v20, -inf }
0x1396   : > { %3824 = vmax.xlane.f32.xlu1 %v3823_v21  ;;  %v3738_v22 = vpop.f32.mrf.mxu0  ;;  %v5817_v23 = vpop.f32.mrf.mxu1 }
0x1397   : > { %v3820_v25 = vsel %vm1503_vm3, %v3738_v22, -inf }
0x1398   : > { %3821 = vmax.xlane.f32.xlu0 %v3820_v25  ;;  %v5812_v26 = vpop.f32.mrf.mxu0 }
0x13a7   : > { %3920 = vrot.lane.b32.xlu1 %v6551_v34, %s6818_s9 }
0x13ab   : > { %3998 = vrot.lane.b32.xlu1 %v6544_v46, %s6819_s29 }
0x13af   : > { %4076 = vrot.lane.b32.xlu1 %v6541_v43, %s6819_s29 }
0x13b3   : > { %4074 = vrot.lane.b32.xlu1 %v6548_v15, %s6819_s29 }
0x141f   : > { %v3825_v27 = vpop.xlane.xlu1 %3824 }
0x1420   : > { %v3827_v30 = vsub.f32 %v3816_v20, %v3825_v27 }
0x1421   : > { %v3822_v33 = vpop.xlane.xlu0 %3821 }
0x1422   : > { %v3830_v35 = vmul.f32 1.442695, %v3827_v30  ;;  %v3826_v36 = vsub.f32 %v3738_v22, %v3822_v33 }
0x1423   : > { %v3921_v37 = vpop.permute.xlu1 %3920 }
0x1424   : > { %5973 = vpow2.f32 %v3830_v35  ;;  %v3828_v31 = vmul.f32 1.442695, %v3826_v36  ;;  %5824 = vmatpush3.msra.mxu1 %v3921_v37 }
0x1425   : > { %5833 = vmatprep.subr.mxu1 %v6013_v17 }
0x1426   : > { %5975 = vpow2.f32 %v3828_v31 }
0x1427   : > { %v3999_v42 = vpop.permute.xlu1 %3998 }
0x142b   : > { %v4077_v45 = vpop.permute.xlu1 %4076 }
0x142f   : > { %v4075_v52 = vpop.permute.xlu1 %4074 }
0x1431   : > { %v5974_v38 = vpop.eup %5973 }
0x1432   : > { %v3835_v60 = vsel %vm1503_vm3, %v5974_v38, 0.0 }
0x1433   : > { %v5976_v63 = vpop.eup %5975  ;;  %3836 = vadd.xlane.f32.xlu0 %v3835_v60 }
0x1434   : > { %v3832_v39 = vsel %vm1503_vm3, %v5976_v63, 0.0 }
0x1437   : > { %3833 = vadd.xlane.f32.xlu0 %v3832_v39 }
0x144d   : > { %3843 = vrot.lane.b32.xlu0 %v6560_v50, %s6818_s9 }
0x1451   : > { %3996 = vrot.lane.b32.xlu0 %v6555_v48, %s6819_s29 }
0x14bc   : > { %v3837_v40 = vpop.xlane.xlu0 %3836 }
0x14bd   : > { %5977 = vrcp.f32 %v3837_v40 }
0x14c0   : > { %v3834_v41 = vpop.xlane.xlu0 %3833 }
0x14c1   : > { %5979 = vrcp.f32 %v3834_v41 }
0x14c4   : > { %v3844_v44 = vpop.permute.xlu0 %3843 }
0x14c5   : > { %5819 = vmatpush3.msra.mxu0 %v3844_v44 }
0x14c6   : > { %5828 = vmatprep.subr.mxu0 %v6013_v17 }
0x14c8   : > { %v3997_v53 = vpop.permute.xlu0 %3996 }
0x14ca   : > { %v5978_v8 = vpop.eup %5977 }
0x14cb   : > { %v3841_v47 = vmul.f32 %v5978_v8, %v5974_v38 }
0x14cd   : > { %5826 = vmatmul.mubr.msk.f32.vlgmr.msra.gmra.mxu1 %vm1503_vm3, %v3841_v47 }
0x14ce   : > { %v5980_v49 = vpop.eup %5979  ;;  %5834 = vmatpush3.xpose.msk.msra.mxu1 %vm1350_vm2, %v4077_v45  ;;  %5835 = vmatprep.mubr.msk.f32.mxu1 %vm6014_vm1, %v6013_v17 }
0x14cf   : > { %v3839_v51 = vmul.f32 %v5980_v49, %v5976_v63  ;;  %5843 = vmatprep.subr.mxu1 %v6013_v17 }
0x14d1   : > { %5821 = vmatmul.mubr.msk.f32.vlgmr.msra.gmra.mxu0 %vm1503_vm3, %v3839_v51  ;;  %5836 = vmatmul.mubr.msk.f32.vlgmr.msra.gmra.mxu1 %vm1350_vm2, %v4075_v52 }
0x14d2   : > { %5829 = vmatpush3.xpose.msk.msra.mxu0 %vm1350_vm2, %v3999_v42  ;;  %5830 = vmatprep.mubr.msk.f32.mxu0 %vm6014_vm1, %v6013_v17 }
0x14d3   : > { %5838 = vmatprep.subr.mxu0 %v6013_v17  ;;  %5845 = vmatprep.mubr.msk.f32.mxu1 %vm6014_vm1, %v6013_v17 }
0x14d5   : > { %5831 = vmatmul.mubr.msk.f32.vlgmr.msra.gmra.mxu0 %vm1350_vm2, %v3997_v53 }
0x14d6   : > { %5840 = vmatprep.mubr.msk.f32.mxu0 %vm6014_vm1, %v6013_v17 }
0x158d   : > { %v6638_v54 = vpop.f32.mrf.mxu1 }
0x158f   : > { %v5827_v55 = vpop.f32.mrf.mxu1 }
0x1590   : > { %v5469_v55 = vld [vmem:[%s6408_s3 + $0x18] sm:$0xff] }
0x1591   : > { %v6640_v56 = vpop.f32.mrf.mxu0  ;;  %v4148_v57 = vpop.f32.mrf.mxu1 }
0x1592   : > { %v4155_v58 = vsel %vm1503_vm3, %v4148_v57, -inf }
0x1593   : > { %4156 = vmax.xlane.f32.xlu1 %v4155_v58  ;;  %v5822_v59 = vpop.f32.mrf.mxu0  ;;  %v5837_v28 = vpop.f32.mrf.mxu1 }
0x1595   : > { %v4070_v24 = vpop.f32.mrf.mxu0 }
0x1596   : > { %v4152_v29 = vsel %vm1503_vm3, %v4070_v24, -inf }
0x1597   : > { %4153 = vmax.xlane.f32.xlu0 %v4152_v29  ;;  %v5832_v62 = vpop.f32.mrf.mxu0 }
0x15a4   : > { %4250 = vrot.lane.b32.xlu1 %v6551_v34, %s6819_s29 }
0x15a8   : > { %4328 = vrot.lane.b32.xlu1 %v6544_v46, %s6820_s30 }
0x15ac   : > { %4406 = vrot.lane.b32.xlu1 %v6541_v43, %s6820_s30 }
0x15b0   : > { %4404 = vrot.lane.b32.xlu1 %v6548_v15, %s6820_s30 }
0x161c   : > { %v4157_v0 = vpop.xlane.xlu1 %4156 }
0x161d   : > { %v4159_v2 = vsub.f32 %v4148_v57, %v4157_v0 }
0x161f   : > { %v4162_v3 = vmul.f32 1.442695, %v4159_v2 }
0x1620   : > { %v4251_v5 = vpop.permute.xlu1 %4250  ;;  %v4154_v4 = vpop.xlane.xlu0 %4153 }
0x1621   : > { %5981 = vpow2.f32 %v4162_v3  ;;  %v4158_v7 = vsub.f32 %v4070_v24, %v4154_v4  ;;  %5844 = vmatpush3.msra.mxu1 %v4251_v5 }
0x1622   : > { %5853 = vmatprep.subr.mxu1 %v6013_v17 }
0x1623   : > { %v4160_v6 = vmul.f32 1.442695, %v4158_v7 }
0x1624   : > { %v4329_v13 = vpop.permute.xlu1 %4328 }
0x1625   : > { %5983 = vpow2.f32 %v4160_v6 }
0x1628   : > { %v4407_v18 = vpop.permute.xlu1 %4406 }
0x162c   : > { %v4405_v21 = vpop.permute.xlu1 %4404 }
0x162e   : > { %v5982_v32 = vpop.eup %5981 }
0x162f   : > { %v4167_v46 = vsel %vm1503_vm3, %v5982_v32, 0.0 }
0x1630   : > { %4168 = vadd.xlane.f32.xlu0 %v4167_v46  ;;  %v5471_v46 = vld [vmem:[%s6428_s4 + $0x1] ss:$0 sm:$0xff] }
0x1632   : > { %v5984_v43 = vpop.eup %5983 }
0x1633   : > { %v4164_v11 = vsel %vm1503_vm3, %v5984_v43, 0.0 }
0x1634   : > { %4165 = vadd.xlane.f32.xlu0 %v4164_v11 }
0x164a   : > { %4174 = vrot.lane.b32.xlu0 %v6560_v50, %s6819_s29 }
0x164e   : > { %4326 = vrot.lane.b32.xlu0 %v6555_v48, %s6820_s30 }
0x16b9   : > { %v4169_v15 = vpop.xlane.xlu0 %4168 }
0x16ba   : > { %5985 = vrcp.f32 %v4169_v15 }
0x16bd   : > { %v4166_v12 = vpop.xlane.xlu0 %4165 }
0x16be   : > { %5987 = vrcp.f32 %v4166_v12 }
0x16c1   : > { %v4175_v14 = vpop.permute.xlu0 %4174 }
0x16c2   : > { %5839 = vmatpush3.msra.mxu0 %v4175_v14 }
0x16c3   : > { %5848 = vmatprep.subr.mxu0 %v6013_v17 }
0x16c5   : > { %v4327_v22 = vpop.permute.xlu0 %4326 }
0x16c7   : > { %v5986_v10 = vpop.eup %5985 }
0x16c8   : > { %v4173_v19 = vmul.f32 %v5986_v10, %v5982_v32 }
0x16ca   : > { %5846 = vmatmul.mubr.msk.f32.vlgmr.msra.gmra.mxu1 %vm1503_vm3, %v4173_v19 }
0x16cb   : > { %v5988_v20 = vpop.eup %5987  ;;  %5854 = vmatpush3.xpose.msk.msra.mxu1 %vm1350_vm2, %v4407_v18  ;;  %5855 = vmatprep.mubr.msk.f32.mxu1 %vm6014_vm1, %v6013_v17 }
0x16cc   : > { %v4171_v48 = vmul.f32 %v5988_v20, %v5984_v43  ;;  %5863 = vmatprep.subr.mxu1 %v6013_v17 }
0x16ce   : > { %5841 = vmatmul.mubr.msk.f32.vlgmr.msra.gmra.mxu0 %vm1503_vm3, %v4171_v48  ;;  %5856 = vmatmul.mubr.msk.f32.vlgmr.msra.gmra.mxu1 %vm1350_vm2, %v4405_v21 }
0x16cf   : > { %5849 = vmatpush3.xpose.msk.msra.mxu0 %vm1350_vm2, %v4329_v13  ;;  %5850 = vmatprep.mubr.msk.f32.mxu0 %vm6014_vm1, %v6013_v17 }
0x16d0   : > { %5858 = vmatprep.subr.mxu0 %v6013_v17  ;;  %5865 = vmatprep.mubr.msk.f32.mxu1 %vm6014_vm1, %v6013_v17 }
0x16d2   : > { %5851 = vmatmul.mubr.msk.f32.vlgmr.msra.gmra.mxu0 %vm1350_vm2, %v4327_v22 }
0x16d3   : > { %5860 = vmatprep.mubr.msk.f32.mxu0 %vm6014_vm1, %v6013_v17 }
0x178a   : > { %v4322_v23 = vpop.f32.mrf.mxu1 }
0x178c   : > { %v5847_v25 = vpop.f32.mrf.mxu1 }
0x178d   : > { %v5479_v25 = vld [vmem:[%s6449_s27 + $0x18] sm:$0xff] }
0x178e   : > { %v4246_v26 = vpop.f32.mrf.mxu0  ;;  %v4478_v27 = vpop.f32.mrf.mxu1 }
0x178f   : > { %v4485_v30 = vsel %vm1503_vm3, %v4478_v27, -inf }
0x1790   : > { %4486 = vmax.xlane.f32.xlu1 %v4485_v30  ;;  %v5842_v33 = vpop.f32.mrf.mxu0  ;;  %v5857_v35 = vpop.f32.mrf.mxu1  ;;  %v5490_v30 = vld [vmem:[%s6456_s10 + $0x70] sm:$0xff] }
0x1791   : > { %v5489_v33 = vld [vmem:[%s6456_s10 + $0x68] sm:$0xff]  ;;  %v5488_v35 = vld [vmem:[%s6456_s10 + $0x60] sm:$0xff] }
0x1792   : > { %v4400_v36 = vpop.f32.mrf.mxu0 }
0x1793   : > { %v4482_v37 = vsel %vm1503_vm3, %v4400_v36, -inf }
0x1794   : > { %4483 = vmax.xlane.f32.xlu0 %v4482_v37  ;;  %v5852_v31 = vpop.f32.mrf.mxu0 }
0x17a1   : > { %4580 = vrot.lane.b32.xlu1 %v6551_v34, %s6820_s30 }
0x17a5   : > { %4658 = vrot.lane.b32.xlu1 %v6640_v56, %s6821_s5 }
0x17a9   : > { %4660 = vrot.lane.b32.xlu1 %v6638_v54, %s6821_s5 }
0x17ad   : > { %4668 = vrot.lane.b32.xlu1 %v4322_v23, %s6822_s1 }
0x1819   : > { %v4487_v17 = vpop.xlane.xlu1 %4486 }
0x181a   : > { %v4489_v38 = vsub.f32 %v4478_v27, %v4487_v17  ;;  %v5491_v27 = vld [vmem:[%s6456_s10 + $0x78] sm:$0xff] }
0x181c   : > { %v4492_v60 = vmul.f32 1.442695, %v4489_v38 }
0x181d   : > { %v4581_v63 = vpop.permute.xlu1 %4580  ;;  %v4484_v39 = vpop.xlane.xlu0 %4483 }
0x181e   : > { %5989 = vpow2.f32 %v4492_v60  ;;  %v4488_v40 = vsub.f32 %v4400_v36, %v4484_v39  ;;  %5864 = vmatpush3.msra.mxu1 %v4581_v63  ;;  %v5476_v39 = vld [vmem:[%s6467_s24 + $0x1] ss:$0 sm:$0xff]  ;;  %s989_s24 = scalar_lea.vmem %s6782_s20, %s6825_s25 }
0x181f   : > { %5875 = vmatprep.subr.mxu1 %v5479_v25 }
0x1820   : > { %v4490_v41 = vmul.f32 1.442695, %v4488_v40 }
0x1821   : > { %v4659_v28 = vpop.permute.xlu1 %4658 }
0x1822   : > { %5991 = vpow2.f32 %v4490_v41  ;;  %v4680_v0 = vsel %vm1350_vm2, %v6602_v9, %v4659_v28  ;;  %v5477_v41 = vld [vmem:[%s6473_s23 + $0x1] ss:$0 sm:$0xff] }
0x1823   : > { %v5493_v28 = vld [vmem:[%s6499_s8 + $0x1] ss:$0 sm:$0xff] }
0x1825   : > { %v4661_v24 = vpop.permute.xlu1 %4660 }
0x1826   : > { %v4681_v3 = vsel %vm1350_vm2, %v6600_v16, %v4661_v24 }
0x1829   : > { %v4669_v29 = vpop.permute.xlu1 %4668 }
0x182a   : > { %v4683_v7 = vsel %vm1503_vm3, %v4681_v3, %v4669_v29 }
0x182b   : > { %v5990_v42 = vpop.eup %5989 }
0x182c   : > { %v4497_v34 = vsel %vm1503_vm3, %v5990_v42, 0.0 }
0x182d   : > { %4498 = vadd.xlane.f32.xlu0 %v4497_v34 }
0x182f   : > { %v5992_v44 = vpop.eup %5991 }
0x1830   : > { %v4494_v8 = vsel %vm1503_vm3, %v5992_v44, 0.0 }
0x1831   : > { %4495 = vadd.xlane.f32.xlu0 %v4494_v8 }
0x1847   : > { %4504 = vrot.lane.b32.xlu0 %v6560_v50, %s6820_s30  ;;  %v5468_v50 = vld [vmem:[%s6408_s3 + $0x10] sm:$0xff] }
0x184b   : > { %4666 = vrot.lane.b32.xlu0 %v4246_v26, %s6822_s1  ;;  %v5478_v26 = vld [vmem:[%s6449_s27 + $0x10] sm:$0xff]  ;;  %s986_s27 = scalar_lea.vmem %s6781_s19, %s6825_s25 }
0x18b6   : > { %v4499_v45 = vpop.xlane.xlu0 %4498 }
0x18b7   : > { %5993 = vrcp.f32 %v4499_v45 }
0x18ba   : > { %v4496_v47 = vpop.xlane.xlu0 %4495 }
0x18bb   : > { %5995 = vrcp.f32 %v4496_v47 }
0x18be   : > { %v4505_v49 = vpop.permute.xlu0 %4504 }
0x18bf   : > { %5859 = vmatpush3.msra.mxu0 %v4505_v49  ;;  %v5487_v49 = vld [vmem:[%s6456_s10 + $0x58] sm:$0xff] }
0x18c0   : > { %5868 = vmatprep.subr.mxu0 %v5469_v55 }
0x18c2   : > { %v4667_v62 = vpop.permute.xlu0 %4666 }
0x18c3   : > { %v4682_v5 = vsel %vm1503_vm3, %v4680_v0, %v4667_v62 }
0x18c4   : > { %v5994_v51 = vpop.eup %5993 }
0x18c5   : > { %v4503_v52 = vmul.f32 %v5994_v51, %v5990_v42  ;;  %v5486_v51 = vld [vmem:[%s6456_s10 + $0x50] sm:$0xff] }
0x18c7   : > { %5866 = vmatmul.mubr.msk.f32.vlgmr.msra.gmra.mxu1 %vm1503_vm3, %v4503_v52  ;;  %v5485_v52 = vld [vmem:[%s6456_s10 + $0x48] sm:$0xff] }
0x18c8   : > { %v5996_v53 = vpop.eup %5995  ;;  %5876 = vmatpush3.msra.mxu1 %v5479_v25 }
0x18c9   : > { %v4501_v54 = vmul.f32 %v5996_v53, %v5992_v44  ;;  %5877 = vmatprep.subr.mxu1 %v5478_v26  ;;  %v5484_v53 = vld [vmem:[%s6456_s10 + $0x40] sm:$0xff] }
0x18ca   : > { %5878 = vmatpush3.msra.mxu1 %v5478_v26 }
0x18cb   : > { %5861 = vmatmul.mubr.msk.f32.vlgmr.msra.gmra.mxu0 %vm1503_vm3, %v4501_v54  ;;  %v5481_v54 = vld [vmem:[%s6488_s7 + $0x1] ss:$0 sm:$0xff] }
0x18cc   : > { %5869 = vmatpush3.msra.mxu0 %v5469_v55 }
0x18cd   : > { %5870 = vmatprep.subr.mxu0 %v5468_v50 }
0x18ce   : > { %5871 = vmatpush3.msra.mxu0 %v5468_v50 }
0x18cf   : > { %5882 = vmatprep.subr.mxu0 %v5491_v27 }
0x1987   : > { %v4652_v56 = vpop.f32.mrf.mxu1 }
0x1988   : > { %4676 = vrot.lane.b32.xlu1 %v4652_v56, %s6823_s28 }
0x1989   : > { %v5867_v57 = vpop.f32.mrf.mxu1 }
0x198b   : > { %v4576_v58 = vpop.f32.mrf.mxu0 }
0x198c   : > { %4674 = vrot.lane.b32.xlu0 %v4576_v58, %s6823_s28 }
0x198d   : > { %v5862_v59 = vpop.f32.mrf.mxu0 }
0x19fa   : > { %v4677_v2 = vpop.permute.xlu1 %4676 }
0x19fb   : > { %v4685_v32 = vsel %vm2692_vm4, %v4683_v7, %v4677_v2 }
0x19fe   : > { %v4675_v4 = vpop.permute.xlu0 %4674 }
0x19ff   : > { %v4684_v6 = vsel %vm2692_vm4, %v4682_v5, %v4675_v4 }
0x1a00   : > { %5872 = vmatprep.mubr.msk.f32.mxu0 %vm1010_vm0, %v4684_v6 }
0x1a01   : > { %5873 = vmatmul.mubr.msk.f32.vlgmr.msra.gmra.mxu0 %vm1010_vm0, %v4685_v32 }
0x1a02   : > { %5883 = vmatpush3.msra.mxu0 %v5491_v27 }
0x1a03   : > { %5884 = vmatprep.subr.mxu0 %v5490_v30 }
0x1a04   : > { %5885 = vmatpush3.msra.mxu0 %v5490_v30 }
0x1a05   : > { %5886 = vmatprep.subr.mxu0 %v5489_v33 }
0x1a06   : > { %5887 = vmatpush3.msra.mxu0 %v5489_v33 }
0x1a07   : > { %5888 = vmatprep.subr.mxu0 %v5488_v35 }
0x1a08   : > { %5889 = vmatpush3.msra.mxu0 %v5488_v35 }
0x1a09   : > { %5890 = vmatprep.subr.mxu0 %v5487_v49 }
0x1a0a   : > { %5891 = vmatpush3.msra.mxu0 %v5487_v49 }
0x1a0b   : > { %5892 = vmatprep.subr.mxu0 %v5486_v51 }
0x1a0c   : > { %5893 = vmatpush3.msra.mxu0 %v5486_v51 }
0x1a0d   : > { %5894 = vmatprep.subr.mxu0 %v5485_v52 }
0x1a0e   : > { %5895 = vmatpush3.msra.mxu0 %v5485_v52 }
0x1a0f   : > { %5896 = vmatprep.subr.mxu0 %v5484_v53 }
0x1a10   : > { %5897 = vmatpush3.msra.mxu0 %v5484_v53 }
0x1ac1   : > { %v5874_v43 = vpop.f32.mrf.mxu0 }
0x1ac2   : > { %v4775_v9 = vadd.f32 %v5874_v43, %v5471_v46 }
0x1ac3   : > { %v4769_v11 = vpop.f32.mrf.mxu0 }
0x1ac4   : > { %v6708_v15 = vadd.f32 %v4775_v9, %v6503_v61  ;;  %v4770_v16 = vadd.f32 %v5471_v46, %v4769_v11 }
0x1ac6   : > { %v6711_v12 = vadd.f32 %v4770_v16, %v6506_v1  ;;  %v4787_v13 = vsel %vm1010_vm0, %v6708_v15, 0.0 }
0x1ac7   : > { %4788 = vadd.xlane.f32.xlu1 %v4787_v13 }
0x1ac8   : > { %v4784_v14 = vsel %vm1010_vm0, %v6711_v12, 0.0 }
0x1ac9   : > { %4785 = vadd.xlane.f32.xlu0 %v4784_v14 }
0x1b50   : > { %v4789_v10 = vpop.xlane.xlu1 %4788 }
0x1b51   : > { %v4791_v18 = vmul.f32 0.0625, %v4789_v10 }
0x1b52   : > { %v4786_v19 = vpop.xlane.xlu0 %4785 }
0x1b53   : > { %v4790_v61 = vmul.f32 0.0625, %v4786_v19  ;;  %v4793_v20 = vsub.f32 %v6708_v15, %v4791_v18 }
0x1b55   : > { %v4792_v1 = vsub.f32 %v6711_v12, %v4790_v61  ;;  %v4795_v22 = vmul.f32 %v4793_v20, %v4793_v20 }
0x1b57   : > { %v4794_v48 = vmul.f32 %v4792_v1, %v4792_v1  ;;  %v4799_v23 = vsel %vm1010_vm0, %v4795_v22, 0.0  ;;  %v5497_v22 = vld [vmem:[%s989_s24] ss:$0 sm:$0xff] }
0x1b59   : > { %v4796_v21 = vsel %vm1010_vm0, %v4794_v48, 0.0 }
0x1b5a   : > { %4797 = vadd.xlane.f32.xlu0 %v4796_v21 }
0x1b5e   : > { %4800 = vadd.xlane.f32.xlu0 %v4799_v23 }
0x1be3   : > { %v4798_v36 = vpop.xlane.xlu0 %4797 }
0x1be4   : > { %v4802_v37 = vmul.f32 0.0625, %v4798_v36 }
0x1be6   : > { %v4804_v31 = vadd.f32 1e-05, %v4802_v37 }
0x1be7   : > { %v4801_v17 = vpop.xlane.xlu0 %4800 }
0x1be8   : > { %5997 = vrsqrt.f32 %v4804_v31  ;;  %v4803_v38 = vmul.f32 0.0625, %v4801_v17 }
0x1bea   : > { %v4805_v60 = vadd.f32 1e-05, %v4803_v38 }
0x1bec   : > { %5999 = vrsqrt.f32 %v4805_v60 }
0x1bf5   : > { %v5998_v63 = vpop.eup %5997 }
0x1bf6   : > { %v4808_v40 = vmul.f32 %v5998_v63, %v4792_v1  ;;  %v5496_v1 = vld [vmem:[%s986_s27] ss:$0 sm:$0xff] }
0x1bf8   : > { %v4816_v42 = vmul.f32 %v5476_v39, %v4808_v40 }
0x1bf9   : > { %v6000_v34 = vpop.eup %5999 }
0x1bfa   : > { %v4809_v44 = vmul.f32 %v6000_v34, %v4793_v20  ;;  %v4824_v8 = vadd.f32 %v5477_v41, %v4816_v42 }
0x1bfc   : > { %v4817_v45 = vmul.f32 %v5476_v39, %v4809_v44  ;;  %5879 = vmatprep.mubr.msk.f32.mxu1 %vm1010_vm0, %v4824_v8 }
0x1bfe   : > { %v4825_v47 = vadd.f32 %v5477_v41, %v4817_v45 }
0x1c00   : > { %5880 = vmatmul.mubr.msk.f32.vlgmr.msra.gmra.mxu1 %vm1010_vm0, %v4825_v47 }
0x1cc0   : > { %v5881_v55 = vpop.f32.mrf.mxu1 }
0x1cc1   : > { %v4915_v50 = vadd.f32 %v5881_v55, %v5481_v54 }
0x1cc2   : > { %v4909_v56 = vpop.f32.mrf.mxu1 }
0x1cc3   : > { %v4910_v57 = vadd.f32 %v5481_v54, %v4909_v56  ;;  %v4919_v59 = vmax.f32 %v4915_v50, 0.0 }
0x1cc5   : > { %v4918_v58 = vmax.f32 %v4910_v57, 0.0 }
0x1cc7   : > { %5898 = vmatprep.mubr.msk.f32.mxu0 %vm2938_vm5, %v4918_v58 }
0x1cc8   : > { %5899 = vmatmul.mubr.msk.f32.vlgmr.msra.gmra.mxu0 %vm2938_vm5, %v4919_v59 }
0x1d88   : > { %v5900_v24 = vpop.f32.mrf.mxu0 }
0x1d89   : > { %v5015_v29 = vadd.f32 %v5900_v24, %v5493_v28 }
0x1d8a   : > { %v5009_v62 = vpop.f32.mrf.mxu0 }
0x1d8b   : > { %v5019_v0 = vadd.f32 %v5015_v29, %v6708_v15  ;;  %v5010_v2 = vadd.f32 %v5493_v28, %v5009_v62 }
0x1d8d   : > { %v5018_v3 = vadd.f32 %v5010_v2, %v6711_v12  ;;  %v5025_v5 = vsel %vm1010_vm0, %v5019_v0, 0.0 }
0x1d8e   : > { %5026 = vadd.xlane.f32.xlu1 %v5025_v5 }
0x1d8f   : > { %v5022_v4 = vsel %vm1010_vm0, %v5018_v3, 0.0 }
0x1d90   : > { %5023 = vadd.xlane.f32.xlu0 %v5022_v4 }
0x1e17   : > { %v5027_v7 = vpop.xlane.xlu1 %5026 }
0x1e18   : > { %v5029_v6 = vmul.f32 0.0625, %v5027_v7 }
0x1e19   : > { %v5024_v32 = vpop.xlane.xlu0 %5023 }
0x1e1a   : > { %v5031_v46 = vsub.f32 %v5019_v0, %v5029_v6  ;;  %v5028_v43 = vmul.f32 0.0625, %v5024_v32 }
0x1e1c   : > { %v5030_v9 = vsub.f32 %v5018_v3, %v5028_v43  ;;  %v5033_v11 = vmul.f32 %v5031_v46, %v5031_v46 }
0x1e1e   : > { %v5037_v15 = vsel %vm1010_vm0, %v5033_v11, 0.0  ;;  %v5032_v16 = vmul.f32 %v5030_v9, %v5030_v9 }
0x1e1f   : > { %5038 = vadd.xlane.f32.xlu1 %v5037_v15 }
0x1e20   : > { %v5034_v12 = vsel %vm1010_vm0, %v5032_v16, 0.0 }
0x1e21   : > { %5035 = vadd.xlane.f32.xlu0 %v5034_v12 }
0x1ea8   : > { %v5039_v13 = vpop.xlane.xlu1 %5038 }
0x1ea9   : > { %v5041_v14 = vmul.f32 0.0625, %v5039_v13 }
0x1eaa   : > { %v5036_v10 = vpop.xlane.xlu0 %5035 }
0x1eab   : > { %v5043_v18 = vadd.f32 1e-05, %v5041_v14  ;;  %v5040_v19 = vmul.f32 0.0625, %v5036_v10 }
0x1ead   : > { %6001 = vrsqrt.f32 %v5043_v18  ;;  %v5042_v61 = vadd.f32 1e-05, %v5040_v19 }
0x1eaf   : > { %6003 = vrsqrt.f32 %v5042_v61 }
0x1eba   : > { %v6002_v20 = vpop.eup %6001 }
0x1ebb   : > { %v5047_v48 = vmul.f32 %v6002_v20, %v5031_v46 }
0x1ebc   : > { %v6004_v21 = vpop.eup %6003 }
0x1ebd   : > { %v5055_v23 = vmul.f32 %v5496_v1, %v5047_v48  ;;  %v5046_v25 = vmul.f32 %v6004_v21, %v5030_v9 }
0x1ebf   : > { %v5063_v26 = vadd.f32 %v5497_v22, %v5055_v23  ;;  %v5054_v27 = vmul.f32 %v5496_v1, %v5046_v25 }
0x1ec1   : > { %5065 = vst.msk [vmem:[%s994_s0 + $0x8] sm:$0xff] %vm1010_vm0, %v5063_v26  ;;  %v5062_v30 = vadd.f32 %v5497_v22, %v5054_v27 }
0x1ec3   : > { %5064 = vst.msk [vmem:[%s994_s0] sm:$0xff] %vm1010_vm0, %v5062_v30 }
0x1ec4 PF: > { %s31_s2 = sadd.s32 1, %s6011_s2  }
0x1ec5   : > { %p28_p4 = scmp.ge.s32.totalorder %s31_s2, 6  }
0x1ec7   :  { %30 = sbr.rel (!%p28_p4) target bundleno = 12 (0xc), region = 207 }

// kernel: mag_forward.3
= control target key start
LH: loop header
LB: loop body
LE: loop exit
PB: predicated region body
PF: predicated region fallthrough
CT: control target
= control target key end

     0   :  { %11 = vsyncpa [#allocation3], 0  ;;  %s8190_s0 = inlined_call_operand.vmem [shape: f32[16,96], index: 0, kind: input, shape index: {}]   ;;  %s8191_s1 = inlined_call_operand.vmem [shape: f32[96,192], index: 1, kind: input, shape index: {}]   ;;  %s8192_s2 = inlined_call_operand.hbm [shape: f32[5,64,192], index: 2, kind: input, shape index: {}]   ;;  %s8193_s3 = inlined_call_operand.hbm [shape: f32[6,64,192], index: 3, kind: input, shape index: {}]   ;;  %s8194_s4 = inlined_call_operand.hbm [shape: f32[6,1,192], index: 4, kind: input, shape index: {}]   ;;  %s8195_s5 = inlined_call_operand.hbm [shape: f32[6,1,64], index: 5, kind: input, shape index: {}]   ;;  %s8196_s6 = inlined_call_operand.vmem [shape: f32[2,512], index: 6, kind: output, shape index: {}]  }
   0x1   :  { %12 = vsyncpa [#allocation5], 0 }
   0x2   :  { %13 = vsyncpa [#allocation8], 0  ;;  %s6360_s21 = smov [#allocation4]   ;;  %s6361_s23 = smov [#allocation2]  }
   0x3   :  { %s35_s22 = sshll.u32 %s6360_s21, 4  ;;  %s23_s24 = sshll.u32 %s6361_s23, 4  ;;  %s36_s22 = int_to_ptr.vmem [resolvable:$true] %s35_s22  ;;  %s24_s24 = int_to_ptr.vmem [resolvable:$true] %s23_s24 }
   0x4   :  { %s6282_s25 = scalar_lea.vmem %s36_s22, 12288  ;;  %p6287_p1 = scmp.lt.s32.totalorder %s36_s22, %s36_s22 }
   0x5   :  { %p6283_p0 = scmp.ne.s32.totalorder %s36_s22, %s6282_s25  ;;  %p6288_p2 = scmp.lt.s32.totalorder %s6282_s25, %s6282_s25 }
   0x7   :  { %p6289_p3 = por %p6288_p2, %p6287_p1 }
   0x9   :  { %p6290_p4 = pnand %p6289_p3, %p6283_p0 }
   0xb   :  { %6293 = shalt.err (!%p6290_p4)
}
   0xc   :  { %s6362_s26 = smov 256   ;;  %s6363_s27 = smov 16  }
   0xd   :  { %41 = dma.hbm_to_vmem [thread:$0]  %s8193_s3, 12288, %s36_s22, [#allocation5], %s6362_s26, %s6362_s26, %s6363_s27  }
   0xe   :  { %s6302_s30 = scalar_lea.vmem %s24_s24, 10240  ;;  %p6307_p6 = scmp.lt.s32.totalorder %s24_s24, %s24_s24 }
   0xf   :  { %p6303_p5 = scmp.ne.s32.totalorder %s24_s24, %s6302_s30  ;;  %p6308_p7 = scmp.lt.s32.totalorder %s6302_s30, %s6302_s30 }
  0x11   :  { %p6309_p8 = por %p6308_p7, %p6307_p6 }
  0x13   :  { %p6310_p9 = pnand %p6309_p8, %p6303_p5 }
  0x15   :  { %6313 = shalt.err (!%p6310_p9)
}
  0x16   :  { %29 = dma.hbm_to_vmem [thread:$0]  %s8192_s2, 10240, %s24_s24, [#allocation3], %s6362_s26, %s6362_s26, %s6363_s27  }
  0x17   :  { %s6364_s9 = smov [#allocation6]  }
  0x18   :  { %s47_s10 = sshll.u32 %s6364_s9, 4  ;;  %s48_s10 = int_to_ptr.vmem [resolvable:$true] %s47_s10 }
  0x19   :  { %s6322_s11 = scalar_lea.vmem %s48_s10, 192  ;;  %p6327_p11 = scmp.lt.s32.totalorder %s48_s10, %s48_s10 }
  0x1a   :  { %p6323_p10 = scmp.ne.s32.totalorder %s48_s10, %s6322_s11  ;;  %p6328_p12 = scmp.lt.s32.totalorder %s6322_s11, %s6322_s11 }
  0x1c   :  { %p6329_p13 = por %p6328_p12, %p6327_p11 }
  0x1e   :  { %p6330_p0 = pnand %p6329_p13, %p6323_p10 }
  0x20   :  { %6333 = shalt.err (!%p6330_p0)
}
  0x21   :  { %s6365_s3 = smov 32   ;;  %s6366_s12 = smov 2  }
  0x22   :  { %53 = dma.hbm_to_vmem [thread:$0]  %s8194_s4, 192, %s48_s10, [#allocation5], %s6365_s3, %s6365_s3, %s6366_s12  }
  0x23   :  { %s6367_s15 = smov [#allocation7]  }
  0x24   :  { %s59_s16 = sshll.u32 %s6367_s15, 4  ;;  %s60_s16 = int_to_ptr.vmem [resolvable:$true] %s59_s16 }
  0x25   :  { %s6342_s2 = scalar_lea.vmem %s60_s16, 96  ;;  %p6347_p2 = scmp.lt.s32.totalorder %s60_s16, %s60_s16 }
  0x26   :  { %p6343_p1 = scmp.ne.s32.totalorder %s60_s16, %s6342_s2  ;;  %p6348_p3 = scmp.lt.s32.totalorder %s6342_s2, %s6342_s2 }
  0x28   :  { %p6349_p4 = por %p6348_p3, %p6347_p2 }
  0x2a   :  { %p6350_p5 = pnand %p6349_p4, %p6343_p1 }
  0x2c   :  { %6353 = shalt.err (!%p6350_p5)
}
  0x2d   :  { %s6368_s17 = smov 1  }
  0x2e   :  { %65 = dma.hbm_to_vmem [thread:$0]  %s8195_s5, 96, %s60_s16, [#allocation8], %s6363_s27, %s6363_s27, %s6368_s17  }
  0x2f   :  { %6354 = dma.done.wait [#allocation3], 10240  }
  0x30   :  { %6355 = vsyncadd [#allocation3], 4294957056 }
  0x31   :  { %6356 = dma.done.wait [#allocation5], 12480  }
  0x32   :  { %6357 = vsyncadd [#allocation5], 4294954816 }
  0x33   :  { %6358 = dma.done.wait [#allocation8], 96  }
  0x34   :  { %6359 = vsyncadd [#allocation8], 4294967200  ;;  %v6369_v0 = vmov 0.0   ;;  %v103_v1 = vld [vmem:[%s8191_s1 + $0xb8] sm:$0xff]  ;;  %v102_v2 = vld [vmem:[%s8191_s1 + $0xb0] sm:$0xff]  ;;  %vm116_vm0 = vcmask 785408   ;;  %v106_v42 = vlaneseq }
  0x35   :  { %187 = vmatprep.mubr.f32.mxu0 %v6369_v0  ;;  %291 = vmatprep.mubr.f32.mxu1 %v6369_v0  ;;  %v101_v3 = vld [vmem:[%s8191_s1 + $0xa8] sm:$0xff]  ;;  %v100_v4 = vld [vmem:[%s8191_s1 + $0xa0] sm:$0xff]  ;;  %v99_v5 = vld [vmem:[%s8191_s1 + $0x98] sm:$0xff]  ;;  %vm223_vm1 = vcmask 523264   ;;  %vm1036_vm2 = vcmask 1041408   ;;  %vm1038_vm3 = vcmask 1043456  }
  0x36   :  { %131 = vmatprep.subr.mxu0 %v103_v1  ;;  %v98_v6 = vld [vmem:[%s8191_s1 + $0x90] sm:$0xff]  ;;  %v6443_v7 = vld [vmem:[#allocation4 + $0x78] sm:$0xff]  ;;  %v97_v9 = vld [vmem:[%s8191_s1 + $0x88] sm:$0xff]  ;;  %v6586_v43 = vshrl.u32 %v106_v42, 7  ;;  %vm1040_vm4 = vcmask 1045504  }
  0x37   :  { %132 = vmatpush1.msra.mxu0 %v102_v2  ;;  %v6445_v8 = vld [vmem:[#allocation4 + $0x70] sm:$0xff]  ;;  %243 = vmatprep.subr.mxu1 %v6443_v7  ;;  %v6451_v10 = vld [vmem:[#allocation4 + $0x68] sm:$0xff]  ;;  %v96_v11 = vld [vmem:[%s8191_s1 + $0x80] sm:$0xff] }
  0x38   :  { %133 = vmatprep.subr.mxu0 %v101_v3  ;;  %244 = vmatpush1.msra.mxu1 %v6445_v8  ;;  %v6457_v12 = vld [vmem:[#allocation4 + $0x60] sm:$0xff]  ;;  %v6459_v13 = vld [vmem:[#allocation4 + $0x58] sm:$0xff]  ;;  %v6465_v15 = vld [vmem:[#allocation4 + $0x50] sm:$0xff]  ;;  %v6589_v44 = vsub.s32 0, %v6586_v43  ;;  %v6599_v54 = vsub.s32 1, %v6586_v43 }
  0x39   :  { %134 = vmatpush1.msra.mxu0 %v100_v4  ;;  %v95_v14 = vld [vmem:[%s8191_s1 + $0x78] sm:$0xff]  ;;  %245 = vmatprep.subr.mxu1 %v6451_v10  ;;  %v94_v16 = vld [vmem:[%s8191_s1 + $0x70] sm:$0xff]  ;;  %v6471_v17 = vld [vmem:[#allocation4 + $0x48] sm:$0xff] }
  0x3a   :  { %135 = vmatprep.subr.mxu0 %v99_v5  ;;  %246 = vmatpush1.msra.mxu1 %v6457_v12  ;;  %v93_v18 = vld [vmem:[%s8191_s1 + $0x68] sm:$0xff]  ;;  %v6477_v19 = vld [vmem:[#allocation4 + $0x40] sm:$0xff]  ;;  %v6483_v21 = vld [vmem:[#allocation4 + $0x38] sm:$0xff] }
  0x3b   :  { %136 = vmatpush1.msra.mxu0 %v98_v6  ;;  %247 = vmatprep.subr.mxu1 %v6459_v13  ;;  %v92_v20 = vld [vmem:[%s8191_s1 + $0x60] sm:$0xff]  ;;  %v91_v22 = vld [vmem:[%s8191_s1 + $0x58] sm:$0xff]  ;;  %v6489_v23 = vld [vmem:[#allocation4 + $0x30] sm:$0xff] }
  0x3c   :  { %137 = vmatprep.subr.mxu0 %v97_v9  ;;  %248 = vmatpush1.msra.mxu1 %v6465_v15  ;;  %v90_v24 = vld [vmem:[%s8191_s1 + $0x50] sm:$0xff]  ;;  %v6495_v25 = vld [vmem:[#allocation4 + $0x28] sm:$0xff]  ;;  %v6501_v27 = vld [vmem:[#allocation4 + $0x20] sm:$0xff] }
  0x3d   :  { %138 = vmatpush1.msra.mxu0 %v96_v11  ;;  %249 = vmatprep.subr.mxu1 %v6471_v17  ;;  %v89_v26 = vld [vmem:[%s8191_s1 + $0x48] sm:$0xff]  ;;  %v88_v28 = vld [vmem:[%s8191_s1 + $0x40] sm:$0xff]  ;;  %v6507_v29 = vld [vmem:[#allocation4 + $0x18] sm:$0xff] }
  0x3e   :  { %139 = vmatprep.subr.mxu0 %v95_v14  ;;  %250 = vmatpush1.msra.mxu1 %v6477_v19  ;;  %v87_v30 = vld [vmem:[%s8191_s1 + $0x38] sm:$0xff]  ;;  %v6513_v31 = vld [vmem:[#allocation4 + $0x10] sm:$0xff]  ;;  %v6519_v33 = vld [vmem:[#allocation4 + $0x8] sm:$0xff] }
  0x3f   :  { %140 = vmatpush1.msra.mxu0 %v94_v16  ;;  %251 = vmatprep.subr.mxu1 %v6483_v21  ;;  %v86_v32 = vld [vmem:[%s8191_s1 + $0x30] sm:$0xff]  ;;  %v85_v34 = vld [vmem:[%s8191_s1 + $0x28] sm:$0xff]  ;;  %v6525_v35 = vld [vmem:[#allocation4] sm:$0xff] }
  0x40   :  { %141 = vmatprep.subr.mxu0 %v93_v18  ;;  %252 = vmatpush1.msra.mxu1 %v6489_v23  ;;  %v84_v36 = vld [vmem:[%s8191_s1 + $0x20] sm:$0xff]  ;;  %v83_v37 = vld [vmem:[%s8191_s1 + $0x18] sm:$0xff]  ;;  %v82_v38 = vld [vmem:[%s8191_s1 + $0x10] sm:$0xff] }
  0x41   :  { %142 = vmatpush1.msra.mxu0 %v92_v20  ;;  %253 = vmatprep.subr.mxu1 %v6495_v25  ;;  %v81_v39 = vld [vmem:[%s8191_s1 + $0x8] sm:$0xff]  ;;  %v80_v40 = vld [vmem:[%s8191_s1] sm:$0xff]  ;;  %s6370_s1 = smov 64  }
  0x42   :  { %143 = vmatprep.subr.mxu0 %v91_v22  ;;  %254 = vmatpush1.msra.mxu1 %v6501_v27  ;;  %v78_v41 = vld [vmem:[%s8190_s0] sm:$0xff]  ;;  %v6601_v55 = vld [vmem:[#allocation7] ss:$0 sm:$0xff] }
  0x43   :  { %144 = vmatpush1.msra.mxu0 %v90_v24  ;;  %255 = vmatprep.subr.mxu1 %v6507_v29  ;;  %v104_v45 = vld [vmem:[#allocation6] sm:$0x3] }
  0x44   :  { %145 = vmatprep.subr.mxu0 %v89_v26  ;;  %256 = vmatpush1.msra.mxu1 %v6513_v31  ;;  %v6592_v46 = vrot.slane %v104_v45, %v6589_v44  ;;  %v6604_v57 = vrot.slane %v104_v45, %v6599_v54 }
  0x45   :  { %146 = vmatpush1.msra.mxu0 %v88_v28  ;;  %257 = vmatprep.subr.mxu1 %v6519_v33 }
  0x46   :  { %147 = vmatprep.subr.mxu0 %v87_v30  ;;  %258 = vmatpush1.msra.mxu1 %v6525_v35 }
  0x47   :  { %148 = vmatpush1.msra.mxu0 %v86_v32  ;;  %292 = vmatmul.mubr.f32.vlgmr.msra.gmra.mxu1 %v6369_v0 }
  0x48   :  { %149 = vmatprep.subr.mxu0 %v85_v34  ;;  %338 = vmatprep.subr.mxu1 %v6443_v7 }
  0x49   :  { %150 = vmatpush1.msra.mxu0 %v84_v36  ;;  %339 = vmatpush1.msra.mxu1 %v6445_v8  ;;  %v79_v36 = vld [vmem:[%s8190_s0 + $0x8] sm:$0xff] }
  0x4a   :  { %151 = vmatprep.subr.mxu0 %v83_v37  ;;  %340 = vmatprep.subr.mxu1 %v6451_v10 }
  0x4b   :  { %152 = vmatpush1.msra.mxu0 %v82_v38  ;;  %341 = vmatpush1.msra.mxu1 %v6457_v12 }
  0x4c   :  { %153 = vmatprep.subr.mxu0 %v81_v39  ;;  %342 = vmatprep.subr.mxu1 %v6459_v13 }
  0x4d   :  { %154 = vmatpush1.msra.mxu0 %v80_v40  ;;  %343 = vmatpush1.msra.mxu1 %v6465_v15 }
  0x4e   :  { %5866 = vmatmul.mubr.msk.f32.vlgmr.msra.gmra.mxu0 %vm116_vm0, %v78_v41  ;;  %386 = vmatprep.mubr.f32.mxu1 %v6369_v0 }
  0x4f   :  { %344 = vmatprep.subr.mxu1 %v6471_v17  ;;  %442 = vmatprep.subr.mxu0 %v6443_v7 }
  0x50   :  { %345 = vmatpush1.msra.mxu1 %v6477_v19  ;;  %443 = vmatpush1.msra.mxu0 %v6445_v8 }
  0x51   :  { %346 = vmatprep.subr.mxu1 %v6483_v21  ;;  %444 = vmatprep.subr.mxu0 %v6451_v10 }
  0x52   :  { %347 = vmatpush1.msra.mxu1 %v6489_v23  ;;  %445 = vmatpush1.msra.mxu0 %v6457_v12 }
  0x53   :  { %348 = vmatprep.subr.mxu1 %v6495_v25  ;;  %446 = vmatprep.subr.mxu0 %v6459_v13 }
  0x54   :  { %349 = vmatpush1.msra.mxu1 %v6501_v27  ;;  %447 = vmatpush1.msra.mxu0 %v6465_v15 }
  0x55   :  { %350 = vmatprep.subr.mxu1 %v6507_v29  ;;  %448 = vmatprep.subr.mxu0 %v6471_v17 }
  0x56   :  { %351 = vmatpush1.msra.mxu1 %v6513_v31  ;;  %449 = vmatpush1.msra.mxu0 %v6477_v19 }
  0x57   :  { %352 = vmatprep.subr.mxu1 %v6519_v33  ;;  %450 = vmatprep.subr.mxu0 %v6483_v21 }
  0x58   :  { %353 = vmatpush1.msra.mxu1 %v6525_v35  ;;  %193 = vmatprep.mubr.f32.mxu0 %v6369_v0 }
  0x59   :  { %451 = vmatpush1.msra.mxu0 %v6489_v23  ;;  %546 = vmatprep.subr.mxu1 %v6443_v7 }
  0x5a   :  { %452 = vmatprep.subr.mxu0 %v6495_v25  ;;  %5867 = vmatmul.mubr.msk.f32.gmra.mxu0 %vm116_vm0, %v79_v36 }
  0x5b   :  { %453 = vmatpush1.msra.mxu0 %v6501_v27  ;;  %490 = vmatprep.mubr.f32.mxu0 %v6369_v0 }
  0x5c   :  { %454 = vmatprep.subr.mxu0 %v6507_v29 }
  0x5d   :  { %455 = vmatpush1.msra.mxu0 %v6513_v31 }
  0x5e   :  { %456 = vmatprep.subr.mxu0 %v6519_v33 }
  0x5f   :  { %457 = vmatpush1.msra.mxu0 %v6525_v35 }
  0x60   :  { %650 = vmatprep.subr.mxu0 %v6443_v7 }
 0x107   :  { %v293_v49 = vpop.f32.mrf.mxu1 }
 0x109   :  { %v295_v56 = vpop.f32.mrf.mxu1 }
 0x10a   :  { %v305_v59 = vadd.f32 %v6601_v55, %v295_v56 }
 0x10e   :  { %v189_v47 = vpop.f32.mrf.mxu0 }
 0x10f   :  { %v6595_v48 = vadd.f32 %v189_v47, %v6592_v46 }
 0x110   :  { %v191_v58 = vpop.f32.mrf.mxu0 }
 0x111   :  { %v298_v50 = vadd.f32 %v293_v49, %v6595_v48  ;;  %v6608_v61 = vadd.f32 %v191_v58, %v6604_v57 }
 0x113   :  { %v5869_v51 = vmul.f32 -1.442695, %v298_v50 }
 0x115   :  { %5986 = vpow2.f32 %v5869_v51 }
 0x11a   :  { %v6663_v50 = vpop.f32.mrf.mxu0 }
 0x11c   :  { %v6665_v51 = vpop.f32.mrf.mxu0 }
 0x122   :  { %v5987_v52 = vpop.eup %5986 }
 0x123   :  { %v302_v53 = vadd.f32 1.0, %v5987_v52 }
 0x125   :  { %5988 = vrcp.f32 %v302_v53 }
 0x132   :  { %v5989_v60 = vpop.eup %5988 }
 0x133   :  { %v306_v62 = vmul.f32 %v5989_v60, %v305_v59  ;;  %v309_v2 = vsub.f32 1.0, %v5989_v60  ;;  %v315_v4 = vmul.f32 0.0, %v5989_v60 }
 0x135   :  { %v307_v63 = vadd.f32 %v306_v62, %v6608_v61 }
 0x137   :  { %5990 = vtanh.f32 %v307_v63 }
 0x144   :  { %v5991_v1 = vpop.eup %5990 }
 0x145   :  { %311 = vrot.lane.b32.xlu0 %v5991_v1, %s6370_s1 }
 0x1b7   :  { %v312_v3 = vpop.permute.xlu0 %311 }
 0x1b8   :  { %v314_v5 = vmul.f32 %v312_v3, %v309_v2 }
 0x1ba   :  { %v6612_v6 = vadd.f32 %v315_v4, %v314_v5 }
 0x1bc   :  { %318 = vrot.lane.b32.xlu0 %v6612_v6, %s6370_s1  ;;  %v416_v39 = vrot.slane %v6612_v6, 6 }
 0x22e   :  { %v319_v9 = vpop.permute.xlu0 %318 }
 0x22f   :  { %5870 = vmatmul.mubr.msk.f32.vlgmr.msra.gmra.mxu1 %vm223_vm1, %v319_v9 }
 0x230   :  { %547 = vmatpush1.msra.mxu1 %v6445_v8  ;;  %594 = vmatprep.mubr.f32.mxu1 %v6369_v0 }
 0x231   :  { %548 = vmatprep.subr.mxu1 %v6451_v10 }
 0x232   :  { %549 = vmatpush1.msra.mxu1 %v6457_v12 }
 0x233   :  { %550 = vmatprep.subr.mxu1 %v6459_v13 }
 0x234   :  { %551 = vmatpush1.msra.mxu1 %v6465_v15 }
 0x235   :  { %552 = vmatprep.subr.mxu1 %v6471_v17 }
 0x236   :  { %553 = vmatpush1.msra.mxu1 %v6477_v19 }
 0x237   :  { %554 = vmatprep.subr.mxu1 %v6483_v21 }
 0x238   :  { %555 = vmatpush1.msra.mxu1 %v6489_v23 }
 0x239   :  { %556 = vmatprep.subr.mxu1 %v6495_v25 }
 0x23a   :  { %557 = vmatpush1.msra.mxu1 %v6501_v27 }
 0x23b   :  { %558 = vmatprep.subr.mxu1 %v6507_v29 }
 0x23c   :  { %559 = vmatpush1.msra.mxu1 %v6513_v31 }
 0x23d   :  { %560 = vmatprep.subr.mxu1 %v6519_v33 }
 0x23e   :  { %561 = vmatpush1.msra.mxu1 %v6525_v35 }
 0x23f   :  { %746 = vmatprep.subr.mxu1 %v6443_v7 }
 0x2ef   :  { %v388_v11 = vpop.f32.mrf.mxu1 }
 0x2f0   :  { %v394_v14 = vrot.slane %v388_v11, 6 }
 0x2f1   :  { %v390_v24 = vpop.f32.mrf.mxu1 }
 0x2f2   :  { %v396_v16 = vadd.f32 %v394_v14, %v6595_v48  ;;  %v403_v26 = vadd.f32 %v6601_v55, %v390_v24 }
 0x2f4   :  { %v5871_v18 = vmul.f32 -1.442695, %v396_v16  ;;  %v405_v28 = vrot.slane %v403_v26, 6 }
 0x2f6   :  { %5992 = vpow2.f32 %v5871_v18 }
 0x303   :  { %v5993_v20 = vpop.eup %5992 }
 0x304   :  { %v400_v22 = vadd.f32 1.0, %v5993_v20 }
 0x306   :  { %5994 = vrcp.f32 %v400_v22 }
 0x313   :  { %v5995_v30 = vpop.eup %5994 }
 0x314   :  { %v407_v32 = vmul.f32 %v5995_v30, %v405_v28  ;;  %v410_v38 = vsub.f32 1.0, %v5995_v30  ;;  %v418_v42 = vmul.f32 %v5995_v30, %v416_v39 }
 0x316   :  { %v408_v34 = vadd.f32 %v407_v32, %v6608_v61 }
 0x318   :  { %5996 = vtanh.f32 %v408_v34 }
 0x325   :  { %v5997_v37 = vpop.eup %5996 }
 0x326   :  { %412 = vrot.lane.b32.xlu1 %v5997_v37, %s6370_s1 }
 0x398   :  { %v413_v40 = vpop.permute.xlu1 %412 }
 0x399   :  { %v415_v41 = vmul.f32 %v413_v40, %v410_v38 }
 0x39b   :  { %v419_v45 = vadd.f32 %v418_v42, %v415_v41 }
 0x39d   :  { %v421_v47 = vrot.slane %v419_v45, 2  ;;  %v520_v2 = vrot.slane %v419_v45, 6  ;;  %v1037_v22 = vsel %vm1036_vm2, %v6612_v6, %v419_v45 }
 0x39f   :  { %422 = vrot.lane.b32.xlu1 %v421_v47, %s6370_s1 }
 0x411   :  { %v423_v49 = vpop.permute.xlu1 %422 }
 0x412   :  { %5872 = vmatmul.mubr.msk.f32.vlgmr.msra.gmra.mxu0 %vm223_vm1, %v423_v49 }
 0x413   :  { %651 = vmatpush1.msra.mxu0 %v6445_v8  ;;  %698 = vmatprep.mubr.f32.mxu0 %v6369_v0 }
 0x414   :  { %652 = vmatprep.subr.mxu0 %v6451_v10 }
 0x415   :  { %653 = vmatpush1.msra.mxu0 %v6457_v12 }
 0x416   :  { %654 = vmatprep.subr.mxu0 %v6459_v13 }
 0x417   :  { %655 = vmatpush1.msra.mxu0 %v6465_v15 }
 0x418   :  { %656 = vmatprep.subr.mxu0 %v6471_v17 }
 0x419   :  { %657 = vmatpush1.msra.mxu0 %v6477_v19 }
 0x41a   :  { %658 = vmatprep.subr.mxu0 %v6483_v21 }
 0x41b   :  { %659 = vmatpush1.msra.mxu0 %v6489_v23 }
 0x41c   :  { %660 = vmatprep.subr.mxu0 %v6495_v25 }
 0x41d   :  { %661 = vmatpush1.msra.mxu0 %v6501_v27 }
 0x41e   :  { %662 = vmatprep.subr.mxu0 %v6507_v29 }
 0x41f   :  { %663 = vmatpush1.msra.mxu0 %v6513_v31 }
 0x420   :  { %664 = vmatprep.subr.mxu0 %v6519_v33 }
 0x421   :  { %665 = vmatpush1.msra.mxu0 %v6525_v35 }
 0x422   :  { %850 = vmatprep.subr.mxu0 %v6443_v7 }
 0x4d2   :  { %v492_v52 = vpop.f32.mrf.mxu0 }
 0x4d3   :  { %v498_v53 = vrot.slane %v492_v52, 4 }
 0x4d4   :  { %v494_v62 = vpop.f32.mrf.mxu0 }
 0x4d5   :  { %v500_v56 = vadd.f32 %v498_v53, %v6595_v48  ;;  %v507_v63 = vadd.f32 %v6601_v55, %v494_v62 }
 0x4d7   :  { %v5873_v58 = vmul.f32 -1.442695, %v500_v56  ;;  %v509_v1 = vrot.slane %v507_v63, 4 }
 0x4d9   :  { %5998 = vpow2.f32 %v5873_v58 }
 0x4e6   :  { %v5999_v59 = vpop.eup %5998 }
 0x4e7   :  { %v504_v60 = vadd.f32 1.0, %v5999_v59 }
 0x4e9   :  { %6000 = vrcp.f32 %v504_v60 }
 0x4f6   :  { %v6001_v3 = vpop.eup %6000 }
 0x4f7   :  { %v511_v4 = vmul.f32 %v6001_v3, %v509_v1  ;;  %v522_v5 = vmul.f32 %v6001_v3, %v520_v2  ;;  %v514_v14 = vsub.f32 1.0, %v6001_v3 }
 0x4f9   :  { %v512_v9 = vadd.f32 %v511_v4, %v6608_v61 }
 0x4fb   :  { %6002 = vtanh.f32 %v512_v9 }
 0x508   :  { %v6003_v11 = vpop.eup %6002 }
 0x509   :  { %516 = vrot.lane.b32.xlu0 %v6003_v11, %s6370_s1  ;;  %v6726_v11 = vadd.f32 %v6665_v51, %v6604_v57 }
 0x57b   :  { %v517_v16 = vpop.permute.xlu0 %516 }
 0x57c   :  { %v519_v18 = vmul.f32 %v517_v16, %v514_v14 }
 0x57e   :  { %v523_v20 = vadd.f32 %v522_v5, %v519_v18 }
 0x580   :  { %v525_v24 = vrot.slane %v523_v20, 4  ;;  %v1039_v26 = vsel %vm1038_vm3, %v1037_v22, %v523_v20  ;;  %v624_v41 = vrot.slane %v523_v20, 6 }
 0x582   :  { %526 = vrot.lane.b32.xlu1 %v525_v24, %s6370_s1 }
 0x5f4   :  { %v527_v28 = vpop.permute.xlu1 %526 }
 0x5f5   :  { %5874 = vmatmul.mubr.msk.f32.vlgmr.msra.gmra.mxu1 %vm223_vm1, %v527_v28 }
 0x5f6   :  { %747 = vmatpush1.msra.mxu1 %v6445_v8  ;;  %794 = vmatprep.mubr.f32.mxu1 %v6369_v0 }
 0x5f7   :  { %748 = vmatprep.subr.mxu1 %v6451_v10 }
 0x5f8   :  { %749 = vmatpush1.msra.mxu1 %v6457_v12 }
 0x5f9   :  { %750 = vmatprep.subr.mxu1 %v6459_v13 }
 0x5fa   :  { %751 = vmatpush1.msra.mxu1 %v6465_v15 }
 0x5fb   :  { %752 = vmatprep.subr.mxu1 %v6471_v17 }
 0x5fc   :  { %753 = vmatpush1.msra.mxu1 %v6477_v19 }
 0x5fd   :  { %754 = vmatprep.subr.mxu1 %v6483_v21 }
 0x5fe   :  { %755 = vmatpush1.msra.mxu1 %v6489_v23 }
 0x5ff   :  { %756 = vmatprep.subr.mxu1 %v6495_v25 }
 0x600   :  { %757 = vmatpush1.msra.mxu1 %v6501_v27 }
 0x601   :  { %758 = vmatprep.subr.mxu1 %v6507_v29 }
 0x602   :  { %759 = vmatpush1.msra.mxu1 %v6513_v31 }
 0x603   :  { %760 = vmatprep.subr.mxu1 %v6519_v33 }
 0x604   :  { %761 = vmatpush1.msra.mxu1 %v6525_v35 }
 0x605   :  { %954 = vmatprep.subr.mxu1 %v6443_v7 }
 0x6b5   :  { %v596_v6 = vpop.f32.mrf.mxu1 }
 0x6b6   :  { %v602_v30 = vrot.slane %v596_v6, 2 }
 0x6b7   :  { %v598_v38 = vpop.f32.mrf.mxu1 }
 0x6b8   :  { %v604_v32 = vadd.f32 %v602_v30, %v6595_v48  ;;  %v611_v39 = vadd.f32 %v6601_v55, %v598_v38  ;;  %v1057_v38 = vld [vmem:[#allocation2 + $0x60] sm:$0xff] }
 0x6ba   :  { %v5875_v34 = vmul.f32 -1.442695, %v604_v32  ;;  %v613_v40 = vrot.slane %v611_v39, 2  ;;  %v1056_v39 = vld [vmem:[#allocation2 + $0x58] sm:$0xff] }
 0x6bc   :  { %6004 = vpow2.f32 %v5875_v34  ;;  %v1060_v34 = vld [vmem:[#allocation2 + $0x78] sm:$0xff] }
 0x6c9   :  { %v6005_v36 = vpop.eup %6004 }
 0x6ca   :  { %v608_v37 = vadd.f32 1.0, %v6005_v36  ;;  %v1059_v36 = vld [vmem:[#allocation2 + $0x70] sm:$0xff] }
 0x6cc   :  { %6006 = vrcp.f32 %v608_v37  ;;  %v1058_v37 = vld [vmem:[#allocation2 + $0x68] sm:$0xff] }
 0x6d9   :  { %v6007_v42 = vpop.eup %6006 }
 0x6da   :  { %v615_v45 = vmul.f32 %v6007_v42, %v613_v40  ;;  %v626_v47 = vmul.f32 %v6007_v42, %v624_v41  ;;  %v618_v48 = vsub.f32 1.0, %v6007_v42  ;;  %v1055_v40 = vld [vmem:[#allocation2 + $0x50] sm:$0xff]  ;;  %v1054_v41 = vld [vmem:[#allocation2 + $0x48] sm:$0xff]  ;;  %v1053_v42 = vld [vmem:[#allocation2 + $0x40] sm:$0xff] }
 0x6dc   :  { %v616_v49 = vadd.f32 %v615_v45, %v6608_v61  ;;  %v6720_v61 = vadd.f32 %v6663_v50, %v6592_v46  ;;  %v1052_v45 = vld [vmem:[#allocation2 + $0x38] sm:$0xff] }
 0x6de   :  { %6008 = vtanh.f32 %v616_v49  ;;  %v1050_v49 = vld [vmem:[#allocation2 + $0x28] sm:$0xff] }
 0x6eb   :  { %v6009_v7 = vpop.eup %6008 }
 0x6ec   :  { %620 = vrot.lane.b32.xlu0 %v6009_v7, %s6370_s1  ;;  %v1049_v7 = vld [vmem:[#allocation2 + $0x20] sm:$0xff] }
 0x75e   :  { %v621_v52 = vpop.permute.xlu0 %620 }
 0x75f   :  { %v623_v53 = vmul.f32 %v621_v52, %v618_v48 }
 0x761   :  { %v627_v56 = vadd.f32 %v626_v47, %v623_v53  ;;  %v1051_v47 = vld [vmem:[#allocation2 + $0x30] sm:$0xff] }
 0x763   :  { %v629_v58 = vrot.slane %v627_v56, 6  ;;  %v6698_v59 = vsel %vm1040_vm4, %v1039_v26, %v627_v56 }
 0x765   :  { %630 = vrot.lane.b32.xlu1 %v629_v58, %s6370_s1 }
 0x7d7   :  { %v631_v60 = vpop.permute.xlu1 %630 }
 0x7d8   :  { %5876 = vmatmul.mubr.msk.f32.vlgmr.msra.gmra.mxu0 %vm223_vm1, %v631_v60 }
 0x7d9   :  { %851 = vmatpush1.msra.mxu0 %v6445_v8  ;;  %898 = vmatprep.mubr.f32.mxu0 %v6369_v0 }
 0x7da   :  { %852 = vmatprep.subr.mxu0 %v6451_v10 }
 0x7db   :  { %853 = vmatpush1.msra.mxu0 %v6457_v12 }
 0x7dc   :  { %854 = vmatprep.subr.mxu0 %v6459_v13 }
 0x7dd   :  { %855 = vmatpush1.msra.mxu0 %v6465_v15 }
 0x7de   :  { %856 = vmatprep.subr.mxu0 %v6471_v17 }
 0x7df   :  { %857 = vmatpush1.msra.mxu0 %v6477_v19 }
 0x7e0   :  { %858 = vmatprep.subr.mxu0 %v6483_v21 }
 0x7e1   :  { %859 = vmatpush1.msra.mxu0 %v6489_v23 }
 0x7e2   :  { %860 = vmatprep.subr.mxu0 %v6495_v25 }
 0x7e3   :  { %861 = vmatpush1.msra.mxu0 %v6501_v27 }
 0x7e4   :  { %862 = vmatprep.subr.mxu0 %v6507_v29 }
 0x7e5   :  { %863 = vmatpush1.msra.mxu0 %v6513_v31 }
 0x7e6   :  { %864 = vmatprep.subr.mxu0 %v6519_v33 }
 0x7e7   :  { %865 = vmatpush1.msra.mxu0 %v6525_v35 }
 0x7e8   :  { %1100 = vmatprep.subr.mxu0 %v1060_v34 }
 0x898   :  { %v700_v62 = vpop.f32.mrf.mxu0 }
 0x899   :  { %v705_v63 = vadd.f32 %v700_v62, %v6720_v61 }
 0x89a   :  { %v702_v4 = vpop.f32.mrf.mxu0 }
 0x89b   :  { %v5877_v1 = vmul.f32 -1.442695, %v705_v63  ;;  %v712_v5 = vadd.f32 %v6601_v55, %v702_v4 }
 0x89d   :  { %6010 = vpow2.f32 %v5877_v1 }
 0x8aa   :  { %v6011_v2 = vpop.eup %6010 }
 0x8ab   :  { %v709_v3 = vadd.f32 1.0, %v6011_v2 }
 0x8ad   :  { %6012 = vrcp.f32 %v709_v3 }
 0x8ba   :  { %v6013_v9 = vpop.eup %6012 }
 0x8bb   :  { %v713_v14 = vmul.f32 %v6013_v9, %v712_v5  ;;  %v716_v16 = vsub.f32 1.0, %v6013_v9  ;;  %v723_v20 = vmul.f32 %v6013_v9, %v629_v58 }
 0x8bd   :  { %v714_v46 = vadd.f32 %v713_v14, %v6726_v11  ;;  %v1048_v14 = vld [vmem:[#allocation2 + $0x18] sm:$0xff] }
 0x8bf   :  { %6014 = vtanh.f32 %v714_v46  ;;  %v1047_v46 = vld [vmem:[#allocation2 + $0x10] sm:$0xff] }
 0x8cc   :  { %v6015_v50 = vpop.eup %6014 }
 0x8cd   :  { %718 = vrot.lane.b32.xlu0 %v6015_v50, %s6370_s1  ;;  %v1046_v50 = vld [vmem:[#allocation2 + $0x8] sm:$0xff] }
 0x93f   :  { %v719_v18 = vpop.permute.xlu0 %718 }
 0x940   :  { %v721_v22 = vmul.f32 %v719_v18, %v716_v16  ;;  %v1045_v16 = vld [vmem:[#allocation2] sm:$0xff]  ;;  %v6766_v18 = vld [vmem:[#allocation4 + $0xf8] sm:$0xff] }
 0x942   :  { %v6730_v24 = vadd.f32 %v723_v20, %v721_v22 }
 0x944   :  { %726 = vrot.lane.b32.xlu1 %v6730_v24, %s6370_s1 }
 0x9b6   :  { %v727_v26 = vpop.permute.xlu1 %726 }
 0x9b7   :  { %5878 = vmatmul.mubr.msk.f32.vlgmr.msra.gmra.mxu1 %vm223_vm1, %v727_v26 }
 0x9b8   :  { %955 = vmatpush1.msra.mxu1 %v6445_v8  ;;  %1002 = vmatprep.mubr.f32.mxu1 %v6369_v0 }
 0x9b9   :  { %956 = vmatprep.subr.mxu1 %v6451_v10 }
 0x9ba   :  { %957 = vmatpush1.msra.mxu1 %v6457_v12 }
 0x9bb   :  { %958 = vmatprep.subr.mxu1 %v6459_v13 }
 0x9bc   :  { %959 = vmatpush1.msra.mxu1 %v6465_v15 }
 0x9bd   :  { %960 = vmatprep.subr.mxu1 %v6471_v17 }
 0x9be   :  { %961 = vmatpush1.msra.mxu1 %v6477_v19 }
 0x9bf   :  { %962 = vmatprep.subr.mxu1 %v6483_v21 }
 0x9c0   :  { %963 = vmatpush1.msra.mxu1 %v6489_v23 }
 0x9c1   :  { %964 = vmatprep.subr.mxu1 %v6495_v25 }
 0x9c2   :  { %965 = vmatpush1.msra.mxu1 %v6501_v27 }
 0x9c3   :  { %966 = vmatprep.subr.mxu1 %v6507_v29 }
 0x9c4   :  { %967 = vmatpush1.msra.mxu1 %v6513_v31 }
 0x9c5   :  { %968 = vmatprep.subr.mxu1 %v6519_v33 }
 0x9c6   :  { %969 = vmatpush1.msra.mxu1 %v6525_v35  ;;  %v824_v35 = vrot.slane %v6730_v24, 6 }
 0x9c7   :  { %1202 = vmatprep.subr.mxu1 %v6766_v18 }
 0xa77   :  { %v796_v8 = vpop.f32.mrf.mxu1 }
 0xa78   :  { %v802_v10 = vrot.slane %v796_v8, 6 }
 0xa79   :  { %v798_v19 = vpop.f32.mrf.mxu1 }
 0xa7a   :  { %v804_v12 = vadd.f32 %v802_v10, %v6720_v61  ;;  %v811_v21 = vadd.f32 %v6601_v55, %v798_v19 }
 0xa7c   :  { %v5879_v13 = vmul.f32 -1.442695, %v804_v12  ;;  %v813_v23 = vrot.slane %v811_v21, 6  ;;  %v6791_v21 = vld [vmem:[#allocation4 + $0xe0] sm:$0xff] }
 0xa7e   :  { %6016 = vpow2.f32 %v5879_v13 }
 0xa8b   :  { %v6017_v15 = vpop.eup %6016 }
 0xa8c   :  { %v808_v17 = vadd.f32 1.0, %v6017_v15 }
 0xa8e   :  { %6018 = vrcp.f32 %v808_v17  ;;  %v6780_v17 = vld [vmem:[#allocation4 + $0xf0] sm:$0xff] }
 0xa9b   :  { %v6019_v25 = vpop.eup %6018 }
 0xa9c   :  { %v815_v27 = vmul.f32 %v6019_v25, %v813_v23  ;;  %v818_v33 = vsub.f32 1.0, %v6019_v25  ;;  %v826_v28 = vmul.f32 %v6019_v25, %v824_v35  ;;  %v6797_v23 = vld [vmem:[#allocation4 + $0xd0] sm:$0xff]  ;;  %v6800_v25 = vld [vmem:[#allocation4 + $0xc8] sm:$0xff]  ;;  %v6815_v35 = vld [vmem:[#allocation4 + $0xa0] sm:$0xff] }
 0xa9e   :  { %v816_v29 = vadd.f32 %v815_v27, %v6726_v11  ;;  %v6803_v27 = vld [vmem:[#allocation4 + $0xc0] sm:$0xff] }
 0xaa0   :  { %6020 = vtanh.f32 %v816_v29  ;;  %v6806_v29 = vld [vmem:[#allocation4 + $0xb8] sm:$0xff] }
 0xaad   :  { %v6021_v31 = vpop.eup %6020 }
 0xaae   :  { %820 = vrot.lane.b32.xlu0 %v6021_v31, %s6370_s1  ;;  %v6809_v31 = vld [vmem:[#allocation4 + $0xb0] sm:$0xff] }
 0xb20   :  { %v821_v57 = vpop.permute.xlu0 %820 }
 0xb21   :  { %v823_v51 = vmul.f32 %v821_v57, %v818_v33  ;;  %v6812_v33 = vld [vmem:[#allocation4 + $0xa8] sm:$0xff]  ;;  %v6818_v57 = vld [vmem:[#allocation4 + $0x98] sm:$0xff] }
 0xb23   :  { %v6756_v6 = vadd.f32 %v826_v28, %v823_v51  ;;  %v6821_v51 = vld [vmem:[#allocation4 + $0x90] sm:$0xff]  ;;  %v6824_v28 = vld [vmem:[#allocation4 + $0x88] sm:$0xff] }
 0xb25   :  { %v829_v30 = vrot.slane %v6756_v6, 2  ;;  %v928_v2 = vrot.slane %v6756_v6, 6  ;;  %v1042_v13 = vsel %vm1036_vm2, %v6730_v24, %v6756_v6  ;;  %v6794_v24 = vld [vmem:[#allocation4 + $0xd8] sm:$0xff]  ;;  %v6827_v6 = vld [vmem:[#allocation4 + $0x80] sm:$0xff] }
 0xb27   :  { %830 = vrot.lane.b32.xlu1 %v829_v30, %s6370_s1 }
 0xb99   :  { %v831_v32 = vpop.permute.xlu1 %830 }
 0xb9a   :  { %5880 = vmatmul.mubr.msk.f32.vlgmr.msra.gmra.mxu0 %vm223_vm1, %v831_v32 }
 0xb9b   :  { %1148 = vmatprep.mubr.f32.mxu0 %v6369_v0  ;;  %1101 = vmatpush1.msra.mxu0 %v1059_v36 }
 0xb9c   :  { %1102 = vmatprep.subr.mxu0 %v1058_v37 }
 0xb9d   :  { %1103 = vmatpush1.msra.mxu0 %v1057_v38  ;;  %v1062_v38 = vld [vmem:[#allocation6 + $0x2] sm:$0x3] }
 0xb9e   :  { %1104 = vmatprep.subr.mxu0 %v1056_v39  ;;  %v6870_v39 = vrot.slane %v1062_v38, %v6589_v44 }
 0xb9f   :  { %1105 = vmatpush1.msra.mxu0 %v1055_v40 }
 0xba0   :  { %1106 = vmatprep.subr.mxu0 %v1054_v41 }
 0xba1   :  { %1107 = vmatpush1.msra.mxu0 %v1053_v42 }
 0xba2   :  { %1108 = vmatprep.subr.mxu0 %v1052_v45 }
 0xba3   :  { %1109 = vmatpush1.msra.mxu0 %v1051_v47 }
 0xba4   :  { %1110 = vmatprep.subr.mxu0 %v1050_v49 }
 0xba5   :  { %1111 = vmatpush1.msra.mxu0 %v1049_v7 }
 0xba6   :  { %1112 = vmatprep.subr.mxu0 %v1048_v14 }
 0xba7   :  { %1113 = vmatpush1.msra.mxu0 %v1047_v46 }
 0xba8   :  { %1114 = vmatprep.subr.mxu0 %v1046_v50 }
 0xba9   :  { %1115 = vmatpush1.msra.mxu0 %v1045_v16 }
 0xbaa   :  { %1297 = vmatprep.subr.mxu0 %v6766_v18 }
 0xc5a   :  { %v900_v48 = vpop.f32.mrf.mxu0 }
 0xc5b   :  { %v906_v52 = vrot.slane %v900_v48, 4 }
 0xc5c   :  { %v902_v62 = vpop.f32.mrf.mxu0 }
 0xc5d   :  { %v908_v53 = vadd.f32 %v906_v52, %v6720_v61  ;;  %v915_v63 = vadd.f32 %v6601_v55, %v902_v62 }
 0xc5f   :  { %v5881_v56 = vmul.f32 -1.442695, %v908_v53  ;;  %v917_v1 = vrot.slane %v915_v63, 4 }
 0xc61   :  { %6022 = vpow2.f32 %v5881_v56 }
 0xc6e   :  { %v6023_v58 = vpop.eup %6022 }
 0xc6f   :  { %v912_v60 = vadd.f32 1.0, %v6023_v58 }
 0xc71   :  { %6024 = vrcp.f32 %v912_v60 }
 0xc7e   :  { %v6025_v3 = vpop.eup %6024 }
 0xc7f   :  { %v919_v4 = vmul.f32 %v6025_v3, %v917_v1  ;;  %v930_v5 = vmul.f32 %v6025_v3, %v928_v2  ;;  %v922_v22 = vsub.f32 1.0, %v6025_v3  ;;  %v6879_v2 = vld [vmem:[#allocation7 + $0x1] ss:$0 sm:$0xff] }
 0xc81   :  { %v920_v9 = vadd.f32 %v919_v4, %v6726_v11  ;;  %v6882_v4 = vrot.slane %v1062_v38, %v6599_v54 }
 0xc83   :  { %6026 = vtanh.f32 %v920_v9 }
 0xc90   :  { %v6027_v20 = vpop.eup %6026 }
 0xc91   :  { %924 = vrot.lane.b32.xlu0 %v6027_v20, %s6370_s1 }
 0xc95   :  { %1076 = vrot.lane.b32.xlu0 %v6698_v59, %s6370_s1  ;;  %v6786_v59 = vld [vmem:[#allocation4 + $0xe8] sm:$0xff] }
 0xd03   :  { %v925_v26 = vpop.permute.xlu0 %924 }
 0xd04   :  { %v927_v8 = vmul.f32 %v925_v26, %v922_v22 }
 0xd06   :  { %v6773_v10 = vadd.f32 %v930_v5, %v927_v8 }
 0xd07   :  { %v1077_v12 = vpop.permute.xlu0 %1076 }
 0xd08   :  { %5884 = vmatmul.mubr.msk.f32.vlgmr.msra.gmra.mxu0 %vm223_vm1, %v1077_v12  ;;  %v933_v15 = vrot.slane %v6773_v10, 4  ;;  %v6784_v19 = vsel %vm1038_vm3, %v1042_v13, %v6773_v10  ;;  %v1032_v58 = vrot.slane %v6773_v10, 6 }
 0xd09   :  { %1298 = vmatpush1.msra.mxu0 %v6780_v17  ;;  %1154 = vmatprep.mubr.f32.mxu0 %v6369_v0 }
 0xd0a   :  { %934 = vrot.lane.b32.xlu1 %v933_v15, %s6370_s1  ;;  %1299 = vmatprep.subr.mxu0 %v6786_v59 }
 0xd0b   :  { %1300 = vmatpush1.msra.mxu0 %v6791_v21 }
 0xd0c   :  { %1301 = vmatprep.subr.mxu0 %v6794_v24 }
 0xd0d   :  { %1302 = vmatpush1.msra.mxu0 %v6797_v23 }
 0xd0e   :  { %1303 = vmatprep.subr.mxu0 %v6800_v25 }
 0xd0f   :  { %1304 = vmatpush1.msra.mxu0 %v6803_v27 }
 0xd10   :  { %1305 = vmatprep.subr.mxu0 %v6806_v29 }
 0xd11   :  { %1306 = vmatpush1.msra.mxu0 %v6809_v31 }
 0xd12   :  { %1307 = vmatprep.subr.mxu0 %v6812_v33 }
 0xd13   :  { %1308 = vmatpush1.msra.mxu0 %v6815_v35 }
 0xd14   :  { %1309 = vmatprep.subr.mxu0 %v6818_v57 }
 0xd15   :  { %1310 = vmatpush1.msra.mxu0 %v6821_v51 }
 0xd16   :  { %1311 = vmatprep.subr.mxu0 %v6824_v28 }
 0xd17   :  { %1312 = vmatpush1.msra.mxu0 %v6827_v6 }
 0xd18   :  { %1505 = vmatprep.subr.mxu0 %v6766_v18 }
 0xd7c   :  { %v935_v30 = vpop.permute.xlu1 %934 }
 0xd7d   :  { %5882 = vmatmul.mubr.msk.f32.vlgmr.msra.gmra.mxu1 %vm223_vm1, %v935_v30 }
 0xd7e   :  { %1203 = vmatpush1.msra.mxu1 %v6780_v17  ;;  %1250 = vmatprep.mubr.f32.mxu1 %v6369_v0 }
 0xd7f   :  { %1204 = vmatprep.subr.mxu1 %v6786_v59 }
 0xd80   :  { %1205 = vmatpush1.msra.mxu1 %v6791_v21 }
 0xd81   :  { %1206 = vmatprep.subr.mxu1 %v6794_v24 }
 0xd82   :  { %1207 = vmatpush1.msra.mxu1 %v6797_v23 }
 0xd83   :  { %1208 = vmatprep.subr.mxu1 %v6800_v25 }
 0xd84   :  { %1209 = vmatpush1.msra.mxu1 %v6803_v27 }
 0xd85   :  { %1210 = vmatprep.subr.mxu1 %v6806_v29 }
 0xd86   :  { %1211 = vmatpush1.msra.mxu1 %v6809_v31 }
 0xd87   :  { %1212 = vmatprep.subr.mxu1 %v6812_v33 }
 0xd88   :  { %1213 = vmatpush1.msra.mxu1 %v6815_v35 }
 0xd89   :  { %1214 = vmatprep.subr.mxu1 %v6818_v57 }
 0xd8a   :  { %1215 = vmatpush1.msra.mxu1 %v6821_v51 }
 0xd8b   :  { %1216 = vmatprep.subr.mxu1 %v6824_v28 }
 0xd8c   :  { %1217 = vmatpush1.msra.mxu1 %v6827_v6 }
 0xd8d   :  { %1251 = vmatmul.mubr.f32.vlgmr.msra.gmra.mxu1 %v6369_v0  ;;  %1401 = vmatprep.subr.mxu1 %v6766_v18 }
 0xd8e   :  { %1402 = vmatpush1.msra.mxu1 %v6780_v17  ;;  %1449 = vmatprep.mubr.f32.mxu1 %v6369_v0 }
 0xd8f   :  { %1403 = vmatprep.subr.mxu1 %v6786_v59 }
 0xd90   :  { %1404 = vmatpush1.msra.mxu1 %v6791_v21 }
 0xd91   :  { %1405 = vmatprep.subr.mxu1 %v6794_v24 }
 0xd92   :  { %1406 = vmatpush1.msra.mxu1 %v6797_v23 }
 0xd93   :  { %1407 = vmatprep.subr.mxu1 %v6800_v25 }
 0xd94   :  { %1408 = vmatpush1.msra.mxu1 %v6803_v27 }
 0xd95   :  { %1409 = vmatprep.subr.mxu1 %v6806_v29 }
 0xd96   :  { %1410 = vmatpush1.msra.mxu1 %v6809_v31 }
 0xd97   :  { %1411 = vmatprep.subr.mxu1 %v6812_v33 }
 0xd98   :  { %1412 = vmatpush1.msra.mxu1 %v6815_v35 }
 0xd99   :  { %1413 = vmatprep.subr.mxu1 %v6818_v57 }
 0xd9a   :  { %1414 = vmatpush1.msra.mxu1 %v6821_v51 }
 0xd9b   :  { %1415 = vmatprep.subr.mxu1 %v6824_v28 }
 0xd9c   :  { %1416 = vmatpush1.msra.mxu1 %v6827_v6 }
 0xd9d   :  { %1609 = vmatprep.subr.mxu1 %v6766_v18 }
 0xdc8   :  { %v1150_v40 = vpop.f32.mrf.mxu0 }
 0xdc9   :  { %v6873_v42 = vadd.f32 %v1150_v40, %v6870_v39 }
 0xdca   :  { %v1152_v5 = vpop.f32.mrf.mxu0 }
 0xdcb   :  { %v6886_v14 = vadd.f32 %v1152_v5, %v6882_v4 }
 0xe3d   :  { %v1004_v32 = vpop.f32.mrf.mxu1 }
 0xe3e   :  { %v1010_v34 = vrot.slane %v1004_v32, 2 }
 0xe3f   :  { %v1006_v41 = vpop.f32.mrf.mxu1 }
 0xe40   :  { %v1012_v36 = vadd.f32 %v1010_v34, %v6720_v61  ;;  %v1019_v61 = vadd.f32 %v6601_v55, %v1006_v41 }
 0xe42   :  { %v5883_v37 = vmul.f32 -1.442695, %v1012_v36  ;;  %v1021_v53 = vrot.slane %v1019_v61, 2 }
 0xe44   :  { %6028 = vpow2.f32 %v5883_v37 }
 0xe4d   :  { %v1252_v45 = vpop.f32.mrf.mxu1 }
 0xe4e   :  { %v1257_v47 = vadd.f32 %v1252_v45, %v6873_v42 }
 0xe4f   :  { %v1254_v3 = vpop.f32.mrf.mxu1 }
 0xe50   :  { %v5887_v49 = vmul.f32 -1.442695, %v1257_v47  ;;  %v1264_v55 = vadd.f32 %v6879_v2, %v1254_v3 }
 0xe51   :  { %v6029_v7 = vpop.eup %6028 }
 0xe52   :  { %v1016_v48 = vadd.f32 1.0, %v6029_v7  ;;  %6030 = vpow2.f32 %v5887_v49 }
 0xe54   :  { %6032 = vrcp.f32 %v1016_v48 }
 0xe5f   :  { %v6031_v52 = vpop.eup %6030 }
 0xe60   :  { %v1261_v56 = vadd.f32 1.0, %v6031_v52 }
 0xe61   :  { %v6033_v60 = vpop.eup %6032 }
 0xe62   :  { %v1023_v62 = vmul.f32 %v6033_v60, %v1021_v53  ;;  %6034 = vrcp.f32 %v1261_v56  ;;  %v1034_v63 = vmul.f32 %v6033_v60, %v1032_v58  ;;  %v1026_v20 = vsub.f32 1.0, %v6033_v60 }
 0xe64   :  { %v1024_v1 = vadd.f32 %v1023_v62, %v6726_v11 }
 0xe66   :  { %6036 = vtanh.f32 %v1024_v1 }
 0xe6f   :  { %v6035_v9 = vpop.eup %6034 }
 0xe70   :  { %v1265_v46 = vmul.f32 %v6035_v9, %v1264_v55  ;;  %v1268_v12 = vsub.f32 1.0, %v6035_v9  ;;  %v1274_v15 = vmul.f32 0.0, %v6035_v9 }
 0xe72   :  { %v1266_v50 = vadd.f32 %v1265_v46, %v6886_v14 }
 0xe73   :  { %v6037_v16 = vpop.eup %6036 }
 0xe74   :  { %6038 = vtanh.f32 %v1266_v50  ;;  %1028 = vrot.lane.b32.xlu1 %v6037_v16, %s6370_s1 }
 0xe81   :  { %v6039_v11 = vpop.eup %6038 }
 0xe82   :  { %1270 = vrot.lane.b32.xlu0 %v6039_v11, %s6370_s1 }
 0xee6   :  { %v1029_v22 = vpop.permute.xlu1 %1028 }
 0xee7   :  { %v1031_v26 = vmul.f32 %v1029_v22, %v1026_v20 }
 0xee9   :  { %v1035_v8 = vadd.f32 %v1034_v63, %v1031_v26 }
 0xeeb   :  { %v1044_v10 = vsel %vm1040_vm4, %v6784_v19, %v1035_v8 }
 0xeec   :  { %1078 = vrot.lane.b32.xlu1 %v1044_v10, %s6370_s1 }
 0xef4   :  { %v1271_v13 = vpop.permute.xlu0 %1270 }
 0xef5   :  { %v1273_v30 = vmul.f32 %v1271_v13, %v1268_v12 }
 0xef7   :  { %v6894_v32 = vadd.f32 %v1274_v15, %v1273_v30 }
 0xef9   :  { %1277 = vrot.lane.b32.xlu0 %v6894_v32, %s6370_s1  ;;  %v1375_v62 = vrot.slane %v6894_v32, 6 }
 0xf5e   :  { %v1079_v34 = vpop.permute.xlu1 %1078 }
 0xf5f   :  { %5885 = vmatmul.mubr.msk.f32.gmra.mxu0 %vm223_vm1, %v1079_v34 }
 0xf60   :  { %1345 = vmatprep.mubr.f32.mxu0 %v6369_v0 }
 0xf6b   :  { %v1278_v36 = vpop.permute.xlu0 %1277 }
 0xf6c   :  { %5888 = vmatmul.mubr.msk.f32.vlgmr.msra.gmra.mxu0 %vm223_vm1, %v1278_v36 }
 0xf6d   :  { %1506 = vmatpush1.msra.mxu0 %v6780_v17  ;;  %1553 = vmatprep.mubr.f32.mxu0 %v6369_v0 }
 0xf6e   :  { %1507 = vmatprep.subr.mxu0 %v6786_v59 }
 0xf6f   :  { %1508 = vmatpush1.msra.mxu0 %v6791_v21 }
 0xf70   :  { %1509 = vmatprep.subr.mxu0 %v6794_v24 }
 0xf71   :  { %1510 = vmatpush1.msra.mxu0 %v6797_v23 }
 0xf72   :  { %1511 = vmatprep.subr.mxu0 %v6800_v25 }
 0xf73   :  { %1512 = vmatpush1.msra.mxu0 %v6803_v27 }
 0xf74   :  { %1513 = vmatprep.subr.mxu0 %v6806_v29 }
 0xf75   :  { %1514 = vmatpush1.msra.mxu0 %v6809_v31 }
 0xf76   :  { %1515 = vmatprep.subr.mxu0 %v6812_v33 }
 0xf77   :  { %1516 = vmatpush1.msra.mxu0 %v6815_v35 }
 0xf78   :  { %1517 = vmatprep.subr.mxu0 %v6818_v57 }
 0xf79   :  { %1518 = vmatpush1.msra.mxu0 %v6821_v51 }
 0xf7a   :  { %1519 = vmatprep.subr.mxu0 %v6824_v28 }
 0xf7b   :  { %1520 = vmatpush1.msra.mxu0 %v6827_v6 }
 0xf7c   :  { %1705 = vmatprep.subr.mxu0 %v6766_v18 }
0x101f   :  { %v6918_v19 = vpop.f32.mrf.mxu0 }
0x1021   :  { %v6920_v37 = vpop.f32.mrf.mxu0 }
0x102c   :  { %v1347_v38 = vpop.f32.mrf.mxu0 }
0x102d   :  { %v1353_v40 = vrot.slane %v1347_v38, 6 }
0x102e   :  { %v1349_v7 = vpop.f32.mrf.mxu0 }
0x102f   :  { %v1355_v41 = vadd.f32 %v1353_v40, %v6873_v42  ;;  %v1362_v48 = vadd.f32 %v6879_v2, %v1349_v7 }
0x1031   :  { %v5889_v45 = vmul.f32 -1.442695, %v1355_v41  ;;  %v1364_v61 = vrot.slane %v1362_v48, 6 }
0x1033   :  { %6040 = vpow2.f32 %v5889_v45 }
0x1040   :  { %v6041_v47 = vpop.eup %6040 }
0x1041   :  { %v1359_v49 = vadd.f32 1.0, %v6041_v47 }
0x1043   :  { %6042 = vrcp.f32 %v1359_v49 }
0x1050   :  { %v6043_v52 = vpop.eup %6042 }
0x1051   :  { %v1366_v53 = vmul.f32 %v6043_v52, %v1364_v61  ;;  %v1369_v60 = vsub.f32 1.0, %v6043_v52  ;;  %v1377_v3 = vmul.f32 %v6043_v52, %v1375_v62 }
0x1053   :  { %v1367_v56 = vadd.f32 %v1366_v53, %v6886_v14 }
0x1055   :  { %6044 = vtanh.f32 %v1367_v56 }
0x1062   :  { %v6045_v58 = vpop.eup %6044 }
0x1063   :  { %1371 = vrot.lane.b32.xlu1 %v6045_v58, %s6370_s1 }
0x10d5   :  { %v1372_v63 = vpop.permute.xlu1 %1371 }
0x10d6   :  { %v1374_v1 = vmul.f32 %v1372_v63, %v1369_v60 }
0x10d8   :  { %v1378_v5 = vadd.f32 %v1377_v3, %v1374_v1 }
0x10da   :  { %v1380_v55 = vrot.slane %v1378_v5, 2  ;;  %v1479_v12 = vrot.slane %v1378_v5, 6  ;;  %v1995_v47 = vsel %vm1036_vm2, %v6894_v32, %v1378_v5 }
0x10dc   :  { %1381 = vrot.lane.b32.xlu0 %v1380_v55, %s6370_s1 }
0x114e   :  { %v1382_v9 = vpop.permute.xlu0 %1381 }
0x114f   :  { %5890 = vmatmul.mubr.msk.f32.vlgmr.msra.gmra.mxu1 %vm223_vm1, %v1382_v9 }
0x1150   :  { %1610 = vmatpush1.msra.mxu1 %v6780_v17  ;;  %1657 = vmatprep.mubr.f32.mxu1 %v6369_v0 }
0x1151   :  { %1611 = vmatprep.subr.mxu1 %v6786_v59 }
0x1152   :  { %1612 = vmatpush1.msra.mxu1 %v6791_v21 }
0x1153   :  { %1613 = vmatprep.subr.mxu1 %v6794_v24 }
0x1154   :  { %1614 = vmatpush1.msra.mxu1 %v6797_v23 }
0x1155   :  { %1615 = vmatprep.subr.mxu1 %v6800_v25 }
0x1156   :  { %1616 = vmatpush1.msra.mxu1 %v6803_v27 }
0x1157   :  { %1617 = vmatprep.subr.mxu1 %v6806_v29 }
0x1158   :  { %1618 = vmatpush1.msra.mxu1 %v6809_v31 }
0x1159   :  { %1619 = vmatprep.subr.mxu1 %v6812_v33 }
0x115a   :  { %1620 = vmatpush1.msra.mxu1 %v6815_v35 }
0x115b   :  { %1621 = vmatprep.subr.mxu1 %v6818_v57 }
0x115c   :  { %1622 = vmatpush1.msra.mxu1 %v6821_v51 }
0x115d   :  { %1623 = vmatprep.subr.mxu1 %v6824_v28 }
0x115e   :  { %1624 = vmatpush1.msra.mxu1 %v6827_v6 }
0x115f   :  { %1809 = vmatprep.subr.mxu1 %v6766_v18 }
0x120f   :  { %v1451_v46 = vpop.f32.mrf.mxu1 }
0x1210   :  { %v1457_v50 = vrot.slane %v1451_v46, 4 }
0x1211   :  { %v1453_v26 = vpop.f32.mrf.mxu1 }
0x1212   :  { %v1459_v16 = vadd.f32 %v1457_v50, %v6873_v42  ;;  %v1466_v8 = vadd.f32 %v6879_v2, %v1453_v26 }
0x1214   :  { %v5891_v11 = vmul.f32 -1.442695, %v1459_v16  ;;  %v1468_v10 = vrot.slane %v1466_v8, 4 }
0x1216   :  { %6046 = vpow2.f32 %v5891_v11 }
0x1223   :  { %v6047_v20 = vpop.eup %6046 }
0x1224   :  { %v1463_v22 = vadd.f32 1.0, %v6047_v20 }
0x1226   :  { %6048 = vrcp.f32 %v1463_v22 }
0x1233   :  { %v6049_v13 = vpop.eup %6048 }
0x1234   :  { %v1470_v15 = vmul.f32 %v6049_v13, %v1468_v10  ;;  %v1481_v30 = vmul.f32 %v6049_v13, %v1479_v12  ;;  %v1473_v38 = vsub.f32 1.0, %v6049_v13 }
0x1236   :  { %v1471_v34 = vadd.f32 %v1470_v15, %v6886_v14 }
0x1238   :  { %6050 = vtanh.f32 %v1471_v34 }
0x1245   :  { %v6051_v36 = vpop.eup %6050 }
0x1246   :  { %1475 = vrot.lane.b32.xlu1 %v6051_v36, %s6370_s1  ;;  %v7005_v36 = vadd.f32 %v6920_v37, %v6882_v4 }
0x12b8   :  { %v1476_v40 = vpop.permute.xlu1 %1475 }
0x12b9   :  { %v1478_v41 = vmul.f32 %v1476_v40, %v1473_v38 }
0x12bb   :  { %v1482_v45 = vadd.f32 %v1481_v30, %v1478_v41 }
0x12bd   :  { %v1484_v49 = vrot.slane %v1482_v45, 4  ;;  %v1996_v7 = vsel %vm1038_vm3, %v1995_v47, %v1482_v45  ;;  %v1583_v1 = vrot.slane %v1482_v45, 6 }
0x12bf   :  { %1485 = vrot.lane.b32.xlu0 %v1484_v49, %s6370_s1 }
0x1331   :  { %v1486_v48 = vpop.permute.xlu0 %1485 }
0x1332   :  { %5892 = vmatmul.mubr.msk.f32.vlgmr.msra.gmra.mxu0 %vm223_vm1, %v1486_v48 }
0x1333   :  { %1706 = vmatpush1.msra.mxu0 %v6780_v17  ;;  %1753 = vmatprep.mubr.f32.mxu0 %v6369_v0 }
0x1334   :  { %1707 = vmatprep.subr.mxu0 %v6786_v59 }
0x1335   :  { %1708 = vmatpush1.msra.mxu0 %v6791_v21 }
0x1336   :  { %1709 = vmatprep.subr.mxu0 %v6794_v24 }
0x1337   :  { %1710 = vmatpush1.msra.mxu0 %v6797_v23 }
0x1338   :  { %1711 = vmatprep.subr.mxu0 %v6800_v25 }
0x1339   :  { %1712 = vmatpush1.msra.mxu0 %v6803_v27 }
0x133a   :  { %1713 = vmatprep.subr.mxu0 %v6806_v29 }
0x133b   :  { %1714 = vmatpush1.msra.mxu0 %v6809_v31 }
0x133c   :  { %1715 = vmatprep.subr.mxu0 %v6812_v33 }
0x133d   :  { %1716 = vmatpush1.msra.mxu0 %v6815_v35 }
0x133e   :  { %1717 = vmatprep.subr.mxu0 %v6818_v57 }
0x133f   :  { %1718 = vmatpush1.msra.mxu0 %v6821_v51 }
0x1340   :  { %1719 = vmatprep.subr.mxu0 %v6824_v28 }
0x1341   :  { %1720 = vmatpush1.msra.mxu0 %v6827_v6 }
0x1342   :  { %1913 = vmatprep.subr.mxu0 %v6766_v18 }
0x13f2   :  { %v1555_v32 = vpop.f32.mrf.mxu0 }
0x13f3   :  { %v1561_v61 = vrot.slane %v1555_v32, 2 }
0x13f4   :  { %v1557_v60 = vpop.f32.mrf.mxu0 }
0x13f5   :  { %v1563_v52 = vadd.f32 %v1561_v61, %v6873_v42  ;;  %v1570_v62 = vadd.f32 %v6879_v2, %v1557_v60  ;;  %v2014_v60 = vld [vmem:[#allocation2 + $0xe0] sm:$0xff] }
0x13f7   :  { %v5893_v53 = vmul.f32 -1.442695, %v1563_v52  ;;  %v1572_v63 = vrot.slane %v1570_v62, 2  ;;  %v2013_v62 = vld [vmem:[#allocation2 + $0xd8] sm:$0xff] }
0x13f9   :  { %6052 = vpow2.f32 %v5893_v53  ;;  %v2017_v53 = vld [vmem:[#allocation2 + $0xf8] sm:$0xff] }
0x1406   :  { %v6053_v56 = vpop.eup %6052 }
0x1407   :  { %v1567_v58 = vadd.f32 1.0, %v6053_v56  ;;  %v2016_v56 = vld [vmem:[#allocation2 + $0xf0] sm:$0xff] }
0x1409   :  { %6054 = vrcp.f32 %v1567_v58  ;;  %v2015_v58 = vld [vmem:[#allocation2 + $0xe8] sm:$0xff] }
0x1416   :  { %v6055_v3 = vpop.eup %6054 }
0x1417   :  { %v1574_v5 = vmul.f32 %v6055_v3, %v1572_v63  ;;  %v1585_v55 = vmul.f32 %v6055_v3, %v1583_v1  ;;  %v1577_v42 = vsub.f32 1.0, %v6055_v3  ;;  %v2012_v63 = vld [vmem:[#allocation2 + $0xd0] sm:$0xff]  ;;  %v2011_v1 = vld [vmem:[#allocation2 + $0xc8] sm:$0xff]  ;;  %v2010_v3 = vld [vmem:[#allocation2 + $0xc0] sm:$0xff] }
0x1419   :  { %v1575_v9 = vadd.f32 %v1574_v5, %v6886_v14  ;;  %v6999_v14 = vadd.f32 %v6918_v19, %v6870_v39  ;;  %v2009_v5 = vld [vmem:[#allocation2 + $0xb8] sm:$0xff] }
0x141b   :  { %6056 = vtanh.f32 %v1575_v9  ;;  %v2007_v9 = vld [vmem:[#allocation2 + $0xa8] sm:$0xff] }
0x1428   :  { %v6057_v18 = vpop.eup %6056 }
0x1429   :  { %1579 = vrot.lane.b32.xlu1 %v6057_v18, %s6370_s1  ;;  %v2006_v18 = vld [vmem:[#allocation2 + $0xa0] sm:$0xff] }
0x149b   :  { %v1580_v46 = vpop.permute.xlu1 %1579 }
0x149c   :  { %v1582_v50 = vmul.f32 %v1580_v46, %v1577_v42 }
0x149e   :  { %v1586_v16 = vadd.f32 %v1585_v55, %v1582_v50  ;;  %v2008_v55 = vld [vmem:[#allocation2 + $0xb0] sm:$0xff] }
0x14a0   :  { %v1588_v11 = vrot.slane %v1586_v16, 6  ;;  %v6977_v20 = vsel %vm1040_vm4, %v1996_v7, %v1586_v16 }
0x14a2   :  { %1589 = vrot.lane.b32.xlu0 %v1588_v11, %s6370_s1 }
0x1514   :  { %v1590_v22 = vpop.permute.xlu0 %1589 }
0x1515   :  { %5894 = vmatmul.mubr.msk.f32.vlgmr.msra.gmra.mxu1 %vm223_vm1, %v1590_v22 }
0x1516   :  { %1810 = vmatpush1.msra.mxu1 %v6780_v17  ;;  %1857 = vmatprep.mubr.f32.mxu1 %v6369_v0 }
0x1517   :  { %1811 = vmatprep.subr.mxu1 %v6786_v59 }
0x1518   :  { %1812 = vmatpush1.msra.mxu1 %v6791_v21 }
0x1519   :  { %1813 = vmatprep.subr.mxu1 %v6794_v24 }
0x151a   :  { %1814 = vmatpush1.msra.mxu1 %v6797_v23 }
0x151b   :  { %1815 = vmatprep.subr.mxu1 %v6800_v25 }
0x151c   :  { %1816 = vmatpush1.msra.mxu1 %v6803_v27 }
0x151d   :  { %1817 = vmatprep.subr.mxu1 %v6806_v29 }
0x151e   :  { %1818 = vmatpush1.msra.mxu1 %v6809_v31 }
0x151f   :  { %1819 = vmatprep.subr.mxu1 %v6812_v33 }
0x1520   :  { %1820 = vmatpush1.msra.mxu1 %v6815_v35 }
0x1521   :  { %1821 = vmatprep.subr.mxu1 %v6818_v57 }
0x1522   :  { %1822 = vmatpush1.msra.mxu1 %v6821_v51 }
0x1523   :  { %1823 = vmatprep.subr.mxu1 %v6824_v28 }
0x1524   :  { %1824 = vmatpush1.msra.mxu1 %v6827_v6 }
0x1525   :  { %2057 = vmatprep.subr.mxu1 %v2017_v53 }
0x15d5   :  { %v1659_v26 = vpop.f32.mrf.mxu1 }
0x15d6   :  { %v1664_v8 = vadd.f32 %v1659_v26, %v6999_v14 }
0x15d7   :  { %v1661_v15 = vpop.f32.mrf.mxu1 }
0x15d8   :  { %v5895_v10 = vmul.f32 -1.442695, %v1664_v8  ;;  %v1671_v30 = vadd.f32 %v6879_v2, %v1661_v15 }
0x15da   :  { %6058 = vpow2.f32 %v5895_v10 }
0x15e7   :  { %v6059_v12 = vpop.eup %6058 }
0x15e8   :  { %v1668_v13 = vadd.f32 1.0, %v6059_v12 }
0x15ea   :  { %6060 = vrcp.f32 %v1668_v13 }
0x15f7   :  { %v6061_v34 = vpop.eup %6060 }
0x15f8   :  { %v1672_v38 = vmul.f32 %v6061_v34, %v1671_v30  ;;  %v1675_v40 = vsub.f32 1.0, %v6061_v34  ;;  %v1682_v45 = vmul.f32 %v6061_v34, %v1588_v11 }
0x15fa   :  { %v1673_v39 = vadd.f32 %v1672_v38, %v7005_v36  ;;  %v2005_v38 = vld [vmem:[#allocation2 + $0x98] sm:$0xff] }
0x15fc   :  { %6062 = vtanh.f32 %v1673_v39  ;;  %v2004_v39 = vld [vmem:[#allocation2 + $0x90] sm:$0xff] }
0x1609   :  { %v6063_v19 = vpop.eup %6062 }
0x160a   :  { %1677 = vrot.lane.b32.xlu1 %v6063_v19, %s6370_s1  ;;  %v2003_v19 = vld [vmem:[#allocation2 + $0x88] sm:$0xff] }
0x167c   :  { %v1678_v41 = vpop.permute.xlu1 %1677 }
0x167d   :  { %v1680_v47 = vmul.f32 %v1678_v41, %v1675_v40  ;;  %v2002_v40 = vld [vmem:[#allocation2 + $0x80] sm:$0xff]  ;;  %v7045_v41 = vld [vmem:[#allocation4 + $0x178] sm:$0xff] }
0x167f   :  { %v7009_v49 = vadd.f32 %v1682_v45, %v1680_v47 }
0x1681   :  { %1685 = vrot.lane.b32.xlu0 %v7009_v49, %s6370_s1 }
0x16f3   :  { %v1686_v7 = vpop.permute.xlu0 %1685 }
0x16f4   :  { %5896 = vmatmul.mubr.msk.f32.vlgmr.msra.gmra.mxu0 %vm223_vm1, %v1686_v7 }
0x16f5   :  { %1914 = vmatpush1.msra.mxu0 %v6780_v17  ;;  %1961 = vmatprep.mubr.f32.mxu0 %v6369_v0 }
0x16f6   :  { %1915 = vmatprep.subr.mxu0 %v6786_v59 }
0x16f7   :  { %1916 = vmatpush1.msra.mxu0 %v6791_v21 }
0x16f8   :  { %1917 = vmatprep.subr.mxu0 %v6794_v24 }
0x16f9   :  { %1918 = vmatpush1.msra.mxu0 %v6797_v23 }
0x16fa   :  { %1919 = vmatprep.subr.mxu0 %v6800_v25 }
0x16fb   :  { %1920 = vmatpush1.msra.mxu0 %v6803_v27 }
0x16fc   :  { %1921 = vmatprep.subr.mxu0 %v6806_v29 }
0x16fd   :  { %1922 = vmatpush1.msra.mxu0 %v6809_v31 }
0x16fe   :  { %1923 = vmatprep.subr.mxu0 %v6812_v33 }
0x16ff   :  { %1924 = vmatpush1.msra.mxu0 %v6815_v35 }
0x1700   :  { %1925 = vmatprep.subr.mxu0 %v6818_v57 }
0x1701   :  { %1926 = vmatpush1.msra.mxu0 %v6821_v51 }
0x1702   :  { %1927 = vmatprep.subr.mxu0 %v6824_v28 }
0x1703   :  { %1928 = vmatpush1.msra.mxu0 %v6827_v6  ;;  %v1783_v6 = vrot.slane %v7009_v49, 6 }
0x1704   :  { %2159 = vmatprep.subr.mxu0 %v7045_v41 }
0x17b4   :  { %v1755_v17 = vpop.f32.mrf.mxu0 }
0x17b5   :  { %v1761_v59 = vrot.slane %v1755_v17, 6 }
0x17b6   :  { %v1757_v27 = vpop.f32.mrf.mxu0 }
0x17b7   :  { %v1763_v21 = vadd.f32 %v1761_v59, %v6999_v14  ;;  %v1770_v29 = vadd.f32 %v6879_v2, %v1757_v27 }
0x17b9   :  { %v5897_v24 = vmul.f32 -1.442695, %v1763_v21  ;;  %v1772_v31 = vrot.slane %v1770_v29, 6  ;;  %v7070_v29 = vld [vmem:[#allocation4 + $0x160] sm:$0xff] }
0x17bb   :  { %6064 = vpow2.f32 %v5897_v24 }
0x17c8   :  { %v6065_v23 = vpop.eup %6064 }
0x17c9   :  { %v1767_v25 = vadd.f32 1.0, %v6065_v23 }
0x17cb   :  { %6066 = vrcp.f32 %v1767_v25  ;;  %v7059_v25 = vld [vmem:[#allocation4 + $0x170] sm:$0xff] }
0x17d8   :  { %v6067_v33 = vpop.eup %6066 }
0x17d9   :  { %v1774_v35 = vmul.f32 %v6067_v33, %v1772_v31  ;;  %v1777_v28 = vsub.f32 1.0, %v6067_v33  ;;  %v1785_v48 = vmul.f32 %v6067_v33, %v1783_v6  ;;  %v7076_v31 = vld [vmem:[#allocation4 + $0x150] sm:$0xff]  ;;  %v7079_v33 = vld [vmem:[#allocation4 + $0x148] sm:$0xff]  ;;  %v7094_v6 = vld [vmem:[#allocation4 + $0x120] sm:$0xff] }
0x17db   :  { %v1775_v57 = vadd.f32 %v1774_v35, %v7005_v36  ;;  %v7082_v35 = vld [vmem:[#allocation4 + $0x140] sm:$0xff] }
0x17dd   :  { %6068 = vtanh.f32 %v1775_v57  ;;  %v7085_v57 = vld [vmem:[#allocation4 + $0x138] sm:$0xff] }
0x17ea   :  { %v6069_v51 = vpop.eup %6068 }
0x17eb   :  { %1779 = vrot.lane.b32.xlu1 %v6069_v51, %s6370_s1  ;;  %v7088_v51 = vld [vmem:[#allocation4 + $0x130] sm:$0xff] }
0x185d   :  { %v1780_v4 = vpop.permute.xlu1 %1779 }
0x185e   :  { %v1782_v37 = vmul.f32 %v1780_v4, %v1777_v28  ;;  %v7091_v28 = vld [vmem:[#allocation4 + $0x128] sm:$0xff]  ;;  %v7097_v4 = vld [vmem:[#allocation4 + $0x118] sm:$0xff] }
0x1860   :  { %v7035_v32 = vadd.f32 %v1785_v48, %v1782_v37  ;;  %v7100_v37 = vld [vmem:[#allocation4 + $0x110] sm:$0xff]  ;;  %v7103_v48 = vld [vmem:[#allocation4 + $0x108] sm:$0xff] }
0x1862   :  { %v1788_v61 = vrot.slane %v7035_v32, 2  ;;  %v1887_v12 = vrot.slane %v7035_v32, 6  ;;  %v1998_v24 = vsel %vm1036_vm2, %v7009_v49, %v7035_v32  ;;  %v7073_v49 = vld [vmem:[#allocation4 + $0x158] sm:$0xff]  ;;  %v7106_v32 = vld [vmem:[#allocation4 + $0x100] sm:$0xff] }
0x1864   :  { %1789 = vrot.lane.b32.xlu0 %v1788_v61, %s6370_s1 }
0x18d6   :  { %v1790_v52 = vpop.permute.xlu0 %1789 }
0x18d7   :  { %5898 = vmatmul.mubr.msk.f32.vlgmr.msra.gmra.mxu1 %vm223_vm1, %v1790_v52 }
0x18d8   :  { %2105 = vmatprep.mubr.f32.mxu1 %v6369_v0  ;;  %2058 = vmatpush1.msra.mxu1 %v2016_v56 }
0x18d9   :  { %2059 = vmatprep.subr.mxu1 %v2015_v58 }
0x18da   :  { %2060 = vmatpush1.msra.mxu1 %v2014_v60  ;;  %v2019_v60 = vld [vmem:[#allocation6 + $0x4] sm:$0x3] }
0x18db   :  { %2061 = vmatprep.subr.mxu1 %v2013_v62  ;;  %v7149_v62 = vrot.slane %v2019_v60, %v6589_v44 }
0x18dc   :  { %2062 = vmatpush1.msra.mxu1 %v2012_v63 }
0x18dd   :  { %2063 = vmatprep.subr.mxu1 %v2011_v1 }
0x18de   :  { %2064 = vmatpush1.msra.mxu1 %v2010_v3 }
0x18df   :  { %2065 = vmatprep.subr.mxu1 %v2009_v5 }
0x18e0   :  { %2066 = vmatpush1.msra.mxu1 %v2008_v55 }
0x18e1   :  { %2067 = vmatprep.subr.mxu1 %v2007_v9 }
0x18e2   :  { %2068 = vmatpush1.msra.mxu1 %v2006_v18 }
0x18e3   :  { %2069 = vmatprep.subr.mxu1 %v2005_v38 }
0x18e4   :  { %2070 = vmatpush1.msra.mxu1 %v2004_v39 }
0x18e5   :  { %2071 = vmatprep.subr.mxu1 %v2003_v19 }
0x18e6   :  { %2072 = vmatpush1.msra.mxu1 %v2002_v40 }
0x18e7   :  { %2254 = vmatprep.subr.mxu1 %v7045_v41 }
0x1997   :  { %v1859_v42 = vpop.f32.mrf.mxu1 }
0x1998   :  { %v1865_v46 = vrot.slane %v1859_v42, 4 }
0x1999   :  { %v1861_v26 = vpop.f32.mrf.mxu1 }
0x199a   :  { %v1867_v50 = vadd.f32 %v1865_v46, %v6999_v14  ;;  %v1874_v8 = vadd.f32 %v6879_v2, %v1861_v26 }
0x199c   :  { %v5899_v16 = vmul.f32 -1.442695, %v1867_v50  ;;  %v1876_v10 = vrot.slane %v1874_v8, 4 }
0x199e   :  { %6070 = vpow2.f32 %v5899_v16 }
0x19ab   :  { %v6071_v11 = vpop.eup %6070 }
0x19ac   :  { %v1871_v22 = vadd.f32 1.0, %v6071_v11 }
0x19ae   :  { %6072 = vrcp.f32 %v1871_v22 }
0x19bb   :  { %v6073_v13 = vpop.eup %6072 }
0x19bc   :  { %v1878_v15 = vmul.f32 %v6073_v13, %v1876_v10  ;;  %v1889_v30 = vmul.f32 %v6073_v13, %v1887_v12  ;;  %v1881_v47 = vsub.f32 1.0, %v6073_v13  ;;  %v7158_v12 = vld [vmem:[#allocation7 + $0x2] ss:$0 sm:$0xff] }
0x19be   :  { %v1879_v34 = vadd.f32 %v1878_v15, %v7005_v36  ;;  %v7161_v15 = vrot.slane %v2019_v60, %v6599_v54 }
0x19c0   :  { %6074 = vtanh.f32 %v1879_v34 }
0x19cd   :  { %v6075_v45 = vpop.eup %6074 }
0x19ce   :  { %1883 = vrot.lane.b32.xlu1 %v6075_v45, %s6370_s1 }
0x19d2   :  { %2033 = vrot.lane.b32.xlu1 %v6977_v20, %s6370_s1  ;;  %v7065_v20 = vld [vmem:[#allocation4 + $0x168] sm:$0xff] }
0x1a40   :  { %v1884_v7 = vpop.permute.xlu1 %1883 }
0x1a41   :  { %v1886_v17 = vmul.f32 %v1884_v7, %v1881_v47 }
0x1a43   :  { %v7052_v59 = vadd.f32 %v1889_v30, %v1886_v17 }
0x1a44   :  { %v2034_v21 = vpop.permute.xlu1 %2033 }
0x1a45   :  { %5902 = vmatmul.mubr.msk.f32.vlgmr.msra.gmra.mxu1 %vm223_vm1, %v2034_v21  ;;  %v1892_v23 = vrot.slane %v7052_v59, 4  ;;  %v7063_v27 = vsel %vm1038_vm3, %v1998_v24, %v7052_v59  ;;  %v1991_v11 = vrot.slane %v7052_v59, 6 }
0x1a46   :  { %2255 = vmatpush1.msra.mxu1 %v7059_v25  ;;  %2111 = vmatprep.mubr.f32.mxu1 %v6369_v0 }
0x1a47   :  { %1893 = vrot.lane.b32.xlu0 %v1892_v23, %s6370_s1  ;;  %2256 = vmatprep.subr.mxu1 %v7065_v20 }
0x1a48   :  { %2257 = vmatpush1.msra.mxu1 %v7070_v29 }
0x1a49   :  { %2258 = vmatprep.subr.mxu1 %v7073_v49 }
0x1a4a   :  { %2259 = vmatpush1.msra.mxu1 %v7076_v31 }
0x1a4b   :  { %2260 = vmatprep.subr.mxu1 %v7079_v33 }
0x1a4c   :  { %2261 = vmatpush1.msra.mxu1 %v7082_v35 }
0x1a4d   :  { %2262 = vmatprep.subr.mxu1 %v7085_v57 }
0x1a4e   :  { %2263 = vmatpush1.msra.mxu1 %v7088_v51 }
0x1a4f   :  { %2264 = vmatprep.subr.mxu1 %v7091_v28 }
0x1a50   :  { %2265 = vmatpush1.msra.mxu1 %v7094_v6 }
0x1a51   :  { %2266 = vmatprep.subr.mxu1 %v7097_v4 }
0x1a52   :  { %2267 = vmatpush1.msra.mxu1 %v7100_v37 }
0x1a53   :  { %2268 = vmatprep.subr.mxu1 %v7103_v48 }
0x1a54   :  { %2269 = vmatpush1.msra.mxu1 %v7106_v32 }
0x1a55   :  { %2462 = vmatprep.subr.mxu1 %v7045_v41 }
0x1ab9   :  { %v1894_v61 = vpop.permute.xlu0 %1893 }
0x1aba   :  { %5900 = vmatmul.mubr.msk.f32.vlgmr.msra.gmra.mxu0 %vm223_vm1, %v1894_v61 }
0x1abb   :  { %2160 = vmatpush1.msra.mxu0 %v7059_v25  ;;  %2207 = vmatprep.mubr.f32.mxu0 %v6369_v0 }
0x1abc   :  { %2161 = vmatprep.subr.mxu0 %v7065_v20 }
0x1abd   :  { %2162 = vmatpush1.msra.mxu0 %v7070_v29 }
0x1abe   :  { %2163 = vmatprep.subr.mxu0 %v7073_v49 }
0x1abf   :  { %2164 = vmatpush1.msra.mxu0 %v7076_v31 }
0x1ac0   :  { %2165 = vmatprep.subr.mxu0 %v7079_v33 }
0x1ac1   :  { %2166 = vmatpush1.msra.mxu0 %v7082_v35 }
0x1ac2   :  { %2167 = vmatprep.subr.mxu0 %v7085_v57 }
0x1ac3   :  { %2168 = vmatpush1.msra.mxu0 %v7088_v51 }
0x1ac4   :  { %2169 = vmatprep.subr.mxu0 %v7091_v28 }
0x1ac5   :  { %2170 = vmatpush1.msra.mxu0 %v7094_v6 }
0x1ac6   :  { %2171 = vmatprep.subr.mxu0 %v7097_v4 }
0x1ac7   :  { %2172 = vmatpush1.msra.mxu0 %v7100_v37 }
0x1ac8   :  { %2173 = vmatprep.subr.mxu0 %v7103_v48 }
0x1ac9   :  { %2174 = vmatpush1.msra.mxu0 %v7106_v32 }
0x1aca   :  { %2208 = vmatmul.mubr.f32.vlgmr.msra.gmra.mxu0 %v6369_v0  ;;  %2358 = vmatprep.subr.mxu0 %v7045_v41 }
0x1acb   :  { %2359 = vmatpush1.msra.mxu0 %v7059_v25  ;;  %2406 = vmatprep.mubr.f32.mxu0 %v6369_v0 }
0x1acc   :  { %2360 = vmatprep.subr.mxu0 %v7065_v20 }
0x1acd   :  { %2361 = vmatpush1.msra.mxu0 %v7070_v29 }
0x1ace   :  { %2362 = vmatprep.subr.mxu0 %v7073_v49 }
0x1acf   :  { %2363 = vmatpush1.msra.mxu0 %v7076_v31 }
0x1ad0   :  { %2364 = vmatprep.subr.mxu0 %v7079_v33 }
0x1ad1   :  { %2365 = vmatpush1.msra.mxu0 %v7082_v35 }
0x1ad2   :  { %2366 = vmatprep.subr.mxu0 %v7085_v57 }
0x1ad3   :  { %2367 = vmatpush1.msra.mxu0 %v7088_v51 }
0x1ad4   :  { %2368 = vmatprep.subr.mxu0 %v7091_v28 }
0x1ad5   :  { %2369 = vmatpush1.msra.mxu0 %v7094_v6 }
0x1ad6   :  { %2370 = vmatprep.subr.mxu0 %v7097_v4 }
0x1ad7   :  { %2371 = vmatpush1.msra.mxu0 %v7100_v37 }
0x1ad8   :  { %2372 = vmatprep.subr.mxu0 %v7103_v48 }
0x1ad9   :  { %2373 = vmatpush1.msra.mxu0 %v7106_v32 }
0x1ada   :  { %2566 = vmatprep.subr.mxu0 %v7045_v41 }
0x1b05   :  { %v2107_v63 = vpop.f32.mrf.mxu1 }
0x1b06   :  { %v7152_v3 = vadd.f32 %v2107_v63, %v7149_v62 }
0x1b07   :  { %v2109_v30 = vpop.f32.mrf.mxu1 }
0x1b08   :  { %v7165_v38 = vadd.f32 %v2109_v30, %v7161_v15 }
0x1b7a   :  { %v1963_v52 = vpop.f32.mrf.mxu0 }
0x1b7b   :  { %v1969_v53 = vrot.slane %v1963_v52, 2 }
0x1b7c   :  { %v1965_v1 = vpop.f32.mrf.mxu0 }
0x1b7d   :  { %v1971_v56 = vadd.f32 %v1969_v53, %v6999_v14  ;;  %v1978_v14 = vadd.f32 %v6879_v2, %v1965_v1 }
0x1b7f   :  { %v5901_v58 = vmul.f32 -1.442695, %v1971_v56  ;;  %v1980_v50 = vrot.slane %v1978_v14, 2 }
0x1b81   :  { %6076 = vpow2.f32 %v5901_v58 }
0x1b8a   :  { %v2209_v5 = vpop.f32.mrf.mxu0 }
0x1b8b   :  { %v2214_v55 = vadd.f32 %v2209_v5, %v7152_v3 }
0x1b8c   :  { %v2211_v13 = vpop.f32.mrf.mxu0 }
0x1b8d   :  { %v5905_v9 = vmul.f32 -1.442695, %v2214_v55  ;;  %v2221_v2 = vadd.f32 %v7158_v12, %v2211_v13 }
0x1b8e   :  { %v6077_v18 = vpop.eup %6076 }
0x1b8f   :  { %v1975_v42 = vadd.f32 1.0, %v6077_v18  ;;  %6078 = vpow2.f32 %v5905_v9 }
0x1b91   :  { %6080 = vrcp.f32 %v1975_v42 }
0x1b9c   :  { %v6079_v46 = vpop.eup %6078 }
0x1b9d   :  { %v2218_v16 = vadd.f32 1.0, %v6079_v46 }
0x1b9e   :  { %v6081_v22 = vpop.eup %6080 }
0x1b9f   :  { %v1982_v26 = vmul.f32 %v6081_v22, %v1980_v50  ;;  %6082 = vrcp.f32 %v2218_v16  ;;  %v1993_v8 = vmul.f32 %v6081_v22, %v1991_v11  ;;  %v1985_v45 = vsub.f32 1.0, %v6081_v22 }
0x1ba1   :  { %v1983_v10 = vadd.f32 %v1982_v26, %v7005_v36 }
0x1ba3   :  { %6084 = vtanh.f32 %v1983_v10 }
0x1bac   :  { %v6083_v34 = vpop.eup %6082 }
0x1bad   :  { %v2222_v39 = vmul.f32 %v6083_v34, %v2221_v2  ;;  %v2225_v21 = vsub.f32 1.0, %v6083_v34  ;;  %v2231_v23 = vmul.f32 0.0, %v6083_v34 }
0x1baf   :  { %v2223_v19 = vadd.f32 %v2222_v39, %v7165_v38 }
0x1bb0   :  { %v6085_v40 = vpop.eup %6084 }
0x1bb1   :  { %6086 = vtanh.f32 %v2223_v19  ;;  %1987 = vrot.lane.b32.xlu0 %v6085_v40, %s6370_s1 }
0x1bbe   :  { %v6087_v36 = vpop.eup %6086 }
0x1bbf   :  { %2227 = vrot.lane.b32.xlu1 %v6087_v36, %s6370_s1 }
0x1c23   :  { %v1988_v47 = vpop.permute.xlu0 %1987 }
0x1c24   :  { %v1990_v7 = vmul.f32 %v1988_v47, %v1985_v45 }
0x1c26   :  { %v1994_v17 = vadd.f32 %v1993_v8, %v1990_v7 }
0x1c28   :  { %v2000_v59 = vsel %vm1040_vm4, %v7063_v27, %v1994_v17 }
0x1c29   :  { %2035 = vrot.lane.b32.xlu0 %v2000_v59, %s6370_s1 }
0x1c31   :  { %v2228_v24 = vpop.permute.xlu1 %2227 }
0x1c32   :  { %v2230_v61 = vmul.f32 %v2228_v24, %v2225_v21 }
0x1c34   :  { %v7173_v52 = vadd.f32 %v2231_v23, %v2230_v61 }
0x1c36   :  { %2234 = vrot.lane.b32.xlu1 %v7173_v52, %s6370_s1  ;;  %v2332_v26 = vrot.slane %v7173_v52, 6 }
0x1c9b   :  { %v2036_v53 = vpop.permute.xlu0 %2035 }
0x1c9c   :  { %5903 = vmatmul.mubr.msk.f32.gmra.mxu1 %vm223_vm1, %v2036_v53 }
0x1c9d   :  { %2302 = vmatprep.mubr.f32.mxu1 %v6369_v0 }
0x1ca8   :  { %v2235_v56 = vpop.permute.xlu1 %2234 }
0x1ca9   :  { %5906 = vmatmul.mubr.msk.f32.vlgmr.msra.gmra.mxu1 %vm223_vm1, %v2235_v56 }
0x1caa   :  { %2463 = vmatpush1.msra.mxu1 %v7059_v25  ;;  %2510 = vmatprep.mubr.f32.mxu1 %v6369_v0 }
0x1cab   :  { %2464 = vmatprep.subr.mxu1 %v7065_v20 }
0x1cac   :  { %2465 = vmatpush1.msra.mxu1 %v7070_v29 }
0x1cad   :  { %2466 = vmatprep.subr.mxu1 %v7073_v49 }
0x1cae   :  { %2467 = vmatpush1.msra.mxu1 %v7076_v31 }
0x1caf   :  { %2468 = vmatprep.subr.mxu1 %v7079_v33 }
0x1cb0   :  { %2469 = vmatpush1.msra.mxu1 %v7082_v35 }
0x1cb1   :  { %2470 = vmatprep.subr.mxu1 %v7085_v57 }
0x1cb2   :  { %2471 = vmatpush1.msra.mxu1 %v7088_v51 }
0x1cb3   :  { %2472 = vmatprep.subr.mxu1 %v7091_v28 }
0x1cb4   :  { %2473 = vmatpush1.msra.mxu1 %v7094_v6 }
0x1cb5   :  { %2474 = vmatprep.subr.mxu1 %v7097_v4 }
0x1cb6   :  { %2475 = vmatpush1.msra.mxu1 %v7100_v37 }
0x1cb7   :  { %2476 = vmatprep.subr.mxu1 %v7103_v48 }
0x1cb8   :  { %2477 = vmatpush1.msra.mxu1 %v7106_v32 }
0x1cb9   :  { %2662 = vmatprep.subr.mxu1 %v7045_v41 }
0x1d5c   :  { %v7197_v27 = vpop.f32.mrf.mxu1 }
0x1d5e   :  { %v7199_v58 = vpop.f32.mrf.mxu1 }
0x1d69   :  { %v2304_v60 = vpop.f32.mrf.mxu1 }
0x1d6a   :  { %v2310_v63 = vrot.slane %v2304_v60, 6 }
0x1d6b   :  { %v2306_v18 = vpop.f32.mrf.mxu1 }
0x1d6c   :  { %v2312_v1 = vadd.f32 %v2310_v63, %v7152_v3  ;;  %v2319_v42 = vadd.f32 %v7158_v12, %v2306_v18 }
0x1d6e   :  { %v5907_v5 = vmul.f32 -1.442695, %v2312_v1  ;;  %v2321_v14 = vrot.slane %v2319_v42, 6 }
0x1d70   :  { %6088 = vpow2.f32 %v5907_v5 }
0x1d7d   :  { %v6089_v55 = vpop.eup %6088 }
0x1d7e   :  { %v2316_v9 = vadd.f32 1.0, %v6089_v55 }
0x1d80   :  { %6090 = vrcp.f32 %v2316_v9 }
0x1d8d   :  { %v6091_v46 = vpop.eup %6090 }
0x1d8e   :  { %v2323_v50 = vmul.f32 %v6091_v46, %v2321_v14  ;;  %v2326_v22 = vsub.f32 1.0, %v6091_v46  ;;  %v2334_v13 = vmul.f32 %v6091_v46, %v2332_v26 }
0x1d90   :  { %v2324_v16 = vadd.f32 %v2323_v50, %v7165_v38 }
0x1d92   :  { %6092 = vtanh.f32 %v2324_v16 }
0x1d9f   :  { %v6093_v11 = vpop.eup %6092 }
0x1da0   :  { %2328 = vrot.lane.b32.xlu0 %v6093_v11, %s6370_s1 }
0x1e12   :  { %v2329_v8 = vpop.permute.xlu0 %2328 }
0x1e13   :  { %v2331_v10 = vmul.f32 %v2329_v8, %v2326_v22 }
0x1e15   :  { %v2335_v30 = vadd.f32 %v2334_v13, %v2331_v10 }
0x1e17   :  { %v2337_v2 = vrot.slane %v2335_v30, 2  ;;  %v2436_v21 = vrot.slane %v2335_v30, 6  ;;  %v2952_v55 = vsel %vm1036_vm2, %v7173_v52, %v2335_v30 }
0x1e19   :  { %2338 = vrot.lane.b32.xlu1 %v2337_v2, %s6370_s1 }
0x1e8b   :  { %v2339_v34 = vpop.permute.xlu1 %2338 }
0x1e8c   :  { %5908 = vmatmul.mubr.msk.f32.vlgmr.msra.gmra.mxu0 %vm223_vm1, %v2339_v34 }
0x1e8d   :  { %2567 = vmatpush1.msra.mxu0 %v7059_v25  ;;  %2614 = vmatprep.mubr.f32.mxu0 %v6369_v0 }
0x1e8e   :  { %2568 = vmatprep.subr.mxu0 %v7065_v20 }
0x1e8f   :  { %2569 = vmatpush1.msra.mxu0 %v7070_v29 }
0x1e90   :  { %2570 = vmatprep.subr.mxu0 %v7073_v49 }
0x1e91   :  { %2571 = vmatpush1.msra.mxu0 %v7076_v31 }
0x1e92   :  { %2572 = vmatprep.subr.mxu0 %v7079_v33 }
0x1e93   :  { %2573 = vmatpush1.msra.mxu0 %v7082_v35 }
0x1e94   :  { %2574 = vmatprep.subr.mxu0 %v7085_v57 }
0x1e95   :  { %2575 = vmatpush1.msra.mxu0 %v7088_v51 }
0x1e96   :  { %2576 = vmatprep.subr.mxu0 %v7091_v28 }
0x1e97   :  { %2577 = vmatpush1.msra.mxu0 %v7094_v6 }
0x1e98   :  { %2578 = vmatprep.subr.mxu0 %v7097_v4 }
0x1e99   :  { %2579 = vmatpush1.msra.mxu0 %v7100_v37 }
0x1e9a   :  { %2580 = vmatprep.subr.mxu0 %v7103_v48 }
0x1e9b   :  { %2581 = vmatpush1.msra.mxu0 %v7106_v32 }
0x1e9c   :  { %2766 = vmatprep.subr.mxu0 %v7045_v41 }
0x1f4c   :  { %v2408_v39 = vpop.f32.mrf.mxu0 }
0x1f4d   :  { %v2414_v19 = vrot.slane %v2408_v39, 4 }
0x1f4e   :  { %v2410_v7 = vpop.f32.mrf.mxu0 }
0x1f4f   :  { %v2416_v40 = vadd.f32 %v2414_v19, %v7152_v3  ;;  %v2423_v17 = vadd.f32 %v7158_v12, %v2410_v7 }
0x1f51   :  { %v5909_v36 = vmul.f32 -1.442695, %v2416_v40  ;;  %v2425_v59 = vrot.slane %v2423_v17, 4 }
0x1f53   :  { %6094 = vpow2.f32 %v5909_v36 }
0x1f60   :  { %v6095_v45 = vpop.eup %6094 }
0x1f61   :  { %v2420_v47 = vadd.f32 1.0, %v6095_v45 }
0x1f63   :  { %6096 = vrcp.f32 %v2420_v47 }
0x1f70   :  { %v6097_v24 = vpop.eup %6096 }
0x1f71   :  { %v2427_v23 = vmul.f32 %v6097_v24, %v2425_v59  ;;  %v2438_v61 = vmul.f32 %v6097_v24, %v2436_v21  ;;  %v2430_v60 = vsub.f32 1.0, %v6097_v24 }
0x1f73   :  { %v2428_v53 = vadd.f32 %v2427_v23, %v7165_v38 }
0x1f75   :  { %6098 = vtanh.f32 %v2428_v53 }
0x1f82   :  { %v6099_v56 = vpop.eup %6098 }
0x1f83   :  { %2432 = vrot.lane.b32.xlu0 %v6099_v56, %s6370_s1  ;;  %v7284_v56 = vadd.f32 %v7199_v58, %v7161_v15 }
0x1ff5   :  { %v2433_v63 = vpop.permute.xlu0 %2432 }
0x1ff6   :  { %v2435_v1 = vmul.f32 %v2433_v63, %v2430_v60 }
0x1ff8   :  { %v2439_v5 = vadd.f32 %v2438_v61, %v2435_v1 }
0x1ffa   :  { %v2441_v9 = vrot.slane %v2439_v5, 4  ;;  %v2953_v18 = vsel %vm1038_vm3, %v2952_v55, %v2439_v5  ;;  %v2540_v10 = vrot.slane %v2439_v5, 6 }
0x1ffc   :  { %2442 = vrot.lane.b32.xlu1 %v2441_v9, %s6370_s1 }
0x206e   :  { %v2443_v42 = vpop.permute.xlu1 %2442 }
0x206f   :  { %5910 = vmatmul.mubr.msk.f32.vlgmr.msra.gmra.mxu1 %vm223_vm1, %v2443_v42 }
0x2070   :  { %2663 = vmatpush1.msra.mxu1 %v7059_v25  ;;  %2710 = vmatprep.mubr.f32.mxu1 %v6369_v0 }
0x2071   :  { %2664 = vmatprep.subr.mxu1 %v7065_v20 }
0x2072   :  { %2665 = vmatpush1.msra.mxu1 %v7070_v29 }
0x2073   :  { %2666 = vmatprep.subr.mxu1 %v7073_v49 }
0x2074   :  { %2667 = vmatpush1.msra.mxu1 %v7076_v31 }
0x2075   :  { %2668 = vmatprep.subr.mxu1 %v7079_v33 }
0x2076   :  { %2669 = vmatpush1.msra.mxu1 %v7082_v35 }
0x2077   :  { %2670 = vmatprep.subr.mxu1 %v7085_v57 }
0x2078   :  { %2671 = vmatpush1.msra.mxu1 %v7088_v51 }
0x2079   :  { %2672 = vmatprep.subr.mxu1 %v7091_v28 }
0x207a   :  { %2673 = vmatpush1.msra.mxu1 %v7094_v6 }
0x207b   :  { %2674 = vmatprep.subr.mxu1 %v7097_v4 }
0x207c   :  { %2675 = vmatpush1.msra.mxu1 %v7100_v37 }
0x207d   :  { %2676 = vmatprep.subr.mxu1 %v7103_v48 }
0x207e   :  { %2677 = vmatpush1.msra.mxu1 %v7106_v32 }
0x207f   :  { %2870 = vmatprep.subr.mxu1 %v7045_v41 }
0x212f   :  { %v2512_v52 = vpop.f32.mrf.mxu1 }
0x2130   :  { %v2518_v14 = vrot.slane %v2512_v52, 2 }
0x2131   :  { %v2514_v22 = vpop.f32.mrf.mxu1 }
0x2132   :  { %v2520_v46 = vadd.f32 %v2518_v14, %v7152_v3  ;;  %v2527_v26 = vadd.f32 %v7158_v12, %v2514_v22  ;;  %v2971_v22 = vld [vmem:[#allocation2 + $0x160] sm:$0xff] }
0x2134   :  { %v5911_v50 = vmul.f32 -1.442695, %v2520_v46  ;;  %v2529_v8 = vrot.slane %v2527_v26, 2  ;;  %v2970_v26 = vld [vmem:[#allocation2 + $0x158] sm:$0xff] }
0x2136   :  { %6100 = vpow2.f32 %v5911_v50  ;;  %v2974_v50 = vld [vmem:[#allocation2 + $0x178] sm:$0xff] }
0x2143   :  { %v6101_v16 = vpop.eup %6100 }
0x2144   :  { %v2524_v11 = vadd.f32 1.0, %v6101_v16  ;;  %v2973_v16 = vld [vmem:[#allocation2 + $0x170] sm:$0xff] }
0x2146   :  { %6102 = vrcp.f32 %v2524_v11  ;;  %v2972_v11 = vld [vmem:[#allocation2 + $0x168] sm:$0xff] }
0x2153   :  { %v6103_v13 = vpop.eup %6102 }
0x2154   :  { %v2531_v30 = vmul.f32 %v6103_v13, %v2529_v8  ;;  %v2542_v2 = vmul.f32 %v6103_v13, %v2540_v10  ;;  %v2534_v3 = vsub.f32 1.0, %v6103_v13  ;;  %v2969_v8 = vld [vmem:[#allocation2 + $0x150] sm:$0xff]  ;;  %v2968_v10 = vld [vmem:[#allocation2 + $0x148] sm:$0xff]  ;;  %v2967_v13 = vld [vmem:[#allocation2 + $0x140] sm:$0xff] }
0x2156   :  { %v2532_v34 = vadd.f32 %v2531_v30, %v7165_v38  ;;  %v7278_v38 = vadd.f32 %v7197_v27, %v7149_v62  ;;  %v2966_v30 = vld [vmem:[#allocation2 + $0x138] sm:$0xff] }
0x2158   :  { %6104 = vtanh.f32 %v2532_v34  ;;  %v2964_v34 = vld [vmem:[#allocation2 + $0x128] sm:$0xff] }
0x2165   :  { %v6105_v41 = vpop.eup %6104 }
0x2166   :  { %2536 = vrot.lane.b32.xlu0 %v6105_v41, %s6370_s1  ;;  %v2963_v41 = vld [vmem:[#allocation2 + $0x120] sm:$0xff] }
0x21d8   :  { %v2537_v39 = vpop.permute.xlu0 %2536 }
0x21d9   :  { %v2539_v19 = vmul.f32 %v2537_v39, %v2534_v3 }
0x21db   :  { %v2543_v40 = vadd.f32 %v2542_v2, %v2539_v19  ;;  %v2965_v2 = vld [vmem:[#allocation2 + $0x130] sm:$0xff] }
0x21dd   :  { %v2545_v36 = vrot.slane %v2543_v40, 6  ;;  %v7256_v45 = vsel %vm1040_vm4, %v2953_v18, %v2543_v40 }
0x21df   :  { %2546 = vrot.lane.b32.xlu1 %v2545_v36, %s6370_s1 }
0x2251   :  { %v2547_v47 = vpop.permute.xlu1 %2546 }
0x2252   :  { %5912 = vmatmul.mubr.msk.f32.vlgmr.msra.gmra.mxu0 %vm223_vm1, %v2547_v47 }
0x2253   :  { %2767 = vmatpush1.msra.mxu0 %v7059_v25  ;;  %2814 = vmatprep.mubr.f32.mxu0 %v6369_v0 }
0x2254   :  { %2768 = vmatprep.subr.mxu0 %v7065_v20 }
0x2255   :  { %2769 = vmatpush1.msra.mxu0 %v7070_v29 }
0x2256   :  { %2770 = vmatprep.subr.mxu0 %v7073_v49 }
0x2257   :  { %2771 = vmatpush1.msra.mxu0 %v7076_v31 }
0x2258   :  { %2772 = vmatprep.subr.mxu0 %v7079_v33 }
0x2259   :  { %2773 = vmatpush1.msra.mxu0 %v7082_v35 }
0x225a   :  { %2774 = vmatprep.subr.mxu0 %v7085_v57 }
0x225b   :  { %2775 = vmatpush1.msra.mxu0 %v7088_v51 }
0x225c   :  { %2776 = vmatprep.subr.mxu0 %v7091_v28 }
0x225d   :  { %2777 = vmatpush1.msra.mxu0 %v7094_v6 }
0x225e   :  { %2778 = vmatprep.subr.mxu0 %v7097_v4 }
0x225f   :  { %2779 = vmatpush1.msra.mxu0 %v7100_v37 }
0x2260   :  { %2780 = vmatprep.subr.mxu0 %v7103_v48 }
0x2261   :  { %2781 = vmatpush1.msra.mxu0 %v7106_v32 }
0x2262   :  { %3014 = vmatprep.subr.mxu0 %v2974_v50 }
0x2312   :  { %v2616_v7 = vpop.f32.mrf.mxu0 }
0x2313   :  { %v2621_v17 = vadd.f32 %v2616_v7, %v7278_v38 }
0x2314   :  { %v2618_v23 = vpop.f32.mrf.mxu0 }
0x2315   :  { %v5913_v59 = vmul.f32 -1.442695, %v2621_v17  ;;  %v2628_v61 = vadd.f32 %v7158_v12, %v2618_v23 }
0x2317   :  { %6106 = vpow2.f32 %v5913_v59 }
0x2324   :  { %v6107_v21 = vpop.eup %6106 }
0x2325   :  { %v2625_v24 = vadd.f32 1.0, %v6107_v21 }
0x2327   :  { %6108 = vrcp.f32 %v2625_v24 }
0x2334   :  { %v6109_v53 = vpop.eup %6108 }
0x2335   :  { %v2629_v60 = vmul.f32 %v6109_v53, %v2628_v61  ;;  %v2632_v63 = vsub.f32 1.0, %v6109_v53  ;;  %v2639_v5 = vmul.f32 %v6109_v53, %v2545_v36 }
0x2337   :  { %v2630_v62 = vadd.f32 %v2629_v60, %v7284_v56  ;;  %v2962_v60 = vld [vmem:[#allocation2 + $0x118] sm:$0xff] }
0x2339   :  { %6110 = vtanh.f32 %v2630_v62  ;;  %v2961_v62 = vld [vmem:[#allocation2 + $0x110] sm:$0xff] }
0x2346   :  { %v6111_v27 = vpop.eup %6110 }
0x2347   :  { %2634 = vrot.lane.b32.xlu0 %v6111_v27, %s6370_s1  ;;  %v2960_v27 = vld [vmem:[#allocation2 + $0x108] sm:$0xff] }
0x23b9   :  { %v2635_v1 = vpop.permute.xlu0 %2634 }
0x23ba   :  { %v2637_v55 = vmul.f32 %v2635_v1, %v2632_v63  ;;  %v2959_v63 = vld [vmem:[#allocation2 + $0x100] sm:$0xff]  ;;  %v7324_v1 = vld [vmem:[#allocation4 + $0x1f8] sm:$0xff] }
0x23bc   :  { %v7288_v9 = vadd.f32 %v2639_v5, %v2637_v55 }
0x23be   :  { %2642 = vrot.lane.b32.xlu1 %v7288_v9, %s6370_s1 }
0x2430   :  { %v2643_v18 = vpop.permute.xlu1 %2642 }
0x2431   :  { %5914 = vmatmul.mubr.msk.f32.vlgmr.msra.gmra.mxu1 %vm223_vm1, %v2643_v18 }
0x2432   :  { %2871 = vmatpush1.msra.mxu1 %v7059_v25  ;;  %2918 = vmatprep.mubr.f32.mxu1 %v6369_v0 }
0x2433   :  { %2872 = vmatprep.subr.mxu1 %v7065_v20 }
0x2434   :  { %2873 = vmatpush1.msra.mxu1 %v7070_v29 }
0x2435   :  { %2874 = vmatprep.subr.mxu1 %v7073_v49 }
0x2436   :  { %2875 = vmatpush1.msra.mxu1 %v7076_v31 }
0x2437   :  { %2876 = vmatprep.subr.mxu1 %v7079_v33 }
0x2438   :  { %2877 = vmatpush1.msra.mxu1 %v7082_v35 }
0x2439   :  { %2878 = vmatprep.subr.mxu1 %v7085_v57 }
0x243a   :  { %2879 = vmatpush1.msra.mxu1 %v7088_v51 }
0x243b   :  { %2880 = vmatprep.subr.mxu1 %v7091_v28 }
0x243c   :  { %2881 = vmatpush1.msra.mxu1 %v7094_v6 }
0x243d   :  { %2882 = vmatprep.subr.mxu1 %v7097_v4 }
0x243e   :  { %2883 = vmatpush1.msra.mxu1 %v7100_v37 }
0x243f   :  { %2884 = vmatprep.subr.mxu1 %v7103_v48 }
0x2440   :  { %2885 = vmatpush1.msra.mxu1 %v7106_v32  ;;  %v2740_v32 = vrot.slane %v7288_v9, 6 }
0x2441   :  { %3116 = vmatprep.subr.mxu1 %v7324_v1 }
0x24f1   :  { %v2712_v25 = vpop.f32.mrf.mxu1 }
0x24f2   :  { %v2718_v20 = vrot.slane %v2712_v25, 6 }
0x24f3   :  { %v2714_v35 = vpop.f32.mrf.mxu1 }
0x24f4   :  { %v2720_v29 = vadd.f32 %v2718_v20, %v7278_v38  ;;  %v2727_v57 = vadd.f32 %v7158_v12, %v2714_v35 }
0x24f6   :  { %v5915_v49 = vmul.f32 -1.442695, %v2720_v29  ;;  %v2729_v51 = vrot.slane %v2727_v57, 6  ;;  %v7349_v57 = vld [vmem:[#allocation4 + $0x1e0] sm:$0xff] }
0x24f8   :  { %6112 = vpow2.f32 %v5915_v49 }
0x2505   :  { %v6113_v31 = vpop.eup %6112 }
0x2506   :  { %v2724_v33 = vadd.f32 1.0, %v6113_v31 }
0x2508   :  { %6114 = vrcp.f32 %v2724_v33  ;;  %v7338_v33 = vld [vmem:[#allocation4 + $0x1f0] sm:$0xff] }
0x2515   :  { %v6115_v28 = vpop.eup %6114 }
0x2516   :  { %v2731_v6 = vmul.f32 %v6115_v28, %v2729_v51  ;;  %v2734_v48 = vsub.f32 1.0, %v6115_v28  ;;  %v2742_v42 = vmul.f32 %v6115_v28, %v2740_v32  ;;  %v7355_v51 = vld [vmem:[#allocation4 + $0x1d0] sm:$0xff]  ;;  %v7358_v28 = vld [vmem:[#allocation4 + $0x1c8] sm:$0xff]  ;;  %v7373_v32 = vld [vmem:[#allocation4 + $0x1a0] sm:$0xff] }
0x2518   :  { %v2732_v4 = vadd.f32 %v2731_v6, %v7284_v56  ;;  %v7361_v6 = vld [vmem:[#allocation4 + $0x1c0] sm:$0xff] }
0x251a   :  { %6116 = vtanh.f32 %v2732_v4  ;;  %v7364_v4 = vld [vmem:[#allocation4 + $0x1b8] sm:$0xff] }
0x2527   :  { %v6117_v37 = vpop.eup %6116 }
0x2528   :  { %2736 = vrot.lane.b32.xlu0 %v6117_v37, %s6370_s1  ;;  %v7367_v37 = vld [vmem:[#allocation4 + $0x1b0] sm:$0xff] }
0x259a   :  { %v2737_v15 = vpop.permute.xlu0 %2736 }
0x259b   :  { %v2739_v58 = vmul.f32 %v2737_v15, %v2734_v48  ;;  %v7370_v48 = vld [vmem:[#allocation4 + $0x1a8] sm:$0xff]  ;;  %v7376_v15 = vld [vmem:[#allocation4 + $0x198] sm:$0xff] }
0x259d   :  { %v7314_v52 = vadd.f32 %v2742_v42, %v2739_v58  ;;  %v7379_v58 = vld [vmem:[#allocation4 + $0x190] sm:$0xff]  ;;  %v7382_v42 = vld [vmem:[#allocation4 + $0x188] sm:$0xff] }
0x259f   :  { %v2745_v14 = vrot.slane %v7314_v52, 2  ;;  %v2844_v21 = vrot.slane %v7314_v52, 6  ;;  %v2955_v49 = vsel %vm1036_vm2, %v7288_v9, %v7314_v52  ;;  %v7352_v9 = vld [vmem:[#allocation4 + $0x1d8] sm:$0xff]  ;;  %v7385_v52 = vld [vmem:[#allocation4 + $0x180] sm:$0xff] }
0x25a1   :  { %2746 = vrot.lane.b32.xlu1 %v2745_v14, %s6370_s1 }
0x2613   :  { %v2747_v46 = vpop.permute.xlu1 %2746 }
0x2614   :  { %5916 = vmatmul.mubr.msk.f32.vlgmr.msra.gmra.mxu0 %vm223_vm1, %v2747_v46 }
0x2615   :  { %3062 = vmatprep.mubr.f32.mxu0 %v6369_v0  ;;  %3015 = vmatpush1.msra.mxu0 %v2973_v16 }
0x2616   :  { %3016 = vmatprep.subr.mxu0 %v2972_v11 }
0x2617   :  { %3017 = vmatpush1.msra.mxu0 %v2971_v22  ;;  %v2976_v22 = vld [vmem:[#allocation6 + $0x6] sm:$0x3] }
0x2618   :  { %3018 = vmatprep.subr.mxu0 %v2970_v26  ;;  %v7428_v26 = vrot.slane %v2976_v22, %v6589_v44 }
0x2619   :  { %3019 = vmatpush1.msra.mxu0 %v2969_v8 }
0x261a   :  { %3020 = vmatprep.subr.mxu0 %v2968_v10 }
0x261b   :  { %3021 = vmatpush1.msra.mxu0 %v2967_v13 }
0x261c   :  { %3022 = vmatprep.subr.mxu0 %v2966_v30 }
0x261d   :  { %3023 = vmatpush1.msra.mxu0 %v2965_v2 }
0x261e   :  { %3024 = vmatprep.subr.mxu0 %v2964_v34 }
0x261f   :  { %3025 = vmatpush1.msra.mxu0 %v2963_v41 }
0x2620   :  { %3026 = vmatprep.subr.mxu0 %v2962_v60 }
0x2621   :  { %3027 = vmatpush1.msra.mxu0 %v2961_v62 }
0x2622   :  { %3028 = vmatprep.subr.mxu0 %v2960_v27 }
0x2623   :  { %3029 = vmatpush1.msra.mxu0 %v2959_v63 }
0x2624   :  { %3211 = vmatprep.subr.mxu0 %v7324_v1 }
0x26d4   :  { %v2816_v3 = vpop.f32.mrf.mxu0 }
0x26d5   :  { %v2822_v39 = vrot.slane %v2816_v3, 4 }
0x26d6   :  { %v2818_v7 = vpop.f32.mrf.mxu0 }
0x26d7   :  { %v2824_v19 = vadd.f32 %v2822_v39, %v7278_v38  ;;  %v2831_v17 = vadd.f32 %v7158_v12, %v2818_v7 }
0x26d9   :  { %v5917_v40 = vmul.f32 -1.442695, %v2824_v19  ;;  %v2833_v59 = vrot.slane %v2831_v17, 4 }
0x26db   :  { %6118 = vpow2.f32 %v5917_v40 }
0x26e8   :  { %v6119_v36 = vpop.eup %6118 }
0x26e9   :  { %v2828_v47 = vadd.f32 1.0, %v6119_v36 }
0x26eb   :  { %6120 = vrcp.f32 %v2828_v47 }
0x26f8   :  { %v6121_v24 = vpop.eup %6120 }
0x26f9   :  { %v2835_v23 = vmul.f32 %v6121_v24, %v2833_v59  ;;  %v2846_v61 = vmul.f32 %v6121_v24, %v2844_v21  ;;  %v2838_v55 = vsub.f32 1.0, %v6121_v24  ;;  %v7437_v21 = vld [vmem:[#allocation7 + $0x3] ss:$0 sm:$0xff] }
0x26fb   :  { %v2836_v53 = vadd.f32 %v2835_v23, %v7284_v56  ;;  %v7440_v23 = vrot.slane %v2976_v22, %v6599_v54 }
0x26fd   :  { %6122 = vtanh.f32 %v2836_v53 }
0x270a   :  { %v6123_v5 = vpop.eup %6122 }
0x270b   :  { %2840 = vrot.lane.b32.xlu0 %v6123_v5, %s6370_s1 }
0x270f   :  { %2990 = vrot.lane.b32.xlu0 %v7256_v45, %s6370_s1  ;;  %v7344_v45 = vld [vmem:[#allocation4 + $0x1e8] sm:$0xff] }
0x277d   :  { %v2841_v18 = vpop.permute.xlu0 %2840 }
0x277e   :  { %v2843_v25 = vmul.f32 %v2841_v18, %v2838_v55 }
0x2780   :  { %v7331_v20 = vadd.f32 %v2846_v61, %v2843_v25 }
0x2781   :  { %v2991_v29 = vpop.permute.xlu0 %2990 }
0x2782   :  { %5920 = vmatmul.mubr.msk.f32.vlgmr.msra.gmra.mxu0 %vm223_vm1, %v2991_v29  ;;  %v2849_v31 = vrot.slane %v7331_v20, 4  ;;  %v7342_v35 = vsel %vm1038_vm3, %v2955_v49, %v7331_v20  ;;  %v2948_v36 = vrot.slane %v7331_v20, 6 }
0x2783   :  { %3212 = vmatpush1.msra.mxu0 %v7338_v33  ;;  %3068 = vmatprep.mubr.f32.mxu0 %v6369_v0 }
0x2784   :  { %2850 = vrot.lane.b32.xlu1 %v2849_v31, %s6370_s1  ;;  %3213 = vmatprep.subr.mxu0 %v7344_v45 }
0x2785   :  { %3214 = vmatpush1.msra.mxu0 %v7349_v57 }
0x2786   :  { %3215 = vmatprep.subr.mxu0 %v7352_v9 }
0x2787   :  { %3216 = vmatpush1.msra.mxu0 %v7355_v51 }
0x2788   :  { %3217 = vmatprep.subr.mxu0 %v7358_v28 }
0x2789   :  { %3218 = vmatpush1.msra.mxu0 %v7361_v6 }
0x278a   :  { %3219 = vmatprep.subr.mxu0 %v7364_v4 }
0x278b   :  { %3220 = vmatpush1.msra.mxu0 %v7367_v37 }
0x278c   :  { %3221 = vmatprep.subr.mxu0 %v7370_v48 }
0x278d   :  { %3222 = vmatpush1.msra.mxu0 %v7373_v32 }
0x278e   :  { %3223 = vmatprep.subr.mxu0 %v7376_v15 }
0x278f   :  { %3224 = vmatpush1.msra.mxu0 %v7379_v58 }
0x2790   :  { %3225 = vmatprep.subr.mxu0 %v7382_v42 }
0x2791   :  { %3226 = vmatpush1.msra.mxu0 %v7385_v52 }
0x2792   :  { %3419 = vmatprep.subr.mxu0 %v7324_v1 }
0x27f6   :  { %v2851_v14 = vpop.permute.xlu1 %2850 }
0x27f7   :  { %5918 = vmatmul.mubr.msk.f32.vlgmr.msra.gmra.mxu1 %vm223_vm1, %v2851_v14 }
0x27f8   :  { %3117 = vmatpush1.msra.mxu1 %v7338_v33  ;;  %3164 = vmatprep.mubr.f32.mxu1 %v6369_v0 }
0x27f9   :  { %3118 = vmatprep.subr.mxu1 %v7344_v45 }
0x27fa   :  { %3119 = vmatpush1.msra.mxu1 %v7349_v57 }
0x27fb   :  { %3120 = vmatprep.subr.mxu1 %v7352_v9 }
0x27fc   :  { %3121 = vmatpush1.msra.mxu1 %v7355_v51 }
0x27fd   :  { %3122 = vmatprep.subr.mxu1 %v7358_v28 }
0x27fe   :  { %3123 = vmatpush1.msra.mxu1 %v7361_v6 }
0x27ff   :  { %3124 = vmatprep.subr.mxu1 %v7364_v4 }
0x2800   :  { %3125 = vmatpush1.msra.mxu1 %v7367_v37 }
0x2801   :  { %3126 = vmatprep.subr.mxu1 %v7370_v48 }
0x2802   :  { %3127 = vmatpush1.msra.mxu1 %v7373_v32 }
0x2803   :  { %3128 = vmatprep.subr.mxu1 %v7376_v15 }
0x2804   :  { %3129 = vmatpush1.msra.mxu1 %v7379_v58 }
0x2805   :  { %3130 = vmatprep.subr.mxu1 %v7382_v42 }
0x2806   :  { %3131 = vmatpush1.msra.mxu1 %v7385_v52 }
0x2807   :  { %3165 = vmatmul.mubr.f32.vlgmr.msra.gmra.mxu1 %v6369_v0  ;;  %3315 = vmatprep.subr.mxu1 %v7324_v1 }
0x2808   :  { %3316 = vmatpush1.msra.mxu1 %v7338_v33  ;;  %3363 = vmatprep.mubr.f32.mxu1 %v6369_v0 }
0x2809   :  { %3317 = vmatprep.subr.mxu1 %v7344_v45 }
0x280a   :  { %3318 = vmatpush1.msra.mxu1 %v7349_v57 }
0x280b   :  { %3319 = vmatprep.subr.mxu1 %v7352_v9 }
0x280c   :  { %3320 = vmatpush1.msra.mxu1 %v7355_v51 }
0x280d   :  { %3321 = vmatprep.subr.mxu1 %v7358_v28 }
0x280e   :  { %3322 = vmatpush1.msra.mxu1 %v7361_v6 }
0x280f   :  { %3323 = vmatprep.subr.mxu1 %v7364_v4 }
0x2810   :  { %3324 = vmatpush1.msra.mxu1 %v7367_v37 }
0x2811   :  { %3325 = vmatprep.subr.mxu1 %v7370_v48 }
0x2812   :  { %3326 = vmatpush1.msra.mxu1 %v7373_v32 }
0x2813   :  { %3327 = vmatprep.subr.mxu1 %v7376_v15 }
0x2814   :  { %3328 = vmatpush1.msra.mxu1 %v7379_v58 }
0x2815   :  { %3329 = vmatprep.subr.mxu1 %v7382_v42 }
0x2816   :  { %3330 = vmatpush1.msra.mxu1 %v7385_v52 }
0x2817   :  { %3523 = vmatprep.subr.mxu1 %v7324_v1 }
0x2842   :  { %v3064_v8 = vpop.f32.mrf.mxu0 }
0x2843   :  { %v7431_v13 = vadd.f32 %v3064_v8, %v7428_v26 }
0x2844   :  { %v3066_v61 = vpop.f32.mrf.mxu0 }
0x2845   :  { %v7444_v60 = vadd.f32 %v3066_v61, %v7440_v23 }
0x28b7   :  { %v2920_v46 = vpop.f32.mrf.mxu1 }
0x28b8   :  { %v2926_v50 = vrot.slane %v2920_v46, 2 }
0x28b9   :  { %v2922_v10 = vpop.f32.mrf.mxu1 }
0x28ba   :  { %v2928_v16 = vadd.f32 %v2926_v50, %v7278_v38  ;;  %v2935_v38 = vadd.f32 %v7158_v12, %v2922_v10 }
0x28bc   :  { %v5919_v11 = vmul.f32 -1.442695, %v2928_v16  ;;  %v2937_v19 = vrot.slane %v2935_v38, 2 }
0x28be   :  { %6124 = vpow2.f32 %v5919_v11 }
0x28c7   :  { %v3166_v30 = vpop.f32.mrf.mxu1 }
0x28c8   :  { %v3171_v2 = vadd.f32 %v3166_v30, %v7431_v13 }
0x28c9   :  { %v3168_v24 = vpop.f32.mrf.mxu1 }
0x28ca   :  { %v5923_v34 = vmul.f32 -1.442695, %v3171_v2  ;;  %v3178_v12 = vadd.f32 %v7437_v21, %v3168_v24 }
0x28cb   :  { %v6125_v41 = vpop.eup %6124 }
0x28cc   :  { %v2932_v3 = vadd.f32 1.0, %v6125_v41  ;;  %6126 = vpow2.f32 %v5923_v34 }
0x28ce   :  { %6128 = vrcp.f32 %v2932_v3 }
0x28d9   :  { %v6127_v39 = vpop.eup %6126 }
0x28da   :  { %v3175_v40 = vadd.f32 1.0, %v6127_v39 }
0x28db   :  { %v6129_v47 = vpop.eup %6128 }
0x28dc   :  { %v2939_v7 = vmul.f32 %v6129_v47, %v2937_v19  ;;  %6130 = vrcp.f32 %v3175_v40  ;;  %v2950_v17 = vmul.f32 %v6129_v47, %v2948_v36  ;;  %v2942_v5 = vsub.f32 1.0, %v6129_v47 }
0x28de   :  { %v2940_v59 = vadd.f32 %v2939_v7, %v7284_v56 }
0x28e0   :  { %6132 = vtanh.f32 %v2940_v59 }
0x28e9   :  { %v6131_v53 = vpop.eup %6130 }
0x28ea   :  { %v3179_v62 = vmul.f32 %v6131_v53, %v3178_v12  ;;  %v3182_v29 = vsub.f32 1.0, %v6131_v53  ;;  %v3188_v31 = vmul.f32 0.0, %v6131_v53 }
0x28ec   :  { %v3180_v27 = vadd.f32 %v3179_v62, %v7444_v60 }
0x28ed   :  { %v6133_v63 = vpop.eup %6132 }
0x28ee   :  { %6134 = vtanh.f32 %v3180_v27  ;;  %2944 = vrot.lane.b32.xlu1 %v6133_v63, %s6370_s1 }
0x28fb   :  { %v6135_v56 = vpop.eup %6134 }
0x28fc   :  { %3184 = vrot.lane.b32.xlu0 %v6135_v56, %s6370_s1 }
0x2960   :  { %v2945_v55 = vpop.permute.xlu1 %2944 }
0x2961   :  { %v2947_v18 = vmul.f32 %v2945_v55, %v2942_v5 }
0x2963   :  { %v2951_v25 = vadd.f32 %v2950_v17, %v2947_v18 }
0x2965   :  { %v2957_v20 = vsel %vm1040_vm4, %v7342_v35, %v2951_v25 }
0x2966   :  { %2992 = vrot.lane.b32.xlu1 %v2957_v20, %s6370_s1 }
0x296e   :  { %v3185_v49 = vpop.permute.xlu0 %3184 }
0x296f   :  { %v3187_v14 = vmul.f32 %v3185_v49, %v3182_v29 }
0x2971   :  { %v7452_v46 = vadd.f32 %v3188_v31, %v3187_v14 }
0x2973   :  { %3191 = vrot.lane.b32.xlu0 %v7452_v46, %s6370_s1  ;;  %v3289_v7 = vrot.slane %v7452_v46, 6 }
0x29d8   :  { %v2993_v50 = vpop.permute.xlu1 %2992 }
0x29d9   :  { %5921 = vmatmul.mubr.msk.f32.gmra.mxu0 %vm223_vm1, %v2993_v50 }
0x29da   :  { %3259 = vmatprep.mubr.f32.mxu0 %v6369_v0 }
0x29e5   :  { %v3192_v16 = vpop.permute.xlu0 %3191 }
0x29e6   :  { %5924 = vmatmul.mubr.msk.f32.vlgmr.msra.gmra.mxu0 %vm223_vm1, %v3192_v16 }
0x29e7   :  { %3420 = vmatpush1.msra.mxu0 %v7338_v33  ;;  %3467 = vmatprep.mubr.f32.mxu0 %v6369_v0 }
0x29e8   :  { %3421 = vmatprep.subr.mxu0 %v7344_v45 }
0x29e9   :  { %3422 = vmatpush1.msra.mxu0 %v7349_v57 }
0x29ea   :  { %3423 = vmatprep.subr.mxu0 %v7352_v9 }
0x29eb   :  { %3424 = vmatpush1.msra.mxu0 %v7355_v51 }
0x29ec   :  { %3425 = vmatprep.subr.mxu0 %v7358_v28 }
0x29ed   :  { %3426 = vmatpush1.msra.mxu0 %v7361_v6 }
0x29ee   :  { %3427 = vmatprep.subr.mxu0 %v7364_v4 }
0x29ef   :  { %3428 = vmatpush1.msra.mxu0 %v7367_v37 }
0x29f0   :  { %3429 = vmatprep.subr.mxu0 %v7370_v48 }
0x29f1   :  { %3430 = vmatpush1.msra.mxu0 %v7373_v32 }
0x29f2   :  { %3431 = vmatprep.subr.mxu0 %v7376_v15 }
0x29f3   :  { %3432 = vmatpush1.msra.mxu0 %v7379_v58 }
0x29f4   :  { %3433 = vmatprep.subr.mxu0 %v7382_v42 }
0x29f5   :  { %3434 = vmatpush1.msra.mxu0 %v7385_v52 }
0x29f6   :  { %3619 = vmatprep.subr.mxu0 %v7324_v1 }
0x2a99   :  { %v7476_v35 = vpop.f32.mrf.mxu0 }
0x2a9b   :  { %v7478_v11 = vpop.f32.mrf.mxu0 }
0x2aa6   :  { %v3261_v22 = vpop.f32.mrf.mxu0 }
0x2aa7   :  { %v3267_v8 = vrot.slane %v3261_v22, 6 }
0x2aa8   :  { %v3263_v41 = vpop.f32.mrf.mxu0 }
0x2aa9   :  { %v3269_v10 = vadd.f32 %v3267_v8, %v7431_v13  ;;  %v3276_v3 = vadd.f32 %v7437_v21, %v3263_v41 }
0x2aab   :  { %v5925_v30 = vmul.f32 -1.442695, %v3269_v10  ;;  %v3278_v38 = vrot.slane %v3276_v3, 6 }
0x2aad   :  { %6136 = vpow2.f32 %v5925_v30 }
0x2aba   :  { %v6137_v2 = vpop.eup %6136 }
0x2abb   :  { %v3273_v34 = vadd.f32 1.0, %v6137_v2 }
0x2abd   :  { %6138 = vrcp.f32 %v3273_v34 }
0x2aca   :  { %v6139_v39 = vpop.eup %6138 }
0x2acb   :  { %v3280_v19 = vmul.f32 %v6139_v39, %v3278_v38  ;;  %v3283_v47 = vsub.f32 1.0, %v6139_v39  ;;  %v3291_v24 = vmul.f32 %v6139_v39, %v3289_v7 }
0x2acd   :  { %v3281_v40 = vadd.f32 %v3280_v19, %v7444_v60 }
0x2acf   :  { %6140 = vtanh.f32 %v3281_v40 }
0x2adc   :  { %v6141_v36 = vpop.eup %6140 }
0x2add   :  { %3285 = vrot.lane.b32.xlu1 %v6141_v36, %s6370_s1 }
0x2b4f   :  { %v3286_v17 = vpop.permute.xlu1 %3285 }
0x2b50   :  { %v3288_v59 = vmul.f32 %v3286_v17, %v3283_v47 }
0x2b52   :  { %v3292_v61 = vadd.f32 %v3291_v24, %v3288_v59 }
0x2b54   :  { %v3294_v12 = vrot.slane %v3292_v61, 2  ;;  %v3393_v29 = vrot.slane %v3292_v61, 6  ;;  %v3909_v2 = vsel %vm1036_vm2, %v7452_v46, %v3292_v61 }
0x2b56   :  { %3295 = vrot.lane.b32.xlu0 %v3294_v12, %s6370_s1 }
0x2bc8   :  { %v3296_v53 = vpop.permute.xlu0 %3295 }
0x2bc9   :  { %5926 = vmatmul.mubr.msk.f32.vlgmr.msra.gmra.mxu1 %vm223_vm1, %v3296_v53 }
0x2bca   :  { %3524 = vmatpush1.msra.mxu1 %v7338_v33  ;;  %3571 = vmatprep.mubr.f32.mxu1 %v6369_v0 }
0x2bcb   :  { %3525 = vmatprep.subr.mxu1 %v7344_v45 }
0x2bcc   :  { %3526 = vmatpush1.msra.mxu1 %v7349_v57 }
0x2bcd   :  { %3527 = vmatprep.subr.mxu1 %v7352_v9 }
0x2bce   :  { %3528 = vmatpush1.msra.mxu1 %v7355_v51 }
0x2bcf   :  { %3529 = vmatprep.subr.mxu1 %v7358_v28 }
0x2bd0   :  { %3530 = vmatpush1.msra.mxu1 %v7361_v6 }
0x2bd1   :  { %3531 = vmatprep.subr.mxu1 %v7364_v4 }
0x2bd2   :  { %3532 = vmatpush1.msra.mxu1 %v7367_v37 }
0x2bd3   :  { %3533 = vmatprep.subr.mxu1 %v7370_v48 }
0x2bd4   :  { %3534 = vmatpush1.msra.mxu1 %v7373_v32 }
0x2bd5   :  { %3535 = vmatprep.subr.mxu1 %v7376_v15 }
0x2bd6   :  { %3536 = vmatpush1.msra.mxu1 %v7379_v58 }
0x2bd7   :  { %3537 = vmatprep.subr.mxu1 %v7382_v42 }
0x2bd8   :  { %3538 = vmatpush1.msra.mxu1 %v7385_v52 }
0x2bd9   :  { %3723 = vmatprep.subr.mxu1 %v7324_v1 }
0x2c89   :  { %v3365_v62 = vpop.f32.mrf.mxu1 }
0x2c8a   :  { %v3371_v27 = vrot.slane %v3365_v62, 4 }
0x2c8b   :  { %v3367_v18 = vpop.f32.mrf.mxu1 }
0x2c8c   :  { %v3373_v63 = vadd.f32 %v3371_v27, %v7431_v13  ;;  %v3380_v25 = vadd.f32 %v7437_v21, %v3367_v18 }
0x2c8e   :  { %v5927_v56 = vmul.f32 -1.442695, %v3373_v63  ;;  %v3382_v20 = vrot.slane %v3380_v25, 4 }
0x2c90   :  { %6142 = vpow2.f32 %v5927_v56 }
0x2c9d   :  { %v6143_v5 = vpop.eup %6142 }
0x2c9e   :  { %v3377_v55 = vadd.f32 1.0, %v6143_v5 }
0x2ca0   :  { %6144 = vrcp.f32 %v3377_v55 }
0x2cad   :  { %v6145_v49 = vpop.eup %6144 }
0x2cae   :  { %v3384_v31 = vmul.f32 %v6145_v49, %v3382_v20  ;;  %v3395_v14 = vmul.f32 %v6145_v49, %v3393_v29  ;;  %v3387_v22 = vsub.f32 1.0, %v6145_v49 }
0x2cb0   :  { %v3385_v50 = vadd.f32 %v3384_v31, %v7444_v60 }
0x2cb2   :  { %6146 = vtanh.f32 %v3385_v50 }
0x2cbf   :  { %v6147_v16 = vpop.eup %6146 }
0x2cc0   :  { %3389 = vrot.lane.b32.xlu1 %v6147_v16, %s6370_s1  ;;  %v7563_v16 = vadd.f32 %v7478_v11, %v7440_v23 }
0x2d32   :  { %v3390_v8 = vpop.permute.xlu1 %3389 }
0x2d33   :  { %v3392_v10 = vmul.f32 %v3390_v8, %v3387_v22 }
0x2d35   :  { %v3396_v30 = vadd.f32 %v3395_v14, %v3392_v10 }
0x2d37   :  { %v3398_v34 = vrot.slane %v3396_v30, 4  ;;  %v3910_v41 = vsel %vm1038_vm3, %v3909_v2, %v3396_v30  ;;  %v3497_v59 = vrot.slane %v3396_v30, 6 }
0x2d39   :  { %3399 = vrot.lane.b32.xlu0 %v3398_v34, %s6370_s1 }
0x2dab   :  { %v3400_v3 = vpop.permute.xlu0 %3399 }
0x2dac   :  { %5928 = vmatmul.mubr.msk.f32.vlgmr.msra.gmra.mxu0 %vm223_vm1, %v3400_v3 }
0x2dad   :  { %3620 = vmatpush1.msra.mxu0 %v7338_v33  ;;  %3667 = vmatprep.mubr.f32.mxu0 %v6369_v0 }
0x2dae   :  { %3621 = vmatprep.subr.mxu0 %v7344_v45 }
0x2daf   :  { %3622 = vmatpush1.msra.mxu0 %v7349_v57 }
0x2db0   :  { %3623 = vmatprep.subr.mxu0 %v7352_v9 }
0x2db1   :  { %3624 = vmatpush1.msra.mxu0 %v7355_v51 }
0x2db2   :  { %3625 = vmatprep.subr.mxu0 %v7358_v28 }
0x2db3   :  { %3626 = vmatpush1.msra.mxu0 %v7361_v6 }
0x2db4   :  { %3627 = vmatprep.subr.mxu0 %v7364_v4 }
0x2db5   :  { %3628 = vmatpush1.msra.mxu0 %v7367_v37 }
0x2db6   :  { %3629 = vmatprep.subr.mxu0 %v7370_v48 }
0x2db7   :  { %3630 = vmatpush1.msra.mxu0 %v7373_v32 }
0x2db8   :  { %3631 = vmatprep.subr.mxu0 %v7376_v15 }
0x2db9   :  { %3632 = vmatpush1.msra.mxu0 %v7379_v58 }
0x2dba   :  { %3633 = vmatprep.subr.mxu0 %v7382_v42 }
0x2dbb   :  { %3634 = vmatpush1.msra.mxu0 %v7385_v52 }
0x2dbc   :  { %3827 = vmatprep.subr.mxu0 %v7324_v1 }
0x2e6c   :  { %v3469_v46 = vpop.f32.mrf.mxu0 }
0x2e6d   :  { %v3475_v38 = vrot.slane %v3469_v46, 2 }
0x2e6e   :  { %v3471_v47 = vpop.f32.mrf.mxu0 }
0x2e6f   :  { %v3477_v39 = vadd.f32 %v3475_v38, %v7431_v13  ;;  %v3484_v7 = vadd.f32 %v7437_v21, %v3471_v47  ;;  %v3928_v47 = vld [vmem:[#allocation2 + $0x1e0] sm:$0xff] }
0x2e71   :  { %v5929_v19 = vmul.f32 -1.442695, %v3477_v39  ;;  %v3486_v17 = vrot.slane %v3484_v7, 2  ;;  %v3927_v7 = vld [vmem:[#allocation2 + $0x1d8] sm:$0xff] }
0x2e73   :  { %6148 = vpow2.f32 %v5929_v19  ;;  %v3931_v19 = vld [vmem:[#allocation2 + $0x1f8] sm:$0xff] }
0x2e80   :  { %v6149_v40 = vpop.eup %6148 }
0x2e81   :  { %v3481_v36 = vadd.f32 1.0, %v6149_v40  ;;  %v3930_v40 = vld [vmem:[#allocation2 + $0x1f0] sm:$0xff] }
0x2e83   :  { %6150 = vrcp.f32 %v3481_v36  ;;  %v3929_v36 = vld [vmem:[#allocation2 + $0x1e8] sm:$0xff] }
0x2e90   :  { %v6151_v24 = vpop.eup %6150 }
0x2e91   :  { %v3488_v61 = vmul.f32 %v6151_v24, %v3486_v17  ;;  %v3499_v12 = vmul.f32 %v6151_v24, %v3497_v59  ;;  %v3491_v13 = vsub.f32 1.0, %v6151_v24  ;;  %v3926_v17 = vld [vmem:[#allocation2 + $0x1d0] sm:$0xff]  ;;  %v3925_v59 = vld [vmem:[#allocation2 + $0x1c8] sm:$0xff]  ;;  %v3924_v24 = vld [vmem:[#allocation2 + $0x1c0] sm:$0xff] }
0x2e93   :  { %v3489_v53 = vadd.f32 %v3488_v61, %v7444_v60  ;;  %v7557_v60 = vadd.f32 %v7476_v35, %v7428_v26  ;;  %v3923_v61 = vld [vmem:[#allocation2 + $0x1b8] sm:$0xff] }
0x2e95   :  { %6152 = vtanh.f32 %v3489_v53  ;;  %v3921_v53 = vld [vmem:[#allocation2 + $0x1a8] sm:$0xff] }
0x2ea2   :  { %v6153_v1 = vpop.eup %6152 }
0x2ea3   :  { %3493 = vrot.lane.b32.xlu1 %v6153_v1, %s6370_s1  ;;  %v3920_v1 = vld [vmem:[#allocation2 + $0x1a0] sm:$0xff] }
0x2f15   :  { %v3494_v62 = vpop.permute.xlu1 %3493 }
0x2f16   :  { %v3496_v27 = vmul.f32 %v3494_v62, %v3491_v13 }
0x2f18   :  { %v3500_v63 = vadd.f32 %v3499_v12, %v3496_v27  ;;  %v3922_v12 = vld [vmem:[#allocation2 + $0x1b0] sm:$0xff] }
0x2f1a   :  { %v3502_v56 = vrot.slane %v3500_v63, 6  ;;  %v7535_v5 = vsel %vm1040_vm4, %v3910_v41, %v3500_v63 }
0x2f1c   :  { %3503 = vrot.lane.b32.xlu0 %v3502_v56, %s6370_s1 }
0x2f8e   :  { %v3504_v55 = vpop.permute.xlu0 %3503 }
0x2f8f   :  { %5930 = vmatmul.mubr.msk.f32.vlgmr.msra.gmra.mxu1 %vm223_vm1, %v3504_v55 }
0x2f90   :  { %3724 = vmatpush1.msra.mxu1 %v7338_v33  ;;  %3771 = vmatprep.mubr.f32.mxu1 %v6369_v0 }
0x2f91   :  { %3725 = vmatprep.subr.mxu1 %v7344_v45 }
0x2f92   :  { %3726 = vmatpush1.msra.mxu1 %v7349_v57 }
0x2f93   :  { %3727 = vmatprep.subr.mxu1 %v7352_v9 }
0x2f94   :  { %3728 = vmatpush1.msra.mxu1 %v7355_v51 }
0x2f95   :  { %3729 = vmatprep.subr.mxu1 %v7358_v28 }
0x2f96   :  { %3730 = vmatpush1.msra.mxu1 %v7361_v6 }
0x2f97   :  { %3731 = vmatprep.subr.mxu1 %v7364_v4 }
0x2f98   :  { %3732 = vmatpush1.msra.mxu1 %v7367_v37 }
0x2f99   :  { %3733 = vmatprep.subr.mxu1 %v7370_v48 }
0x2f9a   :  { %3734 = vmatpush1.msra.mxu1 %v7373_v32 }
0x2f9b   :  { %3735 = vmatprep.subr.mxu1 %v7376_v15 }
0x2f9c   :  { %3736 = vmatpush1.msra.mxu1 %v7379_v58 }
0x2f9d   :  { %3737 = vmatprep.subr.mxu1 %v7382_v42 }
0x2f9e   :  { %3738 = vmatpush1.msra.mxu1 %v7385_v52 }
0x2f9f   :  { %3971 = vmatprep.subr.mxu1 %v3931_v19 }
0x304f   :  { %v3573_v18 = vpop.f32.mrf.mxu1 }
0x3050   :  { %v3578_v25 = vadd.f32 %v3573_v18, %v7557_v60 }
0x3051   :  { %v3575_v31 = vpop.f32.mrf.mxu1 }
0x3052   :  { %v5931_v20 = vmul.f32 -1.442695, %v3578_v25  ;;  %v3585_v14 = vadd.f32 %v7437_v21, %v3575_v31 }
0x3054   :  { %6154 = vpow2.f32 %v5931_v20 }
0x3061   :  { %v6155_v29 = vpop.eup %6154 }
0x3062   :  { %v3582_v49 = vadd.f32 1.0, %v6155_v29 }
0x3064   :  { %6156 = vrcp.f32 %v3582_v49 }
0x3071   :  { %v6157_v50 = vpop.eup %6156 }
0x3072   :  { %v3586_v22 = vmul.f32 %v6157_v50, %v3585_v14  ;;  %v3589_v8 = vsub.f32 1.0, %v6157_v50  ;;  %v3596_v30 = vmul.f32 %v6157_v50, %v3502_v56 }
0x3074   :  { %v3587_v26 = vadd.f32 %v3586_v22, %v7563_v16  ;;  %v3919_v22 = vld [vmem:[#allocation2 + $0x198] sm:$0xff] }
0x3076   :  { %6158 = vtanh.f32 %v3587_v26  ;;  %v3918_v26 = vld [vmem:[#allocation2 + $0x190] sm:$0xff] }
0x3083   :  { %v6159_v35 = vpop.eup %6158 }
0x3084   :  { %3591 = vrot.lane.b32.xlu1 %v6159_v35, %s6370_s1  ;;  %v3917_v35 = vld [vmem:[#allocation2 + $0x188] sm:$0xff] }
0x30f6   :  { %v3592_v10 = vpop.permute.xlu1 %3591 }
0x30f7   :  { %v3594_v2 = vmul.f32 %v3592_v10, %v3589_v8  ;;  %v3916_v8 = vld [vmem:[#allocation2 + $0x180] sm:$0xff]  ;;  %v7603_v10 = vld [vmem:[#allocation4 + $0x278] sm:$0xff] }
0x30f9   :  { %v7567_v34 = vadd.f32 %v3596_v30, %v3594_v2 }
0x30fb   :  { %3599 = vrot.lane.b32.xlu0 %v7567_v34, %s6370_s1 }
0x316d   :  { %v3600_v41 = vpop.permute.xlu0 %3599 }
0x316e   :  { %5932 = vmatmul.mubr.msk.f32.vlgmr.msra.gmra.mxu0 %vm223_vm1, %v3600_v41 }
0x316f   :  { %3828 = vmatpush1.msra.mxu0 %v7338_v33  ;;  %3875 = vmatprep.mubr.f32.mxu0 %v6369_v0 }
0x3170   :  { %3829 = vmatprep.subr.mxu0 %v7344_v45 }
0x3171   :  { %3830 = vmatpush1.msra.mxu0 %v7349_v57 }
0x3172   :  { %3831 = vmatprep.subr.mxu0 %v7352_v9 }
0x3173   :  { %3832 = vmatpush1.msra.mxu0 %v7355_v51 }
0x3174   :  { %3833 = vmatprep.subr.mxu0 %v7358_v28 }
0x3175   :  { %3834 = vmatpush1.msra.mxu0 %v7361_v6 }
0x3176   :  { %3835 = vmatprep.subr.mxu0 %v7364_v4 }
0x3177   :  { %3836 = vmatpush1.msra.mxu0 %v7367_v37 }
0x3178   :  { %3837 = vmatprep.subr.mxu0 %v7370_v48 }
0x3179   :  { %3838 = vmatpush1.msra.mxu0 %v7373_v32 }
0x317a   :  { %3839 = vmatprep.subr.mxu0 %v7376_v15 }
0x317b   :  { %3840 = vmatpush1.msra.mxu0 %v7379_v58 }
0x317c   :  { %3841 = vmatprep.subr.mxu0 %v7382_v42 }
0x317d   :  { %3842 = vmatpush1.msra.mxu0 %v7385_v52  ;;  %v3697_v52 = vrot.slane %v7567_v34, 6 }
0x317e   :  { %4073 = vmatprep.subr.mxu0 %v7603_v10 }
0x322e   :  { %v3669_v33 = vpop.f32.mrf.mxu0 }
0x322f   :  { %v3675_v45 = vrot.slane %v3669_v33, 6 }
0x3230   :  { %v3671_v6 = vpop.f32.mrf.mxu0 }
0x3231   :  { %v3677_v57 = vadd.f32 %v3675_v45, %v7557_v60  ;;  %v3684_v4 = vadd.f32 %v7437_v21, %v3671_v6 }
0x3233   :  { %v5933_v9 = vmul.f32 -1.442695, %v3677_v57  ;;  %v3686_v37 = vrot.slane %v3684_v4, 6  ;;  %v7628_v4 = vld [vmem:[#allocation4 + $0x260] sm:$0xff] }
0x3235   :  { %6160 = vpow2.f32 %v5933_v9 }
0x3242   :  { %v6161_v51 = vpop.eup %6160 }
0x3243   :  { %v3681_v28 = vadd.f32 1.0, %v6161_v51 }
0x3245   :  { %6162 = vrcp.f32 %v3681_v28  ;;  %v7617_v28 = vld [vmem:[#allocation4 + $0x270] sm:$0xff] }
0x3252   :  { %v6163_v48 = vpop.eup %6162 }
0x3253   :  { %v3688_v32 = vmul.f32 %v6163_v48, %v3686_v37  ;;  %v3691_v42 = vsub.f32 1.0, %v6163_v48  ;;  %v3699_v3 = vmul.f32 %v6163_v48, %v3697_v52  ;;  %v7634_v37 = vld [vmem:[#allocation4 + $0x250] sm:$0xff]  ;;  %v7637_v48 = vld [vmem:[#allocation4 + $0x248] sm:$0xff]  ;;  %v7652_v52 = vld [vmem:[#allocation4 + $0x220] sm:$0xff] }
0x3255   :  { %v3689_v15 = vadd.f32 %v3688_v32, %v7563_v16  ;;  %v7640_v32 = vld [vmem:[#allocation4 + $0x240] sm:$0xff] }
0x3257   :  { %6164 = vtanh.f32 %v3689_v15  ;;  %v7643_v15 = vld [vmem:[#allocation4 + $0x238] sm:$0xff] }
0x3264   :  { %v6165_v58 = vpop.eup %6164 }
0x3265   :  { %3693 = vrot.lane.b32.xlu1 %v6165_v58, %s6370_s1  ;;  %v7646_v58 = vld [vmem:[#allocation4 + $0x230] sm:$0xff] }
0x32d7   :  { %v3694_v23 = vpop.permute.xlu1 %3693 }
0x32d8   :  { %v3696_v11 = vmul.f32 %v3694_v23, %v3691_v42  ;;  %v7649_v42 = vld [vmem:[#allocation4 + $0x228] sm:$0xff]  ;;  %v7655_v23 = vld [vmem:[#allocation4 + $0x218] sm:$0xff] }
0x32da   :  { %v7593_v46 = vadd.f32 %v3699_v3, %v3696_v11  ;;  %v7658_v11 = vld [vmem:[#allocation4 + $0x210] sm:$0xff]  ;;  %v7661_v3 = vld [vmem:[#allocation4 + $0x208] sm:$0xff] }
0x32dc   :  { %v3702_v38 = vrot.slane %v7593_v46, 2  ;;  %v3801_v29 = vrot.slane %v7593_v46, 6  ;;  %v3912_v9 = vsel %vm1036_vm2, %v7567_v34, %v7593_v46  ;;  %v7631_v34 = vld [vmem:[#allocation4 + $0x258] sm:$0xff]  ;;  %v7664_v46 = vld [vmem:[#allocation4 + $0x200] sm:$0xff] }
0x32de   :  { %3703 = vrot.lane.b32.xlu0 %v3702_v38, %s6370_s1 }
0x3350   :  { %v3704_v39 = vpop.permute.xlu0 %3703 }
0x3351   :  { %5934 = vmatmul.mubr.msk.f32.vlgmr.msra.gmra.mxu1 %vm223_vm1, %v3704_v39 }
0x3352   :  { %4019 = vmatprep.mubr.f32.mxu1 %v6369_v0  ;;  %3972 = vmatpush1.msra.mxu1 %v3930_v40 }
0x3353   :  { %3973 = vmatprep.subr.mxu1 %v3929_v36 }
0x3354   :  { %3974 = vmatpush1.msra.mxu1 %v3928_v47  ;;  %v3933_v47 = vld [vmem:[#allocation6 + $0x8] sm:$0x3] }
0x3355   :  { %3975 = vmatprep.subr.mxu1 %v3927_v7  ;;  %v7707_v7 = vrot.slane %v3933_v47, %v6589_v44 }
0x3356   :  { %3976 = vmatpush1.msra.mxu1 %v3926_v17 }
0x3357   :  { %3977 = vmatprep.subr.mxu1 %v3925_v59 }
0x3358   :  { %3978 = vmatpush1.msra.mxu1 %v3924_v24 }
0x3359   :  { %3979 = vmatprep.subr.mxu1 %v3923_v61 }
0x335a   :  { %3980 = vmatpush1.msra.mxu1 %v3922_v12 }
0x335b   :  { %3981 = vmatprep.subr.mxu1 %v3921_v53 }
0x335c   :  { %3982 = vmatpush1.msra.mxu1 %v3920_v1 }
0x335d   :  { %3983 = vmatprep.subr.mxu1 %v3919_v22 }
0x335e   :  { %3984 = vmatpush1.msra.mxu1 %v3918_v26 }
0x335f   :  { %3985 = vmatprep.subr.mxu1 %v3917_v35 }
0x3360   :  { %3986 = vmatpush1.msra.mxu1 %v3916_v8 }
0x3361   :  { %4168 = vmatprep.subr.mxu1 %v7603_v10 }
0x3411   :  { %v3773_v13 = vpop.f32.mrf.mxu1 }
0x3412   :  { %v3779_v62 = vrot.slane %v3773_v13, 4 }
0x3413   :  { %v3775_v18 = vpop.f32.mrf.mxu1 }
0x3414   :  { %v3781_v27 = vadd.f32 %v3779_v62, %v7557_v60  ;;  %v3788_v25 = vadd.f32 %v7437_v21, %v3775_v18 }
0x3416   :  { %v5935_v63 = vmul.f32 -1.442695, %v3781_v27  ;;  %v3790_v20 = vrot.slane %v3788_v25, 4 }
0x3418   :  { %6166 = vpow2.f32 %v5935_v63 }
0x3425   :  { %v6167_v56 = vpop.eup %6166 }
0x3426   :  { %v3785_v55 = vadd.f32 1.0, %v6167_v56 }
0x3428   :  { %6168 = vrcp.f32 %v3785_v55 }
0x3435   :  { %v6169_v49 = vpop.eup %6168 }
0x3436   :  { %v3792_v31 = vmul.f32 %v6169_v49, %v3790_v20  ;;  %v3803_v14 = vmul.f32 %v6169_v49, %v3801_v29  ;;  %v3795_v2 = vsub.f32 1.0, %v6169_v49  ;;  %v7716_v29 = vld [vmem:[#allocation7 + $0x4] ss:$0 sm:$0xff] }
0x3438   :  { %v3793_v50 = vadd.f32 %v3792_v31, %v7563_v16  ;;  %v7719_v31 = vrot.slane %v3933_v47, %v6599_v54 }
0x343a   :  { %6170 = vtanh.f32 %v3793_v50 }
0x3447   :  { %v6171_v30 = vpop.eup %6170 }
0x3448   :  { %3797 = vrot.lane.b32.xlu1 %v6171_v30, %s6370_s1 }
0x344c   :  { %3947 = vrot.lane.b32.xlu1 %v7535_v5, %s6370_s1  ;;  %v7623_v5 = vld [vmem:[#allocation4 + $0x268] sm:$0xff] }
0x34ba   :  { %v3798_v41 = vpop.permute.xlu1 %3797 }
0x34bb   :  { %v3800_v33 = vmul.f32 %v3798_v41, %v3795_v2 }
0x34bd   :  { %v7610_v45 = vadd.f32 %v3803_v14, %v3800_v33 }
0x34be   :  { %v3948_v57 = vpop.permute.xlu1 %3947 }
0x34bf   :  { %5938 = vmatmul.mubr.msk.f32.vlgmr.msra.gmra.mxu1 %vm223_vm1, %v3948_v57  ;;  %v3806_v51 = vrot.slane %v7610_v45, 4  ;;  %v7621_v6 = vsel %vm1038_vm3, %v3912_v9, %v7610_v45  ;;  %v3905_v56 = vrot.slane %v7610_v45, 6 }
0x34c0   :  { %4169 = vmatpush1.msra.mxu1 %v7617_v28  ;;  %4025 = vmatprep.mubr.f32.mxu1 %v6369_v0 }
0x34c1   :  { %3807 = vrot.lane.b32.xlu0 %v3806_v51, %s6370_s1  ;;  %4170 = vmatprep.subr.mxu1 %v7623_v5 }
0x34c2   :  { %4171 = vmatpush1.msra.mxu1 %v7628_v4 }
0x34c3   :  { %4172 = vmatprep.subr.mxu1 %v7631_v34 }
0x34c4   :  { %4173 = vmatpush1.msra.mxu1 %v7634_v37 }
0x34c5   :  { %4174 = vmatprep.subr.mxu1 %v7637_v48 }
0x34c6   :  { %4175 = vmatpush1.msra.mxu1 %v7640_v32 }
0x34c7   :  { %4176 = vmatprep.subr.mxu1 %v7643_v15 }
0x34c8   :  { %4177 = vmatpush1.msra.mxu1 %v7646_v58 }
0x34c9   :  { %4178 = vmatprep.subr.mxu1 %v7649_v42 }
0x34ca   :  { %4179 = vmatpush1.msra.mxu1 %v7652_v52 }
0x34cb   :  { %4180 = vmatprep.subr.mxu1 %v7655_v23 }
0x34cc   :  { %4181 = vmatpush1.msra.mxu1 %v7658_v11 }
0x34cd   :  { %4182 = vmatprep.subr.mxu1 %v7661_v3 }
0x34ce   :  { %4183 = vmatpush1.msra.mxu1 %v7664_v46 }
0x34cf   :  { %4376 = vmatprep.subr.mxu1 %v7603_v10 }
0x3533   :  { %v3808_v38 = vpop.permute.xlu0 %3807 }
0x3534   :  { %5936 = vmatmul.mubr.msk.f32.vlgmr.msra.gmra.mxu0 %vm223_vm1, %v3808_v38 }
0x3535   :  { %4074 = vmatpush1.msra.mxu0 %v7617_v28  ;;  %4121 = vmatprep.mubr.f32.mxu0 %v6369_v0 }
0x3536   :  { %4075 = vmatprep.subr.mxu0 %v7623_v5 }
0x3537   :  { %4076 = vmatpush1.msra.mxu0 %v7628_v4 }
0x3538   :  { %4077 = vmatprep.subr.mxu0 %v7631_v34 }
0x3539   :  { %4078 = vmatpush1.msra.mxu0 %v7634_v37 }
0x353a   :  { %4079 = vmatprep.subr.mxu0 %v7637_v48 }
0x353b   :  { %4080 = vmatpush1.msra.mxu0 %v7640_v32 }
0x353c   :  { %4081 = vmatprep.subr.mxu0 %v7643_v15 }
0x353d   :  { %4082 = vmatpush1.msra.mxu0 %v7646_v58 }
0x353e   :  { %4083 = vmatprep.subr.mxu0 %v7649_v42 }
0x353f   :  { %4084 = vmatpush1.msra.mxu0 %v7652_v52 }
0x3540   :  { %4085 = vmatprep.subr.mxu0 %v7655_v23 }
0x3541   :  { %4086 = vmatpush1.msra.mxu0 %v7658_v11 }
0x3542   :  { %4087 = vmatprep.subr.mxu0 %v7661_v3 }
0x3543   :  { %4088 = vmatpush1.msra.mxu0 %v7664_v46 }
0x3544   :  { %4122 = vmatmul.mubr.f32.vlgmr.msra.gmra.mxu0 %v6369_v0  ;;  %4272 = vmatprep.subr.mxu0 %v7603_v10 }
0x3545   :  { %4273 = vmatpush1.msra.mxu0 %v7617_v28  ;;  %4320 = vmatprep.mubr.f32.mxu0 %v6369_v0 }
0x3546   :  { %4274 = vmatprep.subr.mxu0 %v7623_v5 }
0x3547   :  { %4275 = vmatpush1.msra.mxu0 %v7628_v4 }
0x3548   :  { %4276 = vmatprep.subr.mxu0 %v7631_v34 }
0x3549   :  { %4277 = vmatpush1.msra.mxu0 %v7634_v37 }
0x354a   :  { %4278 = vmatprep.subr.mxu0 %v7637_v48 }
0x354b   :  { %4279 = vmatpush1.msra.mxu0 %v7640_v32 }
0x354c   :  { %4280 = vmatprep.subr.mxu0 %v7643_v15 }
0x354d   :  { %4281 = vmatpush1.msra.mxu0 %v7646_v58 }
0x354e   :  { %4282 = vmatprep.subr.mxu0 %v7649_v42 }
0x354f   :  { %4283 = vmatpush1.msra.mxu0 %v7652_v52 }
0x3550   :  { %4284 = vmatprep.subr.mxu0 %v7655_v23 }
0x3551   :  { %4285 = vmatpush1.msra.mxu0 %v7658_v11 }
0x3552   :  { %4286 = vmatprep.subr.mxu0 %v7661_v3 }
0x3553   :  { %4287 = vmatpush1.msra.mxu0 %v7664_v46 }
0x3554   :  { %4480 = vmatprep.subr.mxu0 %v7603_v10 }
0x357f   :  { %v4021_v17 = vpop.f32.mrf.mxu1 }
0x3580   :  { %v7710_v24 = vadd.f32 %v4021_v17, %v7707_v7 }
0x3581   :  { %v4023_v14 = vpop.f32.mrf.mxu1 }
0x3582   :  { %v7723_v22 = vadd.f32 %v4023_v14, %v7719_v31 }
0x35f4   :  { %v3877_v39 = vpop.f32.mrf.mxu0 }
0x35f5   :  { %v3883_v19 = vrot.slane %v3877_v39, 2 }
0x35f6   :  { %v3879_v59 = vpop.f32.mrf.mxu0 }
0x35f7   :  { %v3885_v40 = vadd.f32 %v3883_v19, %v7557_v60  ;;  %v3892_v60 = vadd.f32 %v7437_v21, %v3879_v59 }
0x35f9   :  { %v5937_v36 = vmul.f32 -1.442695, %v3885_v40  ;;  %v3894_v27 = vrot.slane %v3892_v60, 2 }
0x35fb   :  { %6172 = vpow2.f32 %v5937_v36 }
0x3604   :  { %v4123_v61 = vpop.f32.mrf.mxu0 }
0x3605   :  { %v4128_v12 = vadd.f32 %v4123_v61, %v7710_v24 }
0x3606   :  { %v4125_v49 = vpop.f32.mrf.mxu0 }
0x3607   :  { %v5941_v53 = vmul.f32 -1.442695, %v4128_v12  ;;  %v4135_v21 = vadd.f32 %v7716_v29, %v4125_v49 }
0x3608   :  { %v6173_v1 = vpop.eup %6172 }
0x3609   :  { %v3889_v13 = vadd.f32 1.0, %v6173_v1  ;;  %6174 = vpow2.f32 %v5941_v53 }
0x360b   :  { %6176 = vrcp.f32 %v3889_v13 }
0x3616   :  { %v6175_v62 = vpop.eup %6174 }
0x3617   :  { %v4132_v63 = vadd.f32 1.0, %v6175_v62 }
0x3618   :  { %v6177_v55 = vpop.eup %6176 }
0x3619   :  { %v3896_v18 = vmul.f32 %v6177_v55, %v3894_v27  ;;  %6178 = vrcp.f32 %v4132_v63  ;;  %v3907_v25 = vmul.f32 %v6177_v55, %v3905_v56  ;;  %v3899_v30 = vsub.f32 1.0, %v6177_v55 }
0x361b   :  { %v3897_v20 = vadd.f32 %v3896_v18, %v7563_v16 }
0x361d   :  { %6180 = vtanh.f32 %v3897_v20 }
0x3626   :  { %v6179_v50 = vpop.eup %6178 }
0x3627   :  { %v4136_v26 = vmul.f32 %v6179_v50, %v4135_v21  ;;  %v4139_v57 = vsub.f32 1.0, %v6179_v50  ;;  %v4145_v51 = vmul.f32 0.0, %v6179_v50 }
0x3629   :  { %v4137_v35 = vadd.f32 %v4136_v26, %v7723_v22 }
0x362a   :  { %v6181_v8 = vpop.eup %6180 }
0x362b   :  { %6182 = vtanh.f32 %v4137_v35  ;;  %3901 = vrot.lane.b32.xlu0 %v6181_v8, %s6370_s1 }
0x3638   :  { %v6183_v16 = vpop.eup %6182 }
0x3639   :  { %4141 = vrot.lane.b32.xlu1 %v6183_v16, %s6370_s1 }
0x369d   :  { %v3902_v2 = vpop.permute.xlu0 %3901 }
0x369e   :  { %v3904_v41 = vmul.f32 %v3902_v2, %v3899_v30 }
0x36a0   :  { %v3908_v33 = vadd.f32 %v3907_v25, %v3904_v41 }
0x36a2   :  { %v3914_v45 = vsel %vm1040_vm4, %v7621_v6, %v3908_v33 }
0x36a3   :  { %3949 = vrot.lane.b32.xlu0 %v3914_v45, %s6370_s1 }
0x36ab   :  { %v4142_v9 = vpop.permute.xlu1 %4141 }
0x36ac   :  { %v4144_v38 = vmul.f32 %v4142_v9, %v4139_v57 }
0x36ae   :  { %v7731_v39 = vadd.f32 %v4145_v51, %v4144_v38 }
0x36b0   :  { %4148 = vrot.lane.b32.xlu1 %v7731_v39, %s6370_s1  ;;  %v4246_v18 = vrot.slane %v7731_v39, 6 }
0x3715   :  { %v3950_v19 = vpop.permute.xlu0 %3949 }
0x3716   :  { %5939 = vmatmul.mubr.msk.f32.gmra.mxu1 %vm223_vm1, %v3950_v19 }
0x3717   :  { %4216 = vmatprep.mubr.f32.mxu1 %v6369_v0 }
0x3722   :  { %v4149_v40 = vpop.permute.xlu1 %4148 }
0x3723   :  { %5942 = vmatmul.mubr.msk.f32.vlgmr.msra.gmra.mxu1 %vm223_vm1, %v4149_v40 }
0x3724   :  { %4377 = vmatpush1.msra.mxu1 %v7617_v28  ;;  %4424 = vmatprep.mubr.f32.mxu1 %v6369_v0 }
0x3725   :  { %4378 = vmatprep.subr.mxu1 %v7623_v5 }
0x3726   :  { %4379 = vmatpush1.msra.mxu1 %v7628_v4 }
0x3727   :  { %4380 = vmatprep.subr.mxu1 %v7631_v34 }
0x3728   :  { %4381 = vmatpush1.msra.mxu1 %v7634_v37 }
0x3729   :  { %4382 = vmatprep.subr.mxu1 %v7637_v48 }
0x372a   :  { %4383 = vmatpush1.msra.mxu1 %v7640_v32 }
0x372b   :  { %4384 = vmatprep.subr.mxu1 %v7643_v15 }
0x372c   :  { %4385 = vmatpush1.msra.mxu1 %v7646_v58 }
0x372d   :  { %4386 = vmatprep.subr.mxu1 %v7649_v42 }
0x372e   :  { %4387 = vmatpush1.msra.mxu1 %v7652_v52 }
0x372f   :  { %4388 = vmatprep.subr.mxu1 %v7655_v23 }
0x3730   :  { %4389 = vmatpush1.msra.mxu1 %v7658_v11 }
0x3731   :  { %4390 = vmatprep.subr.mxu1 %v7661_v3 }
0x3732   :  { %4391 = vmatpush1.msra.mxu1 %v7664_v46 }
0x3733   :  { %4576 = vmatprep.subr.mxu1 %v7603_v10 }
0x37d6   :  { %v7755_v6 = vpop.f32.mrf.mxu1 }
0x37d8   :  { %v7757_v36 = vpop.f32.mrf.mxu1 }
0x37e3   :  { %v4218_v47 = vpop.f32.mrf.mxu1 }
0x37e4   :  { %v4224_v17 = vrot.slane %v4218_v47, 6 }
0x37e5   :  { %v4220_v1 = vpop.f32.mrf.mxu1 }
0x37e6   :  { %v4226_v59 = vadd.f32 %v4224_v17, %v7710_v24  ;;  %v4233_v13 = vadd.f32 %v7716_v29, %v4220_v1 }
0x37e8   :  { %v5943_v61 = vmul.f32 -1.442695, %v4226_v59  ;;  %v4235_v60 = vrot.slane %v4233_v13, 6 }
0x37ea   :  { %6184 = vpow2.f32 %v5943_v61 }
0x37f7   :  { %v6185_v12 = vpop.eup %6184 }
0x37f8   :  { %v4230_v53 = vadd.f32 1.0, %v6185_v12 }
0x37fa   :  { %6186 = vrcp.f32 %v4230_v53 }
0x3807   :  { %v6187_v62 = vpop.eup %6186 }
0x3808   :  { %v4237_v27 = vmul.f32 %v6187_v62, %v4235_v60  ;;  %v4240_v55 = vsub.f32 1.0, %v6187_v62  ;;  %v4248_v49 = vmul.f32 %v6187_v62, %v4246_v18 }
0x380a   :  { %v4238_v63 = vadd.f32 %v4237_v27, %v7723_v22 }
0x380c   :  { %6188 = vtanh.f32 %v4238_v63 }
0x3819   :  { %v6189_v56 = vpop.eup %6188 }
0x381a   :  { %4242 = vrot.lane.b32.xlu0 %v6189_v56, %s6370_s1 }
0x388c   :  { %v4243_v25 = vpop.permute.xlu0 %4242 }
0x388d   :  { %v4245_v20 = vmul.f32 %v4243_v25, %v4240_v55 }
0x388f   :  { %v4249_v14 = vadd.f32 %v4248_v49, %v4245_v20 }
0x3891   :  { %v4251_v21 = vrot.slane %v4249_v14, 2  ;;  %v4350_v57 = vrot.slane %v4249_v14, 6  ;;  %v4866_v12 = vsel %vm1036_vm2, %v7731_v39, %v4249_v14 }
0x3893   :  { %4252 = vrot.lane.b32.xlu1 %v4251_v21, %s6370_s1 }
0x3905   :  { %v4253_v50 = vpop.permute.xlu1 %4252 }
0x3906   :  { %5944 = vmatmul.mubr.msk.f32.vlgmr.msra.gmra.mxu0 %vm223_vm1, %v4253_v50 }
0x3907   :  { %4481 = vmatpush1.msra.mxu0 %v7617_v28  ;;  %4528 = vmatprep.mubr.f32.mxu0 %v6369_v0 }
0x3908   :  { %4482 = vmatprep.subr.mxu0 %v7623_v5 }
0x3909   :  { %4483 = vmatpush1.msra.mxu0 %v7628_v4 }
0x390a   :  { %4484 = vmatprep.subr.mxu0 %v7631_v34 }
0x390b   :  { %4485 = vmatpush1.msra.mxu0 %v7634_v37 }
0x390c   :  { %4486 = vmatprep.subr.mxu0 %v7637_v48 }
0x390d   :  { %4487 = vmatpush1.msra.mxu0 %v7640_v32 }
0x390e   :  { %4488 = vmatprep.subr.mxu0 %v7643_v15 }
0x390f   :  { %4489 = vmatpush1.msra.mxu0 %v7646_v58 }
0x3910   :  { %4490 = vmatprep.subr.mxu0 %v7649_v42 }
0x3911   :  { %4491 = vmatpush1.msra.mxu0 %v7652_v52 }
0x3912   :  { %4492 = vmatprep.subr.mxu0 %v7655_v23 }
0x3913   :  { %4493 = vmatpush1.msra.mxu0 %v7658_v11 }
0x3914   :  { %4494 = vmatprep.subr.mxu0 %v7661_v3 }
0x3915   :  { %4495 = vmatpush1.msra.mxu0 %v7664_v46 }
0x3916   :  { %4680 = vmatprep.subr.mxu0 %v7603_v10 }
0x39c6   :  { %v4322_v26 = vpop.f32.mrf.mxu0 }
0x39c7   :  { %v4328_v35 = vrot.slane %v4322_v26, 4 }
0x39c8   :  { %v4324_v41 = vpop.f32.mrf.mxu0 }
0x39c9   :  { %v4330_v8 = vadd.f32 %v4328_v35, %v7710_v24  ;;  %v4337_v33 = vadd.f32 %v7716_v29, %v4324_v41 }
0x39cb   :  { %v5945_v16 = vmul.f32 -1.442695, %v4330_v8  ;;  %v4339_v45 = vrot.slane %v4337_v33, 4 }
0x39cd   :  { %6190 = vpow2.f32 %v5945_v16 }
0x39da   :  { %v6191_v30 = vpop.eup %6190 }
0x39db   :  { %v4334_v2 = vadd.f32 1.0, %v6191_v30 }
0x39dd   :  { %6192 = vrcp.f32 %v4334_v2 }
0x39ea   :  { %v6193_v9 = vpop.eup %6192 }
0x39eb   :  { %v4341_v51 = vmul.f32 %v6193_v9, %v4339_v45  ;;  %v4352_v38 = vmul.f32 %v6193_v9, %v4350_v57  ;;  %v4344_v47 = vsub.f32 1.0, %v6193_v9 }
0x39ed   :  { %v4342_v19 = vadd.f32 %v4341_v51, %v7723_v22 }
0x39ef   :  { %6194 = vtanh.f32 %v4342_v19 }
0x39fc   :  { %v6195_v40 = vpop.eup %6194 }
0x39fd   :  { %4346 = vrot.lane.b32.xlu0 %v6195_v40, %s6370_s1  ;;  %v7842_v40 = vadd.f32 %v7757_v36, %v7719_v31 }
0x3a6f   :  { %v4347_v17 = vpop.permute.xlu0 %4346 }
0x3a70   :  { %v4349_v59 = vmul.f32 %v4347_v17, %v4344_v47 }
0x3a72   :  { %v4353_v61 = vadd.f32 %v4352_v38, %v4349_v59 }
0x3a74   :  { %v4355_v53 = vrot.slane %v4353_v61, 4  ;;  %v4867_v1 = vsel %vm1038_vm3, %v4866_v12, %v4353_v61  ;;  %v4454_v20 = vrot.slane %v4353_v61, 6 }
0x3a76   :  { %4356 = vrot.lane.b32.xlu1 %v4355_v53, %s6370_s1 }
0x3ae8   :  { %v4357_v13 = vpop.permute.xlu1 %4356 }
0x3ae9   :  { %5946 = vmatmul.mubr.msk.f32.vlgmr.msra.gmra.mxu1 %vm223_vm1, %v4357_v13 }
0x3aea   :  { %4577 = vmatpush1.msra.mxu1 %v7617_v28  ;;  %4624 = vmatprep.mubr.f32.mxu1 %v6369_v0 }
0x3aeb   :  { %4578 = vmatprep.subr.mxu1 %v7623_v5 }
0x3aec   :  { %4579 = vmatpush1.msra.mxu1 %v7628_v4 }
0x3aed   :  { %4580 = vmatprep.subr.mxu1 %v7631_v34 }
0x3aee   :  { %4581 = vmatpush1.msra.mxu1 %v7634_v37 }
0x3aef   :  { %4582 = vmatprep.subr.mxu1 %v7637_v48 }
0x3af0   :  { %4583 = vmatpush1.msra.mxu1 %v7640_v32 }
0x3af1   :  { %4584 = vmatprep.subr.mxu1 %v7643_v15 }
0x3af2   :  { %4585 = vmatpush1.msra.mxu1 %v7646_v58 }
0x3af3   :  { %4586 = vmatprep.subr.mxu1 %v7649_v42 }
0x3af4   :  { %4587 = vmatpush1.msra.mxu1 %v7652_v52 }
0x3af5   :  { %4588 = vmatprep.subr.mxu1 %v7655_v23 }
0x3af6   :  { %4589 = vmatpush1.msra.mxu1 %v7658_v11 }
0x3af7   :  { %4590 = vmatprep.subr.mxu1 %v7661_v3 }
0x3af8   :  { %4591 = vmatpush1.msra.mxu1 %v7664_v46 }
0x3af9   :  { %4784 = vmatprep.subr.mxu1 %v7603_v10 }
0x3ba9   :  { %v4426_v39 = vpop.f32.mrf.mxu1 }
0x3baa   :  { %v4432_v60 = vrot.slane %v4426_v39, 2 }
0x3bab   :  { %v4428_v55 = vpop.f32.mrf.mxu1 }
0x3bac   :  { %v4434_v62 = vadd.f32 %v4432_v60, %v7710_v24  ;;  %v4441_v18 = vadd.f32 %v7716_v29, %v4428_v55  ;;  %v4885_v55 = vld [vmem:[#allocation2 + $0x260] sm:$0xff] }
0x3bae   :  { %v5947_v27 = vmul.f32 -1.442695, %v4434_v62  ;;  %v4443_v25 = vrot.slane %v4441_v18, 2  ;;  %v4884_v18 = vld [vmem:[#allocation2 + $0x258] sm:$0xff] }
0x3bb0   :  { %6196 = vpow2.f32 %v5947_v27  ;;  %v4888_v27 = vld [vmem:[#allocation2 + $0x278] sm:$0xff] }
0x3bbd   :  { %v6197_v63 = vpop.eup %6196 }
0x3bbe   :  { %v4438_v56 = vadd.f32 1.0, %v6197_v63  ;;  %v4887_v63 = vld [vmem:[#allocation2 + $0x270] sm:$0xff] }
0x3bc0   :  { %6198 = vrcp.f32 %v4438_v56  ;;  %v4886_v56 = vld [vmem:[#allocation2 + $0x268] sm:$0xff] }
0x3bcd   :  { %v6199_v49 = vpop.eup %6198 }
0x3bce   :  { %v4445_v14 = vmul.f32 %v6199_v49, %v4443_v25  ;;  %v4456_v21 = vmul.f32 %v6199_v49, %v4454_v20  ;;  %v4448_v24 = vsub.f32 1.0, %v6199_v49  ;;  %v4883_v25 = vld [vmem:[#allocation2 + $0x250] sm:$0xff]  ;;  %v4882_v20 = vld [vmem:[#allocation2 + $0x248] sm:$0xff]  ;;  %v4881_v49 = vld [vmem:[#allocation2 + $0x240] sm:$0xff] }
0x3bd0   :  { %v4446_v50 = vadd.f32 %v4445_v14, %v7723_v22  ;;  %v7836_v22 = vadd.f32 %v7755_v6, %v7707_v7  ;;  %v4880_v14 = vld [vmem:[#allocation2 + $0x238] sm:$0xff] }
0x3bd2   :  { %6200 = vtanh.f32 %v4446_v50  ;;  %v4878_v50 = vld [vmem:[#allocation2 + $0x228] sm:$0xff] }
0x3bdf   :  { %v6201_v10 = vpop.eup %6200 }
0x3be0   :  { %4450 = vrot.lane.b32.xlu0 %v6201_v10, %s6370_s1  ;;  %v4877_v10 = vld [vmem:[#allocation2 + $0x220] sm:$0xff] }
0x3c52   :  { %v4451_v26 = vpop.permute.xlu0 %4450 }
0x3c53   :  { %v4453_v35 = vmul.f32 %v4451_v26, %v4448_v24 }
0x3c55   :  { %v4457_v8 = vadd.f32 %v4456_v21, %v4453_v35  ;;  %v4879_v21 = vld [vmem:[#allocation2 + $0x230] sm:$0xff] }
0x3c57   :  { %v4459_v16 = vrot.slane %v4457_v8, 6  ;;  %v7814_v30 = vsel %vm1040_vm4, %v4867_v1, %v4457_v8 }
0x3c59   :  { %4460 = vrot.lane.b32.xlu1 %v4459_v16, %s6370_s1 }
0x3ccb   :  { %v4461_v2 = vpop.permute.xlu1 %4460 }
0x3ccc   :  { %5948 = vmatmul.mubr.msk.f32.vlgmr.msra.gmra.mxu0 %vm223_vm1, %v4461_v2 }
0x3ccd   :  { %4681 = vmatpush1.msra.mxu0 %v7617_v28  ;;  %4728 = vmatprep.mubr.f32.mxu0 %v6369_v0 }
0x3cce   :  { %4682 = vmatprep.subr.mxu0 %v7623_v5 }
0x3ccf   :  { %4683 = vmatpush1.msra.mxu0 %v7628_v4 }
0x3cd0   :  { %4684 = vmatprep.subr.mxu0 %v7631_v34 }
0x3cd1   :  { %4685 = vmatpush1.msra.mxu0 %v7634_v37 }
0x3cd2   :  { %4686 = vmatprep.subr.mxu0 %v7637_v48 }
0x3cd3   :  { %4687 = vmatpush1.msra.mxu0 %v7640_v32 }
0x3cd4   :  { %4688 = vmatprep.subr.mxu0 %v7643_v15 }
0x3cd5   :  { %4689 = vmatpush1.msra.mxu0 %v7646_v58 }
0x3cd6   :  { %4690 = vmatprep.subr.mxu0 %v7649_v42 }
0x3cd7   :  { %4691 = vmatpush1.msra.mxu0 %v7652_v52 }
0x3cd8   :  { %4692 = vmatprep.subr.mxu0 %v7655_v23 }
0x3cd9   :  { %4693 = vmatpush1.msra.mxu0 %v7658_v11 }
0x3cda   :  { %4694 = vmatprep.subr.mxu0 %v7661_v3 }
0x3cdb   :  { %4695 = vmatpush1.msra.mxu0 %v7664_v46 }
0x3cdc   :  { %4928 = vmatprep.subr.mxu0 %v4888_v27 }
0x3d8c   :  { %v4530_v41 = vpop.f32.mrf.mxu0 }
0x3d8d   :  { %v4535_v33 = vadd.f32 %v4530_v41, %v7836_v22 }
0x3d8e   :  { %v4532_v51 = vpop.f32.mrf.mxu0 }
0x3d8f   :  { %v5949_v45 = vmul.f32 -1.442695, %v4535_v33  ;;  %v4542_v38 = vadd.f32 %v7716_v29, %v4532_v51 }
0x3d91   :  { %6202 = vpow2.f32 %v5949_v45 }
0x3d9e   :  { %v6203_v57 = vpop.eup %6202 }
0x3d9f   :  { %v4539_v9 = vadd.f32 1.0, %v6203_v57 }
0x3da1   :  { %6204 = vrcp.f32 %v4539_v9 }
0x3dae   :  { %v6205_v19 = vpop.eup %6204 }
0x3daf   :  { %v4543_v47 = vmul.f32 %v6205_v19, %v4542_v38  ;;  %v4546_v17 = vsub.f32 1.0, %v6205_v19  ;;  %v4553_v61 = vmul.f32 %v6205_v19, %v4459_v16 }
0x3db1   :  { %v4544_v7 = vadd.f32 %v4543_v47, %v7842_v40  ;;  %v4876_v47 = vld [vmem:[#allocation2 + $0x218] sm:$0xff] }
0x3db3   :  { %6206 = vtanh.f32 %v4544_v7  ;;  %v4875_v7 = vld [vmem:[#allocation2 + $0x210] sm:$0xff] }
0x3dc0   :  { %v6207_v6 = vpop.eup %6206 }
0x3dc1   :  { %4548 = vrot.lane.b32.xlu0 %v6207_v6, %s6370_s1  ;;  %v4874_v6 = vld [vmem:[#allocation2 + $0x208] sm:$0xff] }
0x3e33   :  { %v4549_v59 = vpop.permute.xlu0 %4548 }
0x3e34   :  { %v4551_v12 = vmul.f32 %v4549_v59, %v4546_v17  ;;  %v4873_v17 = vld [vmem:[#allocation2 + $0x200] sm:$0xff]  ;;  %v7882_v59 = vld [vmem:[#allocation4 + $0x2f8] sm:$0xff] }
0x3e36   :  { %v7846_v53 = vadd.f32 %v4553_v61, %v4551_v12 }
0x3e38   :  { %4556 = vrot.lane.b32.xlu1 %v7846_v53, %s6370_s1 }
0x3eaa   :  { %v4557_v1 = vpop.permute.xlu1 %4556 }
0x3eab   :  { %5950 = vmatmul.mubr.msk.f32.vlgmr.msra.gmra.mxu1 %vm223_vm1, %v4557_v1 }
0x3eac   :  { %4785 = vmatpush1.msra.mxu1 %v7617_v28  ;;  %4832 = vmatprep.mubr.f32.mxu1 %v6369_v0 }
0x3ead   :  { %4786 = vmatprep.subr.mxu1 %v7623_v5 }
0x3eae   :  { %4787 = vmatpush1.msra.mxu1 %v7628_v4 }
0x3eaf   :  { %4788 = vmatprep.subr.mxu1 %v7631_v34 }
0x3eb0   :  { %4789 = vmatpush1.msra.mxu1 %v7634_v37 }
0x3eb1   :  { %4790 = vmatprep.subr.mxu1 %v7637_v48 }
0x3eb2   :  { %4791 = vmatpush1.msra.mxu1 %v7640_v32 }
0x3eb3   :  { %4792 = vmatprep.subr.mxu1 %v7643_v15 }
0x3eb4   :  { %4793 = vmatpush1.msra.mxu1 %v7646_v58 }
0x3eb5   :  { %4794 = vmatprep.subr.mxu1 %v7649_v42 }
0x3eb6   :  { %4795 = vmatpush1.msra.mxu1 %v7652_v52 }
0x3eb7   :  { %4796 = vmatprep.subr.mxu1 %v7655_v23 }
0x3eb8   :  { %4797 = vmatpush1.msra.mxu1 %v7658_v11 }
0x3eb9   :  { %4798 = vmatprep.subr.mxu1 %v7661_v3 }
0x3eba   :  { %4799 = vmatpush1.msra.mxu1 %v7664_v46  ;;  %v4654_v46 = vrot.slane %v7846_v53, 6 }
0x3ebb   :  { %5030 = vmatprep.subr.mxu1 %v7882_v59 }
0x3f6b   :  { %v4626_v28 = vpop.f32.mrf.mxu1 }
0x3f6c   :  { %v4632_v5 = vrot.slane %v4626_v28, 6 }
0x3f6d   :  { %v4628_v32 = vpop.f32.mrf.mxu1 }
0x3f6e   :  { %v4634_v4 = vadd.f32 %v4632_v5, %v7836_v22  ;;  %v4641_v15 = vadd.f32 %v7716_v29, %v4628_v32 }
0x3f70   :  { %v5951_v34 = vmul.f32 -1.442695, %v4634_v4  ;;  %v4643_v58 = vrot.slane %v4641_v15, 6  ;;  %v7907_v15 = vld [vmem:[#allocation4 + $0x2e0] sm:$0xff] }
0x3f72   :  { %6208 = vpow2.f32 %v5951_v34 }
0x3f7f   :  { %v6209_v37 = vpop.eup %6208 }
0x3f80   :  { %v4638_v48 = vadd.f32 1.0, %v6209_v37 }
0x3f82   :  { %6210 = vrcp.f32 %v4638_v48  ;;  %v7896_v48 = vld [vmem:[#allocation4 + $0x2f0] sm:$0xff] }
0x3f8f   :  { %v6211_v42 = vpop.eup %6210 }
0x3f90   :  { %v4645_v52 = vmul.f32 %v6211_v42, %v4643_v58  ;;  %v4648_v3 = vsub.f32 1.0, %v6211_v42  ;;  %v4656_v13 = vmul.f32 %v6211_v42, %v4654_v46  ;;  %v7913_v58 = vld [vmem:[#allocation4 + $0x2d0] sm:$0xff]  ;;  %v7916_v42 = vld [vmem:[#allocation4 + $0x2c8] sm:$0xff]  ;;  %v7931_v46 = vld [vmem:[#allocation4 + $0x2a0] sm:$0xff] }
0x3f92   :  { %v4646_v23 = vadd.f32 %v4645_v52, %v7842_v40  ;;  %v7919_v52 = vld [vmem:[#allocation4 + $0x2c0] sm:$0xff] }
0x3f94   :  { %6212 = vtanh.f32 %v4646_v23  ;;  %v7922_v23 = vld [vmem:[#allocation4 + $0x2b8] sm:$0xff] }
0x3fa1   :  { %v6213_v11 = vpop.eup %6212 }
0x3fa2   :  { %4650 = vrot.lane.b32.xlu0 %v6213_v11, %s6370_s1  ;;  %v7925_v11 = vld [vmem:[#allocation4 + $0x2b0] sm:$0xff] }
0x4014   :  { %v4651_v31 = vpop.permute.xlu0 %4650 }
0x4015   :  { %v4653_v36 = vmul.f32 %v4651_v31, %v4648_v3  ;;  %v7928_v3 = vld [vmem:[#allocation4 + $0x2a8] sm:$0xff]  ;;  %v7934_v31 = vld [vmem:[#allocation4 + $0x298] sm:$0xff] }
0x4017   :  { %v7872_v39 = vadd.f32 %v4656_v13, %v4653_v36  ;;  %v7937_v36 = vld [vmem:[#allocation4 + $0x290] sm:$0xff]  ;;  %v7940_v13 = vld [vmem:[#allocation4 + $0x288] sm:$0xff] }
0x4019   :  { %v4659_v60 = vrot.slane %v7872_v39, 2  ;;  %v4758_v57 = vrot.slane %v7872_v39, 6  ;;  %v4869_v34 = vsel %vm1036_vm2, %v7846_v53, %v7872_v39  ;;  %v7910_v53 = vld [vmem:[#allocation4 + $0x2d8] sm:$0xff]  ;;  %v7943_v39 = vld [vmem:[#allocation4 + $0x280] sm:$0xff] }
0x401b   :  { %4660 = vrot.lane.b32.xlu1 %v4659_v60, %s6370_s1 }
0x408d   :  { %v4661_v62 = vpop.permute.xlu1 %4660 }
0x408e   :  { %5952 = vmatmul.mubr.msk.f32.vlgmr.msra.gmra.mxu0 %vm223_vm1, %v4661_v62 }
0x408f   :  { %4976 = vmatprep.mubr.f32.mxu0 %v6369_v0  ;;  %4929 = vmatpush1.msra.mxu0 %v4887_v63 }
0x4090   :  { %4930 = vmatprep.subr.mxu0 %v4886_v56 }
0x4091   :  { %4931 = vmatpush1.msra.mxu0 %v4885_v55  ;;  %v4890_v55 = vld [vmem:[#allocation6 + $0xa] sm:$0x3] }
0x4092   :  { %4932 = vmatprep.subr.mxu0 %v4884_v18  ;;  %v7986_v18 = vrot.slane %v4890_v55, %v6589_v44 }
0x4093   :  { %4933 = vmatpush1.msra.mxu0 %v4883_v25 }
0x4094   :  { %4934 = vmatprep.subr.mxu0 %v4882_v20 }
0x4095   :  { %4935 = vmatpush1.msra.mxu0 %v4881_v49 }
0x4096   :  { %4936 = vmatprep.subr.mxu0 %v4880_v14 }
0x4097   :  { %4937 = vmatpush1.msra.mxu0 %v4879_v21 }
0x4098   :  { %4938 = vmatprep.subr.mxu0 %v4878_v50 }
0x4099   :  { %4939 = vmatpush1.msra.mxu0 %v4877_v10 }
0x409a   :  { %4940 = vmatprep.subr.mxu0 %v4876_v47 }
0x409b   :  { %4941 = vmatpush1.msra.mxu0 %v4875_v7 }
0x409c   :  { %4942 = vmatprep.subr.mxu0 %v4874_v6 }
0x409d   :  { %4943 = vmatpush1.msra.mxu0 %v4873_v17 }
0x409e   :  { %5125 = vmatprep.subr.mxu0 %v7882_v59 }
0x414e   :  { %v4730_v24 = vpop.f32.mrf.mxu0 }
0x414f   :  { %v4736_v26 = vrot.slane %v4730_v24, 4 }
0x4150   :  { %v4732_v41 = vpop.f32.mrf.mxu0 }
0x4151   :  { %v4738_v35 = vadd.f32 %v4736_v26, %v7836_v22  ;;  %v4745_v33 = vadd.f32 %v7716_v29, %v4732_v41 }
0x4153   :  { %v5953_v8 = vmul.f32 -1.442695, %v4738_v35  ;;  %v4747_v45 = vrot.slane %v4745_v33, 4 }
0x4155   :  { %6214 = vpow2.f32 %v5953_v8 }
0x4162   :  { %v6215_v16 = vpop.eup %6214 }
0x4163   :  { %v4742_v2 = vadd.f32 1.0, %v6215_v16 }
0x4165   :  { %6216 = vrcp.f32 %v4742_v2 }
0x4172   :  { %v6217_v9 = vpop.eup %6216 }
0x4173   :  { %v4749_v51 = vmul.f32 %v6217_v9, %v4747_v45  ;;  %v4760_v38 = vmul.f32 %v6217_v9, %v4758_v57  ;;  %v4752_v12 = vsub.f32 1.0, %v6217_v9  ;;  %v7995_v45 = vld [vmem:[#allocation7 + $0x5] ss:$0 sm:$0xff]  ;;  %v7998_v9 = vrot.slane %v4890_v55, %v6599_v54 }
0x4175   :  { %v4750_v19 = vadd.f32 %v4749_v51, %v7842_v40 }
0x4177   :  { %6218 = vtanh.f32 %v4750_v19 }
0x4184   :  { %v6219_v61 = vpop.eup %6218 }
0x4185   :  { %4754 = vrot.lane.b32.xlu0 %v6219_v61, %s6370_s1 }
0x4189   :  { %4904 = vrot.lane.b32.xlu0 %v7814_v30, %s6370_s1  ;;  %v7902_v30 = vld [vmem:[#allocation4 + $0x2e8] sm:$0xff] }
0x41f7   :  { %v4755_v1 = vpop.permute.xlu0 %4754 }
0x41f8   :  { %v4757_v28 = vmul.f32 %v4755_v1, %v4752_v12 }
0x41fa   :  { %v7889_v5 = vadd.f32 %v4760_v38, %v4757_v28 }
0x41fb   :  { %v4905_v4 = vpop.permute.xlu0 %4904 }
0x41fc   :  { %5956 = vmatmul.mubr.msk.f32.vlgmr.msra.gmra.mxu0 %vm223_vm1, %v4905_v4  ;;  %v4763_v37 = vrot.slane %v7889_v5, 4  ;;  %v7900_v32 = vsel %vm1038_vm3, %v4869_v34, %v7889_v5  ;;  %v4862_v44 = vrot.slane %v7889_v5, 6 }
0x41fd   :  { %5126 = vmatpush1.msra.mxu0 %v7896_v48  ;;  %4982 = vmatprep.mubr.f32.mxu0 %v6369_v0 }
0x41fe   :  { %4764 = vrot.lane.b32.xlu1 %v4763_v37, %s6370_s1  ;;  %5127 = vmatprep.subr.mxu0 %v7902_v30 }
0x41ff   :  { %5128 = vmatpush1.msra.mxu0 %v7907_v15 }
0x4200   :  { %5129 = vmatprep.subr.mxu0 %v7910_v53 }
0x4201   :  { %5130 = vmatpush1.msra.mxu0 %v7913_v58 }
0x4202   :  { %5131 = vmatprep.subr.mxu0 %v7916_v42 }
0x4203   :  { %5132 = vmatpush1.msra.mxu0 %v7919_v52 }
0x4204   :  { %5133 = vmatprep.subr.mxu0 %v7922_v23 }
0x4205   :  { %5134 = vmatpush1.msra.mxu0 %v7925_v11 }
0x4206   :  { %5135 = vmatprep.subr.mxu0 %v7928_v3 }
0x4207   :  { %5136 = vmatpush1.msra.mxu0 %v7931_v46 }
0x4208   :  { %5137 = vmatprep.subr.mxu0 %v7934_v31 }
0x4209   :  { %5138 = vmatpush1.msra.mxu0 %v7937_v36 }
0x420a   :  { %5139 = vmatprep.subr.mxu0 %v7940_v13 }
0x420b   :  { %5140 = vmatpush1.msra.mxu0 %v7943_v39 }
0x420c   :  { %5333 = vmatprep.subr.mxu0 %v7882_v59 }
0x4270   :  { %v4765_v60 = vpop.permute.xlu1 %4764 }
0x4271   :  { %5954 = vmatmul.mubr.msk.f32.vlgmr.msra.gmra.mxu1 %vm223_vm1, %v4765_v60 }
0x4272   :  { %5031 = vmatpush1.msra.mxu1 %v7896_v48  ;;  %5078 = vmatprep.mubr.f32.mxu1 %v6369_v0 }
0x4273   :  { %5032 = vmatprep.subr.mxu1 %v7902_v30 }
0x4274   :  { %5033 = vmatpush1.msra.mxu1 %v7907_v15 }
0x4275   :  { %5034 = vmatprep.subr.mxu1 %v7910_v53 }
0x4276   :  { %5035 = vmatpush1.msra.mxu1 %v7913_v58 }
0x4277   :  { %5036 = vmatprep.subr.mxu1 %v7916_v42 }
0x4278   :  { %5037 = vmatpush1.msra.mxu1 %v7919_v52 }
0x4279   :  { %5038 = vmatprep.subr.mxu1 %v7922_v23 }
0x427a   :  { %5039 = vmatpush1.msra.mxu1 %v7925_v11 }
0x427b   :  { %5040 = vmatprep.subr.mxu1 %v7928_v3 }
0x427c   :  { %5041 = vmatpush1.msra.mxu1 %v7931_v46 }
0x427d   :  { %5042 = vmatprep.subr.mxu1 %v7934_v31 }
0x427e   :  { %5043 = vmatpush1.msra.mxu1 %v7937_v36 }
0x427f   :  { %5044 = vmatprep.subr.mxu1 %v7940_v13 }
0x4280   :  { %5045 = vmatpush1.msra.mxu1 %v7943_v39 }
0x4281   :  { %5079 = vmatmul.mubr.f32.vlgmr.msra.gmra.mxu1 %v6369_v0  ;;  %5229 = vmatprep.subr.mxu1 %v7882_v59 }
0x4282   :  { %5230 = vmatpush1.msra.mxu1 %v7896_v48  ;;  %5277 = vmatprep.mubr.f32.mxu1 %v6369_v0 }
0x4283   :  { %5231 = vmatprep.subr.mxu1 %v7902_v30 }
0x4284   :  { %5232 = vmatpush1.msra.mxu1 %v7907_v15 }
0x4285   :  { %5233 = vmatprep.subr.mxu1 %v7910_v53 }
0x4286   :  { %5234 = vmatpush1.msra.mxu1 %v7913_v58 }
0x4287   :  { %5235 = vmatprep.subr.mxu1 %v7916_v42 }
0x4288   :  { %5236 = vmatpush1.msra.mxu1 %v7919_v52 }
0x4289   :  { %5237 = vmatprep.subr.mxu1 %v7922_v23 }
0x428a   :  { %5238 = vmatpush1.msra.mxu1 %v7925_v11 }
0x428b   :  { %5239 = vmatprep.subr.mxu1 %v7928_v3 }
0x428c   :  { %5240 = vmatpush1.msra.mxu1 %v7931_v46 }
0x428d   :  { %5241 = vmatprep.subr.mxu1 %v7934_v31 }
0x428e   :  { %5242 = vmatpush1.msra.mxu1 %v7937_v36 }
0x428f   :  { %5243 = vmatprep.subr.mxu1 %v7940_v13 }
0x4290   :  { %5244 = vmatpush1.msra.mxu1 %v7943_v39 }
0x4291   :  { %5437 = vmatprep.subr.mxu1 %v7882_v59 }
0x42bc   :  { %v4978_v25 = vpop.f32.mrf.mxu0 }
0x42bd   :  { %v7989_v49 = vadd.f32 %v4978_v25, %v7986_v18 }
0x42be   :  { %v4980_v51 = vpop.f32.mrf.mxu0 }
0x42bf   :  { %v8002_v19 = vadd.f32 %v4980_v51, %v7998_v9 }
0x4331   :  { %v4834_v62 = vpop.f32.mrf.mxu1 }
0x4332   :  { %v4840_v27 = vrot.slane %v4834_v62, 2 }
0x4333   :  { %v4836_v20 = vpop.f32.mrf.mxu1 }
0x4334   :  { %v4842_v63 = vadd.f32 %v4840_v27, %v7836_v22  ;;  %v4849_v22 = vadd.f32 %v7716_v29, %v4836_v20 }
0x4336   :  { %v5955_v56 = vmul.f32 -1.442695, %v4842_v63  ;;  %v4851_v35 = vrot.slane %v4849_v22, 2 }
0x4338   :  { %6220 = vpow2.f32 %v5955_v56 }
0x4341   :  { %v5080_v14 = vpop.f32.mrf.mxu1 }
0x4342   :  { %v5085_v21 = vadd.f32 %v5080_v14, %v7989_v49 }
0x4343   :  { %v5082_v57 = vpop.f32.mrf.mxu1 }
0x4344   :  { %v5959_v50 = vmul.f32 -1.442695, %v5085_v21  ;;  %v5092_v29 = vadd.f32 %v7995_v45, %v5082_v57 }
0x4345   :  { %v6221_v10 = vpop.eup %6220 }
0x4346   :  { %v4846_v24 = vadd.f32 1.0, %v6221_v10  ;;  %6222 = vpow2.f32 %v5959_v50 }
0x4348   :  { %6224 = vrcp.f32 %v4846_v24 }
0x4353   :  { %v6223_v26 = vpop.eup %6222 }
0x4354   :  { %v5089_v8 = vadd.f32 1.0, %v6223_v26 }
0x4355   :  { %v6225_v16 = vpop.eup %6224 }
0x4356   :  { %v4853_v2 = vmul.f32 %v6225_v16, %v4851_v35  ;;  %6226 = vrcp.f32 %v5089_v8  ;;  %v4864_v41 = vmul.f32 %v6225_v16, %v4862_v44  ;;  %v4856_v17 = vsub.f32 1.0, %v6225_v16 }
0x4358   :  { %v4854_v33 = vadd.f32 %v4853_v2, %v7842_v40 }
0x435a   :  { %6228 = vtanh.f32 %v4854_v33 }
0x4363   :  { %v6227_v38 = vpop.eup %6226 }
0x4364   :  { %v5093_v47 = vmul.f32 %v6227_v38, %v5092_v29  ;;  %v5096_v28 = vsub.f32 1.0, %v6227_v38  ;;  %v5102_v4 = vmul.f32 0.0, %v6227_v38 }
0x4366   :  { %v5094_v7 = vadd.f32 %v5093_v47, %v8002_v19 }
0x4367   :  { %v6229_v6 = vpop.eup %6228 }
0x4368   :  { %6230 = vtanh.f32 %v5094_v7  ;;  %4858 = vrot.lane.b32.xlu1 %v6229_v6, %s6370_s1 }
0x4375   :  { %v6231_v40 = vpop.eup %6230 }
0x4376   :  { %5098 = vrot.lane.b32.xlu0 %v6231_v40, %s6370_s1 }
0x43da   :  { %v4859_v54 = vpop.permute.xlu1 %4858 }
0x43db   :  { %v4861_v61 = vmul.f32 %v4859_v54, %v4856_v17 }
0x43dd   :  { %v4865_v12 = vadd.f32 %v4864_v41, %v4861_v61 }
0x43df   :  { %v4871_v1 = vsel %vm1040_vm4, %v7900_v32, %v4865_v12 }
0x43e0   :  { %4906 = vrot.lane.b32.xlu1 %v4871_v1, %s6370_s1 }
0x43e8   :  { %v5099_v5 = vpop.permute.xlu0 %5098 }
0x43e9   :  { %v5101_v34 = vmul.f32 %v5099_v5, %v5096_v28 }
0x43eb   :  { %v5103_v37 = vadd.f32 %v5102_v4, %v5101_v34 }
0x43ed   :  { %5105 = vrot.lane.b32.xlu0 %v5103_v37, %s6370_s1  ;;  %v5203_v10 = vrot.slane %v5103_v37, 6 }
0x4452   :  { %v4907_v60 = vpop.permute.xlu1 %4906 }
0x4453   :  { %5957 = vmatmul.mubr.msk.f32.gmra.mxu0 %vm223_vm1, %v4907_v60 }
0x4454   :  { %5173 = vmatprep.mubr.f32.mxu0 %v6369_v0 }
0x445f   :  { %v8013_v62 = vpop.permute.xlu0 %5105 }
0x4460   :  { %5960 = vmatmul.mubr.msk.f32.vlgmr.msra.gmra.mxu0 %vm223_vm1, %v8013_v62 }
0x4461   :  { %5334 = vmatpush1.msra.mxu0 %v7896_v48  ;;  %5381 = vmatprep.mubr.f32.mxu0 %v6369_v0 }
0x4462   :  { %5335 = vmatprep.subr.mxu0 %v7902_v30 }
0x4463   :  { %5336 = vmatpush1.msra.mxu0 %v7907_v15 }
0x4464   :  { %5337 = vmatprep.subr.mxu0 %v7910_v53 }
0x4465   :  { %5338 = vmatpush1.msra.mxu0 %v7913_v58 }
0x4466   :  { %5339 = vmatprep.subr.mxu0 %v7916_v42 }
0x4467   :  { %5340 = vmatpush1.msra.mxu0 %v7919_v52 }
0x4468   :  { %5341 = vmatprep.subr.mxu0 %v7922_v23 }
0x4469   :  { %5342 = vmatpush1.msra.mxu0 %v7925_v11 }
0x446a   :  { %5343 = vmatprep.subr.mxu0 %v7928_v3 }
0x446b   :  { %5344 = vmatpush1.msra.mxu0 %v7931_v46 }
0x446c   :  { %5345 = vmatprep.subr.mxu0 %v7934_v31 }
0x446d   :  { %5346 = vmatpush1.msra.mxu0 %v7937_v36 }
0x446e   :  { %5347 = vmatprep.subr.mxu0 %v7940_v13 }
0x446f   :  { %5348 = vmatpush1.msra.mxu0 %v7943_v39 }
0x4470   :  { %5533 = vmatprep.subr.mxu0 %v7882_v59 }
0x4513   :  { %v8034_v32 = vpop.f32.mrf.mxu0 }
0x4515   :  { %v8036_v27 = vpop.f32.mrf.mxu0 }
0x4520   :  { %v5175_v63 = vpop.f32.mrf.mxu0 }
0x4521   :  { %v5181_v56 = vrot.slane %v5175_v63, 6 }
0x4522   :  { %v5177_v21 = vpop.f32.mrf.mxu0 }
0x4523   :  { %v5183_v55 = vadd.f32 %v5181_v56, %v7989_v49  ;;  %v5190_v50 = vadd.f32 %v7995_v45, %v5177_v21 }
0x4525   :  { %v5961_v25 = vmul.f32 -1.442695, %v5183_v55  ;;  %v5192_v24 = vrot.slane %v5190_v50, 6 }
0x4527   :  { %6232 = vpow2.f32 %v5961_v25 }
0x4534   :  { %v6233_v20 = vpop.eup %6232 }
0x4535   :  { %v5187_v14 = vadd.f32 1.0, %v6233_v20 }
0x4537   :  { %6234 = vrcp.f32 %v5187_v14 }
0x4544   :  { %v6235_v22 = vpop.eup %6234 }
0x4545   :  { %v5194_v26 = vmul.f32 %v6235_v22, %v5192_v24  ;;  %v5205_v35 = vmul.f32 %v6235_v22, %v5203_v10  ;;  %v5197_v16 = vsub.f32 1.0, %v6235_v22 }
0x4547   :  { %v5195_v8 = vadd.f32 %v5194_v26, %v8002_v19 }
0x4549   :  { %6236 = vtanh.f32 %v5195_v8 }
0x4556   :  { %v6237_v44 = vpop.eup %6236 }
0x4557   :  { %5199 = vrot.lane.b32.xlu1 %v6237_v44, %s6370_s1 }
0x45c9   :  { %v5200_v2 = vpop.permute.xlu1 %5199 }
0x45ca   :  { %v5202_v41 = vmul.f32 %v5200_v2, %v5197_v16 }
0x45cc   :  { %v8042_v33 = vadd.f32 %v5205_v35, %v5202_v41 }
0x45ce   :  { %v5208_v57 = vrot.slane %v8042_v33, 2  ;;  %v5307_v61 = vrot.slane %v8042_v33, 6 }
0x45d0   :  { %5209 = vrot.lane.b32.xlu0 %v5208_v57, %s6370_s1 }
0x4642   :  { %v5210_v51 = vpop.permute.xlu0 %5209 }
0x4643   :  { %5962 = vmatmul.mubr.msk.f32.vlgmr.msra.gmra.mxu1 %vm223_vm1, %v5210_v51 }
0x4644   :  { %5438 = vmatpush1.msra.mxu1 %v7896_v48  ;;  %5485 = vmatprep.mubr.f32.mxu1 %v6369_v0 }
0x4645   :  { %5439 = vmatprep.subr.mxu1 %v7902_v30 }
0x4646   :  { %5440 = vmatpush1.msra.mxu1 %v7907_v15 }
0x4647   :  { %5441 = vmatprep.subr.mxu1 %v7910_v53 }
0x4648   :  { %5442 = vmatpush1.msra.mxu1 %v7913_v58 }
0x4649   :  { %5443 = vmatprep.subr.mxu1 %v7916_v42 }
0x464a   :  { %5444 = vmatpush1.msra.mxu1 %v7919_v52 }
0x464b   :  { %5445 = vmatprep.subr.mxu1 %v7922_v23 }
0x464c   :  { %5446 = vmatpush1.msra.mxu1 %v7925_v11 }
0x464d   :  { %5447 = vmatprep.subr.mxu1 %v7928_v3 }
0x464e   :  { %5448 = vmatpush1.msra.mxu1 %v7931_v46 }
0x464f   :  { %5449 = vmatprep.subr.mxu1 %v7934_v31 }
0x4650   :  { %5450 = vmatpush1.msra.mxu1 %v7937_v36 }
0x4651   :  { %5451 = vmatprep.subr.mxu1 %v7940_v13 }
0x4652   :  { %5452 = vmatpush1.msra.mxu1 %v7943_v39 }
0x4653   :  { %5637 = vmatprep.subr.mxu1 %v7882_v59 }
0x4703   :  { %v5279_v29 = vpop.f32.mrf.mxu1 }
0x4704   :  { %v5285_v38 = vrot.slane %v5279_v29, 4 }
0x4705   :  { %v5281_v17 = vpop.f32.mrf.mxu1 }
0x4706   :  { %v5287_v47 = vadd.f32 %v5285_v38, %v7989_v49  ;;  %v5294_v54 = vadd.f32 %v7995_v45, %v5281_v17 }
0x4708   :  { %v5963_v7 = vmul.f32 -1.442695, %v5287_v47  ;;  %v5296_v12 = vrot.slane %v5294_v54, 4 }
0x470a   :  { %6238 = vpow2.f32 %v5963_v7 }
0x4717   :  { %v6239_v6 = vpop.eup %6238 }
0x4718   :  { %v5291_v40 = vadd.f32 1.0, %v6239_v6 }
0x471a   :  { %6240 = vrcp.f32 %v5291_v40 }
0x4727   :  { %v6241_v1 = vpop.eup %6240 }
0x4728   :  { %v5298_v28 = vmul.f32 %v6241_v1, %v5296_v12  ;;  %v5309_v5 = vmul.f32 %v6241_v1, %v5307_v61  ;;  %v5301_v37 = vsub.f32 1.0, %v6241_v1 }
0x472a   :  { %v5299_v4 = vadd.f32 %v5298_v28, %v8002_v19 }
0x472c   :  { %6242 = vtanh.f32 %v5299_v4 }
0x4739   :  { %v6243_v34 = vpop.eup %6242 }
0x473a   :  { %5303 = vrot.lane.b32.xlu1 %v6243_v34, %s6370_s1 }
0x47ac   :  { %v5304_v60 = vpop.permute.xlu1 %5303 }
0x47ad   :  { %v5306_v63 = vmul.f32 %v5304_v60, %v5301_v37 }
0x47af   :  { %v5310_v56 = vadd.f32 %v5309_v5, %v5306_v63  ;;  %v8126_v5 = vadd.f32 %v8036_v27, %v7998_v9 }
0x47b1   :  { %v5312_v55 = vrot.slane %v5310_v56, 4  ;;  %v5411_v35 = vrot.slane %v5310_v56, 6 }
0x47b3   :  { %5313 = vrot.lane.b32.xlu0 %v5312_v55, %s6370_s1 }
0x4825   :  { %v8072_v25 = vpop.permute.xlu0 %5313 }
0x4826   :  { %5964 = vmatmul.mubr.msk.f32.vlgmr.msra.gmra.mxu0 %vm223_vm1, %v8072_v25 }
0x4827   :  { %5534 = vmatpush1.msra.mxu0 %v7896_v48  ;;  %5581 = vmatprep.mubr.f32.mxu0 %v6369_v0 }
0x4828   :  { %5535 = vmatprep.subr.mxu0 %v7902_v30 }
0x4829   :  { %5536 = vmatpush1.msra.mxu0 %v7907_v15 }
0x482a   :  { %5537 = vmatprep.subr.mxu0 %v7910_v53 }
0x482b   :  { %5538 = vmatpush1.msra.mxu0 %v7913_v58 }
0x482c   :  { %5539 = vmatprep.subr.mxu0 %v7916_v42 }
0x482d   :  { %5540 = vmatpush1.msra.mxu0 %v7919_v52 }
0x482e   :  { %5541 = vmatprep.subr.mxu0 %v7922_v23 }
0x482f   :  { %5542 = vmatpush1.msra.mxu0 %v7925_v11 }
0x4830   :  { %5543 = vmatprep.subr.mxu0 %v7928_v3 }
0x4831   :  { %5544 = vmatpush1.msra.mxu0 %v7931_v46 }
0x4832   :  { %5545 = vmatprep.subr.mxu0 %v7934_v31 }
0x4833   :  { %5546 = vmatpush1.msra.mxu0 %v7937_v36 }
0x4834   :  { %5547 = vmatprep.subr.mxu0 %v7940_v13 }
0x4835   :  { %5548 = vmatpush1.msra.mxu0 %v7943_v39 }
0x4836   :  { %5741 = vmatprep.subr.mxu0 %v7882_v59 }
0x48e6   :  { %v5383_v20 = vpop.f32.mrf.mxu0 }
0x48e7   :  { %v5389_v14 = vrot.slane %v5383_v20, 2 }
0x48e8   :  { %v5385_v22 = vpop.f32.mrf.mxu0 }
0x48e9   :  { %v5391_v21 = vadd.f32 %v5389_v14, %v7989_v49  ;;  %v5398_v26 = vadd.f32 %v7995_v45, %v5385_v22 }
0x48eb   :  { %v5965_v50 = vmul.f32 -1.442695, %v5391_v21  ;;  %v5400_v8 = vrot.slane %v5398_v26, 2 }
0x48ed   :  { %6244 = vpow2.f32 %v5965_v50 }
0x48fa   :  { %v6245_v10 = vpop.eup %6244 }
0x48fb   :  { %v5395_v24 = vadd.f32 1.0, %v6245_v10 }
0x48fd   :  { %6246 = vrcp.f32 %v5395_v24 }
0x490a   :  { %v6247_v44 = vpop.eup %6246 }
0x490b   :  { %v5402_v16 = vmul.f32 %v6247_v44, %v5400_v8  ;;  %v5413_v2 = vmul.f32 %v6247_v44, %v5411_v35  ;;  %v5405_v49 = vsub.f32 1.0, %v6247_v44 }
0x490d   :  { %v5403_v41 = vadd.f32 %v5402_v16, %v8002_v19  ;;  %v8120_v19 = vadd.f32 %v8034_v32, %v7986_v18 }
0x490f   :  { %6248 = vtanh.f32 %v5403_v41 }
0x491c   :  { %v6249_v59 = vpop.eup %6248 }
0x491d   :  { %5407 = vrot.lane.b32.xlu1 %v6249_v59, %s6370_s1 }
0x498f   :  { %v5408_v51 = vpop.permute.xlu1 %5407 }
0x4990   :  { %v5410_v29 = vmul.f32 %v5408_v51, %v5405_v49 }
0x4992   :  { %v5414_v38 = vadd.f32 %v5413_v2, %v5410_v29 }
0x4994   :  { %v8097_v47 = vrot.slane %v5414_v38, 6 }
0x4996   :  { %5417 = vrot.lane.b32.xlu0 %v8097_v47, %s6370_s1 }
0x4a08   :  { %v5418_v7 = vpop.permute.xlu0 %5417 }
0x4a09   :  { %5966 = vmatmul.mubr.msk.f32.vlgmr.msra.gmra.mxu1 %vm223_vm1, %v5418_v7 }
0x4a0a   :  { %5638 = vmatpush1.msra.mxu1 %v7896_v48  ;;  %5685 = vmatprep.mubr.f32.mxu1 %v6369_v0 }
0x4a0b   :  { %5639 = vmatprep.subr.mxu1 %v7902_v30 }
0x4a0c   :  { %5640 = vmatpush1.msra.mxu1 %v7907_v15 }
0x4a0d   :  { %5641 = vmatprep.subr.mxu1 %v7910_v53 }
0x4a0e   :  { %5642 = vmatpush1.msra.mxu1 %v7913_v58 }
0x4a0f   :  { %5643 = vmatprep.subr.mxu1 %v7916_v42 }
0x4a10   :  { %5644 = vmatpush1.msra.mxu1 %v7919_v52 }
0x4a11   :  { %5645 = vmatprep.subr.mxu1 %v7922_v23 }
0x4a12   :  { %5646 = vmatpush1.msra.mxu1 %v7925_v11 }
0x4a13   :  { %5647 = vmatprep.subr.mxu1 %v7928_v3 }
0x4a14   :  { %5648 = vmatpush1.msra.mxu1 %v7931_v46 }
0x4a15   :  { %5649 = vmatprep.subr.mxu1 %v7934_v31 }
0x4a16   :  { %5650 = vmatpush1.msra.mxu1 %v7937_v36 }
0x4a17   :  { %5651 = vmatprep.subr.mxu1 %v7940_v13 }
0x4a18   :  { %5652 = vmatpush1.msra.mxu1 %v7943_v39 }
0x4ac9   :  { %v5487_v6 = vpop.f32.mrf.mxu1 }
0x4aca   :  { %v5492_v40 = vadd.f32 %v5487_v6, %v8120_v19 }
0x4acb   :  { %v5489_v12 = vpop.f32.mrf.mxu1 }
0x4acc   :  { %v5967_v17 = vmul.f32 -1.442695, %v5492_v40  ;;  %v5499_v1 = vadd.f32 %v7995_v45, %v5489_v12 }
0x4ace   :  { %6250 = vpow2.f32 %v5967_v17 }
0x4adb   :  { %v6251_v54 = vpop.eup %6250 }
0x4adc   :  { %v5496_v61 = vadd.f32 1.0, %v6251_v54 }
0x4ade   :  { %6252 = vrcp.f32 %v5496_v61 }
0x4aeb   :  { %v6253_v28 = vpop.eup %6252 }
0x4aec   :  { %v5500_v4 = vmul.f32 %v6253_v28, %v5499_v1  ;;  %v5503_v34 = vsub.f32 1.0, %v6253_v28  ;;  %v5510_v60 = vmul.f32 %v6253_v28, %v8097_v47 }
0x4aee   :  { %v5501_v18 = vadd.f32 %v5500_v4, %v8126_v5 }
0x4af0   :  { %6254 = vtanh.f32 %v5501_v18 }
0x4afd   :  { %v6255_v32 = vpop.eup %6254 }
0x4afe   :  { %5505 = vrot.lane.b32.xlu1 %v6255_v32, %s6370_s1 }
0x4b70   :  { %v5506_v37 = vpop.permute.xlu1 %5505 }
0x4b71   :  { %v5508_v63 = vmul.f32 %v5506_v37, %v5503_v34 }
0x4b73   :  { %v5511_v56 = vadd.f32 %v5510_v60, %v5508_v63 }
0x4b75   :  { %5513 = vrot.lane.b32.xlu0 %v5511_v56, %s6370_s1 }
0x4be7   :  { %v8132_v55 = vpop.permute.xlu0 %5513 }
0x4be8   :  { %5968 = vmatmul.mubr.msk.f32.vlgmr.msra.gmra.mxu0 %vm223_vm1, %v8132_v55 }
0x4be9   :  { %5742 = vmatpush1.msra.mxu0 %v7896_v48  ;;  %5789 = vmatprep.mubr.f32.mxu0 %v6369_v0 }
0x4bea   :  { %5743 = vmatprep.subr.mxu0 %v7902_v30 }
0x4beb   :  { %5744 = vmatpush1.msra.mxu0 %v7907_v15 }
0x4bec   :  { %5745 = vmatprep.subr.mxu0 %v7910_v53 }
0x4bed   :  { %5746 = vmatpush1.msra.mxu0 %v7913_v58 }
0x4bee   :  { %5747 = vmatprep.subr.mxu0 %v7916_v42 }
0x4bef   :  { %5748 = vmatpush1.msra.mxu0 %v7919_v52 }
0x4bf0   :  { %5749 = vmatprep.subr.mxu0 %v7922_v23  ;;  %v5611_v23 = vrot.slane %v5511_v56, 6 }
0x4bf1   :  { %5750 = vmatpush1.msra.mxu0 %v7925_v11 }
0x4bf2   :  { %5751 = vmatprep.subr.mxu0 %v7928_v3 }
0x4bf3   :  { %5752 = vmatpush1.msra.mxu0 %v7931_v46 }
0x4bf4   :  { %5753 = vmatprep.subr.mxu0 %v7934_v31 }
0x4bf5   :  { %5754 = vmatpush1.msra.mxu0 %v7937_v36 }
0x4bf6   :  { %5755 = vmatprep.subr.mxu0 %v7940_v13 }
0x4bf7   :  { %5756 = vmatpush1.msra.mxu0 %v7943_v39 }
0x4ca8   :  { %v5583_v0 = vpop.f32.mrf.mxu0 }
0x4ca9   :  { %v5589_v48 = vrot.slane %v5583_v0, 6 }
0x4caa   :  { %v5585_v42 = vpop.f32.mrf.mxu0 }
0x4cab   :  { %v5591_v30 = vadd.f32 %v5589_v48, %v8120_v19  ;;  %v5598_v52 = vadd.f32 %v7995_v45, %v5585_v42 }
0x4cad   :  { %v5969_v15 = vmul.f32 -1.442695, %v5591_v30  ;;  %v5600_v11 = vrot.slane %v5598_v52, 6 }
0x4caf   :  { %6256 = vpow2.f32 %v5969_v15 }
0x4cbc   :  { %v6257_v53 = vpop.eup %6256 }
0x4cbd   :  { %v5595_v58 = vadd.f32 1.0, %v6257_v53 }
0x4cbf   :  { %6258 = vrcp.f32 %v5595_v58 }
0x4ccc   :  { %v6259_v3 = vpop.eup %6258 }
0x4ccd   :  { %v5602_v46 = vmul.f32 %v6259_v3, %v5600_v11  ;;  %v5613_v31 = vmul.f32 %v6259_v3, %v5611_v23  ;;  %v5605_v39 = vsub.f32 1.0, %v6259_v3 }
0x4ccf   :  { %v5603_v36 = vadd.f32 %v5602_v46, %v8126_v5 }
0x4cd1   :  { %6260 = vtanh.f32 %v5603_v36 }
0x4cde   :  { %v6261_v13 = vpop.eup %6260 }
0x4cdf   :  { %5607 = vrot.lane.b32.xlu1 %v6261_v13, %s6370_s1 }
0x4d51   :  { %v5608_v9 = vpop.permute.xlu1 %5607 }
0x4d52   :  { %v5610_v27 = vmul.f32 %v5608_v9, %v5605_v39 }
0x4d54   :  { %v8156_v20 = vadd.f32 %v5613_v31, %v5610_v27 }
0x4d56   :  { %v5616_v14 = vrot.slane %v8156_v20, 2  ;;  %v5715_v16 = vrot.slane %v8156_v20, 6 }
0x4d58   :  { %5617 = vrot.lane.b32.xlu0 %v5616_v14, %s6370_s1  ;;  %v5834_v31 = vsel %vm223_vm1, %v8132_v55, %v5616_v14 }
0x4dca   :  { %v5618_v21 = vpop.permute.xlu0 %5617 }
0x4dcb   :  { %5970 = vmatmul.mubr.msk.f32.vlgmr.msra.gmra.mxu1 %vm223_vm1, %v5618_v21 }
0x4e8b   :  { %v5687_v50 = vpop.f32.mrf.mxu1 }
0x4e8c   :  { %v5693_v10 = vrot.slane %v5687_v50, 4 }
0x4e8d   :  { %v5689_v8 = vpop.f32.mrf.mxu1 }
0x4e8e   :  { %v5695_v24 = vadd.f32 %v5693_v10, %v8120_v19  ;;  %v5702_v44 = vadd.f32 %v7995_v45, %v5689_v8 }
0x4e90   :  { %v5971_v22 = vmul.f32 -1.442695, %v5695_v24  ;;  %v5704_v2 = vrot.slane %v5702_v44, 4 }
0x4e92   :  { %6262 = vpow2.f32 %v5971_v22 }
0x4e9f   :  { %v6263_v26 = vpop.eup %6262 }
0x4ea0   :  { %v5699_v35 = vadd.f32 1.0, %v6263_v26 }
0x4ea2   :  { %6264 = vrcp.f32 %v5699_v35 }
0x4eaf   :  { %v6265_v41 = vpop.eup %6264 }
0x4eb0   :  { %v5706_v59 = vmul.f32 %v6265_v41, %v5704_v2  ;;  %v5717_v49 = vmul.f32 %v6265_v41, %v5715_v16  ;;  %v5709_v38 = vsub.f32 1.0, %v6265_v41 }
0x4eb2   :  { %v5707_v51 = vadd.f32 %v5706_v59, %v8126_v5 }
0x4eb4   :  { %6266 = vtanh.f32 %v5707_v51 }
0x4ec1   :  { %v6267_v29 = vpop.eup %6266 }
0x4ec2   :  { %5711 = vrot.lane.b32.xlu1 %v6267_v29, %s6370_s1 }
0x4f34   :  { %v5712_v7 = vpop.permute.xlu1 %5711 }
0x4f35   :  { %v5714_v6 = vmul.f32 %v5712_v7, %v5709_v38 }
0x4f37   :  { %v5718_v40 = vadd.f32 %v5717_v49, %v5714_v6 }
0x4f39   :  { %v5720_v17 = vrot.slane %v5718_v40, 4  ;;  %v5819_v37 = vrot.slane %v5718_v40, 6 }
0x4f3b   :  { %5721 = vrot.lane.b32.xlu0 %v5720_v17, %s6370_s1 }
0x4fad   :  { %v5722_v54 = vpop.permute.xlu0 %5721 }
0x4fae   :  { %5972 = vmatmul.mubr.msk.f32.vlgmr.msra.gmra.mxu0 %vm223_vm1, %v5722_v54 }
0x506e   :  { %v5791_v61 = vpop.f32.mrf.mxu0 }
0x506f   :  { %v5797_v12 = vrot.slane %v5791_v61, 2 }
0x5070   :  { %v5793_v32 = vpop.f32.mrf.mxu0 }
0x5071   :  { %v5799_v1 = vadd.f32 %v5797_v12, %v8120_v19  ;;  %v5806_v34 = vadd.f32 %v7995_v45, %v5793_v32  ;;  %v6371_v19 = vmov 1983009808   ;;  %v5833_v45 = vsel %vm223_vm1, %v8072_v25, %v8097_v47 }
0x5072   :  { %v5843_v15 = vunpack.c.l.s4 %v6371_v19 }
0x5073   :  { %v5973_v28 = vmul.f32 -1.442695, %v5799_v1  ;;  %v5808_v60 = vrot.slane %v5806_v34, 2 }
0x5074   :  { %v5844_v52 = vunpack.c.0.s8 %v5843_v15 }
0x5075   :  { %6268 = vpow2.f32 %v5973_v28 }
0x5076   :  { %v5847_v3 = vsub.s32 %v5844_v52, %v6586_v43 }
0x5082   :  { %v6269_v4 = vpop.eup %6268 }
0x5083   :  { %v5803_v18 = vadd.f32 1.0, %v6269_v4 }
0x5085   :  { %6270 = vrcp.f32 %v5803_v18 }
0x5092   :  { %v6271_v63 = vpop.eup %6270 }
0x5093   :  { %v5810_v56 = vmul.f32 %v6271_v63, %v5808_v60  ;;  %v5821_v0 = vmul.f32 %v6271_v63, %v5819_v37  ;;  %v5813_v53 = vsub.f32 1.0, %v6271_v63 }
0x5095   :  { %v5811_v48 = vadd.f32 %v5810_v56, %v8126_v5  ;;  %v5832_v5 = vsel %vm223_vm1, %v8013_v62, %v5208_v57 }
0x5096   :  { %v5840_v46 = vcombine.low %v5832_v5, %v5833_v45 }
0x5097   :  { %6272 = vtanh.f32 %v5811_v48 }
0x5098   :  { %v5848_v39 = vrot.slane %v5840_v46, %v5847_v3 }
0x50a4   :  { %v6273_v30 = vpop.eup %6272 }
0x50a5   :  { %5815 = vrot.lane.b32.xlu1 %v6273_v30, %s6370_s1 }
0x5117   :  { %v5816_v58 = vpop.permute.xlu1 %5815 }
0x5118   :  { %v5818_v42 = vmul.f32 %v5816_v58, %v5813_v53 }
0x511a   :  { %v5822_v23 = vadd.f32 %v5821_v0, %v5818_v42 }
0x511c   :  { %v5830_v11 = vrot.slane %v5822_v23, 6 }
0x511e   :  { %v5835_v36 = vsel %vm223_vm1, %v5722_v54, %v5830_v11 }
0x511f   :  { %v5841_v13 = vcombine.low %v5834_v31, %v5835_v36 }
0x5121   :  { %v5855_v25 = vrot.slane %v5841_v13, %v5847_v3 }
0x5123   :  { %v5856_v47 = vcombine.low %v5848_v39, %v5855_v25 }
0x5125   :  { %5858 = vst [vmem:[%s8196_s6] sm:$0xff] %v5856_v47 }
0x5126   :  { %5863 = vsyncpa [#allocation3], 1 }
0x5127   :  { %5864 = vsyncpa [#allocation5], 1 }
0x5128   :  { %5865 = vsyncpa [#allocation8], 1 }

</bundles_post_ra>
